<compile_context>
chip_gen: v7x
topology: tpu7x:2x2x1
jax: 0.10.0
libtpu: 0.0.40
codegen_flags: <defaults>
</compile_context>

<pallas_src>
import functools

import jax
import jax.numpy as jnp
from jax.experimental import pallas as pl
from jax.experimental.pallas import tpu as pltpu

EPS = 1e-5
RES_SCALE = 0.2
N_STAGES = 5                      # b1..b5 of a DenseResidualBlock


# ----------------------------------------------------------------------------
# Fused DenseResidualBlock kernel:
#   grid = (stage, batch); per step: folded-BN + ReLU -> one matmul -> 27-tap
#   roll/mask accumulation -> bias; stage outputs + batch stats kept in VMEM.
# ----------------------------------------------------------------------------
def _make_drb_kernel(N, F, F_pad, D, H, W):
    M = D * H * W
    HW = H * W
    inv_cnt = 1.0 / float(N * M)

    def kernel(xmean_ref, xvar_ref, gam_ref, bet_ref, w_ref, b_ref, coord_ref,
               x_ref, o_ref, a_ref, acts_ref, mean_ref, var_ref):
        s = pl.program_id(0)          # stage (outer, sequential)
        n = pl.program_id(1)          # batch (inner, sequential: stats carry)

        # ---- one-time init of the persistent scratch (first grid step) ----
        @pl.when(jnp.logical_and(s == 0, n == 0))
        def _():
            a_ref[...] = jnp.zeros_like(a_ref)
            acts_ref[...] = jnp.zeros_like(acts_ref)
            mean_ref[...] = jnp.zeros_like(mean_ref)
            var_ref[...] = jnp.zeros_like(var_ref)
            mean_ref[0] = xmean_ref[...]
            var_ref[0] = xvar_ref[...]

        # ---- stage start: exact two-pass batch stats of the previous stage ----
        for k in range(1, N_STAGES):
            @pl.when(jnp.logical_and(s == k, n == 0))
            def _(k=k):
                base = (k - 1) * N
                acc1 = jnp.zeros((F_pad, 1), jnp.float32)
                for b in range(N):
                    acc1 = acc1 + jnp.sum(acts_ref[base + b], axis=1, keepdims=True)
                mu = acc1 * inv_cnt
                acc2 = jnp.zeros((F_pad, 1), jnp.float32)
                for b in range(N):
                    c = acts_ref[base + b] - mu
                    acc2 = acc2 + jnp.sum(c * c, axis=1, keepdims=True)
                mean_ref[k] = mu
                var_ref[k] = acc2 * inv_cnt

        # ---- build A (Cin_pad, M): folded BN affine + ReLU per available chunk ----
        sc0 = gam_ref[0, 0:F_pad] * jax.lax.rsqrt(var_ref[0] + EPS)      # (F_pad, 1)
        sh0 = bet_ref[0, 0:F_pad] - mean_ref[0] * sc0
        a_ref[0:F, :] = jnp.maximum(x_ref[0] * sc0[0:F] + sh0[0:F], 0.0)

        for j in range(1, N_STAGES):
            @pl.when(s >= j)
            def _(j=j):
                raw = acts_ref[(j - 1) * N + n]                          # (F_pad, M)
                g = gam_ref[0, j * F_pad:(j + 1) * F_pad]
                bt = bet_ref[0, j * F_pad:(j + 1) * F_pad]
                scj = g * jax.lax.rsqrt(var_ref[j] + EPS)
                shj = bt - mean_ref[j] * scj
                a_ref[j * F_pad:(j + 1) * F_pad, :] = jnp.maximum(raw * scj + shj, 0.0)

        # ---- one matmul for all 27 taps:
        #      Z[t*F_pad + o, m] = sum_ci w_s[o, ci, t] * A[ci, m] ----
        z = jnp.dot(w_ref[0], a_ref[...], preferred_element_type=jnp.float32)

        # ---- output-stationary accumulation: lane roll (XLU) + boundary mask ----
        dpos = coord_ref[0:1, :]
        hpos = coord_ref[1:2, :]
        wpos = coord_ref[2:3, :]
        lo = [jnp.where(dpos >= 1.0, 1.0, 0.0),
              jnp.where(hpos >= 1.0, 1.0, 0.0),
              jnp.where(wpos >= 1.0, 1.0, 0.0)]
        hi = [jnp.where(dpos <= float(D - 2), 1.0, 0.0),
              jnp.where(hpos <= float(H - 2), 1.0, 0.0),
              jnp.where(wpos <= float(W - 2), 1.0, 0.0)]

        acc = jnp.zeros((F_pad, M), jnp.float32)
        for t in range(27):
            kd, kh, kw = t // 9, (t // 3) % 3, t % 3
            zt = z[t * F_pad:(t + 1) * F_pad, :]
            delta = (kd - 1) * HW + (kh - 1) * W + (kw - 1)
            shift = (-delta) % M
            if shift:
                zt = pltpu.roll(zt, shift, 1)       # rolled[p] = z[(p + delta) % M]
            parts = []
            for kk, ax in ((kd, 0), (kh, 1), (kw, 2)):
                if kk == 0:
                    parts.append(lo[ax])
                elif kk == 2:
                    parts.append(hi[ax])
            if parts:
                m_t = parts[0]
                for p in parts[1:]:
                    m_t = m_t * p
                acc = acc + m_t * zt
            else:                                   # center tap: always valid
                acc = acc + zt

        y = acc + b_ref[0]                          # (F_pad, M); pad rows stay 0

        # stash raw stage output for later stages' BN stats / dense concat
        acts_ref[s * N + n] = y

        # dense-block residual; only the last stage's write survives in HBM
        o_ref[0] = y[0:F, :] * RES_SCALE + x_ref[0]

    return kernel


# ----------------------------------------------------------------------------
# Host-side parameter packing (done once; constants under jit)
# ----------------------------------------------------------------------------
def _prepare_drb(block_params, F, D, H, W):
    """block_params: 5 tuples (gamma, beta, conv_w (Cout,Cin,3,3,3), conv_b)."""
    F_pad = ((F + 7) // 8) * 8
    S = len(block_params)
    assert S == N_STAGES
    CinP = S * F_pad
    M = D * H * W

    gam = jnp.zeros((S, CinP, 1), jnp.float32)
    bet = jnp.zeros((S, CinP, 1), jnp.float32)
    bias = jnp.zeros((S, F_pad, 1), jnp.float32)
    wstk = jnp.zeros((S, 27 * F_pad, CinP), jnp.float32)

    for s, (g, b, w, cb) in enumerate(block_params):
        nc = s + 1
        gpad = jnp.zeros((S, F_pad), jnp.float32).at[:nc, :F].set(g.reshape(nc, F))
        bpad = jnp.zeros((S, F_pad), jnp.float32).at[:nc, :F].set(b.reshape(nc, F))
        gam = gam.at[s, :, 0].set(gpad.reshape(CinP))
        bet = bet.at[s, :, 0].set(bpad.reshape(CinP))
        bias = bias.at[s, :F, 0].set(cb)
        # (Cout, nc*F, 3,3,3) -> rows t*F_pad+o, cols j*F_pad+c
        wr = w.reshape(F, nc, F, 27)                 # (o, j, c, t)
        wr = jnp.transpose(wr, (3, 0, 1, 2))         # (t, o, j, c)
        wr = jnp.pad(wr, ((0, 0), (0, F_pad - F), (0, S - nc), (0, F_pad - F)))
        wstk = wstk.at[s].set(wr.reshape(27 * F_pad, CinP))

    m = jnp.arange(M, dtype=jnp.int32)
    dpos = (m // (H * W)).astype(jnp.float32)
    hpos = ((m // W) % H).astype(jnp.float32)
    wpos = (m % W).astype(jnp.float32)
    coords = jnp.zeros((8, M), jnp.float32)
    coords = coords.at[0].set(dpos).at[1].set(hpos).at[2].set(wpos)

    return dict(F_pad=F_pad, gam=gam, bet=bet, bias=bias, wstk=wstk, coords=coords)


# ----------------------------------------------------------------------------
# DenseResidualBlock forward = one fused pallas_call
# ----------------------------------------------------------------------------
def dense_residual_block(x, prep, D, H, W):
    """x: (N, F, M) with M = D*H*W (multiple of 128)."""
    N, F, M = x.shape
    F_pad = prep["F_pad"]
    S = N_STAGES
    CinP = S * F_pad
    R = 27 * F_pad

    # Tiny JAX glue: channel stats of the block input (chunk 0).
    xmean = jnp.zeros((F_pad, 1), jnp.float32).at[:F, 0].set(jnp.mean(x, axis=(0, 2)))
    xvar = jnp.zeros((F_pad, 1), jnp.float32).at[:F, 0].set(jnp.var(x, axis=(0, 2)))

    kernel = _make_drb_kernel(N, F, F_pad, D, H, W)

    return pl.pallas_call(
        kernel,
        out_shape=jax.ShapeDtypeStruct((N, F, M), jnp.float32),
        grid=(S, N),
        in_specs=[
            pl.BlockSpec((F_pad, 1), lambda s, n: (0, 0)),          # x channel mean
            pl.BlockSpec((F_pad, 1), lambda s, n: (0, 0)),          # x channel var
            pl.BlockSpec((1, CinP, 1), lambda s, n: (s, 0, 0)),     # gamma (per stage)
            pl.BlockSpec((1, CinP, 1), lambda s, n: (s, 0, 0)),     # beta  (per stage)
            pl.BlockSpec((1, R, CinP), lambda s, n: (s, 0, 0)),     # stacked conv weights
            pl.BlockSpec((1, F_pad, 1), lambda s, n: (s, 0, 0)),    # conv bias
            pl.BlockSpec((8, M), lambda s, n: (0, 0)),              # voxel coords (d,h,w)
            pl.BlockSpec((1, F, M), lambda s, n: (n, 0, 0)),        # block input x
        ],
        out_specs=pl.BlockSpec((1, F, M), lambda s, n: (n, 0, 0)),
        scratch_shapes=[
            pltpu.VMEM((CinP, M), jnp.float32),                     # A: BN+ReLU'd chunks
            pltpu.VMEM((S * N, F_pad, M), jnp.float32),             # raw stage outputs
            pltpu.VMEM((S, F_pad, 1), jnp.float32),                 # per-chunk mean
            pltpu.VMEM((S, F_pad, 1), jnp.float32),                 # per-chunk var
        ],
        compiler_params=pltpu.CompilerParams(
            # Batch statistics + persistent scratch force sequential execution.
            dimension_semantics=("arbitrary", "arbitrary")),
    )(xmean, xvar, prep["gam"], prep["bet"], prep["wstk"], prep["bias"],
      prep["coords"], x)


def rrdb(x, preps, D, H, W):
    y = x
    for prep in preps:                              # 3 DenseResidualBlocks
        y = dense_residual_block(y, prep, D, H, W)
    return y * RES_SCALE + x


# ----------------------------------------------------------------------------
# Pure-JAX reference (NCDHW) for the self-check
# ----------------------------------------------------------------------------
def _ref_stage(inp, gamma, beta, w, b):
    mean = jnp.mean(inp, axis=(0, 2, 3, 4), keepdims=True)
    var = jnp.var(inp, axis=(0, 2, 3, 4), keepdims=True)
    g = gamma.reshape(1, -1, 1, 1, 1)
    bt = beta.reshape(1, -1, 1, 1, 1)
    a = jnp.maximum((inp - mean) / jnp.sqrt(var + EPS) * g + bt, 0.0)
    y = jax.lax.conv_general_dilated(
        a, w, window_strides=(1, 1, 1),
        padding=((1, 1), (1, 1), (1, 1)),
        dimension_numbers=("NCDHW", "OIDHW", "NCDHW"),
        precision=jax.lax.Precision.HIGHEST)
    return y + b.reshape(1, -1, 1, 1, 1)


def _ref_rrdb(x_ncdhw, params):
    def drb(xb, block_params):
        inputs = xb
        out = xb
        for (gamma, beta, w, b) in block_params:
            out = _ref_stage(inputs, gamma, beta, w, b)
            inputs = jnp.concatenate([inputs, out], axis=1)
        return out * RES_SCALE + xb

    y = x_ncdhw
    for bp in params:
        y = drb(y, bp)
    return y * RES_SCALE + x_ncdhw


# ----------------------------------------------------------------------------
# Deterministic synthetic parameter initialization (PyTorch layouts)
# ----------------------------------------------------------------------------
def init_params(key, filters):
    params = []
    for _ in range(3):              # 3 DenseResidualBlocks
        blocks = []
        for i in range(1, 6):       # b1..b5, in_features = i * filters
            cin = i * filters
            key, k1, k2, k3, k4 = jax.random.split(key, 5)
            gamma = 1.0 + 0.1 * jax.random.normal(k1, (cin,), jnp.float32)
            beta = 0.1 * jax.random.normal(k2, (cin,), jnp.float32)
            # PyTorch Conv3d weight layout: (Cout, Cin, kD, kH, kW)
            w = 0.05 * jax.random.normal(k3, (filters, cin, 3, 3, 3), jnp.float32)
            b = 0.05 * jax.random.normal(k4, (filters,), jnp.float32)
            blocks.append((gamma, beta, w, b))
        params.append(blocks)
    return params


if __name__ == "__main__":
    key = jax.random.PRNGKey(0)
    kx, kp = jax.random.split(key)

    N, F, D, H, W = 2, 4, 8, 8, 8
    M = D * H * W

    # PyTorch-convention input: NCDHW.
    x_ncdhw = jax.random.normal(kx, (N, F, D, H, W), jnp.float32)
    params = init_params(kp, F)
    preps = [_prepare_drb(bp, F, D, H, W) for bp in params]

    # Kernel layout: channels on sublanes, flattened spatial (D*H*W) on lanes.
    x = x_ncdhw.reshape(N, F, M)

    fwd = jax.jit(functools.partial(rrdb, preps=preps, D=D, H=H, W=W))
    out = jax.block_until_ready(fwd(x))

    # Correctness self-check against a pure-JAX reference of the same forward.
    ref = _ref_rrdb(x_ncdhw, params)
    out_ncdhw = out.reshape(N, F, D, H, W)
    assert out_ncdhw.shape == x_ncdhw.shape
    assert jnp.allclose(out_ncdhw, ref, atol=2e-2, rtol=2e-2), \
        "mismatch vs JAX reference"

    print("KERNEL_OK")
</pallas_src>

<mosaic_0001>
module attributes {stable_mosaic.version = 11 : i64} {
  func.func @kernel(%arg0: i32, %arg1: i32, %arg2: memref<8x1xf32, #tpu.memory_space<vmem>>, %arg3: memref<8x1xf32, #tpu.memory_space<vmem>>, %arg4: memref<1x40x1xf32, #tpu.memory_space<vmem>>, %arg5: memref<1x40x1xf32, #tpu.memory_space<vmem>>, %arg6: memref<1x216x40xf32, #tpu.memory_space<vmem>>, %arg7: memref<1x8x1xf32, #tpu.memory_space<vmem>>, %arg8: memref<8x512xf32, #tpu.memory_space<vmem>>, %arg9: memref<1x4x512xf32, #tpu.memory_space<vmem>>, %arg10: memref<1x4x512xf32, #tpu.memory_space<vmem>>, %arg11: memref<40x512xf32, #tpu.memory_space<vmem>>, %arg12: memref<10x8x512xf32, #tpu.memory_space<vmem>>, %arg13: memref<5x8x1xf32, #tpu.memory_space<vmem>>, %arg14: memref<5x8x1xf32, #tpu.memory_space<vmem>>) attributes {dimension_semantics = [#tpu.dimension_semantics<arbitrary>, #tpu.dimension_semantics<arbitrary>], iteration_bounds = array<i64: 5, 2>, scalar_prefetch = 0 : i64, scratch_operands = 4 : i64, tpu.core_type = #tpu.core_type<tc>, window_params = [{pipeline_mode = #tpu.pipeline_mode<synchronous>, transform_indices = @transform_0, window_bounds = array<i64: 8, 1>}, {pipeline_mode = #tpu.pipeline_mode<synchronous>, transform_indices = @transform_1, window_bounds = array<i64: 8, 1>}, {transform_indices = @transform_2, window_bounds = array<i64: 1, 40, 1>}, {transform_indices = @transform_3, window_bounds = array<i64: 1, 40, 1>}, {transform_indices = @transform_4, window_bounds = array<i64: 1, 216, 40>}, {transform_indices = @transform_5, window_bounds = array<i64: 1, 8, 1>}, {pipeline_mode = #tpu.pipeline_mode<synchronous>, transform_indices = @transform_6, window_bounds = array<i64: 8, 512>}, {transform_indices = @transform_7, window_bounds = array<i64: 1, 4, 512>}, {transform_indices = @transform_8, window_bounds = array<i64: 1, 4, 512>}]} {
    %c0_i32 = arith.constant 0 : i32
    %0 = arith.cmpi eq, %arg0, %c0_i32 : i32
    %c0_i32_0 = arith.constant 0 : i32
    %1 = arith.cmpi eq, %arg1, %c0_i32_0 : i32
    %2 = arith.andi %0, %1 : i1
    %3 = arith.extui %2 : i1 to i32
    %c0_i32_1 = arith.constant 0 : i32
    %4 = arith.cmpi ne, %3, %c0_i32_1 : i32
    scf.if %4 {
      %cst_78 = arith.constant 0.000000e+00 : f32
      %279 = vector.broadcast %cst_78 : f32 to vector<40x512xf32>
      %c0_79 = arith.constant 0 : index
      %c0_80 = arith.constant 0 : index
      %280 = vector.load %arg11[%c0_79, %c0_80] : memref<40x512xf32, #tpu.memory_space<vmem>>, vector<40x512xf32>
      tpu.vector_store %arg11[%c0_79, %c0_80], %279 {strides = array<i32>} : memref<40x512xf32, #tpu.memory_space<vmem>>, vector<40x512xf32>,
      %cst_81 = arith.constant 0.000000e+00 : f32
      %281 = vector.broadcast %cst_81 : f32 to vector<10x8x512xf32>
      %c0_82 = arith.constant 0 : index
      %c0_83 = arith.constant 0 : index
      %c0_84 = arith.constant 0 : index
      %282 = vector.load %arg12[%c0_82, %c0_83, %c0_84] : memref<10x8x512xf32, #tpu.memory_space<vmem>>, vector<10x8x512xf32>
      tpu.vector_store %arg12[%c0_82, %c0_83, %c0_84], %281 {strides = array<i32>} : memref<10x8x512xf32, #tpu.memory_space<vmem>>, vector<10x8x512xf32>,
      %cst_85 = arith.constant 0.000000e+00 : f32
      %283 = vector.broadcast %cst_85 : f32 to vector<5x8x1xf32>
      %c0_86 = arith.constant 0 : index
      %c0_87 = arith.constant 0 : index
      %c0_88 = arith.constant 0 : index
      %284 = vector.load %arg13[%c0_86, %c0_87, %c0_88] : memref<5x8x1xf32, #tpu.memory_space<vmem>>, vector<5x8x1xf32>
      tpu.vector_store %arg13[%c0_86, %c0_87, %c0_88], %283 {strides = array<i32>} : memref<5x8x1xf32, #tpu.memory_space<vmem>>, vector<5x8x1xf32>,
      %cst_89 = arith.constant 0.000000e+00 : f32
      %285 = vector.broadcast %cst_89 : f32 to vector<5x8x1xf32>
      %c0_90 = arith.constant 0 : index
      %c0_91 = arith.constant 0 : index
      %c0_92 = arith.constant 0 : index
      %286 = vector.load %arg14[%c0_90, %c0_91, %c0_92] : memref<5x8x1xf32, #tpu.memory_space<vmem>>, vector<5x8x1xf32>
      tpu.vector_store %arg14[%c0_90, %c0_91, %c0_92], %285 {strides = array<i32>} : memref<5x8x1xf32, #tpu.memory_space<vmem>>, vector<5x8x1xf32>,
      %c0_93 = arith.constant 0 : index
      %c0_94 = arith.constant 0 : index
      %287 = vector.load %arg2[%c0_93, %c0_94] : memref<8x1xf32, #tpu.memory_space<vmem>>, vector<8x1xf32>
      %c0_95 = arith.constant 0 : index
      %c0_96 = arith.constant 0 : index
      %c0_97 = arith.constant 0 : index
      %288 = vector.load %arg13[%c0_95, %c0_96, %c0_97] : memref<5x8x1xf32, #tpu.memory_space<vmem>>, vector<1x8x1xf32>
      %289 = vector.shape_cast %288 : vector<1x8x1xf32> to vector<8x1xf32>
      %290 = vector.shape_cast %287 : vector<8x1xf32> to vector<1x8x1xf32>
      tpu.vector_store %arg13[%c0_95, %c0_96, %c0_97], %290 {strides = array<i32>} : memref<5x8x1xf32, #tpu.memory_space<vmem>>, vector<1x8x1xf32>,
      %c0_98 = arith.constant 0 : index
      %c0_99 = arith.constant 0 : index
      %291 = vector.load %arg3[%c0_98, %c0_99] : memref<8x1xf32, #tpu.memory_space<vmem>>, vector<8x1xf32>
      %c0_100 = arith.constant 0 : index
      %c0_101 = arith.constant 0 : index
      %c0_102 = arith.constant 0 : index
      %292 = vector.load %arg14[%c0_100, %c0_101, %c0_102] : memref<5x8x1xf32, #tpu.memory_space<vmem>>, vector<1x8x1xf32>
      %293 = vector.shape_cast %292 : vector<1x8x1xf32> to vector<8x1xf32>
      %294 = vector.shape_cast %291 : vector<8x1xf32> to vector<1x8x1xf32>
      tpu.vector_store %arg14[%c0_100, %c0_101, %c0_102], %294 {strides = array<i32>} : memref<5x8x1xf32, #tpu.memory_space<vmem>>, vector<1x8x1xf32>,
    } else {
    }
    %c1_i32 = arith.constant 1 : i32
    %5 = arith.cmpi eq, %arg0, %c1_i32 : i32
    %c0_i32_2 = arith.constant 0 : i32
    %6 = arith.cmpi eq, %arg1, %c0_i32_2 : i32
    %7 = arith.andi %5, %6 : i1
    %8 = arith.extui %7 : i1 to i32
    %c0_i32_3 = arith.constant 0 : i32
    %9 = arith.cmpi ne, %8, %c0_i32_3 : i32
    scf.if %9 {
      %cst_78 = arith.constant 0.000000e+00 : f32
      %279 = vector.broadcast %cst_78 : f32 to vector<8x1xf32>
      %c0_79 = arith.constant 0 : index
      %c0_80 = arith.constant 0 : index
      %c0_81 = arith.constant 0 : index
      %280 = vector.load %arg12[%c0_79, %c0_80, %c0_81] : memref<10x8x512xf32, #tpu.memory_space<vmem>>, vector<1x8x512xf32>
      %281 = vector.shape_cast %280 : vector<1x8x512xf32> to vector<8x512xf32>
      %cst_82 = arith.constant dense<0.000000e+00> : vector<8xf32>
      %282 = vector.multi_reduction <add>, %281, %cst_82 [1] : vector<8x512xf32> to vector<8xf32>
      %283 = vector.shape_cast %282 : vector<8xf32> to vector<8x1xf32>
      %284 = arith.addf %279, %283 : vector<8x1xf32>
      %c1_83 = arith.constant 1 : index
      %c0_84 = arith.constant 0 : index
      %c0_85 = arith.constant 0 : index
      %285 = vector.load %arg12[%c1_83, %c0_84, %c0_85] : memref<10x8x512xf32, #tpu.memory_space<vmem>>, vector<1x8x512xf32>
      %286 = vector.shape_cast %285 : vector<1x8x512xf32> to vector<8x512xf32>
      %cst_86 = arith.constant dense<0.000000e+00> : vector<8xf32>
      %287 = vector.multi_reduction <add>, %286, %cst_86 [1] : vector<8x512xf32> to vector<8xf32>
      %288 = vector.shape_cast %287 : vector<8xf32> to vector<8x1xf32>
      %289 = arith.addf %284, %288 : vector<8x1xf32>
      %cst_87 = arith.constant 9.765625E-4 : f32
      %290 = vector.broadcast %cst_87 : f32 to vector<8x1xf32>
      %291 = arith.mulf %289, %290 : vector<8x1xf32>
      %cst_88 = arith.constant 0.000000e+00 : f32
      %292 = vector.broadcast %cst_88 : f32 to vector<8x1xf32>
      %c0_89 = arith.constant 0 : index
      %c0_90 = arith.constant 0 : index
      %c0_91 = arith.constant 0 : index
      %293 = vector.load %arg12[%c0_89, %c0_90, %c0_91] : memref<10x8x512xf32, #tpu.memory_space<vmem>>, vector<1x8x512xf32>
      %294 = vector.shape_cast %293 : vector<1x8x512xf32> to vector<8x512xf32>
      %295 = vector.broadcast %291 : vector<8x1xf32> to vector<8x512xf32>
      %296 = arith.subf %294, %295 : vector<8x512xf32>
      %297 = arith.mulf %296, %296 : vector<8x512xf32>
      %cst_92 = arith.constant dense<0.000000e+00> : vector<8xf32>
      %298 = vector.multi_reduction <add>, %297, %cst_92 [1] : vector<8x512xf32> to vector<8xf32>
      %299 = vector.shape_cast %298 : vector<8xf32> to vector<8x1xf32>
      %300 = arith.addf %292, %299 : vector<8x1xf32>
      %c1_93 = arith.constant 1 : index
      %c0_94 = arith.constant 0 : index
      %c0_95 = arith.constant 0 : index
      %301 = vector.load %arg12[%c1_93, %c0_94, %c0_95] : memref<10x8x512xf32, #tpu.memory_space<vmem>>, vector<1x8x512xf32>
      %302 = vector.shape_cast %301 : vector<1x8x512xf32> to vector<8x512xf32>
      %303 = vector.broadcast %291 : vector<8x1xf32> to vector<8x512xf32>
      %304 = arith.subf %302, %303 : vector<8x512xf32>
      %305 = arith.mulf %304, %304 : vector<8x512xf32>
      %cst_96 = arith.constant dense<0.000000e+00> : vector<8xf32>
      %306 = vector.multi_reduction <add>, %305, %cst_96 [1] : vector<8x512xf32> to vector<8xf32>
      %307 = vector.shape_cast %306 : vector<8xf32> to vector<8x1xf32>
      %308 = arith.addf %300, %307 : vector<8x1xf32>
      %c1_97 = arith.constant 1 : index
      %c0_98 = arith.constant 0 : index
      %c0_99 = arith.constant 0 : index
      %309 = vector.load %arg13[%c1_97, %c0_98, %c0_99] : memref<5x8x1xf32, #tpu.memory_space<vmem>>, vector<1x8x1xf32>
      %310 = vector.shape_cast %309 : vector<1x8x1xf32> to vector<8x1xf32>
      %311 = vector.shape_cast %291 : vector<8x1xf32> to vector<1x8x1xf32>
      tpu.vector_store %arg13[%c1_97, %c0_98, %c0_99], %311 {strides = array<i32>} : memref<5x8x1xf32, #tpu.memory_space<vmem>>, vector<1x8x1xf32>,
      %cst_100 = arith.constant 9.765625E-4 : f32
      %312 = vector.broadcast %cst_100 : f32 to vector<8x1xf32>
      %313 = arith.mulf %308, %312 : vector<8x1xf32>
      %c1_101 = arith.constant 1 : index
      %c0_102 = arith.constant 0 : index
      %c0_103 = arith.constant 0 : index
      %314 = vector.load %arg14[%c1_101, %c0_102, %c0_103] : memref<5x8x1xf32, #tpu.memory_space<vmem>>, vector<1x8x1xf32>
      %315 = vector.shape_cast %314 : vector<1x8x1xf32> to vector<8x1xf32>
      %316 = vector.shape_cast %313 : vector<8x1xf32> to vector<1x8x1xf32>
      tpu.vector_store %arg14[%c1_101, %c0_102, %c0_103], %316 {strides = array<i32>} : memref<5x8x1xf32, #tpu.memory_space<vmem>>, vector<1x8x1xf32>,
    } else {
    }
    %c2_i32 = arith.constant 2 : i32
    %10 = arith.cmpi eq, %arg0, %c2_i32 : i32
    %c0_i32_4 = arith.constant 0 : i32
    %11 = arith.cmpi eq, %arg1, %c0_i32_4 : i32
    %12 = arith.andi %10, %11 : i1
    %13 = arith.extui %12 : i1 to i32
    %c0_i32_5 = arith.constant 0 : i32
    %14 = arith.cmpi ne, %13, %c0_i32_5 : i32
    scf.if %14 {
      %cst_78 = arith.constant 0.000000e+00 : f32
      %279 = vector.broadcast %cst_78 : f32 to vector<8x1xf32>
      %c2_79 = arith.constant 2 : index
      %c0_80 = arith.constant 0 : index
      %c0_81 = arith.constant 0 : index
      %280 = vector.load %arg12[%c2_79, %c0_80, %c0_81] : memref<10x8x512xf32, #tpu.memory_space<vmem>>, vector<1x8x512xf32>
      %281 = vector.shape_cast %280 : vector<1x8x512xf32> to vector<8x512xf32>
      %cst_82 = arith.constant dense<0.000000e+00> : vector<8xf32>
      %282 = vector.multi_reduction <add>, %281, %cst_82 [1] : vector<8x512xf32> to vector<8xf32>
      %283 = vector.shape_cast %282 : vector<8xf32> to vector<8x1xf32>
      %284 = arith.addf %279, %283 : vector<8x1xf32>
      %c3 = arith.constant 3 : index
      %c0_83 = arith.constant 0 : index
      %c0_84 = arith.constant 0 : index
      %285 = vector.load %arg12[%c3, %c0_83, %c0_84] : memref<10x8x512xf32, #tpu.memory_space<vmem>>, vector<1x8x512xf32>
      %286 = vector.shape_cast %285 : vector<1x8x512xf32> to vector<8x512xf32>
      %cst_85 = arith.constant dense<0.000000e+00> : vector<8xf32>
      %287 = vector.multi_reduction <add>, %286, %cst_85 [1] : vector<8x512xf32> to vector<8xf32>
      %288 = vector.shape_cast %287 : vector<8xf32> to vector<8x1xf32>
      %289 = arith.addf %284, %288 : vector<8x1xf32>
      %cst_86 = arith.constant 9.765625E-4 : f32
      %290 = vector.broadcast %cst_86 : f32 to vector<8x1xf32>
      %291 = arith.mulf %289, %290 : vector<8x1xf32>
      %cst_87 = arith.constant 0.000000e+00 : f32
      %292 = vector.broadcast %cst_87 : f32 to vector<8x1xf32>
      %c2_88 = arith.constant 2 : index
      %c0_89 = arith.constant 0 : index
      %c0_90 = arith.constant 0 : index
      %293 = vector.load %arg12[%c2_88, %c0_89, %c0_90] : memref<10x8x512xf32, #tpu.memory_space<vmem>>, vector<1x8x512xf32>
      %294 = vector.shape_cast %293 : vector<1x8x512xf32> to vector<8x512xf32>
      %295 = vector.broadcast %291 : vector<8x1xf32> to vector<8x512xf32>
      %296 = arith.subf %294, %295 : vector<8x512xf32>
      %297 = arith.mulf %296, %296 : vector<8x512xf32>
      %cst_91 = arith.constant dense<0.000000e+00> : vector<8xf32>
      %298 = vector.multi_reduction <add>, %297, %cst_91 [1] : vector<8x512xf32> to vector<8xf32>
      %299 = vector.shape_cast %298 : vector<8xf32> to vector<8x1xf32>
      %300 = arith.addf %292, %299 : vector<8x1xf32>
      %c3_92 = arith.constant 3 : index
      %c0_93 = arith.constant 0 : index
      %c0_94 = arith.constant 0 : index
      %301 = vector.load %arg12[%c3_92, %c0_93, %c0_94] : memref<10x8x512xf32, #tpu.memory_space<vmem>>, vector<1x8x512xf32>
      %302 = vector.shape_cast %301 : vector<1x8x512xf32> to vector<8x512xf32>
      %303 = vector.broadcast %291 : vector<8x1xf32> to vector<8x512xf32>
      %304 = arith.subf %302, %303 : vector<8x512xf32>
      %305 = arith.mulf %304, %304 : vector<8x512xf32>
      %cst_95 = arith.constant dense<0.000000e+00> : vector<8xf32>
      %306 = vector.multi_reduction <add>, %305, %cst_95 [1] : vector<8x512xf32> to vector<8xf32>
      %307 = vector.shape_cast %306 : vector<8xf32> to vector<8x1xf32>
      %308 = arith.addf %300, %307 : vector<8x1xf32>
      %c2_96 = arith.constant 2 : index
      %c0_97 = arith.constant 0 : index
      %c0_98 = arith.constant 0 : index
      %309 = vector.load %arg13[%c2_96, %c0_97, %c0_98] : memref<5x8x1xf32, #tpu.memory_space<vmem>>, vector<1x8x1xf32>
      %310 = vector.shape_cast %309 : vector<1x8x1xf32> to vector<8x1xf32>
      %311 = vector.shape_cast %291 : vector<8x1xf32> to vector<1x8x1xf32>
      tpu.vector_store %arg13[%c2_96, %c0_97, %c0_98], %311 {strides = array<i32>} : memref<5x8x1xf32, #tpu.memory_space<vmem>>, vector<1x8x1xf32>,
      %cst_99 = arith.constant 9.765625E-4 : f32
      %312 = vector.broadcast %cst_99 : f32 to vector<8x1xf32>
      %313 = arith.mulf %308, %312 : vector<8x1xf32>
      %c2_100 = arith.constant 2 : index
      %c0_101 = arith.constant 0 : index
      %c0_102 = arith.constant 0 : index
      %314 = vector.load %arg14[%c2_100, %c0_101, %c0_102] : memref<5x8x1xf32, #tpu.memory_space<vmem>>, vector<1x8x1xf32>
      %315 = vector.shape_cast %314 : vector<1x8x1xf32> to vector<8x1xf32>
      %316 = vector.shape_cast %313 : vector<8x1xf32> to vector<1x8x1xf32>
      tpu.vector_store %arg14[%c2_100, %c0_101, %c0_102], %316 {strides = array<i32>} : memref<5x8x1xf32, #tpu.memory_space<vmem>>, vector<1x8x1xf32>,
    } else {
    }
    %c3_i32 = arith.constant 3 : i32
    %15 = arith.cmpi eq, %arg0, %c3_i32 : i32
    %c0_i32_6 = arith.constant 0 : i32
    %16 = arith.cmpi eq, %arg1, %c0_i32_6 : i32
    %17 = arith.andi %15, %16 : i1
    %18 = arith.extui %17 : i1 to i32
    %c0_i32_7 = arith.constant 0 : i32
    %19 = arith.cmpi ne, %18, %c0_i32_7 : i32
    scf.if %19 {
      %cst_78 = arith.constant 0.000000e+00 : f32
      %279 = vector.broadcast %cst_78 : f32 to vector<8x1xf32>
      %c4 = arith.constant 4 : index
      %c0_79 = arith.constant 0 : index
      %c0_80 = arith.constant 0 : index
      %280 = vector.load %arg12[%c4, %c0_79, %c0_80] : memref<10x8x512xf32, #tpu.memory_space<vmem>>, vector<1x8x512xf32>
      %281 = vector.shape_cast %280 : vector<1x8x512xf32> to vector<8x512xf32>
      %cst_81 = arith.constant dense<0.000000e+00> : vector<8xf32>
      %282 = vector.multi_reduction <add>, %281, %cst_81 [1] : vector<8x512xf32> to vector<8xf32>
      %283 = vector.shape_cast %282 : vector<8xf32> to vector<8x1xf32>
      %284 = arith.addf %279, %283 : vector<8x1xf32>
      %c5 = arith.constant 5 : index
      %c0_82 = arith.constant 0 : index
      %c0_83 = arith.constant 0 : index
      %285 = vector.load %arg12[%c5, %c0_82, %c0_83] : memref<10x8x512xf32, #tpu.memory_space<vmem>>, vector<1x8x512xf32>
      %286 = vector.shape_cast %285 : vector<1x8x512xf32> to vector<8x512xf32>
      %cst_84 = arith.constant dense<0.000000e+00> : vector<8xf32>
      %287 = vector.multi_reduction <add>, %286, %cst_84 [1] : vector<8x512xf32> to vector<8xf32>
      %288 = vector.shape_cast %287 : vector<8xf32> to vector<8x1xf32>
      %289 = arith.addf %284, %288 : vector<8x1xf32>
      %cst_85 = arith.constant 9.765625E-4 : f32
      %290 = vector.broadcast %cst_85 : f32 to vector<8x1xf32>
      %291 = arith.mulf %289, %290 : vector<8x1xf32>
      %cst_86 = arith.constant 0.000000e+00 : f32
      %292 = vector.broadcast %cst_86 : f32 to vector<8x1xf32>
      %c4_87 = arith.constant 4 : index
      %c0_88 = arith.constant 0 : index
      %c0_89 = arith.constant 0 : index
      %293 = vector.load %arg12[%c4_87, %c0_88, %c0_89] : memref<10x8x512xf32, #tpu.memory_space<vmem>>, vector<1x8x512xf32>
      %294 = vector.shape_cast %293 : vector<1x8x512xf32> to vector<8x512xf32>
      %295 = vector.broadcast %291 : vector<8x1xf32> to vector<8x512xf32>
      %296 = arith.subf %294, %295 : vector<8x512xf32>
      %297 = arith.mulf %296, %296 : vector<8x512xf32>
      %cst_90 = arith.constant dense<0.000000e+00> : vector<8xf32>
      %298 = vector.multi_reduction <add>, %297, %cst_90 [1] : vector<8x512xf32> to vector<8xf32>
      %299 = vector.shape_cast %298 : vector<8xf32> to vector<8x1xf32>
      %300 = arith.addf %292, %299 : vector<8x1xf32>
      %c5_91 = arith.constant 5 : index
      %c0_92 = arith.constant 0 : index
      %c0_93 = arith.constant 0 : index
      %301 = vector.load %arg12[%c5_91, %c0_92, %c0_93] : memref<10x8x512xf32, #tpu.memory_space<vmem>>, vector<1x8x512xf32>
      %302 = vector.shape_cast %301 : vector<1x8x512xf32> to vector<8x512xf32>
      %303 = vector.broadcast %291 : vector<8x1xf32> to vector<8x512xf32>
      %304 = arith.subf %302, %303 : vector<8x512xf32>
      %305 = arith.mulf %304, %304 : vector<8x512xf32>
      %cst_94 = arith.constant dense<0.000000e+00> : vector<8xf32>
      %306 = vector.multi_reduction <add>, %305, %cst_94 [1] : vector<8x512xf32> to vector<8xf32>
      %307 = vector.shape_cast %306 : vector<8xf32> to vector<8x1xf32>
      %308 = arith.addf %300, %307 : vector<8x1xf32>
      %c3 = arith.constant 3 : index
      %c0_95 = arith.constant 0 : index
      %c0_96 = arith.constant 0 : index
      %309 = vector.load %arg13[%c3, %c0_95, %c0_96] : memref<5x8x1xf32, #tpu.memory_space<vmem>>, vector<1x8x1xf32>
      %310 = vector.shape_cast %309 : vector<1x8x1xf32> to vector<8x1xf32>
      %311 = vector.shape_cast %291 : vector<8x1xf32> to vector<1x8x1xf32>
      tpu.vector_store %arg13[%c3, %c0_95, %c0_96], %311 {strides = array<i32>} : memref<5x8x1xf32, #tpu.memory_space<vmem>>, vector<1x8x1xf32>,
      %cst_97 = arith.constant 9.765625E-4 : f32
      %312 = vector.broadcast %cst_97 : f32 to vector<8x1xf32>
      %313 = arith.mulf %308, %312 : vector<8x1xf32>
      %c3_98 = arith.constant 3 : index
      %c0_99 = arith.constant 0 : index
      %c0_100 = arith.constant 0 : index
      %314 = vector.load %arg14[%c3_98, %c0_99, %c0_100] : memref<5x8x1xf32, #tpu.memory_space<vmem>>, vector<1x8x1xf32>
      %315 = vector.shape_cast %314 : vector<1x8x1xf32> to vector<8x1xf32>
      %316 = vector.shape_cast %313 : vector<8x1xf32> to vector<1x8x1xf32>
      tpu.vector_store %arg14[%c3_98, %c0_99, %c0_100], %316 {strides = array<i32>} : memref<5x8x1xf32, #tpu.memory_space<vmem>>, vector<1x8x1xf32>,
    } else {
    }
    %c4_i32 = arith.constant 4 : i32
    %20 = arith.cmpi eq, %arg0, %c4_i32 : i32
    %c0_i32_8 = arith.constant 0 : i32
    %21 = arith.cmpi eq, %arg1, %c0_i32_8 : i32
    %22 = arith.andi %20, %21 : i1
    %23 = arith.extui %22 : i1 to i32
    %c0_i32_9 = arith.constant 0 : i32
    %24 = arith.cmpi ne, %23, %c0_i32_9 : i32
    scf.if %24 {
      %cst_78 = arith.constant 0.000000e+00 : f32
      %279 = vector.broadcast %cst_78 : f32 to vector<8x1xf32>
      %c6 = arith.constant 6 : index
      %c0_79 = arith.constant 0 : index
      %c0_80 = arith.constant 0 : index
      %280 = vector.load %arg12[%c6, %c0_79, %c0_80] : memref<10x8x512xf32, #tpu.memory_space<vmem>>, vector<1x8x512xf32>
      %281 = vector.shape_cast %280 : vector<1x8x512xf32> to vector<8x512xf32>
      %cst_81 = arith.constant dense<0.000000e+00> : vector<8xf32>
      %282 = vector.multi_reduction <add>, %281, %cst_81 [1] : vector<8x512xf32> to vector<8xf32>
      %283 = vector.shape_cast %282 : vector<8xf32> to vector<8x1xf32>
      %284 = arith.addf %279, %283 : vector<8x1xf32>
      %c7 = arith.constant 7 : index
      %c0_82 = arith.constant 0 : index
      %c0_83 = arith.constant 0 : index
      %285 = vector.load %arg12[%c7, %c0_82, %c0_83] : memref<10x8x512xf32, #tpu.memory_space<vmem>>, vector<1x8x512xf32>
      %286 = vector.shape_cast %285 : vector<1x8x512xf32> to vector<8x512xf32>
      %cst_84 = arith.constant dense<0.000000e+00> : vector<8xf32>
      %287 = vector.multi_reduction <add>, %286, %cst_84 [1] : vector<8x512xf32> to vector<8xf32>
      %288 = vector.shape_cast %287 : vector<8xf32> to vector<8x1xf32>
      %289 = arith.addf %284, %288 : vector<8x1xf32>
      %cst_85 = arith.constant 9.765625E-4 : f32
      %290 = vector.broadcast %cst_85 : f32 to vector<8x1xf32>
      %291 = arith.mulf %289, %290 : vector<8x1xf32>
      %cst_86 = arith.constant 0.000000e+00 : f32
      %292 = vector.broadcast %cst_86 : f32 to vector<8x1xf32>
      %c6_87 = arith.constant 6 : index
      %c0_88 = arith.constant 0 : index
      %c0_89 = arith.constant 0 : index
      %293 = vector.load %arg12[%c6_87, %c0_88, %c0_89] : memref<10x8x512xf32, #tpu.memory_space<vmem>>, vector<1x8x512xf32>
      %294 = vector.shape_cast %293 : vector<1x8x512xf32> to vector<8x512xf32>
      %295 = vector.broadcast %291 : vector<8x1xf32> to vector<8x512xf32>
      %296 = arith.subf %294, %295 : vector<8x512xf32>
      %297 = arith.mulf %296, %296 : vector<8x512xf32>
      %cst_90 = arith.constant dense<0.000000e+00> : vector<8xf32>
      %298 = vector.multi_reduction <add>, %297, %cst_90 [1] : vector<8x512xf32> to vector<8xf32>
      %299 = vector.shape_cast %298 : vector<8xf32> to vector<8x1xf32>
      %300 = arith.addf %292, %299 : vector<8x1xf32>
      %c7_91 = arith.constant 7 : index
      %c0_92 = arith.constant 0 : index
      %c0_93 = arith.constant 0 : index
      %301 = vector.load %arg12[%c7_91, %c0_92, %c0_93] : memref<10x8x512xf32, #tpu.memory_space<vmem>>, vector<1x8x512xf32>
      %302 = vector.shape_cast %301 : vector<1x8x512xf32> to vector<8x512xf32>
      %303 = vector.broadcast %291 : vector<8x1xf32> to vector<8x512xf32>
      %304 = arith.subf %302, %303 : vector<8x512xf32>
      %305 = arith.mulf %304, %304 : vector<8x512xf32>
      %cst_94 = arith.constant dense<0.000000e+00> : vector<8xf32>
      %306 = vector.multi_reduction <add>, %305, %cst_94 [1] : vector<8x512xf32> to vector<8xf32>
      %307 = vector.shape_cast %306 : vector<8xf32> to vector<8x1xf32>
      %308 = arith.addf %300, %307 : vector<8x1xf32>
      %c4 = arith.constant 4 : index
      %c0_95 = arith.constant 0 : index
      %c0_96 = arith.constant 0 : index
      %309 = vector.load %arg13[%c4, %c0_95, %c0_96] : memref<5x8x1xf32, #tpu.memory_space<vmem>>, vector<1x8x1xf32>
      %310 = vector.shape_cast %309 : vector<1x8x1xf32> to vector<8x1xf32>
      %311 = vector.shape_cast %291 : vector<8x1xf32> to vector<1x8x1xf32>
      tpu.vector_store %arg13[%c4, %c0_95, %c0_96], %311 {strides = array<i32>} : memref<5x8x1xf32, #tpu.memory_space<vmem>>, vector<1x8x1xf32>,
      %cst_97 = arith.constant 9.765625E-4 : f32
      %312 = vector.broadcast %cst_97 : f32 to vector<8x1xf32>
      %313 = arith.mulf %308, %312 : vector<8x1xf32>
      %c4_98 = arith.constant 4 : index
      %c0_99 = arith.constant 0 : index
      %c0_100 = arith.constant 0 : index
      %314 = vector.load %arg14[%c4_98, %c0_99, %c0_100] : memref<5x8x1xf32, #tpu.memory_space<vmem>>, vector<1x8x1xf32>
      %315 = vector.shape_cast %314 : vector<1x8x1xf32> to vector<8x1xf32>
      %316 = vector.shape_cast %313 : vector<8x1xf32> to vector<1x8x1xf32>
      tpu.vector_store %arg14[%c4_98, %c0_99, %c0_100], %316 {strides = array<i32>} : memref<5x8x1xf32, #tpu.memory_space<vmem>>, vector<1x8x1xf32>,
    } else {
    }
    %c0 = arith.constant 0 : index
    %c0_10 = arith.constant 0 : index
    %c0_11 = arith.constant 0 : index
    %25 = vector.load %arg4[%c0, %c0_10, %c0_11] : memref<1x40x1xf32, #tpu.memory_space<vmem>>, vector<1x8x1xf32>
    %26 = vector.shape_cast %25 : vector<1x8x1xf32> to vector<8x1xf32>
    %c0_12 = arith.constant 0 : index
    %c0_13 = arith.constant 0 : index
    %c0_14 = arith.constant 0 : index
    %27 = vector.load %arg14[%c0_12, %c0_13, %c0_14] : memref<5x8x1xf32, #tpu.memory_space<vmem>>, vector<1x8x1xf32>
    %28 = vector.shape_cast %27 : vector<1x8x1xf32> to vector<8x1xf32>
    %cst = arith.constant 9.99999974E-6 : f32
    %29 = vector.broadcast %cst : f32 to vector<8x1xf32>
    %30 = arith.addf %28, %29 : vector<8x1xf32>
    %31 = math.rsqrt %30 : vector<8x1xf32>
    %32 = arith.mulf %26, %31 : vector<8x1xf32>
    %c0_15 = arith.constant 0 : index
    %c0_16 = arith.constant 0 : index
    %c0_17 = arith.constant 0 : index
    %33 = vector.load %arg5[%c0_15, %c0_16, %c0_17] : memref<1x40x1xf32, #tpu.memory_space<vmem>>, vector<1x8x1xf32>
    %34 = vector.shape_cast %33 : vector<1x8x1xf32> to vector<8x1xf32>
    %c0_18 = arith.constant 0 : index
    %c0_19 = arith.constant 0 : index
    %c0_20 = arith.constant 0 : index
    %35 = vector.load %arg13[%c0_18, %c0_19, %c0_20] : memref<5x8x1xf32, #tpu.memory_space<vmem>>, vector<1x8x1xf32>
    %36 = vector.shape_cast %35 : vector<1x8x1xf32> to vector<8x1xf32>
    %37 = arith.mulf %36, %32 : vector<8x1xf32>
    %38 = arith.subf %34, %37 : vector<8x1xf32>
    %c0_21 = arith.constant 0 : index
    %c0_22 = arith.constant 0 : index
    %c0_23 = arith.constant 0 : index
    %39 = vector.load %arg9[%c0_21, %c0_22, %c0_23] : memref<1x4x512xf32, #tpu.memory_space<vmem>>, vector<1x4x512xf32>
    %40 = vector.shape_cast %39 : vector<1x4x512xf32> to vector<4x512xf32>
    %41 = vector.extract_strided_slice %32 {offsets = [0, 0], sizes = [4, 1], strides = [1, 1]} : vector<8x1xf32> to vector<4x1xf32>
    %42 = vector.broadcast %41 : vector<4x1xf32> to vector<4x512xf32>
    %43 = arith.mulf %40, %42 : vector<4x512xf32>
    %44 = vector.extract_strided_slice %38 {offsets = [0, 0], sizes = [4, 1], strides = [1, 1]} : vector<8x1xf32> to vector<4x1xf32>
    %45 = vector.broadcast %44 : vector<4x1xf32> to vector<4x512xf32>
    %46 = arith.addf %43, %45 : vector<4x512xf32>
    %cst_24 = arith.constant 0.000000e+00 : f32
    %47 = vector.broadcast %cst_24 : f32 to vector<4x512xf32>
    %48 = arith.maximumf %46, %47 : vector<4x512xf32>
    %c0_25 = arith.constant 0 : index
    %c0_26 = arith.constant 0 : index
    %49 = vector.load %arg11[%c0_25, %c0_26] : memref<40x512xf32, #tpu.memory_space<vmem>>, vector<4x512xf32>
    tpu.vector_store %arg11[%c0_25, %c0_26], %48 {strides = array<i32>} : memref<40x512xf32, #tpu.memory_space<vmem>>, vector<4x512xf32>,
    %c1_i32_27 = arith.constant 1 : i32
    %50 = arith.cmpi sge, %arg0, %c1_i32_27 : i32
    %51 = arith.extui %50 : i1 to i32
    %c0_i32_28 = arith.constant 0 : i32
    %52 = arith.cmpi ne, %51, %c0_i32_28 : i32
    scf.if %52 {
      %c0_i32_78 = arith.constant 0 : i32
      %279 = arith.addi %c0_i32_78, %arg1 : i32
      %280 = arith.index_cast %279 : i32 to index
      %c0_79 = arith.constant 0 : index
      %c0_80 = arith.constant 0 : index
      %281 = vector.load %arg12[%280, %c0_79, %c0_80] : memref<10x8x512xf32, #tpu.memory_space<vmem>>, vector<1x8x512xf32>
      %282 = vector.shape_cast %281 : vector<1x8x512xf32> to vector<8x512xf32>
      %c0_81 = arith.constant 0 : index
      %c8 = arith.constant 8 : index
      %c0_82 = arith.constant 0 : index
      %283 = vector.load %arg4[%c0_81, %c8, %c0_82] : memref<1x40x1xf32, #tpu.memory_space<vmem>>, vector<1x8x1xf32>
      %284 = vector.shape_cast %283 : vector<1x8x1xf32> to vector<8x1xf32>
      %c0_83 = arith.constant 0 : index
      %c8_84 = arith.constant 8 : index
      %c0_85 = arith.constant 0 : index
      %285 = vector.load %arg5[%c0_83, %c8_84, %c0_85] : memref<1x40x1xf32, #tpu.memory_space<vmem>>, vector<1x8x1xf32>
      %286 = vector.shape_cast %285 : vector<1x8x1xf32> to vector<8x1xf32>
      %c1_86 = arith.constant 1 : index
      %c0_87 = arith.constant 0 : index
      %c0_88 = arith.constant 0 : index
      %287 = vector.load %arg14[%c1_86, %c0_87, %c0_88] : memref<5x8x1xf32, #tpu.memory_space<vmem>>, vector<1x8x1xf32>
      %288 = vector.shape_cast %287 : vector<1x8x1xf32> to vector<8x1xf32>
      %cst_89 = arith.constant 9.99999974E-6 : f32
      %289 = vector.broadcast %cst_89 : f32 to vector<8x1xf32>
      %290 = arith.addf %288, %289 : vector<8x1xf32>
      %291 = math.rsqrt %290 : vector<8x1xf32>
      %292 = arith.mulf %284, %291 : vector<8x1xf32>
      %c1_90 = arith.constant 1 : index
      %c0_91 = arith.constant 0 : index
      %c0_92 = arith.constant 0 : index
      %293 = vector.load %arg13[%c1_90, %c0_91, %c0_92] : memref<5x8x1xf32, #tpu.memory_space<vmem>>, vector<1x8x1xf32>
      %294 = vector.shape_cast %293 : vector<1x8x1xf32> to vector<8x1xf32>
      %295 = arith.mulf %294, %292 : vector<8x1xf32>
      %296 = arith.subf %286, %295 : vector<8x1xf32>
      %297 = vector.broadcast %292 : vector<8x1xf32> to vector<8x512xf32>
      %298 = arith.mulf %282, %297 : vector<8x512xf32>
      %299 = vector.broadcast %296 : vector<8x1xf32> to vector<8x512xf32>
      %300 = arith.addf %298, %299 : vector<8x512xf32>
      %cst_93 = arith.constant 0.000000e+00 : f32
      %301 = vector.broadcast %cst_93 : f32 to vector<8x512xf32>
      %302 = arith.maximumf %300, %301 : vector<8x512xf32>
      %c8_94 = arith.constant 8 : index
      %c0_95 = arith.constant 0 : index
      %303 = vector.load %arg11[%c8_94, %c0_95] : memref<40x512xf32, #tpu.memory_space<vmem>>, vector<8x512xf32>
      tpu.vector_store %arg11[%c8_94, %c0_95], %302 {strides = array<i32>} : memref<40x512xf32, #tpu.memory_space<vmem>>, vector<8x512xf32>,
    } else {
    }
    %c2_i32_29 = arith.constant 2 : i32
    %53 = arith.cmpi sge, %arg0, %c2_i32_29 : i32
    %54 = arith.extui %53 : i1 to i32
    %c0_i32_30 = arith.constant 0 : i32
    %55 = arith.cmpi ne, %54, %c0_i32_30 : i32
    scf.if %55 {
      %c2_i32_78 = arith.constant 2 : i32
      %279 = arith.addi %c2_i32_78, %arg1 : i32
      %280 = arith.index_cast %279 : i32 to index
      %c0_79 = arith.constant 0 : index
      %c0_80 = arith.constant 0 : index
      %281 = vector.load %arg12[%280, %c0_79, %c0_80] : memref<10x8x512xf32, #tpu.memory_space<vmem>>, vector<1x8x512xf32>
      %282 = vector.shape_cast %281 : vector<1x8x512xf32> to vector<8x512xf32>
      %c0_81 = arith.constant 0 : index
      %c16 = arith.constant 16 : index
      %c0_82 = arith.constant 0 : index
      %283 = vector.load %arg4[%c0_81, %c16, %c0_82] : memref<1x40x1xf32, #tpu.memory_space<vmem>>, vector<1x8x1xf32>
      %284 = vector.shape_cast %283 : vector<1x8x1xf32> to vector<8x1xf32>
      %c0_83 = arith.constant 0 : index
      %c16_84 = arith.constant 16 : index
      %c0_85 = arith.constant 0 : index
      %285 = vector.load %arg5[%c0_83, %c16_84, %c0_85] : memref<1x40x1xf32, #tpu.memory_space<vmem>>, vector<1x8x1xf32>
      %286 = vector.shape_cast %285 : vector<1x8x1xf32> to vector<8x1xf32>
      %c2_86 = arith.constant 2 : index
      %c0_87 = arith.constant 0 : index
      %c0_88 = arith.constant 0 : index
      %287 = vector.load %arg14[%c2_86, %c0_87, %c0_88] : memref<5x8x1xf32, #tpu.memory_space<vmem>>, vector<1x8x1xf32>
      %288 = vector.shape_cast %287 : vector<1x8x1xf32> to vector<8x1xf32>
      %cst_89 = arith.constant 9.99999974E-6 : f32
      %289 = vector.broadcast %cst_89 : f32 to vector<8x1xf32>
      %290 = arith.addf %288, %289 : vector<8x1xf32>
      %291 = math.rsqrt %290 : vector<8x1xf32>
      %292 = arith.mulf %284, %291 : vector<8x1xf32>
      %c2_90 = arith.constant 2 : index
      %c0_91 = arith.constant 0 : index
      %c0_92 = arith.constant 0 : index
      %293 = vector.load %arg13[%c2_90, %c0_91, %c0_92] : memref<5x8x1xf32, #tpu.memory_space<vmem>>, vector<1x8x1xf32>
      %294 = vector.shape_cast %293 : vector<1x8x1xf32> to vector<8x1xf32>
      %295 = arith.mulf %294, %292 : vector<8x1xf32>
      %296 = arith.subf %286, %295 : vector<8x1xf32>
      %297 = vector.broadcast %292 : vector<8x1xf32> to vector<8x512xf32>
      %298 = arith.mulf %282, %297 : vector<8x512xf32>
      %299 = vector.broadcast %296 : vector<8x1xf32> to vector<8x512xf32>
      %300 = arith.addf %298, %299 : vector<8x512xf32>
      %cst_93 = arith.constant 0.000000e+00 : f32
      %301 = vector.broadcast %cst_93 : f32 to vector<8x512xf32>
      %302 = arith.maximumf %300, %301 : vector<8x512xf32>
      %c16_94 = arith.constant 16 : index
      %c0_95 = arith.constant 0 : index
      %303 = vector.load %arg11[%c16_94, %c0_95] : memref<40x512xf32, #tpu.memory_space<vmem>>, vector<8x512xf32>
      tpu.vector_store %arg11[%c16_94, %c0_95], %302 {strides = array<i32>} : memref<40x512xf32, #tpu.memory_space<vmem>>, vector<8x512xf32>,
    } else {
    }
    %c3_i32_31 = arith.constant 3 : i32
    %56 = arith.cmpi sge, %arg0, %c3_i32_31 : i32
    %57 = arith.extui %56 : i1 to i32
    %c0_i32_32 = arith.constant 0 : i32
    %58 = arith.cmpi ne, %57, %c0_i32_32 : i32
    scf.if %58 {
      %c4_i32_78 = arith.constant 4 : i32
      %279 = arith.addi %c4_i32_78, %arg1 : i32
      %280 = arith.index_cast %279 : i32 to index
      %c0_79 = arith.constant 0 : index
      %c0_80 = arith.constant 0 : index
      %281 = vector.load %arg12[%280, %c0_79, %c0_80] : memref<10x8x512xf32, #tpu.memory_space<vmem>>, vector<1x8x512xf32>
      %282 = vector.shape_cast %281 : vector<1x8x512xf32> to vector<8x512xf32>
      %c0_81 = arith.constant 0 : index
      %c24 = arith.constant 24 : index
      %c0_82 = arith.constant 0 : index
      %283 = vector.load %arg4[%c0_81, %c24, %c0_82] : memref<1x40x1xf32, #tpu.memory_space<vmem>>, vector<1x8x1xf32>
      %284 = vector.shape_cast %283 : vector<1x8x1xf32> to vector<8x1xf32>
      %c0_83 = arith.constant 0 : index
      %c24_84 = arith.constant 24 : index
      %c0_85 = arith.constant 0 : index
      %285 = vector.load %arg5[%c0_83, %c24_84, %c0_85] : memref<1x40x1xf32, #tpu.memory_space<vmem>>, vector<1x8x1xf32>
      %286 = vector.shape_cast %285 : vector<1x8x1xf32> to vector<8x1xf32>
      %c3 = arith.constant 3 : index
      %c0_86 = arith.constant 0 : index
      %c0_87 = arith.constant 0 : index
      %287 = vector.load %arg14[%c3, %c0_86, %c0_87] : memref<5x8x1xf32, #tpu.memory_space<vmem>>, vector<1x8x1xf32>
      %288 = vector.shape_cast %287 : vector<1x8x1xf32> to vector<8x1xf32>
      %cst_88 = arith.constant 9.99999974E-6 : f32
      %289 = vector.broadcast %cst_88 : f32 to vector<8x1xf32>
      %290 = arith.addf %288, %289 : vector<8x1xf32>
      %291 = math.rsqrt %290 : vector<8x1xf32>
      %292 = arith.mulf %284, %291 : vector<8x1xf32>
      %c3_89 = arith.constant 3 : index
      %c0_90 = arith.constant 0 : index
      %c0_91 = arith.constant 0 : index
      %293 = vector.load %arg13[%c3_89, %c0_90, %c0_91] : memref<5x8x1xf32, #tpu.memory_space<vmem>>, vector<1x8x1xf32>
      %294 = vector.shape_cast %293 : vector<1x8x1xf32> to vector<8x1xf32>
      %295 = arith.mulf %294, %292 : vector<8x1xf32>
      %296 = arith.subf %286, %295 : vector<8x1xf32>
      %297 = vector.broadcast %292 : vector<8x1xf32> to vector<8x512xf32>
      %298 = arith.mulf %282, %297 : vector<8x512xf32>
      %299 = vector.broadcast %296 : vector<8x1xf32> to vector<8x512xf32>
      %300 = arith.addf %298, %299 : vector<8x512xf32>
      %cst_92 = arith.constant 0.000000e+00 : f32
      %301 = vector.broadcast %cst_92 : f32 to vector<8x512xf32>
      %302 = arith.maximumf %300, %301 : vector<8x512xf32>
      %c24_93 = arith.constant 24 : index
      %c0_94 = arith.constant 0 : index
      %303 = vector.load %arg11[%c24_93, %c0_94] : memref<40x512xf32, #tpu.memory_space<vmem>>, vector<8x512xf32>
      tpu.vector_store %arg11[%c24_93, %c0_94], %302 {strides = array<i32>} : memref<40x512xf32, #tpu.memory_space<vmem>>, vector<8x512xf32>,
    } else {
    }
    %c4_i32_33 = arith.constant 4 : i32
    %59 = arith.cmpi sge, %arg0, %c4_i32_33 : i32
    %60 = arith.extui %59 : i1 to i32
    %c0_i32_34 = arith.constant 0 : i32
    %61 = arith.cmpi ne, %60, %c0_i32_34 : i32
    scf.if %61 {
      %c6_i32 = arith.constant 6 : i32
      %279 = arith.addi %c6_i32, %arg1 : i32
      %280 = arith.index_cast %279 : i32 to index
      %c0_78 = arith.constant 0 : index
      %c0_79 = arith.constant 0 : index
      %281 = vector.load %arg12[%280, %c0_78, %c0_79] : memref<10x8x512xf32, #tpu.memory_space<vmem>>, vector<1x8x512xf32>
      %282 = vector.shape_cast %281 : vector<1x8x512xf32> to vector<8x512xf32>
      %c0_80 = arith.constant 0 : index
      %c32 = arith.constant 32 : index
      %c0_81 = arith.constant 0 : index
      %283 = vector.load %arg4[%c0_80, %c32, %c0_81] : memref<1x40x1xf32, #tpu.memory_space<vmem>>, vector<1x8x1xf32>
      %284 = vector.shape_cast %283 : vector<1x8x1xf32> to vector<8x1xf32>
      %c0_82 = arith.constant 0 : index
      %c32_83 = arith.constant 32 : index
      %c0_84 = arith.constant 0 : index
      %285 = vector.load %arg5[%c0_82, %c32_83, %c0_84] : memref<1x40x1xf32, #tpu.memory_space<vmem>>, vector<1x8x1xf32>
      %286 = vector.shape_cast %285 : vector<1x8x1xf32> to vector<8x1xf32>
      %c4 = arith.constant 4 : index
      %c0_85 = arith.constant 0 : index
      %c0_86 = arith.constant 0 : index
      %287 = vector.load %arg14[%c4, %c0_85, %c0_86] : memref<5x8x1xf32, #tpu.memory_space<vmem>>, vector<1x8x1xf32>
      %288 = vector.shape_cast %287 : vector<1x8x1xf32> to vector<8x1xf32>
      %cst_87 = arith.constant 9.99999974E-6 : f32
      %289 = vector.broadcast %cst_87 : f32 to vector<8x1xf32>
      %290 = arith.addf %288, %289 : vector<8x1xf32>
      %291 = math.rsqrt %290 : vector<8x1xf32>
      %292 = arith.mulf %284, %291 : vector<8x1xf32>
      %c4_88 = arith.constant 4 : index
      %c0_89 = arith.constant 0 : index
      %c0_90 = arith.constant 0 : index
      %293 = vector.load %arg13[%c4_88, %c0_89, %c0_90] : memref<5x8x1xf32, #tpu.memory_space<vmem>>, vector<1x8x1xf32>
      %294 = vector.shape_cast %293 : vector<1x8x1xf32> to vector<8x1xf32>
      %295 = arith.mulf %294, %292 : vector<8x1xf32>
      %296 = arith.subf %286, %295 : vector<8x1xf32>
      %297 = vector.broadcast %292 : vector<8x1xf32> to vector<8x512xf32>
      %298 = arith.mulf %282, %297 : vector<8x512xf32>
      %299 = vector.broadcast %296 : vector<8x1xf32> to vector<8x512xf32>
      %300 = arith.addf %298, %299 : vector<8x512xf32>
      %cst_91 = arith.constant 0.000000e+00 : f32
      %301 = vector.broadcast %cst_91 : f32 to vector<8x512xf32>
      %302 = arith.maximumf %300, %301 : vector<8x512xf32>
      %c32_92 = arith.constant 32 : index
      %c0_93 = arith.constant 0 : index
      %303 = vector.load %arg11[%c32_92, %c0_93] : memref<40x512xf32, #tpu.memory_space<vmem>>, vector<8x512xf32>
      tpu.vector_store %arg11[%c32_92, %c0_93], %302 {strides = array<i32>} : memref<40x512xf32, #tpu.memory_space<vmem>>, vector<8x512xf32>,
    } else {
    }
    %c0_35 = arith.constant 0 : index
    %c0_36 = arith.constant 0 : index
    %c0_37 = arith.constant 0 : index
    %62 = vector.load %arg6[%c0_35, %c0_36, %c0_37] : memref<1x216x40xf32, #tpu.memory_space<vmem>>, vector<1x216x40xf32>
    %63 = vector.shape_cast %62 : vector<1x216x40xf32> to vector<216x40xf32>
    %c0_38 = arith.constant 0 : index
    %c0_39 = arith.constant 0 : index
    %64 = vector.load %arg11[%c0_38, %c0_39] : memref<40x512xf32, #tpu.memory_space<vmem>>, vector<40x512xf32>
    %cst_40 = arith.constant dense<0.000000e+00> : vector<216x512xf32>
    %65 = tpu.matmul %63, %64, %cst_40 {dimension_numbers = #tpu.dot_dimension_numbers<[1], [0], [0], [1], [0, 0, 1, 1], [], []>} : vector<216x40xf32>, vector<40x512xf32>, vector<216x512xf32> -> vector<216x512xf32>
    %c0_41 = arith.constant 0 : index
    %c0_42 = arith.constant 0 : index
    %66 = vector.load %arg8[%c0_41, %c0_42] : memref<8x512xf32, #tpu.memory_space<vmem>>, vector<1x512xf32>
    %c1 = arith.constant 1 : index
    %c0_43 = arith.constant 0 : index
    %67 = vector.load %arg8[%c1, %c0_43] : memref<8x512xf32, #tpu.memory_space<vmem>>, vector<1x512xf32>
    %c2 = arith.constant 2 : index
    %c0_44 = arith.constant 0 : index
    %68 = vector.load %arg8[%c2, %c0_44] : memref<8x512xf32, #tpu.memory_space<vmem>>, vector<1x512xf32>
    %cst_45 = arith.constant 1.000000e+00 : f32
    %69 = vector.broadcast %cst_45 : f32 to vector<1x512xf32>
    %70 = arith.cmpf oge, %66, %69 : vector<1x512xf32>
    %cst_46 = arith.constant 1.000000e+00 : f32
    %cst_47 = arith.constant 0.000000e+00 : f32
    %71 = vector.broadcast %cst_46 : f32 to vector<1x512xf32>
    %72 = vector.broadcast %cst_47 : f32 to vector<1x512xf32>
    %73 = arith.select %70, %71, %72 : vector<1x512xi1>, vector<1x512xf32>
    %cst_48 = arith.constant 1.000000e+00 : f32
    %74 = vector.broadcast %cst_48 : f32 to vector<1x512xf32>
    %75 = arith.cmpf oge, %67, %74 : vector<1x512xf32>
    %cst_49 = arith.constant 1.000000e+00 : f32
    %cst_50 = arith.constant 0.000000e+00 : f32
    %76 = vector.broadcast %cst_49 : f32 to vector<1x512xf32>
    %77 = vector.broadcast %cst_50 : f32 to vector<1x512xf32>
    %78 = arith.select %75, %76, %77 : vector<1x512xi1>, vector<1x512xf32>
    %cst_51 = arith.constant 1.000000e+00 : f32
    %79 = vector.broadcast %cst_51 : f32 to vector<1x512xf32>
    %80 = arith.cmpf oge, %68, %79 : vector<1x512xf32>
    %cst_52 = arith.constant 1.000000e+00 : f32
    %cst_53 = arith.constant 0.000000e+00 : f32
    %81 = vector.broadcast %cst_52 : f32 to vector<1x512xf32>
    %82 = vector.broadcast %cst_53 : f32 to vector<1x512xf32>
    %83 = arith.select %80, %81, %82 : vector<1x512xi1>, vector<1x512xf32>
    %cst_54 = arith.constant 6.000000e+00 : f32
    %84 = vector.broadcast %cst_54 : f32 to vector<1x512xf32>
    %85 = arith.cmpf ole, %66, %84 : vector<1x512xf32>
    %cst_55 = arith.constant 1.000000e+00 : f32
    %cst_56 = arith.constant 0.000000e+00 : f32
    %86 = vector.broadcast %cst_55 : f32 to vector<1x512xf32>
    %87 = vector.broadcast %cst_56 : f32 to vector<1x512xf32>
    %88 = arith.select %85, %86, %87 : vector<1x512xi1>, vector<1x512xf32>
    %cst_57 = arith.constant 6.000000e+00 : f32
    %89 = vector.broadcast %cst_57 : f32 to vector<1x512xf32>
    %90 = arith.cmpf ole, %67, %89 : vector<1x512xf32>
    %cst_58 = arith.constant 1.000000e+00 : f32
    %cst_59 = arith.constant 0.000000e+00 : f32
    %91 = vector.broadcast %cst_58 : f32 to vector<1x512xf32>
    %92 = vector.broadcast %cst_59 : f32 to vector<1x512xf32>
    %93 = arith.select %90, %91, %92 : vector<1x512xi1>, vector<1x512xf32>
    %cst_60 = arith.constant 6.000000e+00 : f32
    %94 = vector.broadcast %cst_60 : f32 to vector<1x512xf32>
    %95 = arith.cmpf ole, %68, %94 : vector<1x512xf32>
    %cst_61 = arith.constant 1.000000e+00 : f32
    %cst_62 = arith.constant 0.000000e+00 : f32
    %96 = vector.broadcast %cst_61 : f32 to vector<1x512xf32>
    %97 = vector.broadcast %cst_62 : f32 to vector<1x512xf32>
    %98 = arith.select %95, %96, %97 : vector<1x512xi1>, vector<1x512xf32>
    %cst_63 = arith.constant 0.000000e+00 : f32
    %99 = vector.broadcast %cst_63 : f32 to vector<8x512xf32>
    %100 = vector.extract_strided_slice %65 {offsets = [0, 0], sizes = [8, 512], strides = [1, 1]} : vector<216x512xf32> to vector<8x512xf32>
    %c73_i32 = arith.constant 73 : i32
    %101 = tpu.dynamic_rotate %100 by %c73_i32 dim 1 : vector<8x512xf32>, i32 -> vector<8x512xf32>
    %102 = arith.mulf %73, %78 : vector<1x512xf32>
    %103 = arith.mulf %102, %83 : vector<1x512xf32>
    %104 = vector.broadcast %103 : vector<1x512xf32> to vector<8x512xf32>
    %105 = arith.mulf %104, %101 : vector<8x512xf32>
    %106 = arith.addf %99, %105 : vector<8x512xf32>
    %107 = vector.extract_strided_slice %65 {offsets = [8, 0], sizes = [8, 512], strides = [1, 1]} : vector<216x512xf32> to vector<8x512xf32>
    %c72_i32 = arith.constant 72 : i32
    %108 = tpu.dynamic_rotate %107 by %c72_i32 dim 1 : vector<8x512xf32>, i32 -> vector<8x512xf32>
    %109 = arith.mulf %73, %78 : vector<1x512xf32>
    %110 = vector.broadcast %109 : vector<1x512xf32> to vector<8x512xf32>
    %111 = arith.mulf %110, %108 : vector<8x512xf32>
    %112 = arith.addf %106, %111 : vector<8x512xf32>
    %113 = vector.extract_strided_slice %65 {offsets = [16, 0], sizes = [8, 512], strides = [1, 1]} : vector<216x512xf32> to vector<8x512xf32>
    %c71_i32 = arith.constant 71 : i32
    %114 = tpu.dynamic_rotate %113 by %c71_i32 dim 1 : vector<8x512xf32>, i32 -> vector<8x512xf32>
    %115 = arith.mulf %73, %78 : vector<1x512xf32>
    %116 = arith.mulf %115, %98 : vector<1x512xf32>
    %117 = vector.broadcast %116 : vector<1x512xf32> to vector<8x512xf32>
    %118 = arith.mulf %117, %114 : vector<8x512xf32>
    %119 = arith.addf %112, %118 : vector<8x512xf32>
    %120 = vector.extract_strided_slice %65 {offsets = [24, 0], sizes = [8, 512], strides = [1, 1]} : vector<216x512xf32> to vector<8x512xf32>
    %c65_i32 = arith.constant 65 : i32
    %121 = tpu.dynamic_rotate %120 by %c65_i32 dim 1 : vector<8x512xf32>, i32 -> vector<8x512xf32>
    %122 = arith.mulf %73, %83 : vector<1x512xf32>
    %123 = vector.broadcast %122 : vector<1x512xf32> to vector<8x512xf32>
    %124 = arith.mulf %123, %121 : vector<8x512xf32>
    %125 = arith.addf %119, %124 : vector<8x512xf32>
    %126 = vector.extract_strided_slice %65 {offsets = [32, 0], sizes = [8, 512], strides = [1, 1]} : vector<216x512xf32> to vector<8x512xf32>
    %c64_i32 = arith.constant 64 : i32
    %127 = tpu.dynamic_rotate %126 by %c64_i32 dim 1 : vector<8x512xf32>, i32 -> vector<8x512xf32>
    %128 = vector.broadcast %73 : vector<1x512xf32> to vector<8x512xf32>
    %129 = arith.mulf %128, %127 : vector<8x512xf32>
    %130 = arith.addf %125, %129 : vector<8x512xf32>
    %131 = vector.extract_strided_slice %65 {offsets = [40, 0], sizes = [8, 512], strides = [1, 1]} : vector<216x512xf32> to vector<8x512xf32>
    %c63_i32 = arith.constant 63 : i32
    %132 = tpu.dynamic_rotate %131 by %c63_i32 dim 1 : vector<8x512xf32>, i32 -> vector<8x512xf32>
    %133 = arith.mulf %73, %98 : vector<1x512xf32>
    %134 = vector.broadcast %133 : vector<1x512xf32> to vector<8x512xf32>
    %135 = arith.mulf %134, %132 : vector<8x512xf32>
    %136 = arith.addf %130, %135 : vector<8x512xf32>
    %137 = vector.extract_strided_slice %65 {offsets = [48, 0], sizes = [8, 512], strides = [1, 1]} : vector<216x512xf32> to vector<8x512xf32>
    %c57_i32 = arith.constant 57 : i32
    %138 = tpu.dynamic_rotate %137 by %c57_i32 dim 1 : vector<8x512xf32>, i32 -> vector<8x512xf32>
    %139 = arith.mulf %73, %93 : vector<1x512xf32>
    %140 = arith.mulf %139, %83 : vector<1x512xf32>
    %141 = vector.broadcast %140 : vector<1x512xf32> to vector<8x512xf32>
    %142 = arith.mulf %141, %138 : vector<8x512xf32>
    %143 = arith.addf %136, %142 : vector<8x512xf32>
    %144 = vector.extract_strided_slice %65 {offsets = [56, 0], sizes = [8, 512], strides = [1, 1]} : vector<216x512xf32> to vector<8x512xf32>
    %c56_i32 = arith.constant 56 : i32
    %145 = tpu.dynamic_rotate %144 by %c56_i32 dim 1 : vector<8x512xf32>, i32 -> vector<8x512xf32>
    %146 = arith.mulf %73, %93 : vector<1x512xf32>
    %147 = vector.broadcast %146 : vector<1x512xf32> to vector<8x512xf32>
    %148 = arith.mulf %147, %145 : vector<8x512xf32>
    %149 = arith.addf %143, %148 : vector<8x512xf32>
    %150 = vector.extract_strided_slice %65 {offsets = [64, 0], sizes = [8, 512], strides = [1, 1]} : vector<216x512xf32> to vector<8x512xf32>
    %c55_i32 = arith.constant 55 : i32
    %151 = tpu.dynamic_rotate %150 by %c55_i32 dim 1 : vector<8x512xf32>, i32 -> vector<8x512xf32>
    %152 = arith.mulf %73, %93 : vector<1x512xf32>
    %153 = arith.mulf %152, %98 : vector<1x512xf32>
    %154 = vector.broadcast %153 : vector<1x512xf32> to vector<8x512xf32>
    %155 = arith.mulf %154, %151 : vector<8x512xf32>
    %156 = arith.addf %149, %155 : vector<8x512xf32>
    %157 = vector.extract_strided_slice %65 {offsets = [72, 0], sizes = [8, 512], strides = [1, 1]} : vector<216x512xf32> to vector<8x512xf32>
    %c9_i32 = arith.constant 9 : i32
    %158 = tpu.dynamic_rotate %157 by %c9_i32 dim 1 : vector<8x512xf32>, i32 -> vector<8x512xf32>
    %159 = arith.mulf %78, %83 : vector<1x512xf32>
    %160 = vector.broadcast %159 : vector<1x512xf32> to vector<8x512xf32>
    %161 = arith.mulf %160, %158 : vector<8x512xf32>
    %162 = arith.addf %156, %161 : vector<8x512xf32>
    %163 = vector.extract_strided_slice %65 {offsets = [80, 0], sizes = [8, 512], strides = [1, 1]} : vector<216x512xf32> to vector<8x512xf32>
    %c8_i32 = arith.constant 8 : i32
    %164 = tpu.dynamic_rotate %163 by %c8_i32 dim 1 : vector<8x512xf32>, i32 -> vector<8x512xf32>
    %165 = vector.broadcast %78 : vector<1x512xf32> to vector<8x512xf32>
    %166 = arith.mulf %165, %164 : vector<8x512xf32>
    %167 = arith.addf %162, %166 : vector<8x512xf32>
    %168 = vector.extract_strided_slice %65 {offsets = [88, 0], sizes = [8, 512], strides = [1, 1]} : vector<216x512xf32> to vector<8x512xf32>
    %c7_i32 = arith.constant 7 : i32
    %169 = tpu.dynamic_rotate %168 by %c7_i32 dim 1 : vector<8x512xf32>, i32 -> vector<8x512xf32>
    %170 = arith.mulf %78, %98 : vector<1x512xf32>
    %171 = vector.broadcast %170 : vector<1x512xf32> to vector<8x512xf32>
    %172 = arith.mulf %171, %169 : vector<8x512xf32>
    %173 = arith.addf %167, %172 : vector<8x512xf32>
    %174 = vector.extract_strided_slice %65 {offsets = [96, 0], sizes = [8, 512], strides = [1, 1]} : vector<216x512xf32> to vector<8x512xf32>
    %c1_i32_64 = arith.constant 1 : i32
    %175 = tpu.dynamic_rotate %174 by %c1_i32_64 dim 1 : vector<8x512xf32>, i32 -> vector<8x512xf32>
    %176 = vector.broadcast %83 : vector<1x512xf32> to vector<8x512xf32>
    %177 = arith.mulf %176, %175 : vector<8x512xf32>
    %178 = arith.addf %173, %177 : vector<8x512xf32>
    %179 = vector.extract_strided_slice %65 {offsets = [104, 0], sizes = [8, 512], strides = [1, 1]} : vector<216x512xf32> to vector<8x512xf32>
    %180 = arith.addf %178, %179 : vector<8x512xf32>
    %181 = vector.extract_strided_slice %65 {offsets = [112, 0], sizes = [8, 512], strides = [1, 1]} : vector<216x512xf32> to vector<8x512xf32>
    %c511_i32 = arith.constant 511 : i32
    %182 = tpu.dynamic_rotate %181 by %c511_i32 dim 1 : vector<8x512xf32>, i32 -> vector<8x512xf32>
    %183 = vector.broadcast %98 : vector<1x512xf32> to vector<8x512xf32>
    %184 = arith.mulf %183, %182 : vector<8x512xf32>
    %185 = arith.addf %180, %184 : vector<8x512xf32>
    %186 = vector.extract_strided_slice %65 {offsets = [120, 0], sizes = [8, 512], strides = [1, 1]} : vector<216x512xf32> to vector<8x512xf32>
    %c505_i32 = arith.constant 505 : i32
    %187 = tpu.dynamic_rotate %186 by %c505_i32 dim 1 : vector<8x512xf32>, i32 -> vector<8x512xf32>
    %188 = arith.mulf %93, %83 : vector<1x512xf32>
    %189 = vector.broadcast %188 : vector<1x512xf32> to vector<8x512xf32>
    %190 = arith.mulf %189, %187 : vector<8x512xf32>
    %191 = arith.addf %185, %190 : vector<8x512xf32>
    %192 = vector.extract_strided_slice %65 {offsets = [128, 0], sizes = [8, 512], strides = [1, 1]} : vector<216x512xf32> to vector<8x512xf32>
    %c504_i32 = arith.constant 504 : i32
    %193 = tpu.dynamic_rotate %192 by %c504_i32 dim 1 : vector<8x512xf32>, i32 -> vector<8x512xf32>
    %194 = vector.broadcast %93 : vector<1x512xf32> to vector<8x512xf32>
    %195 = arith.mulf %194, %193 : vector<8x512xf32>
    %196 = arith.addf %191, %195 : vector<8x512xf32>
    %197 = vector.extract_strided_slice %65 {offsets = [136, 0], sizes = [8, 512], strides = [1, 1]} : vector<216x512xf32> to vector<8x512xf32>
    %c503_i32 = arith.constant 503 : i32
    %198 = tpu.dynamic_rotate %197 by %c503_i32 dim 1 : vector<8x512xf32>, i32 -> vector<8x512xf32>
    %199 = arith.mulf %93, %98 : vector<1x512xf32>
    %200 = vector.broadcast %199 : vector<1x512xf32> to vector<8x512xf32>
    %201 = arith.mulf %200, %198 : vector<8x512xf32>
    %202 = arith.addf %196, %201 : vector<8x512xf32>
    %203 = vector.extract_strided_slice %65 {offsets = [144, 0], sizes = [8, 512], strides = [1, 1]} : vector<216x512xf32> to vector<8x512xf32>
    %c457_i32 = arith.constant 457 : i32
    %204 = tpu.dynamic_rotate %203 by %c457_i32 dim 1 : vector<8x512xf32>, i32 -> vector<8x512xf32>
    %205 = arith.mulf %88, %78 : vector<1x512xf32>
    %206 = arith.mulf %205, %83 : vector<1x512xf32>
    %207 = vector.broadcast %206 : vector<1x512xf32> to vector<8x512xf32>
    %208 = arith.mulf %207, %204 : vector<8x512xf32>
    %209 = arith.addf %202, %208 : vector<8x512xf32>
    %210 = vector.extract_strided_slice %65 {offsets = [152, 0], sizes = [8, 512], strides = [1, 1]} : vector<216x512xf32> to vector<8x512xf32>
    %c456_i32 = arith.constant 456 : i32
    %211 = tpu.dynamic_rotate %210 by %c456_i32 dim 1 : vector<8x512xf32>, i32 -> vector<8x512xf32>
    %212 = arith.mulf %88, %78 : vector<1x512xf32>
    %213 = vector.broadcast %212 : vector<1x512xf32> to vector<8x512xf32>
    %214 = arith.mulf %213, %211 : vector<8x512xf32>
    %215 = arith.addf %209, %214 : vector<8x512xf32>
    %216 = vector.extract_strided_slice %65 {offsets = [160, 0], sizes = [8, 512], strides = [1, 1]} : vector<216x512xf32> to vector<8x512xf32>
    %c455_i32 = arith.constant 455 : i32
    %217 = tpu.dynamic_rotate %216 by %c455_i32 dim 1 : vector<8x512xf32>, i32 -> vector<8x512xf32>
    %218 = arith.mulf %88, %78 : vector<1x512xf32>
    %219 = arith.mulf %218, %98 : vector<1x512xf32>
    %220 = vector.broadcast %219 : vector<1x512xf32> to vector<8x512xf32>
    %221 = arith.mulf %220, %217 : vector<8x512xf32>
    %222 = arith.addf %215, %221 : vector<8x512xf32>
    %223 = vector.extract_strided_slice %65 {offsets = [168, 0], sizes = [8, 512], strides = [1, 1]} : vector<216x512xf32> to vector<8x512xf32>
    %c449_i32 = arith.constant 449 : i32
    %224 = tpu.dynamic_rotate %223 by %c449_i32 dim 1 : vector<8x512xf32>, i32 -> vector<8x512xf32>
    %225 = arith.mulf %88, %83 : vector<1x512xf32>
    %226 = vector.broadcast %225 : vector<1x512xf32> to vector<8x512xf32>
    %227 = arith.mulf %226, %224 : vector<8x512xf32>
    %228 = arith.addf %222, %227 : vector<8x512xf32>
    %229 = vector.extract_strided_slice %65 {offsets = [176, 0], sizes = [8, 512], strides = [1, 1]} : vector<216x512xf32> to vector<8x512xf32>
    %c448_i32 = arith.constant 448 : i32
    %230 = tpu.dynamic_rotate %229 by %c448_i32 dim 1 : vector<8x512xf32>, i32 -> vector<8x512xf32>
    %231 = vector.broadcast %88 : vector<1x512xf32> to vector<8x512xf32>
    %232 = arith.mulf %231, %230 : vector<8x512xf32>
    %233 = arith.addf %228, %232 : vector<8x512xf32>
    %234 = vector.extract_strided_slice %65 {offsets = [184, 0], sizes = [8, 512], strides = [1, 1]} : vector<216x512xf32> to vector<8x512xf32>
    %c447_i32 = arith.constant 447 : i32
    %235 = tpu.dynamic_rotate %234 by %c447_i32 dim 1 : vector<8x512xf32>, i32 -> vector<8x512xf32>
    %236 = arith.mulf %88, %98 : vector<1x512xf32>
    %237 = vector.broadcast %236 : vector<1x512xf32> to vector<8x512xf32>
    %238 = arith.mulf %237, %235 : vector<8x512xf32>
    %239 = arith.addf %233, %238 : vector<8x512xf32>
    %240 = vector.extract_strided_slice %65 {offsets = [192, 0], sizes = [8, 512], strides = [1, 1]} : vector<216x512xf32> to vector<8x512xf32>
    %c441_i32 = arith.constant 441 : i32
    %241 = tpu.dynamic_rotate %240 by %c441_i32 dim 1 : vector<8x512xf32>, i32 -> vector<8x512xf32>
    %242 = arith.mulf %88, %93 : vector<1x512xf32>
    %243 = arith.mulf %242, %83 : vector<1x512xf32>
    %244 = vector.broadcast %243 : vector<1x512xf32> to vector<8x512xf32>
    %245 = arith.mulf %244, %241 : vector<8x512xf32>
    %246 = arith.addf %239, %245 : vector<8x512xf32>
    %247 = vector.extract_strided_slice %65 {offsets = [200, 0], sizes = [8, 512], strides = [1, 1]} : vector<216x512xf32> to vector<8x512xf32>
    %c440_i32 = arith.constant 440 : i32
    %248 = tpu.dynamic_rotate %247 by %c440_i32 dim 1 : vector<8x512xf32>, i32 -> vector<8x512xf32>
    %249 = arith.mulf %88, %93 : vector<1x512xf32>
    %250 = vector.broadcast %249 : vector<1x512xf32> to vector<8x512xf32>
    %251 = arith.mulf %250, %248 : vector<8x512xf32>
    %252 = arith.addf %246, %251 : vector<8x512xf32>
    %253 = vector.extract_strided_slice %65 {offsets = [208, 0], sizes = [8, 512], strides = [1, 1]} : vector<216x512xf32> to vector<8x512xf32>
    %c439_i32 = arith.constant 439 : i32
    %254 = tpu.dynamic_rotate %253 by %c439_i32 dim 1 : vector<8x512xf32>, i32 -> vector<8x512xf32>
    %255 = arith.mulf %88, %93 : vector<1x512xf32>
    %256 = arith.mulf %255, %98 : vector<1x512xf32>
    %257 = vector.broadcast %256 : vector<1x512xf32> to vector<8x512xf32>
    %258 = arith.mulf %257, %254 : vector<8x512xf32>
    %259 = arith.addf %252, %258 : vector<8x512xf32>
    %c0_65 = arith.constant 0 : index
    %c0_66 = arith.constant 0 : index
    %c0_67 = arith.constant 0 : index
    %260 = vector.load %arg7[%c0_65, %c0_66, %c0_67] : memref<1x8x1xf32, #tpu.memory_space<vmem>>, vector<1x8x1xf32>
    %261 = vector.shape_cast %260 : vector<1x8x1xf32> to vector<8x1xf32>
    %262 = vector.broadcast %261 : vector<8x1xf32> to vector<8x512xf32>
    %263 = arith.addf %259, %262 : vector<8x512xf32>
    %c2_i32_68 = arith.constant 2 : i32
    %264 = arith.muli %arg0, %c2_i32_68 : i32
    %265 = arith.addi %264, %arg1 : i32
    %266 = arith.index_cast %265 : i32 to index
    %c0_69 = arith.constant 0 : index
    %c0_70 = arith.constant 0 : index
    %267 = vector.load %arg12[%266, %c0_69, %c0_70] : memref<10x8x512xf32, #tpu.memory_space<vmem>>, vector<1x8x512xf32>
    %268 = vector.shape_cast %267 : vector<1x8x512xf32> to vector<8x512xf32>
    %269 = vector.shape_cast %263 : vector<8x512xf32> to vector<1x8x512xf32>
    tpu.vector_store %arg12[%266, %c0_69, %c0_70], %269 {strides = array<i32>} : memref<10x8x512xf32, #tpu.memory_space<vmem>>, vector<1x8x512xf32>,
    %270 = vector.extract_strided_slice %263 {offsets = [0, 0], sizes = [4, 512], strides = [1, 1]} : vector<8x512xf32> to vector<4x512xf32>
    %cst_71 = arith.constant 2.000000e-01 : f32
    %271 = vector.broadcast %cst_71 : f32 to vector<4x512xf32>
    %272 = arith.mulf %270, %271 : vector<4x512xf32>
    %c0_72 = arith.constant 0 : index
    %c0_73 = arith.constant 0 : index
    %c0_74 = arith.constant 0 : index
    %273 = vector.load %arg9[%c0_72, %c0_73, %c0_74] : memref<1x4x512xf32, #tpu.memory_space<vmem>>, vector<1x4x512xf32>
    %274 = vector.shape_cast %273 : vector<1x4x512xf32> to vector<4x512xf32>
    %275 = arith.addf %272, %274 : vector<4x512xf32>
    %c0_75 = arith.constant 0 : index
    %c0_76 = arith.constant 0 : index
    %c0_77 = arith.constant 0 : index
    %276 = vector.load %arg10[%c0_75, %c0_76, %c0_77] : memref<1x4x512xf32, #tpu.memory_space<vmem>>, vector<1x4x512xf32>
    %277 = vector.shape_cast %276 : vector<1x4x512xf32> to vector<4x512xf32>
    %278 = vector.shape_cast %275 : vector<4x512xf32> to vector<1x4x512xf32>
    tpu.vector_store %arg10[%c0_75, %c0_76, %c0_77], %278 {strides = array<i32>} : memref<1x4x512xf32, #tpu.memory_space<vmem>>, vector<1x4x512xf32>,
    return
  }
  func.func @transform_0(%arg0: i32, %arg1: i32) -> (i32, i32) {
    %c0_i32 = arith.constant 0 : i32
    %c0_i32_0 = arith.constant 0 : i32
    %c0_i32_1 = arith.constant 0 : i32
    return %c0_i32, %c0_i32_0 : i32, i32
  }
  func.func @transform_1(%arg0: i32, %arg1: i32) -> (i32, i32) {
    %c0_i32 = arith.constant 0 : i32
    %c0_i32_0 = arith.constant 0 : i32
    %c0_i32_1 = arith.constant 0 : i32
    return %c0_i32, %c0_i32_0 : i32, i32
  }
  func.func @transform_2(%arg0: i32, %arg1: i32) -> (i32, i32, i32) {
    %c0_i32 = arith.constant 0 : i32
    %c0_i32_0 = arith.constant 0 : i32
    %c0_i32_1 = arith.constant 0 : i32
    return %arg0, %c0_i32, %c0_i32_0 : i32, i32, i32
  }
  func.func @transform_3(%arg0: i32, %arg1: i32) -> (i32, i32, i32) {
    %c0_i32 = arith.constant 0 : i32
    %c0_i32_0 = arith.constant 0 : i32
    %c0_i32_1 = arith.constant 0 : i32
    return %arg0, %c0_i32, %c0_i32_0 : i32, i32, i32
  }
  func.func @transform_4(%arg0: i32, %arg1: i32) -> (i32, i32, i32) {
    %c0_i32 = arith.constant 0 : i32
    %c0_i32_0 = arith.constant 0 : i32
    %c0_i32_1 = arith.constant 0 : i32
    return %arg0, %c0_i32, %c0_i32_0 : i32, i32, i32
  }
  func.func @transform_5(%arg0: i32, %arg1: i32) -> (i32, i32, i32) {
    %c0_i32 = arith.constant 0 : i32
    %c0_i32_0 = arith.constant 0 : i32
    %c0_i32_1 = arith.constant 0 : i32
    return %arg0, %c0_i32, %c0_i32_0 : i32, i32, i32
  }
  func.func @transform_6(%arg0: i32, %arg1: i32) -> (i32, i32) {
    %c0_i32 = arith.constant 0 : i32
    %c0_i32_0 = arith.constant 0 : i32
    %c0_i32_1 = arith.constant 0 : i32
    return %c0_i32, %c0_i32_0 : i32, i32
  }
  func.func @transform_7(%arg0: i32, %arg1: i32) -> (i32, i32, i32) {
    %c0_i32 = arith.constant 0 : i32
    %c0_i32_0 = arith.constant 0 : i32
    %c0_i32_1 = arith.constant 0 : i32
    return %arg1, %c0_i32, %c0_i32_0 : i32, i32, i32
  }
  func.func @transform_8(%arg0: i32, %arg1: i32) -> (i32, i32, i32) {
    %c0_i32 = arith.constant 0 : i32
    %c0_i32_0 = arith.constant 0 : i32
    %c0_i32_1 = arith.constant 0 : i32
    return %arg1, %c0_i32, %c0_i32_0 : i32, i32, i32
  }
}

module attributes {stable_mosaic.version = 11 : i64} {
  func.func @kernel(%arg0: i32, %arg1: i32, %arg2: memref<8x1xf32, #tpu.memory_space<vmem>>, %arg3: memref<8x1xf32, #tpu.memory_space<vmem>>, %arg4: memref<1x40x1xf32, #tpu.memory_space<vmem>>, %arg5: memref<1x40x1xf32, #tpu.memory_space<vmem>>, %arg6: memref<1x216x40xf32, #tpu.memory_space<vmem>>, %arg7: memref<1x8x1xf32, #tpu.memory_space<vmem>>, %arg8: memref<8x512xf32, #tpu.memory_space<vmem>>, %arg9: memref<1x4x512xf32, #tpu.memory_space<vmem>>, %arg10: memref<1x4x512xf32, #tpu.memory_space<vmem>>, %arg11: memref<40x512xf32, #tpu.memory_space<vmem>>, %arg12: memref<10x8x512xf32, #tpu.memory_space<vmem>>, %arg13: memref<5x8x1xf32, #tpu.memory_space<vmem>>, %arg14: memref<5x8x1xf32, #tpu.memory_space<vmem>>) attributes {dimension_semantics = [#tpu.dimension_semantics<arbitrary>, #tpu.dimension_semantics<arbitrary>], iteration_bounds = array<i64: 5, 2>, scalar_prefetch = 0 : i64, scratch_operands = 4 : i64, tpu.core_type = #tpu.core_type<tc>, window_params = [{pipeline_mode = #tpu.pipeline_mode<synchronous>, transform_indices = @transform_0, window_bounds = array<i64: 8, 1>}, {pipeline_mode = #tpu.pipeline_mode<synchronous>, transform_indices = @transform_1, window_bounds = array<i64: 8, 1>}, {transform_indices = @transform_2, window_bounds = array<i64: 1, 40, 1>}, {transform_indices = @transform_3, window_bounds = array<i64: 1, 40, 1>}, {transform_indices = @transform_4, window_bounds = array<i64: 1, 216, 40>}, {transform_indices = @transform_5, window_bounds = array<i64: 1, 8, 1>}, {pipeline_mode = #tpu.pipeline_mode<synchronous>, transform_indices = @transform_6, window_bounds = array<i64: 8, 512>}, {transform_indices = @transform_7, window_bounds = array<i64: 1, 4, 512>}, {transform_indices = @transform_8, window_bounds = array<i64: 1, 4, 512>}]} {
    %c0_i32 = arith.constant 0 : i32
    %0 = arith.cmpi eq, %arg0, %c0_i32 : i32
    %c0_i32_0 = arith.constant 0 : i32
    %1 = arith.cmpi eq, %arg1, %c0_i32_0 : i32
    %2 = arith.andi %0, %1 : i1
    %3 = arith.extui %2 : i1 to i32
    %c0_i32_1 = arith.constant 0 : i32
    %4 = arith.cmpi ne, %3, %c0_i32_1 : i32
    scf.if %4 {
      %cst_78 = arith.constant 0.000000e+00 : f32
      %279 = vector.broadcast %cst_78 : f32 to vector<40x512xf32>
      %c0_79 = arith.constant 0 : index
      %c0_80 = arith.constant 0 : index
      %280 = vector.load %arg11[%c0_79, %c0_80] : memref<40x512xf32, #tpu.memory_space<vmem>>, vector<40x512xf32>
      tpu.vector_store %arg11[%c0_79, %c0_80], %279 {strides = array<i32>} : memref<40x512xf32, #tpu.memory_space<vmem>>, vector<40x512xf32>,
      %cst_81 = arith.constant 0.000000e+00 : f32
      %281 = vector.broadcast %cst_81 : f32 to vector<10x8x512xf32>
      %c0_82 = arith.constant 0 : index
      %c0_83 = arith.constant 0 : index
      %c0_84 = arith.constant 0 : index
      %282 = vector.load %arg12[%c0_82, %c0_83, %c0_84] : memref<10x8x512xf32, #tpu.memory_space<vmem>>, vector<10x8x512xf32>
      tpu.vector_store %arg12[%c0_82, %c0_83, %c0_84], %281 {strides = array<i32>} : memref<10x8x512xf32, #tpu.memory_space<vmem>>, vector<10x8x512xf32>,
      %cst_85 = arith.constant 0.000000e+00 : f32
      %283 = vector.broadcast %cst_85 : f32 to vector<5x8x1xf32>
      %c0_86 = arith.constant 0 : index
      %c0_87 = arith.constant 0 : index
      %c0_88 = arith.constant 0 : index
      %284 = vector.load %arg13[%c0_86, %c0_87, %c0_88] : memref<5x8x1xf32, #tpu.memory_space<vmem>>, vector<5x8x1xf32>
      tpu.vector_store %arg13[%c0_86, %c0_87, %c0_88], %283 {strides = array<i32>} : memref<5x8x1xf32, #tpu.memory_space<vmem>>, vector<5x8x1xf32>,
      %cst_89 = arith.constant 0.000000e+00 : f32
      %285 = vector.broadcast %cst_89 : f32 to vector<5x8x1xf32>
      %c0_90 = arith.constant 0 : index
      %c0_91 = arith.constant 0 : index
      %c0_92 = arith.constant 0 : index
      %286 = vector.load %arg14[%c0_90, %c0_91, %c0_92] : memref<5x8x1xf32, #tpu.memory_space<vmem>>, vector<5x8x1xf32>
      tpu.vector_store %arg14[%c0_90, %c0_91, %c0_92], %285 {strides = array<i32>} : memref<5x8x1xf32, #tpu.memory_space<vmem>>, vector<5x8x1xf32>,
      %c0_93 = arith.constant 0 : index
      %c0_94 = arith.constant 0 : index
      %287 = vector.load %arg2[%c0_93, %c0_94] : memref<8x1xf32, #tpu.memory_space<vmem>>, vector<8x1xf32>
      %c0_95 = arith.constant 0 : index
      %c0_96 = arith.constant 0 : index
      %c0_97 = arith.constant 0 : index
      %288 = vector.load %arg13[%c0_95, %c0_96, %c0_97] : memref<5x8x1xf32, #tpu.memory_space<vmem>>, vector<1x8x1xf32>
      %289 = vector.shape_cast %288 : vector<1x8x1xf32> to vector<8x1xf32>
      %290 = vector.shape_cast %287 : vector<8x1xf32> to vector<1x8x1xf32>
      tpu.vector_store %arg13[%c0_95, %c0_96, %c0_97], %290 {strides = array<i32>} : memref<5x8x1xf32, #tpu.memory_space<vmem>>, vector<1x8x1xf32>,
      %c0_98 = arith.constant 0 : index
      %c0_99 = arith.constant 0 : index
      %291 = vector.load %arg3[%c0_98, %c0_99] : memref<8x1xf32, #tpu.memory_space<vmem>>, vector<8x1xf32>
      %c0_100 = arith.constant 0 : index
      %c0_101 = arith.constant 0 : index
      %c0_102 = arith.constant 0 : index
      %292 = vector.load %arg14[%c0_100, %c0_101, %c0_102] : memref<5x8x1xf32, #tpu.memory_space<vmem>>, vector<1x8x1xf32>
      %293 = vector.shape_cast %292 : vector<1x8x1xf32> to vector<8x1xf32>
      %294 = vector.shape_cast %291 : vector<8x1xf32> to vector<1x8x1xf32>
      tpu.vector_store %arg14[%c0_100, %c0_101, %c0_102], %294 {strides = array<i32>} : memref<5x8x1xf32, #tpu.memory_space<vmem>>, vector<1x8x1xf32>,
    } else {
    }
    %c1_i32 = arith.constant 1 : i32
    %5 = arith.cmpi eq, %arg0, %c1_i32 : i32
    %c0_i32_2 = arith.constant 0 : i32
    %6 = arith.cmpi eq, %arg1, %c0_i32_2 : i32
    %7 = arith.andi %5, %6 : i1
    %8 = arith.extui %7 : i1 to i32
    %c0_i32_3 = arith.constant 0 : i32
    %9 = arith.cmpi ne, %8, %c0_i32_3 : i32
    scf.if %9 {
      %cst_78 = arith.constant 0.000000e+00 : f32
      %279 = vector.broadcast %cst_78 : f32 to vector<8x1xf32>
      %c0_79 = arith.constant 0 : index
      %c0_80 = arith.constant 0 : index
      %c0_81 = arith.constant 0 : index
      %280 = vector.load %arg12[%c0_79, %c0_80, %c0_81] : memref<10x8x512xf32, #tpu.memory_space<vmem>>, vector<1x8x512xf32>
      %281 = vector.shape_cast %280 : vector<1x8x512xf32> to vector<8x512xf32>
      %cst_82 = arith.constant dense<0.000000e+00> : vector<8xf32>
      %282 = vector.multi_reduction <add>, %281, %cst_82 [1] : vector<8x512xf32> to vector<8xf32>
      %283 = vector.shape_cast %282 : vector<8xf32> to vector<8x1xf32>
      %284 = arith.addf %279, %283 : vector<8x1xf32>
      %c1_83 = arith.constant 1 : index
      %c0_84 = arith.constant 0 : index
      %c0_85 = arith.constant 0 : index
      %285 = vector.load %arg12[%c1_83, %c0_84, %c0_85] : memref<10x8x512xf32, #tpu.memory_space<vmem>>, vector<1x8x512xf32>
      %286 = vector.shape_cast %285 : vector<1x8x512xf32> to vector<8x512xf32>
      %cst_86 = arith.constant dense<0.000000e+00> : vector<8xf32>
      %287 = vector.multi_reduction <add>, %286, %cst_86 [1] : vector<8x512xf32> to vector<8xf32>
      %288 = vector.shape_cast %287 : vector<8xf32> to vector<8x1xf32>
      %289 = arith.addf %284, %288 : vector<8x1xf32>
      %cst_87 = arith.constant 9.765625E-4 : f32
      %290 = vector.broadcast %cst_87 : f32 to vector<8x1xf32>
      %291 = arith.mulf %289, %290 : vector<8x1xf32>
      %cst_88 = arith.constant 0.000000e+00 : f32
      %292 = vector.broadcast %cst_88 : f32 to vector<8x1xf32>
      %c0_89 = arith.constant 0 : index
      %c0_90 = arith.constant 0 : index
      %c0_91 = arith.constant 0 : index
      %293 = vector.load %arg12[%c0_89, %c0_90, %c0_91] : memref<10x8x512xf32, #tpu.memory_space<vmem>>, vector<1x8x512xf32>
      %294 = vector.shape_cast %293 : vector<1x8x512xf32> to vector<8x512xf32>
      %295 = vector.broadcast %291 : vector<8x1xf32> to vector<8x512xf32>
      %296 = arith.subf %294, %295 : vector<8x512xf32>
      %297 = arith.mulf %296, %296 : vector<8x512xf32>
      %cst_92 = arith.constant dense<0.000000e+00> : vector<8xf32>
      %298 = vector.multi_reduction <add>, %297, %cst_92 [1] : vector<8x512xf32> to vector<8xf32>
      %299 = vector.shape_cast %298 : vector<8xf32> to vector<8x1xf32>
      %300 = arith.addf %292, %299 : vector<8x1xf32>
      %c1_93 = arith.constant 1 : index
      %c0_94 = arith.constant 0 : index
      %c0_95 = arith.constant 0 : index
      %301 = vector.load %arg12[%c1_93, %c0_94, %c0_95] : memref<10x8x512xf32, #tpu.memory_space<vmem>>, vector<1x8x512xf32>
      %302 = vector.shape_cast %301 : vector<1x8x512xf32> to vector<8x512xf32>
      %303 = vector.broadcast %291 : vector<8x1xf32> to vector<8x512xf32>
      %304 = arith.subf %302, %303 : vector<8x512xf32>
      %305 = arith.mulf %304, %304 : vector<8x512xf32>
      %cst_96 = arith.constant dense<0.000000e+00> : vector<8xf32>
      %306 = vector.multi_reduction <add>, %305, %cst_96 [1] : vector<8x512xf32> to vector<8xf32>
      %307 = vector.shape_cast %306 : vector<8xf32> to vector<8x1xf32>
      %308 = arith.addf %300, %307 : vector<8x1xf32>
      %c1_97 = arith.constant 1 : index
      %c0_98 = arith.constant 0 : index
      %c0_99 = arith.constant 0 : index
      %309 = vector.load %arg13[%c1_97, %c0_98, %c0_99] : memref<5x8x1xf32, #tpu.memory_space<vmem>>, vector<1x8x1xf32>
      %310 = vector.shape_cast %309 : vector<1x8x1xf32> to vector<8x1xf32>
      %311 = vector.shape_cast %291 : vector<8x1xf32> to vector<1x8x1xf32>
      tpu.vector_store %arg13[%c1_97, %c0_98, %c0_99], %311 {strides = array<i32>} : memref<5x8x1xf32, #tpu.memory_space<vmem>>, vector<1x8x1xf32>,
      %cst_100 = arith.constant 9.765625E-4 : f32
      %312 = vector.broadcast %cst_100 : f32 to vector<8x1xf32>
      %313 = arith.mulf %308, %312 : vector<8x1xf32>
      %c1_101 = arith.constant 1 : index
      %c0_102 = arith.constant 0 : index
      %c0_103 = arith.constant 0 : index
      %314 = vector.load %arg14[%c1_101, %c0_102, %c0_103] : memref<5x8x1xf32, #tpu.memory_space<vmem>>, vector<1x8x1xf32>
      %315 = vector.shape_cast %314 : vector<1x8x1xf32> to vector<8x1xf32>
      %316 = vector.shape_cast %313 : vector<8x1xf32> to vector<1x8x1xf32>
      tpu.vector_store %arg14[%c1_101, %c0_102, %c0_103], %316 {strides = array<i32>} : memref<5x8x1xf32, #tpu.memory_space<vmem>>, vector<1x8x1xf32>,
    } else {
    }
    %c2_i32 = arith.constant 2 : i32
    %10 = arith.cmpi eq, %arg0, %c2_i32 : i32
    %c0_i32_4 = arith.constant 0 : i32
    %11 = arith.cmpi eq, %arg1, %c0_i32_4 : i32
    %12 = arith.andi %10, %11 : i1
    %13 = arith.extui %12 : i1 to i32
    %c0_i32_5 = arith.constant 0 : i32
    %14 = arith.cmpi ne, %13, %c0_i32_5 : i32
    scf.if %14 {
      %cst_78 = arith.constant 0.000000e+00 : f32
      %279 = vector.broadcast %cst_78 : f32 to vector<8x1xf32>
      %c2_79 = arith.constant 2 : index
      %c0_80 = arith.constant 0 : index
      %c0_81 = arith.constant 0 : index
      %280 = vector.load %arg12[%c2_79, %c0_80, %c0_81] : memref<10x8x512xf32, #tpu.memory_space<vmem>>, vector<1x8x512xf32>
      %281 = vector.shape_cast %280 : vector<1x8x512xf32> to vector<8x512xf32>
      %cst_82 = arith.constant dense<0.000000e+00> : vector<8xf32>
      %282 = vector.multi_reduction <add>, %281, %cst_82 [1] : vector<8x512xf32> to vector<8xf32>
      %283 = vector.shape_cast %282 : vector<8xf32> to vector<8x1xf32>
      %284 = arith.addf %279, %283 : vector<8x1xf32>
      %c3 = arith.constant 3 : index
      %c0_83 = arith.constant 0 : index
      %c0_84 = arith.constant 0 : index
      %285 = vector.load %arg12[%c3, %c0_83, %c0_84] : memref<10x8x512xf32, #tpu.memory_space<vmem>>, vector<1x8x512xf32>
      %286 = vector.shape_cast %285 : vector<1x8x512xf32> to vector<8x512xf32>
      %cst_85 = arith.constant dense<0.000000e+00> : vector<8xf32>
      %287 = vector.multi_reduction <add>, %286, %cst_85 [1] : vector<8x512xf32> to vector<8xf32>
      %288 = vector.shape_cast %287 : vector<8xf32> to vector<8x1xf32>
      %289 = arith.addf %284, %288 : vector<8x1xf32>
      %cst_86 = arith.constant 9.765625E-4 : f32
      %290 = vector.broadcast %cst_86 : f32 to vector<8x1xf32>
      %291 = arith.mulf %289, %290 : vector<8x1xf32>
      %cst_87 = arith.constant 0.000000e+00 : f32
      %292 = vector.broadcast %cst_87 : f32 to vector<8x1xf32>
      %c2_88 = arith.constant 2 : index
      %c0_89 = arith.constant 0 : index
      %c0_90 = arith.constant 0 : index
      %293 = vector.load %arg12[%c2_88, %c0_89, %c0_90] : memref<10x8x512xf32, #tpu.memory_space<vmem>>, vector<1x8x512xf32>
      %294 = vector.shape_cast %293 : vector<1x8x512xf32> to vector<8x512xf32>
      %295 = vector.broadcast %291 : vector<8x1xf32> to vector<8x512xf32>
      %296 = arith.subf %294, %295 : vector<8x512xf32>
      %297 = arith.mulf %296, %296 : vector<8x512xf32>
      %cst_91 = arith.constant dense<0.000000e+00> : vector<8xf32>
      %298 = vector.multi_reduction <add>, %297, %cst_91 [1] : vector<8x512xf32> to vector<8xf32>
      %299 = vector.shape_cast %298 : vector<8xf32> to vector<8x1xf32>
      %300 = arith.addf %292, %299 : vector<8x1xf32>
      %c3_92 = arith.constant 3 : index
      %c0_93 = arith.constant 0 : index
      %c0_94 = arith.constant 0 : index
      %301 = vector.load %arg12[%c3_92, %c0_93, %c0_94] : memref<10x8x512xf32, #tpu.memory_space<vmem>>, vector<1x8x512xf32>
      %302 = vector.shape_cast %301 : vector<1x8x512xf32> to vector<8x512xf32>
      %303 = vector.broadcast %291 : vector<8x1xf32> to vector<8x512xf32>
      %304 = arith.subf %302, %303 : vector<8x512xf32>
      %305 = arith.mulf %304, %304 : vector<8x512xf32>
      %cst_95 = arith.constant dense<0.000000e+00> : vector<8xf32>
      %306 = vector.multi_reduction <add>, %305, %cst_95 [1] : vector<8x512xf32> to vector<8xf32>
      %307 = vector.shape_cast %306 : vector<8xf32> to vector<8x1xf32>
      %308 = arith.addf %300, %307 : vector<8x1xf32>
      %c2_96 = arith.constant 2 : index
      %c0_97 = arith.constant 0 : index
      %c0_98 = arith.constant 0 : index
      %309 = vector.load %arg13[%c2_96, %c0_97, %c0_98] : memref<5x8x1xf32, #tpu.memory_space<vmem>>, vector<1x8x1xf32>
      %310 = vector.shape_cast %309 : vector<1x8x1xf32> to vector<8x1xf32>
      %311 = vector.shape_cast %291 : vector<8x1xf32> to vector<1x8x1xf32>
      tpu.vector_store %arg13[%c2_96, %c0_97, %c0_98], %311 {strides = array<i32>} : memref<5x8x1xf32, #tpu.memory_space<vmem>>, vector<1x8x1xf32>,
      %cst_99 = arith.constant 9.765625E-4 : f32
      %312 = vector.broadcast %cst_99 : f32 to vector<8x1xf32>
      %313 = arith.mulf %308, %312 : vector<8x1xf32>
      %c2_100 = arith.constant 2 : index
      %c0_101 = arith.constant 0 : index
      %c0_102 = arith.constant 0 : index
      %314 = vector.load %arg14[%c2_100, %c0_101, %c0_102] : memref<5x8x1xf32, #tpu.memory_space<vmem>>, vector<1x8x1xf32>
      %315 = vector.shape_cast %314 : vector<1x8x1xf32> to vector<8x1xf32>
      %316 = vector.shape_cast %313 : vector<8x1xf32> to vector<1x8x1xf32>
      tpu.vector_store %arg14[%c2_100, %c0_101, %c0_102], %316 {strides = array<i32>} : memref<5x8x1xf32, #tpu.memory_space<vmem>>, vector<1x8x1xf32>,
    } else {
    }
    %c3_i32 = arith.constant 3 : i32
    %15 = arith.cmpi eq, %arg0, %c3_i32 : i32
    %c0_i32_6 = arith.constant 0 : i32
    %16 = arith.cmpi eq, %arg1, %c0_i32_6 : i32
    %17 = arith.andi %15, %16 : i1
    %18 = arith.extui %17 : i1 to i32
    %c0_i32_7 = arith.constant 0 : i32
    %19 = arith.cmpi ne, %18, %c0_i32_7 : i32
    scf.if %19 {
      %cst_78 = arith.constant 0.000000e+00 : f32
      %279 = vector.broadcast %cst_78 : f32 to vector<8x1xf32>
      %c4 = arith.constant 4 : index
      %c0_79 = arith.constant 0 : index
      %c0_80 = arith.constant 0 : index
      %280 = vector.load %arg12[%c4, %c0_79, %c0_80] : memref<10x8x512xf32, #tpu.memory_space<vmem>>, vector<1x8x512xf32>
      %281 = vector.shape_cast %280 : vector<1x8x512xf32> to vector<8x512xf32>
      %cst_81 = arith.constant dense<0.000000e+00> : vector<8xf32>
      %282 = vector.multi_reduction <add>, %281, %cst_81 [1] : vector<8x512xf32> to vector<8xf32>
      %283 = vector.shape_cast %282 : vector<8xf32> to vector<8x1xf32>
      %284 = arith.addf %279, %283 : vector<8x1xf32>
      %c5 = arith.constant 5 : index
      %c0_82 = arith.constant 0 : index
      %c0_83 = arith.constant 0 : index
      %285 = vector.load %arg12[%c5, %c0_82, %c0_83] : memref<10x8x512xf32, #tpu.memory_space<vmem>>, vector<1x8x512xf32>
      %286 = vector.shape_cast %285 : vector<1x8x512xf32> to vector<8x512xf32>
      %cst_84 = arith.constant dense<0.000000e+00> : vector<8xf32>
      %287 = vector.multi_reduction <add>, %286, %cst_84 [1] : vector<8x512xf32> to vector<8xf32>
      %288 = vector.shape_cast %287 : vector<8xf32> to vector<8x1xf32>
      %289 = arith.addf %284, %288 : vector<8x1xf32>
      %cst_85 = arith.constant 9.765625E-4 : f32
      %290 = vector.broadcast %cst_85 : f32 to vector<8x1xf32>
      %291 = arith.mulf %289, %290 : vector<8x1xf32>
      %cst_86 = arith.constant 0.000000e+00 : f32
      %292 = vector.broadcast %cst_86 : f32 to vector<8x1xf32>
      %c4_87 = arith.constant 4 : index
      %c0_88 = arith.constant 0 : index
      %c0_89 = arith.constant 0 : index
      %293 = vector.load %arg12[%c4_87, %c0_88, %c0_89] : memref<10x8x512xf32, #tpu.memory_space<vmem>>, vector<1x8x512xf32>
      %294 = vector.shape_cast %293 : vector<1x8x512xf32> to vector<8x512xf32>
      %295 = vector.broadcast %291 : vector<8x1xf32> to vector<8x512xf32>
      %296 = arith.subf %294, %295 : vector<8x512xf32>
      %297 = arith.mulf %296, %296 : vector<8x512xf32>
      %cst_90 = arith.constant dense<0.000000e+00> : vector<8xf32>
      %298 = vector.multi_reduction <add>, %297, %cst_90 [1] : vector<8x512xf32> to vector<8xf32>
      %299 = vector.shape_cast %298 : vector<8xf32> to vector<8x1xf32>
      %300 = arith.addf %292, %299 : vector<8x1xf32>
      %c5_91 = arith.constant 5 : index
      %c0_92 = arith.constant 0 : index
      %c0_93 = arith.constant 0 : index
      %301 = vector.load %arg12[%c5_91, %c0_92, %c0_93] : memref<10x8x512xf32, #tpu.memory_space<vmem>>, vector<1x8x512xf32>
      %302 = vector.shape_cast %301 : vector<1x8x512xf32> to vector<8x512xf32>
      %303 = vector.broadcast %291 : vector<8x1xf32> to vector<8x512xf32>
      %304 = arith.subf %302, %303 : vector<8x512xf32>
      %305 = arith.mulf %304, %304 : vector<8x512xf32>
      %cst_94 = arith.constant dense<0.000000e+00> : vector<8xf32>
      %306 = vector.multi_reduction <add>, %305, %cst_94 [1] : vector<8x512xf32> to vector<8xf32>
      %307 = vector.shape_cast %306 : vector<8xf32> to vector<8x1xf32>
      %308 = arith.addf %300, %307 : vector<8x1xf32>
      %c3 = arith.constant 3 : index
      %c0_95 = arith.constant 0 : index
      %c0_96 = arith.constant 0 : index
      %309 = vector.load %arg13[%c3, %c0_95, %c0_96] : memref<5x8x1xf32, #tpu.memory_space<vmem>>, vector<1x8x1xf32>
      %310 = vector.shape_cast %309 : vector<1x8x1xf32> to vector<8x1xf32>
      %311 = vector.shape_cast %291 : vector<8x1xf32> to vector<1x8x1xf32>
      tpu.vector_store %arg13[%c3, %c0_95, %c0_96], %311 {strides = array<i32>} : memref<5x8x1xf32, #tpu.memory_space<vmem>>, vector<1x8x1xf32>,
      %cst_97 = arith.constant 9.765625E-4 : f32
      %312 = vector.broadcast %cst_97 : f32 to vector<8x1xf32>
      %313 = arith.mulf %308, %312 : vector<8x1xf32>
      %c3_98 = arith.constant 3 : index
      %c0_99 = arith.constant 0 : index
      %c0_100 = arith.constant 0 : index
      %314 = vector.load %arg14[%c3_98, %c0_99, %c0_100] : memref<5x8x1xf32, #tpu.memory_space<vmem>>, vector<1x8x1xf32>
      %315 = vector.shape_cast %314 : vector<1x8x1xf32> to vector<8x1xf32>
      %316 = vector.shape_cast %313 : vector<8x1xf32> to vector<1x8x1xf32>
      tpu.vector_store %arg14[%c3_98, %c0_99, %c0_100], %316 {strides = array<i32>} : memref<5x8x1xf32, #tpu.memory_space<vmem>>, vector<1x8x1xf32>,
    } else {
    }
    %c4_i32 = arith.constant 4 : i32
    %20 = arith.cmpi eq, %arg0, %c4_i32 : i32
    %c0_i32_8 = arith.constant 0 : i32
    %21 = arith.cmpi eq, %arg1, %c0_i32_8 : i32
    %22 = arith.andi %20, %21 : i1
    %23 = arith.extui %22 : i1 to i32
    %c0_i32_9 = arith.constant 0 : i32
    %24 = arith.cmpi ne, %23, %c0_i32_9 : i32
    scf.if %24 {
      %cst_78 = arith.constant 0.000000e+00 : f32
      %279 = vector.broadcast %cst_78 : f32 to vector<8x1xf32>
      %c6 = arith.constant 6 : index
      %c0_79 = arith.constant 0 : index
      %c0_80 = arith.constant 0 : index
      %280 = vector.load %arg12[%c6, %c0_79, %c0_80] : memref<10x8x512xf32, #tpu.memory_space<vmem>>, vector<1x8x512xf32>
      %281 = vector.shape_cast %280 : vector<1x8x512xf32> to vector<8x512xf32>
      %cst_81 = arith.constant dense<0.000000e+00> : vector<8xf32>
      %282 = vector.multi_reduction <add>, %281, %cst_81 [1] : vector<8x512xf32> to vector<8xf32>
      %283 = vector.shape_cast %282 : vector<8xf32> to vector<8x1xf32>
      %284 = arith.addf %279, %283 : vector<8x1xf32>
      %c7 = arith.constant 7 : index
      %c0_82 = arith.constant 0 : index
      %c0_83 = arith.constant 0 : index
      %285 = vector.load %arg12[%c7, %c0_82, %c0_83] : memref<10x8x512xf32, #tpu.memory_space<vmem>>, vector<1x8x512xf32>
      %286 = vector.shape_cast %285 : vector<1x8x512xf32> to vector<8x512xf32>
      %cst_84 = arith.constant dense<0.000000e+00> : vector<8xf32>
      %287 = vector.multi_reduction <add>, %286, %cst_84 [1] : vector<8x512xf32> to vector<8xf32>
      %288 = vector.shape_cast %287 : vector<8xf32> to vector<8x1xf32>
      %289 = arith.addf %284, %288 : vector<8x1xf32>
      %cst_85 = arith.constant 9.765625E-4 : f32
      %290 = vector.broadcast %cst_85 : f32 to vector<8x1xf32>
      %291 = arith.mulf %289, %290 : vector<8x1xf32>
      %cst_86 = arith.constant 0.000000e+00 : f32
      %292 = vector.broadcast %cst_86 : f32 to vector<8x1xf32>
      %c6_87 = arith.constant 6 : index
      %c0_88 = arith.constant 0 : index
      %c0_89 = arith.constant 0 : index
      %293 = vector.load %arg12[%c6_87, %c0_88, %c0_89] : memref<10x8x512xf32, #tpu.memory_space<vmem>>, vector<1x8x512xf32>
      %294 = vector.shape_cast %293 : vector<1x8x512xf32> to vector<8x512xf32>
      %295 = vector.broadcast %291 : vector<8x1xf32> to vector<8x512xf32>
      %296 = arith.subf %294, %295 : vector<8x512xf32>
      %297 = arith.mulf %296, %296 : vector<8x512xf32>
      %cst_90 = arith.constant dense<0.000000e+00> : vector<8xf32>
      %298 = vector.multi_reduction <add>, %297, %cst_90 [1] : vector<8x512xf32> to vector<8xf32>
      %299 = vector.shape_cast %298 : vector<8xf32> to vector<8x1xf32>
      %300 = arith.addf %292, %299 : vector<8x1xf32>
      %c7_91 = arith.constant 7 : index
      %c0_92 = arith.constant 0 : index
      %c0_93 = arith.constant 0 : index
      %301 = vector.load %arg12[%c7_91, %c0_92, %c0_93] : memref<10x8x512xf32, #tpu.memory_space<vmem>>, vector<1x8x512xf32>
      %302 = vector.shape_cast %301 : vector<1x8x512xf32> to vector<8x512xf32>
      %303 = vector.broadcast %291 : vector<8x1xf32> to vector<8x512xf32>
      %304 = arith.subf %302, %303 : vector<8x512xf32>
      %305 = arith.mulf %304, %304 : vector<8x512xf32>
      %cst_94 = arith.constant dense<0.000000e+00> : vector<8xf32>
      %306 = vector.multi_reduction <add>, %305, %cst_94 [1] : vector<8x512xf32> to vector<8xf32>
      %307 = vector.shape_cast %306 : vector<8xf32> to vector<8x1xf32>
      %308 = arith.addf %300, %307 : vector<8x1xf32>
      %c4 = arith.constant 4 : index
      %c0_95 = arith.constant 0 : index
      %c0_96 = arith.constant 0 : index
      %309 = vector.load %arg13[%c4, %c0_95, %c0_96] : memref<5x8x1xf32, #tpu.memory_space<vmem>>, vector<1x8x1xf32>
      %310 = vector.shape_cast %309 : vector<1x8x1xf32> to vector<8x1xf32>
      %311 = vector.shape_cast %291 : vector<8x1xf32> to vector<1x8x1xf32>
      tpu.vector_store %arg13[%c4, %c0_95, %c0_96], %311 {strides = array<i32>} : memref<5x8x1xf32, #tpu.memory_space<vmem>>, vector<1x8x1xf32>,
      %cst_97 = arith.constant 9.765625E-4 : f32
      %312 = vector.broadcast %cst_97 : f32 to vector<8x1xf32>
      %313 = arith.mulf %308, %312 : vector<8x1xf32>
      %c4_98 = arith.constant 4 : index
      %c0_99 = arith.constant 0 : index
      %c0_100 = arith.constant 0 : index
      %314 = vector.load %arg14[%c4_98, %c0_99, %c0_100] : memref<5x8x1xf32, #tpu.memory_space<vmem>>, vector<1x8x1xf32>
      %315 = vector.shape_cast %314 : vector<1x8x1xf32> to vector<8x1xf32>
      %316 = vector.shape_cast %313 : vector<8x1xf32> to vector<1x8x1xf32>
      tpu.vector_store %arg14[%c4_98, %c0_99, %c0_100], %316 {strides = array<i32>} : memref<5x8x1xf32, #tpu.memory_space<vmem>>, vector<1x8x1xf32>,
    } else {
    }
    %c0 = arith.constant 0 : index
    %c0_10 = arith.constant 0 : index
    %c0_11 = arith.constant 0 : index
    %25 = vector.load %arg4[%c0, %c0_10, %c0_11] : memref<1x40x1xf32, #tpu.memory_space<vmem>>, vector<1x8x1xf32>
    %26 = vector.shape_cast %25 : vector<1x8x1xf32> to vector<8x1xf32>
    %c0_12 = arith.constant 0 : index
    %c0_13 = arith.constant 0 : index
    %c0_14 = arith.constant 0 : index
    %27 = vector.load %arg14[%c0_12, %c0_13, %c0_14] : memref<5x8x1xf32, #tpu.memory_space<vmem>>, vector<1x8x1xf32>
    %28 = vector.shape_cast %27 : vector<1x8x1xf32> to vector<8x1xf32>
    %cst = arith.constant 9.99999974E-6 : f32
    %29 = vector.broadcast %cst : f32 to vector<8x1xf32>
    %30 = arith.addf %28, %29 : vector<8x1xf32>
    %31 = math.rsqrt %30 : vector<8x1xf32>
    %32 = arith.mulf %26, %31 : vector<8x1xf32>
    %c0_15 = arith.constant 0 : index
    %c0_16 = arith.constant 0 : index
    %c0_17 = arith.constant 0 : index
    %33 = vector.load %arg5[%c0_15, %c0_16, %c0_17] : memref<1x40x1xf32, #tpu.memory_space<vmem>>, vector<1x8x1xf32>
    %34 = vector.shape_cast %33 : vector<1x8x1xf32> to vector<8x1xf32>
    %c0_18 = arith.constant 0 : index
    %c0_19 = arith.constant 0 : index
    %c0_20 = arith.constant 0 : index
    %35 = vector.load %arg13[%c0_18, %c0_19, %c0_20] : memref<5x8x1xf32, #tpu.memory_space<vmem>>, vector<1x8x1xf32>
    %36 = vector.shape_cast %35 : vector<1x8x1xf32> to vector<8x1xf32>
    %37 = arith.mulf %36, %32 : vector<8x1xf32>
    %38 = arith.subf %34, %37 : vector<8x1xf32>
    %c0_21 = arith.constant 0 : index
    %c0_22 = arith.constant 0 : index
    %c0_23 = arith.constant 0 : index
    %39 = vector.load %arg9[%c0_21, %c0_22, %c0_23] : memref<1x4x512xf32, #tpu.memory_space<vmem>>, vector<1x4x512xf32>
    %40 = vector.shape_cast %39 : vector<1x4x512xf32> to vector<4x512xf32>
    %41 = vector.extract_strided_slice %32 {offsets = [0, 0], sizes = [4, 1], strides = [1, 1]} : vector<8x1xf32> to vector<4x1xf32>
    %42 = vector.broadcast %41 : vector<4x1xf32> to vector<4x512xf32>
    %43 = arith.mulf %40, %42 : vector<4x512xf32>
    %44 = vector.extract_strided_slice %38 {offsets = [0, 0], sizes = [4, 1], strides = [1, 1]} : vector<8x1xf32> to vector<4x1xf32>
    %45 = vector.broadcast %44 : vector<4x1xf32> to vector<4x512xf32>
    %46 = arith.addf %43, %45 : vector<4x512xf32>
    %cst_24 = arith.constant 0.000000e+00 : f32
    %47 = vector.broadcast %cst_24 : f32 to vector<4x512xf32>
    %48 = arith.maximumf %46, %47 : vector<4x512xf32>
    %c0_25 = arith.constant 0 : index
    %c0_26 = arith.constant 0 : index
    %49 = vector.load %arg11[%c0_25, %c0_26] : memref<40x512xf32, #tpu.memory_space<vmem>>, vector<4x512xf32>
    tpu.vector_store %arg11[%c0_25, %c0_26], %48 {strides = array<i32>} : memref<40x512xf32, #tpu.memory_space<vmem>>, vector<4x512xf32>,
    %c1_i32_27 = arith.constant 1 : i32
    %50 = arith.cmpi sge, %arg0, %c1_i32_27 : i32
    %51 = arith.extui %50 : i1 to i32
    %c0_i32_28 = arith.constant 0 : i32
    %52 = arith.cmpi ne, %51, %c0_i32_28 : i32
    scf.if %52 {
      %c0_i32_78 = arith.constant 0 : i32
      %279 = arith.addi %c0_i32_78, %arg1 : i32
      %280 = arith.index_cast %279 : i32 to index
      %c0_79 = arith.constant 0 : index
      %c0_80 = arith.constant 0 : index
      %281 = vector.load %arg12[%280, %c0_79, %c0_80] : memref<10x8x512xf32, #tpu.memory_space<vmem>>, vector<1x8x512xf32>
      %282 = vector.shape_cast %281 : vector<1x8x512xf32> to vector<8x512xf32>
      %c0_81 = arith.constant 0 : index
      %c8 = arith.constant 8 : index
      %c0_82 = arith.constant 0 : index
      %283 = vector.load %arg4[%c0_81, %c8, %c0_82] : memref<1x40x1xf32, #tpu.memory_space<vmem>>, vector<1x8x1xf32>
      %284 = vector.shape_cast %283 : vector<1x8x1xf32> to vector<8x1xf32>
      %c0_83 = arith.constant 0 : index
      %c8_84 = arith.constant 8 : index
      %c0_85 = arith.constant 0 : index
      %285 = vector.load %arg5[%c0_83, %c8_84, %c0_85] : memref<1x40x1xf32, #tpu.memory_space<vmem>>, vector<1x8x1xf32>
      %286 = vector.shape_cast %285 : vector<1x8x1xf32> to vector<8x1xf32>
      %c1_86 = arith.constant 1 : index
      %c0_87 = arith.constant 0 : index
      %c0_88 = arith.constant 0 : index
      %287 = vector.load %arg14[%c1_86, %c0_87, %c0_88] : memref<5x8x1xf32, #tpu.memory_space<vmem>>, vector<1x8x1xf32>
      %288 = vector.shape_cast %287 : vector<1x8x1xf32> to vector<8x1xf32>
      %cst_89 = arith.constant 9.99999974E-6 : f32
      %289 = vector.broadcast %cst_89 : f32 to vector<8x1xf32>
      %290 = arith.addf %288, %289 : vector<8x1xf32>
      %291 = math.rsqrt %290 : vector<8x1xf32>
      %292 = arith.mulf %284, %291 : vector<8x1xf32>
      %c1_90 = arith.constant 1 : index
      %c0_91 = arith.constant 0 : index
      %c0_92 = arith.constant 0 : index
      %293 = vector.load %arg13[%c1_90, %c0_91, %c0_92] : memref<5x8x1xf32, #tpu.memory_space<vmem>>, vector<1x8x1xf32>
      %294 = vector.shape_cast %293 : vector<1x8x1xf32> to vector<8x1xf32>
      %295 = arith.mulf %294, %292 : vector<8x1xf32>
      %296 = arith.subf %286, %295 : vector<8x1xf32>
      %297 = vector.broadcast %292 : vector<8x1xf32> to vector<8x512xf32>
      %298 = arith.mulf %282, %297 : vector<8x512xf32>
      %299 = vector.broadcast %296 : vector<8x1xf32> to vector<8x512xf32>
      %300 = arith.addf %298, %299 : vector<8x512xf32>
      %cst_93 = arith.constant 0.000000e+00 : f32
      %301 = vector.broadcast %cst_93 : f32 to vector<8x512xf32>
      %302 = arith.maximumf %300, %301 : vector<8x512xf32>
      %c8_94 = arith.constant 8 : index
      %c0_95 = arith.constant 0 : index
      %303 = vector.load %arg11[%c8_94, %c0_95] : memref<40x512xf32, #tpu.memory_space<vmem>>, vector<8x512xf32>
      tpu.vector_store %arg11[%c8_94, %c0_95], %302 {strides = array<i32>} : memref<40x512xf32, #tpu.memory_space<vmem>>, vector<8x512xf32>,
    } else {
    }
    %c2_i32_29 = arith.constant 2 : i32
    %53 = arith.cmpi sge, %arg0, %c2_i32_29 : i32
    %54 = arith.extui %53 : i1 to i32
    %c0_i32_30 = arith.constant 0 : i32
    %55 = arith.cmpi ne, %54, %c0_i32_30 : i32
    scf.if %55 {
      %c2_i32_78 = arith.constant 2 : i32
      %279 = arith.addi %c2_i32_78, %arg1 : i32
      %280 = arith.index_cast %279 : i32 to index
      %c0_79 = arith.constant 0 : index
      %c0_80 = arith.constant 0 : index
      %281 = vector.load %arg12[%280, %c0_79, %c0_80] : memref<10x8x512xf32, #tpu.memory_space<vmem>>, vector<1x8x512xf32>
      %282 = vector.shape_cast %281 : vector<1x8x512xf32> to vector<8x512xf32>
      %c0_81 = arith.constant 0 : index
      %c16 = arith.constant 16 : index
      %c0_82 = arith.constant 0 : index
      %283 = vector.load %arg4[%c0_81, %c16, %c0_82] : memref<1x40x1xf32, #tpu.memory_space<vmem>>, vector<1x8x1xf32>
      %284 = vector.shape_cast %283 : vector<1x8x1xf32> to vector<8x1xf32>
      %c0_83 = arith.constant 0 : index
      %c16_84 = arith.constant 16 : index
      %c0_85 = arith.constant 0 : index
      %285 = vector.load %arg5[%c0_83, %c16_84, %c0_85] : memref<1x40x1xf32, #tpu.memory_space<vmem>>, vector<1x8x1xf32>
      %286 = vector.shape_cast %285 : vector<1x8x1xf32> to vector<8x1xf32>
      %c2_86 = arith.constant 2 : index
      %c0_87 = arith.constant 0 : index
      %c0_88 = arith.constant 0 : index
      %287 = vector.load %arg14[%c2_86, %c0_87, %c0_88] : memref<5x8x1xf32, #tpu.memory_space<vmem>>, vector<1x8x1xf32>
      %288 = vector.shape_cast %287 : vector<1x8x1xf32> to vector<8x1xf32>
      %cst_89 = arith.constant 9.99999974E-6 : f32
      %289 = vector.broadcast %cst_89 : f32 to vector<8x1xf32>
      %290 = arith.addf %288, %289 : vector<8x1xf32>
      %291 = math.rsqrt %290 : vector<8x1xf32>
      %292 = arith.mulf %284, %291 : vector<8x1xf32>
      %c2_90 = arith.constant 2 : index
      %c0_91 = arith.constant 0 : index
      %c0_92 = arith.constant 0 : index
      %293 = vector.load %arg13[%c2_90, %c0_91, %c0_92] : memref<5x8x1xf32, #tpu.memory_space<vmem>>, vector<1x8x1xf32>
      %294 = vector.shape_cast %293 : vector<1x8x1xf32> to vector<8x1xf32>
      %295 = arith.mulf %294, %292 : vector<8x1xf32>
      %296 = arith.subf %286, %295 : vector<8x1xf32>
      %297 = vector.broadcast %292 : vector<8x1xf32> to vector<8x512xf32>
      %298 = arith.mulf %282, %297 : vector<8x512xf32>
      %299 = vector.broadcast %296 : vector<8x1xf32> to vector<8x512xf32>
      %300 = arith.addf %298, %299 : vector<8x512xf32>
      %cst_93 = arith.constant 0.000000e+00 : f32
      %301 = vector.broadcast %cst_93 : f32 to vector<8x512xf32>
      %302 = arith.maximumf %300, %301 : vector<8x512xf32>
      %c16_94 = arith.constant 16 : index
      %c0_95 = arith.constant 0 : index
      %303 = vector.load %arg11[%c16_94, %c0_95] : memref<40x512xf32, #tpu.memory_space<vmem>>, vector<8x512xf32>
      tpu.vector_store %arg11[%c16_94, %c0_95], %302 {strides = array<i32>} : memref<40x512xf32, #tpu.memory_space<vmem>>, vector<8x512xf32>,
    } else {
    }
    %c3_i32_31 = arith.constant 3 : i32
    %56 = arith.cmpi sge, %arg0, %c3_i32_31 : i32
    %57 = arith.extui %56 : i1 to i32
    %c0_i32_32 = arith.constant 0 : i32
    %58 = arith.cmpi ne, %57, %c0_i32_32 : i32
    scf.if %58 {
      %c4_i32_78 = arith.constant 4 : i32
      %279 = arith.addi %c4_i32_78, %arg1 : i32
      %280 = arith.index_cast %279 : i32 to index
      %c0_79 = arith.constant 0 : index
      %c0_80 = arith.constant 0 : index
      %281 = vector.load %arg12[%280, %c0_79, %c0_80] : memref<10x8x512xf32, #tpu.memory_space<vmem>>, vector<1x8x512xf32>
      %282 = vector.shape_cast %281 : vector<1x8x512xf32> to vector<8x512xf32>
      %c0_81 = arith.constant 0 : index
      %c24 = arith.constant 24 : index
      %c0_82 = arith.constant 0 : index
      %283 = vector.load %arg4[%c0_81, %c24, %c0_82] : memref<1x40x1xf32, #tpu.memory_space<vmem>>, vector<1x8x1xf32>
      %284 = vector.shape_cast %283 : vector<1x8x1xf32> to vector<8x1xf32>
      %c0_83 = arith.constant 0 : index
      %c24_84 = arith.constant 24 : index
      %c0_85 = arith.constant 0 : index
      %285 = vector.load %arg5[%c0_83, %c24_84, %c0_85] : memref<1x40x1xf32, #tpu.memory_space<vmem>>, vector<1x8x1xf32>
      %286 = vector.shape_cast %285 : vector<1x8x1xf32> to vector<8x1xf32>
      %c3 = arith.constant 3 : index
      %c0_86 = arith.constant 0 : index
      %c0_87 = arith.constant 0 : index
      %287 = vector.load %arg14[%c3, %c0_86, %c0_87] : memref<5x8x1xf32, #tpu.memory_space<vmem>>, vector<1x8x1xf32>
      %288 = vector.shape_cast %287 : vector<1x8x1xf32> to vector<8x1xf32>
      %cst_88 = arith.constant 9.99999974E-6 : f32
      %289 = vector.broadcast %cst_88 : f32 to vector<8x1xf32>
      %290 = arith.addf %288, %289 : vector<8x1xf32>
      %291 = math.rsqrt %290 : vector<8x1xf32>
      %292 = arith.mulf %284, %291 : vector<8x1xf32>
      %c3_89 = arith.constant 3 : index
      %c0_90 = arith.constant 0 : index
      %c0_91 = arith.constant 0 : index
      %293 = vector.load %arg13[%c3_89, %c0_90, %c0_91] : memref<5x8x1xf32, #tpu.memory_space<vmem>>, vector<1x8x1xf32>
      %294 = vector.shape_cast %293 : vector<1x8x1xf32> to vector<8x1xf32>
      %295 = arith.mulf %294, %292 : vector<8x1xf32>
      %296 = arith.subf %286, %295 : vector<8x1xf32>
      %297 = vector.broadcast %292 : vector<8x1xf32> to vector<8x512xf32>
      %298 = arith.mulf %282, %297 : vector<8x512xf32>
      %299 = vector.broadcast %296 : vector<8x1xf32> to vector<8x512xf32>
      %300 = arith.addf %298, %299 : vector<8x512xf32>
      %cst_92 = arith.constant 0.000000e+00 : f32
      %301 = vector.broadcast %cst_92 : f32 to vector<8x512xf32>
      %302 = arith.maximumf %300, %301 : vector<8x512xf32>
      %c24_93 = arith.constant 24 : index
      %c0_94 = arith.constant 0 : index
      %303 = vector.load %arg11[%c24_93, %c0_94] : memref<40x512xf32, #tpu.memory_space<vmem>>, vector<8x512xf32>
      tpu.vector_store %arg11[%c24_93, %c0_94], %302 {strides = array<i32>} : memref<40x512xf32, #tpu.memory_space<vmem>>, vector<8x512xf32>,
    } else {
    }
    %c4_i32_33 = arith.constant 4 : i32
    %59 = arith.cmpi sge, %arg0, %c4_i32_33 : i32
    %60 = arith.extui %59 : i1 to i32
    %c0_i32_34 = arith.constant 0 : i32
    %61 = arith.cmpi ne, %60, %c0_i32_34 : i32
    scf.if %61 {
      %c6_i32 = arith.constant 6 : i32
      %279 = arith.addi %c6_i32, %arg1 : i32
      %280 = arith.index_cast %279 : i32 to index
      %c0_78 = arith.constant 0 : index
      %c0_79 = arith.constant 0 : index
      %281 = vector.load %arg12[%280, %c0_78, %c0_79] : memref<10x8x512xf32, #tpu.memory_space<vmem>>, vector<1x8x512xf32>
      %282 = vector.shape_cast %281 : vector<1x8x512xf32> to vector<8x512xf32>
      %c0_80 = arith.constant 0 : index
      %c32 = arith.constant 32 : index
      %c0_81 = arith.constant 0 : index
      %283 = vector.load %arg4[%c0_80, %c32, %c0_81] : memref<1x40x1xf32, #tpu.memory_space<vmem>>, vector<1x8x1xf32>
      %284 = vector.shape_cast %283 : vector<1x8x1xf32> to vector<8x1xf32>
      %c0_82 = arith.constant 0 : index
      %c32_83 = arith.constant 32 : index
      %c0_84 = arith.constant 0 : index
      %285 = vector.load %arg5[%c0_82, %c32_83, %c0_84] : memref<1x40x1xf32, #tpu.memory_space<vmem>>, vector<1x8x1xf32>
      %286 = vector.shape_cast %285 : vector<1x8x1xf32> to vector<8x1xf32>
      %c4 = arith.constant 4 : index
      %c0_85 = arith.constant 0 : index
      %c0_86 = arith.constant 0 : index
      %287 = vector.load %arg14[%c4, %c0_85, %c0_86] : memref<5x8x1xf32, #tpu.memory_space<vmem>>, vector<1x8x1xf32>
      %288 = vector.shape_cast %287 : vector<1x8x1xf32> to vector<8x1xf32>
      %cst_87 = arith.constant 9.99999974E-6 : f32
      %289 = vector.broadcast %cst_87 : f32 to vector<8x1xf32>
      %290 = arith.addf %288, %289 : vector<8x1xf32>
      %291 = math.rsqrt %290 : vector<8x1xf32>
      %292 = arith.mulf %284, %291 : vector<8x1xf32>
      %c4_88 = arith.constant 4 : index
      %c0_89 = arith.constant 0 : index
      %c0_90 = arith.constant 0 : index
      %293 = vector.load %arg13[%c4_88, %c0_89, %c0_90] : memref<5x8x1xf32, #tpu.memory_space<vmem>>, vector<1x8x1xf32>
      %294 = vector.shape_cast %293 : vector<1x8x1xf32> to vector<8x1xf32>
      %295 = arith.mulf %294, %292 : vector<8x1xf32>
      %296 = arith.subf %286, %295 : vector<8x1xf32>
      %297 = vector.broadcast %292 : vector<8x1xf32> to vector<8x512xf32>
      %298 = arith.mulf %282, %297 : vector<8x512xf32>
      %299 = vector.broadcast %296 : vector<8x1xf32> to vector<8x512xf32>
      %300 = arith.addf %298, %299 : vector<8x512xf32>
      %cst_91 = arith.constant 0.000000e+00 : f32
      %301 = vector.broadcast %cst_91 : f32 to vector<8x512xf32>
      %302 = arith.maximumf %300, %301 : vector<8x512xf32>
      %c32_92 = arith.constant 32 : index
      %c0_93 = arith.constant 0 : index
      %303 = vector.load %arg11[%c32_92, %c0_93] : memref<40x512xf32, #tpu.memory_space<vmem>>, vector<8x512xf32>
      tpu.vector_store %arg11[%c32_92, %c0_93], %302 {strides = array<i32>} : memref<40x512xf32, #tpu.memory_space<vmem>>, vector<8x512xf32>,
    } else {
    }
    %c0_35 = arith.constant 0 : index
    %c0_36 = arith.constant 0 : index
    %c0_37 = arith.constant 0 : index
    %62 = vector.load %arg6[%c0_35, %c0_36, %c0_37] : memref<1x216x40xf32, #tpu.memory_space<vmem>>, vector<1x216x40xf32>
    %63 = vector.shape_cast %62 : vector<1x216x40xf32> to vector<216x40xf32>
    %c0_38 = arith.constant 0 : index
    %c0_39 = arith.constant 0 : index
    %64 = vector.load %arg11[%c0_38, %c0_39] : memref<40x512xf32, #tpu.memory_space<vmem>>, vector<40x512xf32>
    %cst_40 = arith.constant dense<0.000000e+00> : vector<216x512xf32>
    %65 = tpu.matmul %63, %64, %cst_40 {dimension_numbers = #tpu.dot_dimension_numbers<[1], [0], [0], [1], [0, 0, 1, 1], [], []>} : vector<216x40xf32>, vector<40x512xf32>, vector<216x512xf32> -> vector<216x512xf32>
    %c0_41 = arith.constant 0 : index
    %c0_42 = arith.constant 0 : index
    %66 = vector.load %arg8[%c0_41, %c0_42] : memref<8x512xf32, #tpu.memory_space<vmem>>, vector<1x512xf32>
    %c1 = arith.constant 1 : index
    %c0_43 = arith.constant 0 : index
    %67 = vector.load %arg8[%c1, %c0_43] : memref<8x512xf32, #tpu.memory_space<vmem>>, vector<1x512xf32>
    %c2 = arith.constant 2 : index
    %c0_44 = arith.constant 0 : index
    %68 = vector.load %arg8[%c2, %c0_44] : memref<8x512xf32, #tpu.memory_space<vmem>>, vector<1x512xf32>
    %cst_45 = arith.constant 1.000000e+00 : f32
    %69 = vector.broadcast %cst_45 : f32 to vector<1x512xf32>
    %70 = arith.cmpf oge, %66, %69 : vector<1x512xf32>
    %cst_46 = arith.constant 1.000000e+00 : f32
    %cst_47 = arith.constant 0.000000e+00 : f32
    %71 = vector.broadcast %cst_46 : f32 to vector<1x512xf32>
    %72 = vector.broadcast %cst_47 : f32 to vector<1x512xf32>
    %73 = arith.select %70, %71, %72 : vector<1x512xi1>, vector<1x512xf32>
    %cst_48 = arith.constant 1.000000e+00 : f32
    %74 = vector.broadcast %cst_48 : f32 to vector<1x512xf32>
    %75 = arith.cmpf oge, %67, %74 : vector<1x512xf32>
    %cst_49 = arith.constant 1.000000e+00 : f32
    %cst_50 = arith.constant 0.000000e+00 : f32
    %76 = vector.broadcast %cst_49 : f32 to vector<1x512xf32>
    %77 = vector.broadcast %cst_50 : f32 to vector<1x512xf32>
    %78 = arith.select %75, %76, %77 : vector<1x512xi1>, vector<1x512xf32>
    %cst_51 = arith.constant 1.000000e+00 : f32
    %79 = vector.broadcast %cst_51 : f32 to vector<1x512xf32>
    %80 = arith.cmpf oge, %68, %79 : vector<1x512xf32>
    %cst_52 = arith.constant 1.000000e+00 : f32
    %cst_53 = arith.constant 0.000000e+00 : f32
    %81 = vector.broadcast %cst_52 : f32 to vector<1x512xf32>
    %82 = vector.broadcast %cst_53 : f32 to vector<1x512xf32>
    %83 = arith.select %80, %81, %82 : vector<1x512xi1>, vector<1x512xf32>
    %cst_54 = arith.constant 6.000000e+00 : f32
    %84 = vector.broadcast %cst_54 : f32 to vector<1x512xf32>
    %85 = arith.cmpf ole, %66, %84 : vector<1x512xf32>
    %cst_55 = arith.constant 1.000000e+00 : f32
    %cst_56 = arith.constant 0.000000e+00 : f32
    %86 = vector.broadcast %cst_55 : f32 to vector<1x512xf32>
    %87 = vector.broadcast %cst_56 : f32 to vector<1x512xf32>
    %88 = arith.select %85, %86, %87 : vector<1x512xi1>, vector<1x512xf32>
    %cst_57 = arith.constant 6.000000e+00 : f32
    %89 = vector.broadcast %cst_57 : f32 to vector<1x512xf32>
    %90 = arith.cmpf ole, %67, %89 : vector<1x512xf32>
    %cst_58 = arith.constant 1.000000e+00 : f32
    %cst_59 = arith.constant 0.000000e+00 : f32
    %91 = vector.broadcast %cst_58 : f32 to vector<1x512xf32>
    %92 = vector.broadcast %cst_59 : f32 to vector<1x512xf32>
    %93 = arith.select %90, %91, %92 : vector<1x512xi1>, vector<1x512xf32>
    %cst_60 = arith.constant 6.000000e+00 : f32
    %94 = vector.broadcast %cst_60 : f32 to vector<1x512xf32>
    %95 = arith.cmpf ole, %68, %94 : vector<1x512xf32>
    %cst_61 = arith.constant 1.000000e+00 : f32
    %cst_62 = arith.constant 0.000000e+00 : f32
    %96 = vector.broadcast %cst_61 : f32 to vector<1x512xf32>
    %97 = vector.broadcast %cst_62 : f32 to vector<1x512xf32>
    %98 = arith.select %95, %96, %97 : vector<1x512xi1>, vector<1x512xf32>
    %cst_63 = arith.constant 0.000000e+00 : f32
    %99 = vector.broadcast %cst_63 : f32 to vector<8x512xf32>
    %100 = vector.extract_strided_slice %65 {offsets = [0, 0], sizes = [8, 512], strides = [1, 1]} : vector<216x512xf32> to vector<8x512xf32>
    %c73_i32 = arith.constant 73 : i32
    %101 = tpu.dynamic_rotate %100 by %c73_i32 dim 1 : vector<8x512xf32>, i32 -> vector<8x512xf32>
    %102 = arith.mulf %73, %78 : vector<1x512xf32>
    %103 = arith.mulf %102, %83 : vector<1x512xf32>
    %104 = vector.broadcast %103 : vector<1x512xf32> to vector<8x512xf32>
    %105 = arith.mulf %104, %101 : vector<8x512xf32>
    %106 = arith.addf %99, %105 : vector<8x512xf32>
    %107 = vector.extract_strided_slice %65 {offsets = [8, 0], sizes = [8, 512], strides = [1, 1]} : vector<216x512xf32> to vector<8x512xf32>
    %c72_i32 = arith.constant 72 : i32
    %108 = tpu.dynamic_rotate %107 by %c72_i32 dim 1 : vector<8x512xf32>, i32 -> vector<8x512xf32>
    %109 = arith.mulf %73, %78 : vector<1x512xf32>
    %110 = vector.broadcast %109 : vector<1x512xf32> to vector<8x512xf32>
    %111 = arith.mulf %110, %108 : vector<8x512xf32>
    %112 = arith.addf %106, %111 : vector<8x512xf32>
    %113 = vector.extract_strided_slice %65 {offsets = [16, 0], sizes = [8, 512], strides = [1, 1]} : vector<216x512xf32> to vector<8x512xf32>
    %c71_i32 = arith.constant 71 : i32
    %114 = tpu.dynamic_rotate %113 by %c71_i32 dim 1 : vector<8x512xf32>, i32 -> vector<8x512xf32>
    %115 = arith.mulf %73, %78 : vector<1x512xf32>
    %116 = arith.mulf %115, %98 : vector<1x512xf32>
    %117 = vector.broadcast %116 : vector<1x512xf32> to vector<8x512xf32>
    %118 = arith.mulf %117, %114 : vector<8x512xf32>
    %119 = arith.addf %112, %118 : vector<8x512xf32>
    %120 = vector.extract_strided_slice %65 {offsets = [24, 0], sizes = [8, 512], strides = [1, 1]} : vector<216x512xf32> to vector<8x512xf32>
    %c65_i32 = arith.constant 65 : i32
    %121 = tpu.dynamic_rotate %120 by %c65_i32 dim 1 : vector<8x512xf32>, i32 -> vector<8x512xf32>
    %122 = arith.mulf %73, %83 : vector<1x512xf32>
    %123 = vector.broadcast %122 : vector<1x512xf32> to vector<8x512xf32>
    %124 = arith.mulf %123, %121 : vector<8x512xf32>
    %125 = arith.addf %119, %124 : vector<8x512xf32>
    %126 = vector.extract_strided_slice %65 {offsets = [32, 0], sizes = [8, 512], strides = [1, 1]} : vector<216x512xf32> to vector<8x512xf32>
    %c64_i32 = arith.constant 64 : i32
    %127 = tpu.dynamic_rotate %126 by %c64_i32 dim 1 : vector<8x512xf32>, i32 -> vector<8x512xf32>
    %128 = vector.broadcast %73 : vector<1x512xf32> to vector<8x512xf32>
    %129 = arith.mulf %128, %127 : vector<8x512xf32>
    %130 = arith.addf %125, %129 : vector<8x512xf32>
    %131 = vector.extract_strided_slice %65 {offsets = [40, 0], sizes = [8, 512], strides = [1, 1]} : vector<216x512xf32> to vector<8x512xf32>
    %c63_i32 = arith.constant 63 : i32
    %132 = tpu.dynamic_rotate %131 by %c63_i32 dim 1 : vector<8x512xf32>, i32 -> vector<8x512xf32>
    %133 = arith.mulf %73, %98 : vector<1x512xf32>
    %134 = vector.broadcast %133 : vector<1x512xf32> to vector<8x512xf32>
    %135 = arith.mulf %134, %132 : vector<8x512xf32>
    %136 = arith.addf %130, %135 : vector<8x512xf32>
    %137 = vector.extract_strided_slice %65 {offsets = [48, 0], sizes = [8, 512], strides = [1, 1]} : vector<216x512xf32> to vector<8x512xf32>
    %c57_i32 = arith.constant 57 : i32
    %138 = tpu.dynamic_rotate %137 by %c57_i32 dim 1 : vector<8x512xf32>, i32 -> vector<8x512xf32>
    %139 = arith.mulf %73, %93 : vector<1x512xf32>
    %140 = arith.mulf %139, %83 : vector<1x512xf32>
    %141 = vector.broadcast %140 : vector<1x512xf32> to vector<8x512xf32>
    %142 = arith.mulf %141, %138 : vector<8x512xf32>
    %143 = arith.addf %136, %142 : vector<8x512xf32>
    %144 = vector.extract_strided_slice %65 {offsets = [56, 0], sizes = [8, 512], strides = [1, 1]} : vector<216x512xf32> to vector<8x512xf32>
    %c56_i32 = arith.constant 56 : i32
    %145 = tpu.dynamic_rotate %144 by %c56_i32 dim 1 : vector<8x512xf32>, i32 -> vector<8x512xf32>
    %146 = arith.mulf %73, %93 : vector<1x512xf32>
    %147 = vector.broadcast %146 : vector<1x512xf32> to vector<8x512xf32>
    %148 = arith.mulf %147, %145 : vector<8x512xf32>
    %149 = arith.addf %143, %148 : vector<8x512xf32>
    %150 = vector.extract_strided_slice %65 {offsets = [64, 0], sizes = [8, 512], strides = [1, 1]} : vector<216x512xf32> to vector<8x512xf32>
    %c55_i32 = arith.constant 55 : i32
    %151 = tpu.dynamic_rotate %150 by %c55_i32 dim 1 : vector<8x512xf32>, i32 -> vector<8x512xf32>
    %152 = arith.mulf %73, %93 : vector<1x512xf32>
    %153 = arith.mulf %152, %98 : vector<1x512xf32>
    %154 = vector.broadcast %153 : vector<1x512xf32> to vector<8x512xf32>
    %155 = arith.mulf %154, %151 : vector<8x512xf32>
    %156 = arith.addf %149, %155 : vector<8x512xf32>
    %157 = vector.extract_strided_slice %65 {offsets = [72, 0], sizes = [8, 512], strides = [1, 1]} : vector<216x512xf32> to vector<8x512xf32>
    %c9_i32 = arith.constant 9 : i32
    %158 = tpu.dynamic_rotate %157 by %c9_i32 dim 1 : vector<8x512xf32>, i32 -> vector<8x512xf32>
    %159 = arith.mulf %78, %83 : vector<1x512xf32>
    %160 = vector.broadcast %159 : vector<1x512xf32> to vector<8x512xf32>
    %161 = arith.mulf %160, %158 : vector<8x512xf32>
    %162 = arith.addf %156, %161 : vector<8x512xf32>
    %163 = vector.extract_strided_slice %65 {offsets = [80, 0], sizes = [8, 512], strides = [1, 1]} : vector<216x512xf32> to vector<8x512xf32>
    %c8_i32 = arith.constant 8 : i32
    %164 = tpu.dynamic_rotate %163 by %c8_i32 dim 1 : vector<8x512xf32>, i32 -> vector<8x512xf32>
    %165 = vector.broadcast %78 : vector<1x512xf32> to vector<8x512xf32>
    %166 = arith.mulf %165, %164 : vector<8x512xf32>
    %167 = arith.addf %162, %166 : vector<8x512xf32>
    %168 = vector.extract_strided_slice %65 {offsets = [88, 0], sizes = [8, 512], strides = [1, 1]} : vector<216x512xf32> to vector<8x512xf32>
    %c7_i32 = arith.constant 7 : i32
    %169 = tpu.dynamic_rotate %168 by %c7_i32 dim 1 : vector<8x512xf32>, i32 -> vector<8x512xf32>
    %170 = arith.mulf %78, %98 : vector<1x512xf32>
    %171 = vector.broadcast %170 : vector<1x512xf32> to vector<8x512xf32>
    %172 = arith.mulf %171, %169 : vector<8x512xf32>
    %173 = arith.addf %167, %172 : vector<8x512xf32>
    %174 = vector.extract_strided_slice %65 {offsets = [96, 0], sizes = [8, 512], strides = [1, 1]} : vector<216x512xf32> to vector<8x512xf32>
    %c1_i32_64 = arith.constant 1 : i32
    %175 = tpu.dynamic_rotate %174 by %c1_i32_64 dim 1 : vector<8x512xf32>, i32 -> vector<8x512xf32>
    %176 = vector.broadcast %83 : vector<1x512xf32> to vector<8x512xf32>
    %177 = arith.mulf %176, %175 : vector<8x512xf32>
    %178 = arith.addf %173, %177 : vector<8x512xf32>
    %179 = vector.extract_strided_slice %65 {offsets = [104, 0], sizes = [8, 512], strides = [1, 1]} : vector<216x512xf32> to vector<8x512xf32>
    %180 = arith.addf %178, %179 : vector<8x512xf32>
    %181 = vector.extract_strided_slice %65 {offsets = [112, 0], sizes = [8, 512], strides = [1, 1]} : vector<216x512xf32> to vector<8x512xf32>
    %c511_i32 = arith.constant 511 : i32
    %182 = tpu.dynamic_rotate %181 by %c511_i32 dim 1 : vector<8x512xf32>, i32 -> vector<8x512xf32>
    %183 = vector.broadcast %98 : vector<1x512xf32> to vector<8x512xf32>
    %184 = arith.mulf %183, %182 : vector<8x512xf32>
    %185 = arith.addf %180, %184 : vector<8x512xf32>
    %186 = vector.extract_strided_slice %65 {offsets = [120, 0], sizes = [8, 512], strides = [1, 1]} : vector<216x512xf32> to vector<8x512xf32>
    %c505_i32 = arith.constant 505 : i32
    %187 = tpu.dynamic_rotate %186 by %c505_i32 dim 1 : vector<8x512xf32>, i32 -> vector<8x512xf32>
    %188 = arith.mulf %93, %83 : vector<1x512xf32>
    %189 = vector.broadcast %188 : vector<1x512xf32> to vector<8x512xf32>
    %190 = arith.mulf %189, %187 : vector<8x512xf32>
    %191 = arith.addf %185, %190 : vector<8x512xf32>
    %192 = vector.extract_strided_slice %65 {offsets = [128, 0], sizes = [8, 512], strides = [1, 1]} : vector<216x512xf32> to vector<8x512xf32>
    %c504_i32 = arith.constant 504 : i32
    %193 = tpu.dynamic_rotate %192 by %c504_i32 dim 1 : vector<8x512xf32>, i32 -> vector<8x512xf32>
    %194 = vector.broadcast %93 : vector<1x512xf32> to vector<8x512xf32>
    %195 = arith.mulf %194, %193 : vector<8x512xf32>
    %196 = arith.addf %191, %195 : vector<8x512xf32>
    %197 = vector.extract_strided_slice %65 {offsets = [136, 0], sizes = [8, 512], strides = [1, 1]} : vector<216x512xf32> to vector<8x512xf32>
    %c503_i32 = arith.constant 503 : i32
    %198 = tpu.dynamic_rotate %197 by %c503_i32 dim 1 : vector<8x512xf32>, i32 -> vector<8x512xf32>
    %199 = arith.mulf %93, %98 : vector<1x512xf32>
    %200 = vector.broadcast %199 : vector<1x512xf32> to vector<8x512xf32>
    %201 = arith.mulf %200, %198 : vector<8x512xf32>
    %202 = arith.addf %196, %201 : vector<8x512xf32>
    %203 = vector.extract_strided_slice %65 {offsets = [144, 0], sizes = [8, 512], strides = [1, 1]} : vector<216x512xf32> to vector<8x512xf32>
    %c457_i32 = arith.constant 457 : i32
    %204 = tpu.dynamic_rotate %203 by %c457_i32 dim 1 : vector<8x512xf32>, i32 -> vector<8x512xf32>
    %205 = arith.mulf %88, %78 : vector<1x512xf32>
    %206 = arith.mulf %205, %83 : vector<1x512xf32>
    %207 = vector.broadcast %206 : vector<1x512xf32> to vector<8x512xf32>
    %208 = arith.mulf %207, %204 : vector<8x512xf32>
    %209 = arith.addf %202, %208 : vector<8x512xf32>
    %210 = vector.extract_strided_slice %65 {offsets = [152, 0], sizes = [8, 512], strides = [1, 1]} : vector<216x512xf32> to vector<8x512xf32>
    %c456_i32 = arith.constant 456 : i32
    %211 = tpu.dynamic_rotate %210 by %c456_i32 dim 1 : vector<8x512xf32>, i32 -> vector<8x512xf32>
    %212 = arith.mulf %88, %78 : vector<1x512xf32>
    %213 = vector.broadcast %212 : vector<1x512xf32> to vector<8x512xf32>
    %214 = arith.mulf %213, %211 : vector<8x512xf32>
    %215 = arith.addf %209, %214 : vector<8x512xf32>
    %216 = vector.extract_strided_slice %65 {offsets = [160, 0], sizes = [8, 512], strides = [1, 1]} : vector<216x512xf32> to vector<8x512xf32>
    %c455_i32 = arith.constant 455 : i32
    %217 = tpu.dynamic_rotate %216 by %c455_i32 dim 1 : vector<8x512xf32>, i32 -> vector<8x512xf32>
    %218 = arith.mulf %88, %78 : vector<1x512xf32>
    %219 = arith.mulf %218, %98 : vector<1x512xf32>
    %220 = vector.broadcast %219 : vector<1x512xf32> to vector<8x512xf32>
    %221 = arith.mulf %220, %217 : vector<8x512xf32>
    %222 = arith.addf %215, %221 : vector<8x512xf32>
    %223 = vector.extract_strided_slice %65 {offsets = [168, 0], sizes = [8, 512], strides = [1, 1]} : vector<216x512xf32> to vector<8x512xf32>
    %c449_i32 = arith.constant 449 : i32
    %224 = tpu.dynamic_rotate %223 by %c449_i32 dim 1 : vector<8x512xf32>, i32 -> vector<8x512xf32>
    %225 = arith.mulf %88, %83 : vector<1x512xf32>
    %226 = vector.broadcast %225 : vector<1x512xf32> to vector<8x512xf32>
    %227 = arith.mulf %226, %224 : vector<8x512xf32>
    %228 = arith.addf %222, %227 : vector<8x512xf32>
    %229 = vector.extract_strided_slice %65 {offsets = [176, 0], sizes = [8, 512], strides = [1, 1]} : vector<216x512xf32> to vector<8x512xf32>
    %c448_i32 = arith.constant 448 : i32
    %230 = tpu.dynamic_rotate %229 by %c448_i32 dim 1 : vector<8x512xf32>, i32 -> vector<8x512xf32>
    %231 = vector.broadcast %88 : vector<1x512xf32> to vector<8x512xf32>
    %232 = arith.mulf %231, %230 : vector<8x512xf32>
    %233 = arith.addf %228, %232 : vector<8x512xf32>
    %234 = vector.extract_strided_slice %65 {offsets = [184, 0], sizes = [8, 512], strides = [1, 1]} : vector<216x512xf32> to vector<8x512xf32>
    %c447_i32 = arith.constant 447 : i32
    %235 = tpu.dynamic_rotate %234 by %c447_i32 dim 1 : vector<8x512xf32>, i32 -> vector<8x512xf32>
    %236 = arith.mulf %88, %98 : vector<1x512xf32>
    %237 = vector.broadcast %236 : vector<1x512xf32> to vector<8x512xf32>
    %238 = arith.mulf %237, %235 : vector<8x512xf32>
    %239 = arith.addf %233, %238 : vector<8x512xf32>
    %240 = vector.extract_strided_slice %65 {offsets = [192, 0], sizes = [8, 512], strides = [1, 1]} : vector<216x512xf32> to vector<8x512xf32>
    %c441_i32 = arith.constant 441 : i32
    %241 = tpu.dynamic_rotate %240 by %c441_i32 dim 1 : vector<8x512xf32>, i32 -> vector<8x512xf32>
    %242 = arith.mulf %88, %93 : vector<1x512xf32>
    %243 = arith.mulf %242, %83 : vector<1x512xf32>
    %244 = vector.broadcast %243 : vector<1x512xf32> to vector<8x512xf32>
    %245 = arith.mulf %244, %241 : vector<8x512xf32>
    %246 = arith.addf %239, %245 : vector<8x512xf32>
    %247 = vector.extract_strided_slice %65 {offsets = [200, 0], sizes = [8, 512], strides = [1, 1]} : vector<216x512xf32> to vector<8x512xf32>
    %c440_i32 = arith.constant 440 : i32
    %248 = tpu.dynamic_rotate %247 by %c440_i32 dim 1 : vector<8x512xf32>, i32 -> vector<8x512xf32>
    %249 = arith.mulf %88, %93 : vector<1x512xf32>
    %250 = vector.broadcast %249 : vector<1x512xf32> to vector<8x512xf32>
    %251 = arith.mulf %250, %248 : vector<8x512xf32>
    %252 = arith.addf %246, %251 : vector<8x512xf32>
    %253 = vector.extract_strided_slice %65 {offsets = [208, 0], sizes = [8, 512], strides = [1, 1]} : vector<216x512xf32> to vector<8x512xf32>
    %c439_i32 = arith.constant 439 : i32
    %254 = tpu.dynamic_rotate %253 by %c439_i32 dim 1 : vector<8x512xf32>, i32 -> vector<8x512xf32>
    %255 = arith.mulf %88, %93 : vector<1x512xf32>
    %256 = arith.mulf %255, %98 : vector<1x512xf32>
    %257 = vector.broadcast %256 : vector<1x512xf32> to vector<8x512xf32>
    %258 = arith.mulf %257, %254 : vector<8x512xf32>
    %259 = arith.addf %252, %258 : vector<8x512xf32>
    %c0_65 = arith.constant 0 : index
    %c0_66 = arith.constant 0 : index
    %c0_67 = arith.constant 0 : index
    %260 = vector.load %arg7[%c0_65, %c0_66, %c0_67] : memref<1x8x1xf32, #tpu.memory_space<vmem>>, vector<1x8x1xf32>
    %261 = vector.shape_cast %260 : vector<1x8x1xf32> to vector<8x1xf32>
    %262 = vector.broadcast %261 : vector<8x1xf32> to vector<8x512xf32>
    %263 = arith.addf %259, %262 : vector<8x512xf32>
    %c2_i32_68 = arith.constant 2 : i32
    %264 = arith.muli %arg0, %c2_i32_68 : i32
    %265 = arith.addi %264, %arg1 : i32
    %266 = arith.index_cast %265 : i32 to index
    %c0_69 = arith.constant 0 : index
    %c0_70 = arith.constant 0 : index
    %267 = vector.load %arg12[%266, %c0_69, %c0_70] : memref<10x8x512xf32, #tpu.memory_space<vmem>>, vector<1x8x512xf32>
    %268 = vector.shape_cast %267 : vector<1x8x512xf32> to vector<8x512xf32>
    %269 = vector.shape_cast %263 : vector<8x512xf32> to vector<1x8x512xf32>
    tpu.vector_store %arg12[%266, %c0_69, %c0_70], %269 {strides = array<i32>} : memref<10x8x512xf32, #tpu.memory_space<vmem>>, vector<1x8x512xf32>,
    %270 = vector.extract_strided_slice %263 {offsets = [0, 0], sizes = [4, 512], strides = [1, 1]} : vector<8x512xf32> to vector<4x512xf32>
    %cst_71 = arith.constant 2.000000e-01 : f32
    %271 = vector.broadcast %cst_71 : f32 to vector<4x512xf32>
    %272 = arith.mulf %270, %271 : vector<4x512xf32>
    %c0_72 = arith.constant 0 : index
    %c0_73 = arith.constant 0 : index
    %c0_74 = arith.constant 0 : index
    %273 = vector.load %arg9[%c0_72, %c0_73, %c0_74] : memref<1x4x512xf32, #tpu.memory_space<vmem>>, vector<1x4x512xf32>
    %274 = vector.shape_cast %273 : vector<1x4x512xf32> to vector<4x512xf32>
    %275 = arith.addf %272, %274 : vector<4x512xf32>
    %c0_75 = arith.constant 0 : index
    %c0_76 = arith.constant 0 : index
    %c0_77 = arith.constant 0 : index
    %276 = vector.load %arg10[%c0_75, %c0_76, %c0_77] : memref<1x4x512xf32, #tpu.memory_space<vmem>>, vector<1x4x512xf32>
    %277 = vector.shape_cast %276 : vector<1x4x512xf32> to vector<4x512xf32>
    %278 = vector.shape_cast %275 : vector<4x512xf32> to vector<1x4x512xf32>
    tpu.vector_store %arg10[%c0_75, %c0_76, %c0_77], %278 {strides = array<i32>} : memref<1x4x512xf32, #tpu.memory_space<vmem>>, vector<1x4x512xf32>,
    return
  }
  func.func @transform_0(%arg0: i32, %arg1: i32) -> (i32, i32) {
    %c0_i32 = arith.constant 0 : i32
    %c0_i32_0 = arith.constant 0 : i32
    %c0_i32_1 = arith.constant 0 : i32
    return %c0_i32, %c0_i32_0 : i32, i32
  }
  func.func @transform_1(%arg0: i32, %arg1: i32) -> (i32, i32) {
    %c0_i32 = arith.constant 0 : i32
    %c0_i32_0 = arith.constant 0 : i32
    %c0_i32_1 = arith.constant 0 : i32
    return %c0_i32, %c0_i32_0 : i32, i32
  }
  func.func @transform_2(%arg0: i32, %arg1: i32) -> (i32, i32, i32) {
    %c0_i32 = arith.constant 0 : i32
    %c0_i32_0 = arith.constant 0 : i32
    %c0_i32_1 = arith.constant 0 : i32
    return %arg0, %c0_i32, %c0_i32_0 : i32, i32, i32
  }
  func.func @transform_3(%arg0: i32, %arg1: i32) -> (i32, i32, i32) {
    %c0_i32 = arith.constant 0 : i32
    %c0_i32_0 = arith.constant 0 : i32
    %c0_i32_1 = arith.constant 0 : i32
    return %arg0, %c0_i32, %c0_i32_0 : i32, i32, i32
  }
  func.func @transform_4(%arg0: i32, %arg1: i32) -> (i32, i32, i32) {
    %c0_i32 = arith.constant 0 : i32
    %c0_i32_0 = arith.constant 0 : i32
    %c0_i32_1 = arith.constant 0 : i32
    return %arg0, %c0_i32, %c0_i32_0 : i32, i32, i32
  }
  func.func @transform_5(%arg0: i32, %arg1: i32) -> (i32, i32, i32) {
    %c0_i32 = arith.constant 0 : i32
    %c0_i32_0 = arith.constant 0 : i32
    %c0_i32_1 = arith.constant 0 : i32
    return %arg0, %c0_i32, %c0_i32_0 : i32, i32, i32
  }
  func.func @transform_6(%arg0: i32, %arg1: i32) -> (i32, i32) {
    %c0_i32 = arith.constant 0 : i32
    %c0_i32_0 = arith.constant 0 : i32
    %c0_i32_1 = arith.constant 0 : i32
    return %c0_i32, %c0_i32_0 : i32, i32
  }
  func.func @transform_7(%arg0: i32, %arg1: i32) -> (i32, i32, i32) {
    %c0_i32 = arith.constant 0 : i32
    %c0_i32_0 = arith.constant 0 : i32
    %c0_i32_1 = arith.constant 0 : i32
    return %arg1, %c0_i32, %c0_i32_0 : i32, i32, i32
  }
  func.func @transform_8(%arg0: i32, %arg1: i32) -> (i32, i32, i32) {
    %c0_i32 = arith.constant 0 : i32
    %c0_i32_0 = arith.constant 0 : i32
    %c0_i32_1 = arith.constant 0 : i32
    return %arg1, %c0_i32, %c0_i32_0 : i32, i32, i32
  }
}

</mosaic_0001>

<bundles_post_ra>
// kernel: rrdb.3
= control target key start
LH: loop header
LB: loop body
LE: loop exit
PB: predicated region body
PF: predicated region fallthrough
CT: control target
= control target key end

     0   :  { %s5197_s0 = inlined_call_operand.vmem [shape: f32[8,1], index: 0, kind: input, shape index: {}]   ;;  %s5198_s1 = inlined_call_operand.vmem [shape: f32[8,1], index: 1, kind: input, shape index: {}]   ;;  %s5199_s2 = inlined_call_operand.hbm [shape: f32[5,40,1], index: 2, kind: input, shape index: {}]   ;;  %s5200_s3 = inlined_call_operand.hbm [shape: f32[5,40,1], index: 3, kind: input, shape index: {}]   ;;  %s5201_s4 = inlined_call_operand.hbm [shape: f32[5,216,40], index: 4, kind: input, shape index: {}]   ;;  %s5202_s5 = inlined_call_operand.vmem [shape: f32[5,8,1], index: 5, kind: input, shape index: {}]   ;;  %s5203_s6 = inlined_call_operand.vmem [shape: f32[8,512], index: 6, kind: input, shape index: {}]   ;;  %s5204_s7 = inlined_call_operand.hbm [shape: f32[2,4,512], index: 7, kind: input, shape index: {}]   ;;  %s5205_s8 = inlined_call_operand.vmem [shape: f32[2,4,512], index: 8, kind: output, shape index: {}]  }
   0x1   :  { %5226 = sst [smem:[#allocation42_spill]] %s5197_s0 }
   0x2   :  { %5227 = sst [smem:[#allocation43_spill]] %s5198_s1 }
   0x3   :  { %5228 = sst [smem:[#allocation44_spill]] %s5199_s2 }
   0x4   :  { %5229 = sst [smem:[#allocation45_spill]] %s5200_s3 }
   0x5   :  { %5230 = sst [smem:[#allocation46_spill]] %s5201_s4 }
   0x6   :  { %5231 = sst [smem:[#allocation47_spill]] %s5202_s5 }
   0x7   :  { %5232 = sst [smem:[#allocation48_spill]] %s5203_s6 }
   0x8   :  { %5233 = sst [smem:[#allocation49_spill]] %s5204_s7 }
   0x9   :  { %5234 = sst [smem:[#allocation50_spill]] %s5205_s8 }
   0xa   :  { %13 = vsyncpa [#allocation7], 0 }
   0xb   :  { %15 = vsyncpa [#allocation7 + $0x1], 0 }
   0xc   :  { %16 = vsyncpa [#allocation9], 0 }
   0xd   :  { %18 = vsyncpa [#allocation9 + $0x1], 0 }
   0xe   :  { %19 = vsyncpa [#allocation12], 0 }
   0xf   :  { %21 = vsyncpa [#allocation12 + $0x1], 0  ;;  %s3545_s27 = smov 0   ;;  %s3547_s28 = smov 0  }
  0x10   :  { %s3549_s29 = smov 0   ;;  %s3551_s30 = smov 0  }
  0x11   :  { %s3553_s9 = smov 0   ;;  %s3555_s10 = smov 0  }
  0x12   :  { %s3557_s11 = smov 0   ;;  %s3559_s12 = smov 0  }
  0x13   :  { %s3561_s13 = smov 0   ;;  %s3563_s14 = smov 0  }
  0x14   :  { %s3565_s15 = smov 0  }
  0x15 LB: > { %5235 = sst [smem:[#allocation16_spill]] %s3463_s14  ;;  %p95_p0 = scmp.ne.s32.totalorder %s3447_s10, %s3443_s9  ;;  %s3467_s15 = sphi %s3565_s15, %s27_s15   ;;  %s3463_s14 = sphi %s3563_s14, %s5337_s14   ;;  %s3459_s13 = sphi %s3561_s13, %s5345_s13   ;;  %s3455_s12 = sphi %s3559_s12, %s5335_s12   ;;  %s3451_s11 = sphi %s3557_s11, %s5344_s11   ;;  %s3447_s10 = sphi %s3555_s10, %s5343_s10   ;;  %s3443_s9 = sphi %s3553_s9, %s5342_s9   ;;  %s3439_s30 = sphi %s3551_s30, %s5341_s30   ;;  %s3435_s29 = sphi %s3549_s29, %s5340_s29   ;;  %s3431_s28 = sphi %s3547_s28, %s5339_s28   ;;  %s3427_s27 = sphi %s3545_s27, %s5338_s27  }
  0x16   : > { %p5210_p1 = scmp.eq.s32.totalorder %s3467_s15, 0  ;;  %p5209_p2 = scmp.lt.s32.totalorder %s3467_s15, 10 }
  0x17   : > { %s3606_s17 = sand.u32 1, %s3447_s10   ;;  %s5208_s19 = smul.u32 640, %s3463_s14 }
  0x18   : > { %p97_p3 = por %p5210_p1, %p95_p0  ;;  %s5207_s18 = smul.u32 40, %s3606_s17 }
  0x19   : > { %s306_s21 = sand.u32 1, %s3467_s15   ;;  %s5237_s3 = sld [smem:[#allocation45_spill]] }
  0x1a   : > { %p3614_p4 = pnand %p5209_p2, %p97_p3  ;;  %s310_s25 = scalar_lea.vmem [#allocation8], %s5207_s18 }
  0x1b   : > { %s317_s26 = sshll.u32 %s310_s25, 4  ;;  %s3631_s16 = scalar_lea.sflag [#allocation9], %s306_s21  ;;  %s3628_s26 = int_to_ptr.vmem [resolvable:$true] %s317_s26 }
  0x1c   : > { %p3637_p7 = pneg %p3614_p4 }
  0x1f   : > { %s3624_s24 = scalar_lea.hbm %s5237_s3, %s5208_s19  ;;  %s3254_s25 = scalar_lea.hbm %s5237_s3, 3200 }
  0x20   : > { %s3249_s6 = scalar_lea.hbm %s3624_s24, 640  ;;  %p3255_p10 = scmp.lt.u32.totalorder %s3624_s24, %s5237_s3 }
  0x21   : > { %p3250_p6 = scmp.ne.s32.totalorder %s3624_s24, %s3249_s6  ;;  %p3256_p11 = scmp.lt.u32.totalorder %s3254_s25, %s3249_s6 }
  0x22   : > { %p3258_p13 = scmp.lt.u32.totalorder %s3249_s6, %s3624_s24 }
  0x23   : > { %p3252_p8 = pnand %p3637_p7, %p3250_p6  ;;  %p3257_p12 = por %p3256_p11, %p3255_p10 }
  0x25   : > { %p3253_p9 = pneg %p3252_p8  ;;  %p3259_p0 = por %p3258_p13, %p3257_p12 }
  0x27   : > { %p3260_p3 = pnand %p3259_p0, %p3253_p9 }
  0x29   : > { %3263 = shalt.err (!%p3260_p3)
}
  0x2a   : > { %s3264_s21 = scalar_lea.vmem %s3628_s26, 640  ;;  %s3469_s22 = smov [#allocation8]  }
  0x2b   : > { %p3265_p6 = scmp.ne.s32.totalorder %s3628_s26, %s3264_s21  ;;  %s3269_s23 = sshll.u32 %s3469_s22, 4  ;;  %s3270_s23 = int_to_ptr.vmem [resolvable:$false] %s3269_s23 }
  0x2c   : > { %s3271_s18 = scalar_lea.vmem %s3270_s23, 1280  ;;  %p3272_p1 = scmp.lt.s32.totalorder %s3628_s26, %s3270_s23 }
  0x2d   : > { %p3267_p8 = pnand %p3265_p6, %p3637_p7  ;;  %p3273_p5 = scmp.lt.s32.totalorder %s3271_s18, %s3264_s21 }
  0x2f   : > { %p3268_p2 = pneg %p3267_p8  ;;  %p3274_p10 = por %p3273_p5, %p3272_p1 }
  0x31   : > { %p3275_p11 = pnand %p3274_p10, %p3268_p2 }
  0x33   : > { %3278 = shalt.err (!%p3275_p11)
}
  0x34   : > { %s5211_s6 = smov 128   ;;  %s5213_s19 = smov 8  }
  0x35   : > { %3108 = dma.hbm_to_vmem [thread:$0]  (!%p3614_p4), %s3624_s24, 640, %s3628_s26, %s3631_s16, %s5211_s6, %s5211_s6, %s5213_s19  }
  0x36   : > { %p372_p1 = scmp.lt.s32.totalorder %s3467_s15, 11  ;;  %p5239_p2 = scmp.ge.s32.totalorder %s3467_s15, 1 }
  0x37   : > { %s5241_s21 = smul.u32 640, %s3463_s14  ;;  %s5242_s2 = sld [smem:[#allocation44_spill]] }
  0x38   : > { %p3667_p5 = pnand %p5239_p2, %p372_p1  ;;  %s5243_s3 = smul.u32 40, %s3606_s17 }
  0x39   : > { %s3090_s24 = smul.u32 216, %s3606_s17  ;;  %s286_s26 = scalar_lea.sflag [#allocation7], %s3606_s17 }
  0x3a   : > { %s5240_s25 = scalar_select %p3667_p5, 1, 0 }
  0x3b   : > { %s289_s0 = scalar_lea.vmem [#allocation6], %s5243_s3 }
  0x3c   : > { %s296_s8 = sshll.u32 %s289_s0, 4  ;;  %s3680_s8 = int_to_ptr.vmem [resolvable:$true] %s296_s8 }
  0x3d   : > { %s3676_s18 = scalar_lea.hbm %s5242_s2, %s5241_s21  ;;  %s3284_s21 = scalar_lea.hbm %s5242_s2, 3200 }
  0x3e   : > { %s3279_s6 = scalar_lea.hbm %s3676_s18, 640  ;;  %p3285_p0 = scmp.lt.u32.totalorder %s3676_s18, %s5242_s2 }
  0x3f   : > { %p3280_p9 = scmp.ne.s32.totalorder %s3676_s18, %s3279_s6  ;;  %p3286_p3 = scmp.lt.u32.totalorder %s3284_s21, %s3279_s6 }
  0x40   : > { %p3288_p8 = scmp.lt.u32.totalorder %s3279_s6, %s3676_s18 }
  0x41   : > { %p3282_p12 = pnand %p3280_p9, %p3637_p7  ;;  %p3287_p6 = por %p3286_p3, %p3285_p0 }
  0x43   : > { %p3283_p13 = pneg %p3282_p12  ;;  %p3289_p10 = por %p3288_p8, %p3287_p6 }
  0x45   : > { %p3290_p11 = pnand %p3289_p10, %p3283_p13 }
  0x47   : > { %3293 = shalt.err (!%p3290_p11)
}
  0x48   : > { %s3294_s0 = scalar_lea.vmem %s3680_s8, 640  ;;  %s3472_s3 = smov [#allocation6]  }
  0x49   : > { %p3295_p1 = scmp.ne.s32.totalorder %s3680_s8, %s3294_s0  ;;  %s3299_s19 = sshll.u32 %s3472_s3, 4  ;;  %s3300_s19 = int_to_ptr.vmem [resolvable:$false] %s3299_s19 }
  0x4a   : > { %s3301_s5 = scalar_lea.vmem %s3300_s19, 1280  ;;  %p3302_p12 = scmp.lt.s32.totalorder %s3680_s8, %s3300_s19 }
  0x4b   : > { %p3297_p2 = pnand %p3295_p1, %p3637_p7  ;;  %p3303_p5 = scmp.lt.s32.totalorder %s3301_s5, %s3294_s0 }
  0x4d   : > { %p3298_p9 = pneg %p3297_p2  ;;  %p3304_p0 = por %p3303_p5, %p3302_p12 }
  0x4f   : > { %p3305_p3 = pnand %p3304_p0, %p3298_p9 }
  0x51   : > { %3308 = shalt.err (!%p3305_p3)
}
  0x52   : > { %s5244_s6 = smov 8   ;;  %s5245_s22 = smov 128  }
  0x53   : > { %3105 = dma.hbm_to_vmem [thread:$0]  (!%p3614_p4), %s3676_s18, 640, %s3680_s8, %s286_s26, %s5245_s22, %s5245_s22, %s5244_s6  }
  0x54   : > { %s3091_s21 = smul.u32 3456, %s3463_s14  ;;  %s331_s23 = scalar_lea.vmem [#allocation10], %s3090_s24 }
  0x55   : > { %s338_s0 = sshll.u32 %s331_s23, 4  ;;  %s5246_s4 = sld [smem:[#allocation46_spill]]  ;;  %s3718_s0 = int_to_ptr.vmem [resolvable:$true] %s338_s0 }
  0x5b   : > { %s3716_s5 = scalar_lea.hbm %s5246_s4, %s3091_s21  ;;  %s3314_s18 = scalar_lea.hbm %s5246_s4, 17280 }
  0x5c   : > { %s3309_s2 = scalar_lea.hbm %s3716_s5, 3456  ;;  %p3315_p8 = scmp.lt.u32.totalorder %s3716_s5, %s5246_s4 }
  0x5d   : > { %p3310_p5 = scmp.ne.s32.totalorder %s3716_s5, %s3309_s2  ;;  %p3316_p10 = scmp.lt.u32.totalorder %s3314_s18, %s3309_s2 }
  0x5e   : > { %p3318_p1 = scmp.lt.u32.totalorder %s3309_s2, %s3716_s5 }
  0x5f   : > { %p3312_p13 = pnand %p3310_p5, %p3637_p7  ;;  %p3317_p11 = por %p3316_p10, %p3315_p8 }
  0x61   : > { %p3313_p6 = pneg %p3312_p13  ;;  %p3319_p2 = por %p3318_p1, %p3317_p11 }
  0x63   : > { %p3320_p9 = pnand %p3319_p2, %p3313_p6 }
  0x65   : > { %3323 = shalt.err (!%p3320_p9)
}
  0x66   : > { %s3324_s21 = scalar_lea.vmem %s3718_s0, 3456  ;;  %s3473_s23 = smov [#allocation10]  }
  0x67   : > { %p3325_p12 = scmp.ne.s32.totalorder %s3718_s0, %s3324_s21  ;;  %s3329_s3 = sshll.u32 %s3473_s23, 4  ;;  %s3330_s3 = int_to_ptr.vmem [resolvable:$false] %s3329_s3 }
  0x68   : > { %s3331_s19 = scalar_lea.vmem %s3330_s3, 6912  ;;  %p3332_p5 = scmp.lt.s32.totalorder %s3718_s0, %s3330_s3 }
  0x69   : > { %p3327_p0 = pnand %p3325_p12, %p3637_p7  ;;  %p3333_p13 = scmp.lt.s32.totalorder %s3331_s19, %s3324_s21 }
  0x6b   : > { %p3328_p3 = pneg %p3327_p0  ;;  %p3334_p8 = por %p3333_p13, %p3332_p5 }
  0x6d   : > { %p3335_p10 = pnand %p3334_p8, %p3328_p3 }
  0x6f   : > { %3338 = shalt.err (!%p3335_p10)
}
  0x70   : > { %3111 = dma.hbm_to_vmem [thread:$0]  (!%p3614_p4), %s3716_s5, 3456, %s3718_s0, %s3631_s16, %s5245_s22, %s5245_s22, %s5244_s6  }
  0x71   : > { %s2969_s1 = sadd.s32 4294967295, %s3467_s15   ;;  %s36_s2 = sadd.s32 1, %s3459_s13 }
  0x72   : > { %s39_s20 = sadd.s32 1, %s3463_s14  ;;  %p37_p7 = scmp.ge.s32.totalorder %s36_s2, 2 }
  0x73   : > { %p101_p6 = scmp.ne.s32.totalorder %s3443_s9, %s3439_s30  ;;  %p3752_p11 = scmp.eq.s32.totalorder %s2969_s1, 0 }
  0x74   : > { %s213_s17 = sadd.s32 1, %s3435_s29  ;;  %s5347_s2 = smov (%p37_p7, %s36_s2), 0 }
  0x75   : > { %5248 = sst [smem:[#allocation17_spill]] %s5347_s2  ;;  %s5349_s20 = smov (!%p37_p7, %s39_s20), %s3463_s14 }
  0x76   : > { %p3762_p4 = por %p3752_p11, %p101_p6  ;;  %s210_s30 = ssub.s32 %s3459_s13, %s5347_s2 }
  0x77   : > { %p41_p1 = scmp.ge.s32.totalorder %s5349_s20, 5  ;;  %p211_p2 = scmp.eq.s32.totalorder %s210_s30, 0 }
  0x78   : > { %p220_p9 = scmp.ne.s32.totalorder %s3435_s29, %s3431_s28  ;;  %p226_p12 = scmp.ne.s32.totalorder %s3431_s28, %s3427_s27 }
  0x79   : > { %s5351_s20 = smov (%p41_p1, %s5349_s20), 0  ;;  %p5251_p0 = scmp.eq.s32.totalorder %s3467_s15, 0 }
  0x7a   : > { %5250 = sst [smem:[#allocation18_spill]] %s5351_s20  ;;  %s85_s22 = ssub.s32 %s3463_s14, %s5351_s20 }
  0x7b   : > { %s3775_s6 = scalar_select %p211_p2, %s3435_s29, %s213_s17  }
  0x7c   : > { %p222_p3 = por %p220_p9, %p5251_p0  ;;  %p86_p5 = scmp.eq.s32.totalorder %s85_s22, 0 }
  0x7d   : > { %p3783_p13 = por %p226_p12, %p3752_p11  ;;  %s355_s5 = sand.u32 1, %s3435_s29  }
  0x7e   : > { %s3066_s18 = sshll.u32 %s3459_s13, 8  ;;  %s5253_s24 = sadd.s32 1, %s3447_s10 }
  0x7f   : > { %s5252_s0 = scalar_select %p3783_p13, 1, 0 }
  0x80   : > { %s3792_s26 = scalar_select %p86_p5, %s3447_s10, %s5253_s24  }
  0x81   : > { %s2976_s27 = sshll.u32 %s355_s5, 4  ;;  %s5254_s7 = sld [smem:[#allocation49_spill]] }
  0x82   : > { %s359_s19 = scalar_lea.vmem [#allocation11], %s2976_s27  ;;  %p5255_p8 = scmp.lt.s32.totalorder %s3467_s15, 10 }
  0x83   : > { %s367_s8 = sshll.u32 %s359_s19, 4  ;;  %s356_s30 = scalar_lea.sflag [#allocation12], %s355_s5  ;;  %s3805_s8 = int_to_ptr.vmem [resolvable:$true] %s367_s8 }
  0x84   : > { %p3801_p10 = pnand %p5255_p8, %p222_p3 }
  0x86   : > { %p3341_p6 = pneg %p3801_p10 }
  0x87   : > { %s3797_s3 = scalar_lea.hbm %s5254_s7, %s3066_s18  ;;  %s3344_s27 = scalar_lea.hbm %s5254_s7, 512 }
  0x88   : > { %s3339_s22 = scalar_lea.hbm %s3797_s3, 256  ;;  %p3345_p2 = scmp.lt.u32.totalorder %s3797_s3, %s5254_s7 }
  0x89   : > { %p3340_p7 = scmp.ne.s32.totalorder %s3797_s3, %s3339_s22  ;;  %p3346_p9 = scmp.lt.u32.totalorder %s3344_s27, %s3339_s22 }
  0x8a   : > { %p3348_p0 = scmp.lt.u32.totalorder %s3339_s22, %s3797_s3 }
  0x8b   : > { %p3342_p11 = pnand %p3341_p6, %p3340_p7  ;;  %p3347_p12 = por %p3346_p9, %p3345_p2 }
  0x8d   : > { %p3343_p1 = pneg %p3342_p11  ;;  %p3349_p3 = por %p3348_p0, %p3347_p12 }
  0x8f   : > { %p3350_p5 = pnand %p3349_p3, %p3343_p1 }
  0x91   : > { %3353 = shalt.err (!%p3350_p5)
}
  0x92   : > { %s3354_s5 = scalar_lea.vmem %s3805_s8, 256  ;;  %s3474_s19 = smov [#allocation11]  }
  0x93   : > { %p3355_p8 = scmp.ne.s32.totalorder %s3805_s8, %s3354_s5  ;;  %s3359_s18 = sshll.u32 %s3474_s19, 4  ;;  %s3360_s18 = int_to_ptr.vmem [resolvable:$false] %s3359_s18 }
  0x94   : > { %s3361_s24 = scalar_lea.vmem %s3360_s18, 512  ;;  %p3362_p13 = scmp.lt.s32.totalorder %s3805_s8, %s3360_s18 }
  0x95   : > { %p3357_p7 = pnand %p3355_p8, %p3341_p6  ;;  %p3363_p2 = scmp.lt.s32.totalorder %s3361_s24, %s3354_s5 }
  0x97   : > { %p3358_p11 = pneg %p3357_p7  ;;  %p3364_p9 = por %p3363_p2, %p3362_p13 }
  0x99   : > { %p3365_p12 = pnand %p3364_p9, %p3358_p11 }
  0x9b   : > { %3368 = shalt.err (!%p3365_p12)
}
  0x9c   : > { %3114 = dma.hbm_to_vmem [thread:$0]  (!%p3801_p10), %s3797_s3, 256, %s3805_s8, %s356_s30  }
  0x9d   : > { %p5257_p1 = scmp.ne.s32.totalorder %s5240_s25, 0 }
  0x9f   : > { %376 = sbr.rel (%p5257_p1) target bundleno = 2697 (0xa89), region = 52 }
  0xa6   : > { %s378_s22 = sand.u32 1, %s3443_s9  }
  0xa7   : > { %s3092_s27 = smul.u32 40, %s378_s22  ;;  %s379_s21 = scalar_lea.sflag [#allocation7], %s378_s22 }
  0xa9   : > { %s3835_s23 = scalar_lea.vmem [#allocation6], %s3092_s27 }
  0xaa   : > { %3414 = dma.done.wait (%p3762_p4), %s379_s21, 640  }
  0xab   : > { %3416 = vsyncadd (%p3762_p4), %s379_s21, 4294966656  ;;  %s387_s17 = sand.u32 1, %s2969_s1   ;;  %s3843_s8 = scalar_lea.vmem [#allocation8], %s3092_s27 }
  0xac   : > { %s388_s3 = scalar_lea.sflag [#allocation9], %s387_s17 }
  0xad   : > { %3418 = dma.done.wait (%p3762_p4), %s388_s3, 4096  }
  0xae   : > { %3420 = vsyncadd (%p3762_p4), %s388_s3, 4294963200  ;;  %s3093_s25 = smul.u32 216, %s378_s22  ;;  %s405_s30 = sand.u32 1, %s3431_s28  }
  0xaf   : > { %s2980_s5 = sshll.u32 %s405_s30, 4  ;;  %s406_s18 = scalar_lea.sflag [#allocation12], %s405_s30 }
  0xb0   : > { %s3850_s19 = scalar_lea.vmem [#allocation10], %s3093_s25  ;;  %s3852_s24 = scalar_lea.vmem [#allocation11], %s2980_s5 }
  0xb1   : > { %p5258_p13 = scmp.ne.s32.totalorder %s5252_s0, 0 }
  0xb3   : > { %3422 = dma.done.wait (%p5258_p13), %s406_s18, 256  }
  0xb4   : > { %3424 = vsyncadd (%p5258_p13), %s406_s18, 4294967040  ;;  %p461_p4 = scmp.lt.s32.totalorder %s3455_s12, 4  ;;  %p465_p10 = scmp.lt.s32.totalorder %s3451_s11, 1 }
  0xb5   : > { %p470_p6 = scmp.eq.s32.totalorder %s3455_s12, 0  ;;  %p471_p0 = scmp.eq.s32.totalorder %s3451_s11, 0 }
  0xb6   : > { %s462_s1 = scalar_select %p461_p4, %s3455_s12, 4 }
  0xb7   : > { %s466_s16 = scalar_select %p465_p10, %s3451_s11, 1 }
  0xb8   : > { %s2981_s22 = sshll.u32 %s462_s1, 3  ;;  %p472_p3 = pnand %p471_p0, %p470_p6 }
  0xb9   : > { %s5259_s21 = sld [smem:[#allocation47_spill]]  ;;  %s3067_s3 = sshll.u32 %s466_s16, 4  ;;  %vm536_vm0 = vcmask (!%p472_p3), 7168   ;;  %v3475_v2 = vmov (!%p472_p3), 0.0  }
  0xba   : > { %s5260_s5 = sld [smem:[#allocation50_spill]]  ;;  %475 = sbr.rel (%p472_p3) target bundleno = 222 (0xde), region = 72  ;;  %537 = vst.msk [vmem:[#allocation4] sm:$0xff] (!%p472_p3), %vm536_vm0, %v3475_v2  ;;  %476 = vst [vmem:[#allocation2] sm:$0xff] (!%p472_p3), %v3475_v2 }
  0xbb   : > { %s5261_s20 = sld [smem:[#allocation42_spill]] (!%p472_p3)  ;;  %s5262_s14 = sld [smem:[#allocation43_spill]] (!%p472_p3)  ;;  %477 = vst [vmem:[#allocation2 + $0x8] sm:$0xff] (!%p472_p3), %v3475_v2  ;;  %478 = vst [vmem:[#allocation2 + $0x10] sm:$0xff] (!%p472_p3), %v3475_v2 }
  0xbc   : > { %479 = vst [vmem:[#allocation2 + $0x18] sm:$0xff] (!%p472_p3), %v3475_v2  ;;  %480 = vst [vmem:[#allocation2 + $0x20] sm:$0xff] (!%p472_p3), %v3475_v2 }
  0xbd   : > { %481 = vst [vmem:[#allocation2 + $0x28] sm:$0xff] (!%p472_p3), %v3475_v2  ;;  %482 = vst [vmem:[#allocation2 + $0x30] sm:$0xff] (!%p472_p3), %v3475_v2 }
  0xbe   : > { %483 = vst [vmem:[#allocation2 + $0x38] sm:$0xff] (!%p472_p3), %v3475_v2  ;;  %484 = vst [vmem:[#allocation2 + $0x40] sm:$0xff] (!%p472_p3), %v3475_v2 }
  0xbf   : > { %s3871_s17 = scalar_lea.vmem %s5259_s21, %s2981_s22  ;;  %485 = vst [vmem:[#allocation2 + $0x48] sm:$0xff] (!%p472_p3), %v3475_v2  ;;  %486 = vst [vmem:[#allocation2 + $0x50] sm:$0xff] (!%p472_p3), %v3475_v2 }
  0xc0   : > { %s3876_s18 = scalar_lea.vmem %s5260_s5, %s3067_s3  ;;  %487 = vst [vmem:[#allocation2 + $0x58] sm:$0xff] (!%p472_p3), %v3475_v2  ;;  %488 = vst [vmem:[#allocation2 + $0x60] sm:$0xff] (!%p472_p3), %v3475_v2 }
  0xc1   : > { %v3881_v0 = vld [vmem:[%s5261_s20] sm:$0xff]  ;;  %489 = vst [vmem:[#allocation2 + $0x68] sm:$0xff] %v3475_v2  ;;  %490 = vst [vmem:[#allocation2 + $0x70] sm:$0xff] %v3475_v2 }
  0xc2   : > { %v3886_v1 = vld [vmem:[%s5262_s14] sm:$0xff]  ;;  %491 = vst [vmem:[#allocation2 + $0x78] sm:$0xff] %v3475_v2  ;;  %492 = vst [vmem:[#allocation2 + $0x80] sm:$0xff] %v3475_v2 }
  0xc3   : > { %493 = vst [vmem:[#allocation2 + $0x88] sm:$0xff] %v3475_v2  ;;  %494 = vst [vmem:[#allocation2 + $0x90] sm:$0xff] %v3475_v2 }
  0xc4   : > { %495 = vst [vmem:[#allocation2 + $0x98] sm:$0xff] %v3475_v2  ;;  %496 = vst [vmem:[#allocation3] sm:$0xff] %v3475_v2 }
  0xc5   : > { %497 = vst [vmem:[#allocation3 + $0x8] sm:$0xff] %v3475_v2  ;;  %498 = vst [vmem:[#allocation3 + $0x10] sm:$0xff] %v3475_v2 }
  0xc6   : > { %499 = vst [vmem:[#allocation3 + $0x18] sm:$0xff] %v3475_v2  ;;  %500 = vst [vmem:[#allocation3 + $0x20] sm:$0xff] %v3475_v2 }
  0xc7   : > { %501 = vst [vmem:[#allocation3 + $0x28] sm:$0xff] %v3475_v2  ;;  %502 = vst [vmem:[#allocation3 + $0x30] sm:$0xff] %v3475_v2 }
  0xc8   : > { %503 = vst [vmem:[#allocation3 + $0x38] sm:$0xff] %v3475_v2  ;;  %504 = vst [vmem:[#allocation3 + $0x40] sm:$0xff] %v3475_v2 }
  0xc9   : > { %505 = vst [vmem:[#allocation3 + $0x48] sm:$0xff] %v3475_v2  ;;  %506 = vst [vmem:[#allocation3 + $0x50] sm:$0xff] %v3475_v2 }
  0xca   : > { %507 = vst [vmem:[#allocation3 + $0x58] sm:$0xff] %v3475_v2  ;;  %508 = vst [vmem:[#allocation3 + $0x60] sm:$0xff] %v3475_v2 }
  0xcb   : > { %509 = vst [vmem:[#allocation3 + $0x68] sm:$0xff] %v3475_v2  ;;  %510 = vst [vmem:[#allocation3 + $0x70] sm:$0xff] %v3475_v2 }
  0xcc   : > { %511 = vst [vmem:[#allocation3 + $0x78] sm:$0xff] %v3475_v2  ;;  %512 = vst [vmem:[#allocation3 + $0x80] sm:$0xff] %v3475_v2 }
  0xcd   : > { %513 = vst [vmem:[#allocation3 + $0x88] sm:$0xff] %v3475_v2  ;;  %514 = vst [vmem:[#allocation3 + $0x90] sm:$0xff] %v3475_v2 }
  0xce   : > { %515 = vst [vmem:[#allocation3 + $0x98] sm:$0xff] %v3475_v2  ;;  %516 = vst [vmem:[#allocation3 + $0xa0] sm:$0xff] %v3475_v2 }
  0xcf   : > { %517 = vst [vmem:[#allocation3 + $0xa8] sm:$0xff] %v3475_v2  ;;  %518 = vst [vmem:[#allocation3 + $0xb0] sm:$0xff] %v3475_v2 }
  0xd0   : > { %519 = vst [vmem:[#allocation3 + $0xb8] sm:$0xff] %v3475_v2  ;;  %520 = vst [vmem:[#allocation3 + $0xc0] sm:$0xff] %v3475_v2 }
  0xd1   : > { %521 = vst [vmem:[#allocation3 + $0xc8] sm:$0xff] %v3475_v2  ;;  %522 = vst [vmem:[#allocation3 + $0xd0] sm:$0xff] %v3475_v2 }
  0xd2   : > { %523 = vst [vmem:[#allocation3 + $0xd8] sm:$0xff] %v3475_v2  ;;  %524 = vst [vmem:[#allocation3 + $0xe0] sm:$0xff] %v3475_v2 }
  0xd3   : > { %525 = vst [vmem:[#allocation3 + $0xe8] sm:$0xff] %v3475_v2  ;;  %526 = vst [vmem:[#allocation3 + $0xf0] sm:$0xff] %v3475_v2 }
  0xd4   : > { %527 = vst [vmem:[#allocation3 + $0xf8] sm:$0xff] %v3475_v2  ;;  %528 = vst [vmem:[#allocation3 + $0x100] sm:$0xff] %v3475_v2 }
  0xd5   : > { %529 = vst [vmem:[#allocation3 + $0x108] sm:$0xff] %v3475_v2  ;;  %530 = vst [vmem:[#allocation3 + $0x110] sm:$0xff] %v3475_v2 }
  0xd6   : > { %531 = vst [vmem:[#allocation3 + $0x118] sm:$0xff] %v3475_v2  ;;  %532 = vst [vmem:[#allocation3 + $0x120] sm:$0xff] %v3475_v2 }
  0xd7   : > { %533 = vst [vmem:[#allocation3 + $0x128] sm:$0xff] %v3475_v2  ;;  %534 = vst [vmem:[#allocation3 + $0x130] sm:$0xff] %v3475_v2 }
  0xd8   : > { %535 = vst [vmem:[#allocation3 + $0x138] sm:$0xff] %v3475_v2  ;;  %538 = vst.msk [vmem:[#allocation4 + $0x8] sm:$0xff] %vm536_vm0, %v3475_v2 }
  0xd9   : > { %539 = vst.msk [vmem:[#allocation4 + $0x10] sm:$0xff] %vm536_vm0, %v3475_v2  ;;  %540 = vst.msk [vmem:[#allocation4 + $0x18] sm:$0xff] %vm536_vm0, %v3475_v2 }
  0xda   : > { %541 = vst.msk [vmem:[#allocation4 + $0x20] sm:$0xff] %vm536_vm0, %v3475_v2  ;;  %542 = vst.msk [vmem:[#allocation5] sm:$0xff] %vm536_vm0, %v3475_v2 }
  0xdb   : > { %543 = vst.msk [vmem:[#allocation5 + $0x8] sm:$0xff] %vm536_vm0, %v3475_v2  ;;  %544 = vst.msk [vmem:[#allocation5 + $0x10] sm:$0xff] %vm536_vm0, %v3475_v2 }
  0xdc   : > { %545 = vst.msk [vmem:[#allocation5 + $0x18] sm:$0xff] %vm536_vm0, %v3475_v2  ;;  %546 = vst.msk [vmem:[#allocation5 + $0x20] sm:$0xff] %vm536_vm0, %v3475_v2 }
  0xdd   : > { %548 = vst.msk [vmem:[#allocation4] sm:$0xff] %vm536_vm0, %v3881_v0  ;;  %550 = vst.msk [vmem:[#allocation5] sm:$0xff] %vm536_vm0, %v3886_v1 }
  0xde PF: > { %p551_p5 = scmp.eq.s32.totalorder %s3455_s12, 1 }
  0xe0   : > { %p552_p8 = pnand %p551_p5, %p471_p0 }
  0xe1   : > { %v556_v3 = vld [vmem:[#allocation3] sm:$0xff] (!%p552_p8)  ;;  %v557_v4 = vld [vmem:[#allocation3 + $0x8] sm:$0xff] (!%p552_p8)  ;;  %v558_v5 = vld [vmem:[#allocation3 + $0x10] sm:$0xff] (!%p552_p8)  ;;  %vm607_vm1 = vcmask (!%p552_p8), 7168  }
  0xe2   : > { %555 = sbr.rel (%p552_p8) target bundleno = 543 (0x21f), region = 76  ;;  %v560_v6 = vadd.f32 (!%p552_p8), %v557_v4, %v556_v3  ;;  %v567_v7 = vld [vmem:[#allocation3 + $0x20] sm:$0xff] (!%p552_p8)  ;;  %v568_v8 = vld [vmem:[#allocation3 + $0x28] sm:$0xff] (!%p552_p8)  ;;  %v559_v9 = vld [vmem:[#allocation3 + $0x18] sm:$0xff] (!%p552_p8) }
  0xe3   : > { %v569_v10 = vld [vmem:[#allocation3 + $0x30] sm:$0xff] (!%p552_p8)  ;;  %v571_v11 = vadd.f32 (!%p552_p8), %v568_v8, %v567_v7  ;;  %v570_v13 = vld [vmem:[#allocation3 + $0x38] sm:$0xff] (!%p552_p8) }
  0xe4   : > { %v561_v12 = vadd.f32 (!%p552_p8), %v560_v6, %v558_v5 }
  0xe5   : > { %v572_v14 = vadd.f32 (!%p552_p8), %v571_v11, %v569_v10 }
  0xe6   : > { %v562_v15 = vadd.f32 (!%p552_p8), %v561_v12, %v559_v9 }
  0xe7   : > { %v573_v16 = vadd.f32 (!%p552_p8), %v572_v14, %v570_v13 }
  0xe8   : > { %563 = vadd.xlane.f32.xlu0 (!%p552_p8), %v562_v15 }
  0xec   : > { %574 = vadd.xlane.f32.xlu0 %v573_v16 }
 0x175   : > { %v564_v17 = vpop.xlane.xlu0 %563 }
 0x179   : > { %v575_v18 = vpop.xlane.xlu0 %574 }
 0x17a   : > { %v576_v19 = vadd.f32 %v575_v18, %v564_v17 }
 0x17c   : > { %v577_v20 = vmul.f32 0.0009765625, %v576_v19 }
 0x17e   : > { %v578_v21 = vsub.f32 %v556_v3, %v577_v20  ;;  %v579_v22 = vsub.f32 %v557_v4, %v577_v20  ;;  %v580_v23 = vsub.f32 %v558_v5, %v577_v20  ;;  %608 = vst.msk [vmem:[#allocation4 + $0x8] sm:$0xff] %vm607_vm1, %v577_v20  ;;  %v592_v24 = vsub.f32 %v567_v7, %v577_v20 }
 0x17f   : > { %v593_v25 = vsub.f32 %v568_v8, %v577_v20  ;;  %v581_v26 = vsub.f32 %v559_v9, %v577_v20  ;;  %v594_v29 = vsub.f32 %v569_v10, %v577_v20  ;;  %v595_v37 = vsub.f32 %v570_v13, %v577_v20 }
 0x180   : > { %v582_v27 = vmul.f32 %v578_v21, %v578_v21  ;;  %v583_v28 = vmul.f32 %v579_v22, %v579_v22  ;;  %v596_v30 = vmul.f32 %v592_v24, %v592_v24  ;;  %v584_v32 = vmul.f32 %v580_v23, %v580_v23 }
 0x181   : > { %v597_v31 = vmul.f32 %v593_v25, %v593_v25  ;;  %v585_v35 = vmul.f32 %v581_v26, %v581_v26  ;;  %v598_v38 = vmul.f32 %v594_v29, %v594_v29  ;;  %v599_v41 = vmul.f32 %v595_v37, %v595_v37 }
 0x182   : > { %v586_v33 = vadd.f32 %v583_v28, %v582_v27 }
 0x183   : > { %v600_v34 = vadd.f32 %v597_v31, %v596_v30 }
 0x184   : > { %v587_v36 = vadd.f32 %v586_v33, %v584_v32 }
 0x185   : > { %v601_v40 = vadd.f32 %v600_v34, %v598_v38 }
 0x186   : > { %v588_v39 = vadd.f32 %v587_v36, %v585_v35 }
 0x187   : > { %v602_v42 = vadd.f32 %v601_v40, %v599_v41 }
 0x188   : > { %589 = vadd.xlane.f32.xlu1 %v588_v39 }
 0x18c   : > { %603 = vadd.xlane.f32.xlu1 %v602_v42 }
 0x215   : > { %v590_v43 = vpop.xlane.xlu1 %589 }
 0x219   : > { %v604_v44 = vpop.xlane.xlu1 %603 }
 0x21a   : > { %v605_v45 = vadd.f32 %v604_v44, %v590_v43 }
 0x21c   : > { %v609_v46 = vmul.f32 0.0009765625, %v605_v45 }
 0x21e   : > { %611 = vst.msk [vmem:[#allocation5 + $0x8] sm:$0xff] %vm607_vm1, %v609_v46 }
 0x21f PF: > { %p612_p7 = scmp.eq.s32.totalorder %s3455_s12, 2 }
 0x221   : > { %p613_p11 = pnand %p612_p7, %p471_p0 }
 0x222   : > { %v618_v47 = vld [vmem:[#allocation3 + $0x40] sm:$0xff] (!%p613_p11)  ;;  %v619_v48 = vld [vmem:[#allocation3 + $0x48] sm:$0xff] (!%p613_p11)  ;;  %v620_v49 = vld [vmem:[#allocation3 + $0x50] sm:$0xff] (!%p613_p11)  ;;  %vm669_vm2 = vcmask (!%p613_p11), 7168  }
 0x223   : > { %616 = sbr.rel (%p613_p11) target bundleno = 864 (0x360), region = 80  ;;  %v622_v50 = vadd.f32 (!%p613_p11), %v619_v48, %v618_v47  ;;  %v629_v51 = vld [vmem:[#allocation3 + $0x60] sm:$0xff] (!%p613_p11)  ;;  %v630_v52 = vld [vmem:[#allocation3 + $0x68] sm:$0xff] (!%p613_p11)  ;;  %v621_v53 = vld [vmem:[#allocation3 + $0x58] sm:$0xff] (!%p613_p11) }
 0x224   : > { %v631_v54 = vld [vmem:[#allocation3 + $0x70] sm:$0xff] (!%p613_p11)  ;;  %v633_v55 = vadd.f32 (!%p613_p11), %v630_v52, %v629_v51  ;;  %v632_v57 = vld [vmem:[#allocation3 + $0x78] sm:$0xff] (!%p613_p11) }
 0x225   : > { %v623_v56 = vadd.f32 (!%p613_p11), %v622_v50, %v620_v49 }
 0x226   : > { %v634_v58 = vadd.f32 (!%p613_p11), %v633_v55, %v631_v54 }
 0x227   : > { %v624_v59 = vadd.f32 (!%p613_p11), %v623_v56, %v621_v53 }
 0x228   : > { %v635_v60 = vadd.f32 (!%p613_p11), %v634_v58, %v632_v57 }
 0x229   : > { %625 = vadd.xlane.f32.xlu0 (!%p613_p11), %v624_v59 }
 0x22d   : > { %636 = vadd.xlane.f32.xlu0 %v635_v60 }
 0x2b6   : > { %v626_v61 = vpop.xlane.xlu0 %625 }
 0x2ba   : > { %v637_v62 = vpop.xlane.xlu0 %636 }
 0x2bb   : > { %v638_v63 = vadd.f32 %v637_v62, %v626_v61 }
 0x2bd   : > { %v639_v0 = vmul.f32 0.0009765625, %v638_v63 }
 0x2bf   : > { %v640_v1 = vsub.f32 %v618_v47, %v639_v0  ;;  %v641_v2 = vsub.f32 %v619_v48, %v639_v0  ;;  %v642_v3 = vsub.f32 %v620_v49, %v639_v0  ;;  %670 = vst.msk [vmem:[#allocation4 + $0x10] sm:$0xff] %vm669_vm2, %v639_v0  ;;  %v654_v4 = vsub.f32 %v629_v51, %v639_v0 }
 0x2c0   : > { %v655_v5 = vsub.f32 %v630_v52, %v639_v0  ;;  %v643_v6 = vsub.f32 %v621_v53, %v639_v0  ;;  %v656_v9 = vsub.f32 %v631_v54, %v639_v0  ;;  %v657_v17 = vsub.f32 %v632_v57, %v639_v0 }
 0x2c1   : > { %v644_v7 = vmul.f32 %v640_v1, %v640_v1  ;;  %v645_v8 = vmul.f32 %v641_v2, %v641_v2  ;;  %v658_v10 = vmul.f32 %v654_v4, %v654_v4  ;;  %v646_v12 = vmul.f32 %v642_v3, %v642_v3 }
 0x2c2   : > { %v659_v11 = vmul.f32 %v655_v5, %v655_v5  ;;  %v647_v15 = vmul.f32 %v643_v6, %v643_v6  ;;  %v660_v18 = vmul.f32 %v656_v9, %v656_v9  ;;  %v661_v21 = vmul.f32 %v657_v17, %v657_v17 }
 0x2c3   : > { %v648_v13 = vadd.f32 %v645_v8, %v644_v7 }
 0x2c4   : > { %v662_v14 = vadd.f32 %v659_v11, %v658_v10 }
 0x2c5   : > { %v649_v16 = vadd.f32 %v648_v13, %v646_v12 }
 0x2c6   : > { %v663_v20 = vadd.f32 %v662_v14, %v660_v18 }
 0x2c7   : > { %v650_v19 = vadd.f32 %v649_v16, %v647_v15 }
 0x2c8   : > { %v664_v22 = vadd.f32 %v663_v20, %v661_v21 }
 0x2c9   : > { %651 = vadd.xlane.f32.xlu1 %v650_v19 }
 0x2cd   : > { %665 = vadd.xlane.f32.xlu1 %v664_v22 }
 0x356   : > { %v652_v23 = vpop.xlane.xlu1 %651 }
 0x35a   : > { %v666_v24 = vpop.xlane.xlu1 %665 }
 0x35b   : > { %v667_v25 = vadd.f32 %v666_v24, %v652_v23 }
 0x35d   : > { %v671_v26 = vmul.f32 0.0009765625, %v667_v25 }
 0x35f   : > { %673 = vst.msk [vmem:[#allocation5 + $0x10] sm:$0xff] %vm669_vm2, %v671_v26 }
 0x360 PF: > { %p674_p2 = scmp.eq.s32.totalorder %s3455_s12, 3 }
 0x362   : > { %p675_p9 = pnand %p674_p2, %p471_p0 }
 0x363   : > { %v680_v27 = vld [vmem:[#allocation3 + $0x80] sm:$0xff] (!%p675_p9)  ;;  %v681_v28 = vld [vmem:[#allocation3 + $0x88] sm:$0xff] (!%p675_p9)  ;;  %v682_v29 = vld [vmem:[#allocation3 + $0x90] sm:$0xff] (!%p675_p9)  ;;  %vm731_vm3 = vcmask (!%p675_p9), 7168  }
 0x364   : > { %678 = sbr.rel (%p675_p9) target bundleno = 1185 (0x4a1), region = 84  ;;  %v684_v30 = vadd.f32 (!%p675_p9), %v681_v28, %v680_v27  ;;  %v691_v31 = vld [vmem:[#allocation3 + $0xa0] sm:$0xff] (!%p675_p9)  ;;  %v692_v32 = vld [vmem:[#allocation3 + $0xa8] sm:$0xff] (!%p675_p9)  ;;  %v683_v33 = vld [vmem:[#allocation3 + $0x98] sm:$0xff] (!%p675_p9) }
 0x365   : > { %v693_v34 = vld [vmem:[#allocation3 + $0xb0] sm:$0xff] (!%p675_p9)  ;;  %v695_v35 = vadd.f32 (!%p675_p9), %v692_v32, %v691_v31  ;;  %v694_v37 = vld [vmem:[#allocation3 + $0xb8] sm:$0xff] (!%p675_p9) }
 0x366   : > { %v685_v36 = vadd.f32 (!%p675_p9), %v684_v30, %v682_v29 }
 0x367   : > { %v696_v38 = vadd.f32 (!%p675_p9), %v695_v35, %v693_v34 }
 0x368   : > { %v686_v39 = vadd.f32 (!%p675_p9), %v685_v36, %v683_v33 }
 0x369   : > { %v697_v40 = vadd.f32 (!%p675_p9), %v696_v38, %v694_v37 }
 0x36a   : > { %687 = vadd.xlane.f32.xlu0 (!%p675_p9), %v686_v39 }
 0x36e   : > { %698 = vadd.xlane.f32.xlu0 %v697_v40 }
 0x3f7   : > { %v688_v41 = vpop.xlane.xlu0 %687 }
 0x3fb   : > { %v699_v42 = vpop.xlane.xlu0 %698 }
 0x3fc   : > { %v700_v43 = vadd.f32 %v699_v42, %v688_v41 }
 0x3fe   : > { %v701_v44 = vmul.f32 0.0009765625, %v700_v43 }
 0x400   : > { %v702_v45 = vsub.f32 %v680_v27, %v701_v44  ;;  %v703_v46 = vsub.f32 %v681_v28, %v701_v44  ;;  %v704_v47 = vsub.f32 %v682_v29, %v701_v44  ;;  %732 = vst.msk [vmem:[#allocation4 + $0x18] sm:$0xff] %vm731_vm3, %v701_v44  ;;  %v716_v48 = vsub.f32 %v691_v31, %v701_v44 }
 0x401   : > { %v717_v49 = vsub.f32 %v692_v32, %v701_v44  ;;  %v705_v50 = vsub.f32 %v683_v33, %v701_v44  ;;  %v718_v53 = vsub.f32 %v693_v34, %v701_v44  ;;  %v719_v61 = vsub.f32 %v694_v37, %v701_v44 }
 0x402   : > { %v706_v51 = vmul.f32 %v702_v45, %v702_v45  ;;  %v707_v52 = vmul.f32 %v703_v46, %v703_v46  ;;  %v720_v54 = vmul.f32 %v716_v48, %v716_v48  ;;  %v708_v56 = vmul.f32 %v704_v47, %v704_v47 }
 0x403   : > { %v721_v55 = vmul.f32 %v717_v49, %v717_v49  ;;  %v709_v59 = vmul.f32 %v705_v50, %v705_v50  ;;  %v722_v62 = vmul.f32 %v718_v53, %v718_v53  ;;  %v723_v1 = vmul.f32 %v719_v61, %v719_v61 }
 0x404   : > { %v710_v57 = vadd.f32 %v707_v52, %v706_v51 }
 0x405   : > { %v724_v58 = vadd.f32 %v721_v55, %v720_v54 }
 0x406   : > { %v711_v60 = vadd.f32 %v710_v57, %v708_v56 }
 0x407   : > { %v725_v0 = vadd.f32 %v724_v58, %v722_v62 }
 0x408   : > { %v712_v63 = vadd.f32 %v711_v60, %v709_v59 }
 0x409   : > { %v726_v2 = vadd.f32 %v725_v0, %v723_v1 }
 0x40a   : > { %713 = vadd.xlane.f32.xlu1 %v712_v63 }
 0x40e   : > { %727 = vadd.xlane.f32.xlu1 %v726_v2 }
 0x497   : > { %v714_v3 = vpop.xlane.xlu1 %713 }
 0x49b   : > { %v728_v4 = vpop.xlane.xlu1 %727 }
 0x49c   : > { %v729_v5 = vadd.f32 %v728_v4, %v714_v3 }
 0x49e   : > { %v733_v6 = vmul.f32 0.0009765625, %v729_v5 }
 0x4a0   : > { %735 = vst.msk [vmem:[#allocation5 + $0x18] sm:$0xff] %vm731_vm3, %v733_v6 }
 0x4a1 PF: > { %p736_p12 = scmp.eq.s32.totalorder %s3455_s12, 4 }
 0x4a3   : > { %p737_p1 = pnand %p736_p12, %p471_p0 }
 0x4a4   : > { %v742_v7 = vld [vmem:[#allocation3 + $0xc0] sm:$0xff] (!%p737_p1)  ;;  %v743_v8 = vld [vmem:[#allocation3 + $0xc8] sm:$0xff] (!%p737_p1)  ;;  %v744_v9 = vld [vmem:[#allocation3 + $0xd0] sm:$0xff] (!%p737_p1)  ;;  %vm793_vm4 = vcmask (!%p737_p1), 7168  }
 0x4a5   : > { %740 = sbr.rel (%p737_p1) target bundleno = 1506 (0x5e2), region = 88  ;;  %v746_v10 = vadd.f32 (!%p737_p1), %v743_v8, %v742_v7  ;;  %v753_v11 = vld [vmem:[#allocation3 + $0xe0] sm:$0xff] (!%p737_p1)  ;;  %v754_v12 = vld [vmem:[#allocation3 + $0xe8] sm:$0xff] (!%p737_p1)  ;;  %v745_v13 = vld [vmem:[#allocation3 + $0xd8] sm:$0xff] (!%p737_p1) }
 0x4a6   : > { %v755_v14 = vld [vmem:[#allocation3 + $0xf0] sm:$0xff] (!%p737_p1)  ;;  %v757_v15 = vadd.f32 (!%p737_p1), %v754_v12, %v753_v11  ;;  %v756_v17 = vld [vmem:[#allocation3 + $0xf8] sm:$0xff] (!%p737_p1) }
 0x4a7   : > { %v747_v16 = vadd.f32 (!%p737_p1), %v746_v10, %v744_v9 }
 0x4a8   : > { %v758_v18 = vadd.f32 (!%p737_p1), %v757_v15, %v755_v14 }
 0x4a9   : > { %v748_v19 = vadd.f32 (!%p737_p1), %v747_v16, %v745_v13 }
 0x4aa   : > { %v759_v20 = vadd.f32 (!%p737_p1), %v758_v18, %v756_v17 }
 0x4ab   : > { %749 = vadd.xlane.f32.xlu0 (!%p737_p1), %v748_v19 }
 0x4af   : > { %760 = vadd.xlane.f32.xlu0 %v759_v20 }
 0x538   : > { %v750_v21 = vpop.xlane.xlu0 %749 }
 0x53c   : > { %v761_v22 = vpop.xlane.xlu0 %760 }
 0x53d   : > { %v762_v23 = vadd.f32 %v761_v22, %v750_v21 }
 0x53f   : > { %v763_v24 = vmul.f32 0.0009765625, %v762_v23 }
 0x541   : > { %v764_v25 = vsub.f32 %v742_v7, %v763_v24  ;;  %v765_v26 = vsub.f32 %v743_v8, %v763_v24  ;;  %v766_v27 = vsub.f32 %v744_v9, %v763_v24  ;;  %794 = vst.msk [vmem:[#allocation4 + $0x20] sm:$0xff] %vm793_vm4, %v763_v24  ;;  %v778_v28 = vsub.f32 %v753_v11, %v763_v24 }
 0x542   : > { %v779_v29 = vsub.f32 %v754_v12, %v763_v24  ;;  %v767_v30 = vsub.f32 %v745_v13, %v763_v24  ;;  %v780_v33 = vsub.f32 %v755_v14, %v763_v24  ;;  %v781_v41 = vsub.f32 %v756_v17, %v763_v24 }
 0x543   : > { %v768_v31 = vmul.f32 %v764_v25, %v764_v25  ;;  %v769_v32 = vmul.f32 %v765_v26, %v765_v26  ;;  %v782_v34 = vmul.f32 %v778_v28, %v778_v28  ;;  %v770_v36 = vmul.f32 %v766_v27, %v766_v27 }
 0x544   : > { %v783_v35 = vmul.f32 %v779_v29, %v779_v29  ;;  %v771_v39 = vmul.f32 %v767_v30, %v767_v30  ;;  %v784_v42 = vmul.f32 %v780_v33, %v780_v33  ;;  %v785_v45 = vmul.f32 %v781_v41, %v781_v41 }
 0x545   : > { %v772_v37 = vadd.f32 %v769_v32, %v768_v31 }
 0x546   : > { %v786_v38 = vadd.f32 %v783_v35, %v782_v34 }
 0x547   : > { %v773_v40 = vadd.f32 %v772_v37, %v770_v36 }
 0x548   : > { %v787_v44 = vadd.f32 %v786_v38, %v784_v42 }
 0x549   : > { %v774_v43 = vadd.f32 %v773_v40, %v771_v39 }
 0x54a   : > { %v788_v46 = vadd.f32 %v787_v44, %v785_v45 }
 0x54b   : > { %775 = vadd.xlane.f32.xlu1 %v774_v43 }
 0x54f   : > { %789 = vadd.xlane.f32.xlu1 %v788_v46 }
 0x5d8   : > { %v776_v47 = vpop.xlane.xlu1 %775 }
 0x5dc   : > { %v790_v48 = vpop.xlane.xlu1 %789 }
 0x5dd   : > { %v791_v49 = vadd.f32 %v790_v48, %v776_v47 }
 0x5df   : > { %v795_v50 = vmul.f32 0.0009765625, %v791_v49 }
 0x5e1   : > { %797 = vst.msk [vmem:[#allocation5 + $0x20] sm:$0xff] %vm793_vm4, %v795_v50 }
 0x5e2 PF: > { %v799_v51 = vld [vmem:[#allocation5] sm:$0xff]  ;;  %v3476_v52 = vmov 0   ;;  %v798_v54 = vld [vmem:[%s3835_s23] sm:$0xff]  ;;  %v804_v56 = vld [vmem:[#allocation4] sm:$0xff]  ;;  %v3477_v61 = vmov 839922192   ;;  %v5219_v63 = vlaneseq }
 0x5e3   : > { %3231 = vset.pattern.permute.xlu0 %v3476_v52  ;;  %v800_v53 = vadd.f32 1e-05, %v799_v51  ;;  %v803_v58 = vld [vmem:[%s3843_s8] sm:$0xff]  ;;  %v814_v62 = vunpack.c.l.s4 %v3477_v61  ;;  %v808_v6 = vld [vmem:[%s3852_s24 + $0x8] sm:$0xff]  ;;  %p2984_p13 = scmp.lt.s32.totalorder %s3455_s12, 1 }
 0x5e4   : > { %v3996_v1 = vshrl.u32 %v5219_v63, 7  ;;  %v807_v5 = vld [vmem:[%s3852_s24] sm:$0xff]  ;;  %v3478_v18 = vmov (!%p2984_p13), 0   ;;  %v860_v20 = vld [vmem:[%s3835_s23 + $0x8] sm:$0xff] (!%p2984_p13)  ;;  %v868_v22 = vld [vmem:[#allocation4 + $0x8] sm:$0xff] (!%p2984_p13)  ;;  %s3068_s4 = sshll.u32 (!%p2984_p13), %s3451_s11, 5 }
 0x5e5   : > { %3232 = vrsqrt.f32 %v800_v53  ;;  %v815_v0 = vunpack.c.0.s8 %v814_v62  ;;  %v863_v17 = vld [vmem:[#allocation5 + $0x8] sm:$0xff] (!%p2984_p13)  ;;  %s855_s7 = scalar_lea.vmem (!%p2984_p13), [#allocation3], %s3068_s4 }
 0x5e6   : > { %v864_v19 = vadd.f32 (!%p2984_p13), 1e-05, %v863_v17  ;;  %v861_v24 = vld [vmem:[%s3843_s8 + $0x8] sm:$0xff] (!%p2984_p13)  ;;  %v858_v30 = vld [vmem:[%s855_s7 + $0x10] sm:$0xff] (!%p2984_p13)  ;;  %v859_v31 = vld [vmem:[%s855_s7 + $0x18] sm:$0xff] (!%p2984_p13) }
 0x5e7   : > { %v818_v2 = vsub.s32 %v815_v0, %v3996_v1  ;;  %v856_v27 = vld [vmem:[%s855_s7] sm:$0xff] (!%p2984_p13)  ;;  %v857_v29 = vld [vmem:[%s855_s7 + $0x8] sm:$0xff] (!%p2984_p13) }
 0x5e8   : > { %3235 = vrsqrt.f32 (!%p2984_p13), %v864_v19 }
 0x5ef   : > { %v3233_v55 = vpop.eup %3232 }
 0x5f0   : > { %v802_v57 = vmul.f32 %v3233_v55, %v798_v54 }
 0x5f2   : > { %811 = vperm.xlu0 %3231, %v802_v57   ;;  %v805_v59 = vmul.f32 %v804_v56, %v802_v57  ;;  %v3236_v21 = vpop.eup (!%p2984_p13), %3235 }
 0x5f3   : > { %v866_v23 = vmul.f32 (!%p2984_p13), %v3236_v21, %v860_v20 }
 0x5f4   : > { %v806_v60 = vsub.f32 %v803_v58, %v805_v59 }
 0x5f5   : > { %v869_v25 = vmul.f32 (!%p2984_p13), %v868_v22, %v866_v23 }
 0x5f6   : > { %825 = vperm.xlu0 %3231, %v806_v60  }
 0x5f7   : > { %v870_v26 = vsub.f32 (!%p2984_p13), %v861_v24, %v869_v25 }
 0x5fa   : > { %3234 = vset.pattern.permute.xlu0 (!%p2984_p13), %v3478_v18 }
 0x5fb   : > { %873 = vperm.xlu0 (!%p2984_p13), %3234, %v866_v23  }
 0x5ff   : > { %882 = vperm.xlu0 (!%p2984_p13), %3234, %v870_v26  }
 0x671   : > { %v812_v3 = vpop.permute.xlu0 %811 }
 0x672   : > { %v819_v4 = vrot.slane %v812_v3, %v818_v2 }
 0x674   : > { %v821_v8 = vmul.f32 %v819_v4, %v807_v5  ;;  %v822_v9 = vmul.f32 %v819_v4, %v808_v6 }
 0x675   : > { %v826_v7 = vpop.permute.xlu0 %825 }
 0x676   : > { %v833_v10 = vrot.slane %v826_v7, %v818_v2 }
 0x678   : > { %v835_v11 = vadd.f32 %v833_v10, %v821_v8  ;;  %v836_v12 = vadd.f32 %v833_v10, %v822_v9  ;;  %852 = sbr.rel (%p2984_p13) target bundleno = 1669 (0x685), region = 92 }
 0x67a   : > { %v837_v13 = vmax.f32 %v835_v11, 0.0  ;;  %v838_v14 = vmax.f32 %v836_v12, 0.0  ;;  %v874_v28 = vpop.permute.xlu0 (!%p2984_p13), %873 }
 0x67b   : > { %v876_v32 = vmul.f32 (!%p2984_p13), %v874_v28, %v856_v27  ;;  %v877_v33 = vmul.f32 (!%p2984_p13), %v874_v28, %v857_v29  ;;  %v878_v34 = vmul.f32 (!%p2984_p13), %v874_v28, %v858_v30  ;;  %v879_v35 = vmul.f32 (!%p2984_p13), %v874_v28, %v859_v31 }
 0x67c   : > { %v841_v15 = vcombine.high %v837_v13, %v837_v13  ;;  %v842_v16 = vcombine.high %v838_v14, %v838_v14  ;;  %845 = vst [vmem:[#allocation2] sm:$0xf] %v837_v13  ;;  %847 = vst [vmem:[#allocation2 + $0x10] sm:$0xf] %v838_v14 }
 0x67e   : > { %846 = vst [vmem:[#allocation2 + $0x8] sm:$0xf] %v841_v15  ;;  %848 = vst [vmem:[#allocation2 + $0x18] sm:$0xf] %v842_v16  ;;  %v883_v36 = vpop.permute.xlu0 (!%p2984_p13), %882 }
 0x67f   : > { %v885_v37 = vadd.f32 %v883_v36, %v876_v32  ;;  %v886_v38 = vadd.f32 %v883_v36, %v877_v33  ;;  %v887_v39 = vadd.f32 %v883_v36, %v878_v34  ;;  %v888_v40 = vadd.f32 %v883_v36, %v879_v35 }
 0x681   : > { %v889_v41 = vmax.f32 %v885_v37, 0.0  ;;  %v890_v42 = vmax.f32 %v886_v38, 0.0  ;;  %v891_v43 = vmax.f32 %v887_v39, 0.0  ;;  %v892_v44 = vmax.f32 %v888_v40, 0.0 }
 0x683   : > { %893 = vst [vmem:[#allocation2 + $0x20] sm:$0xff] %v889_v41  ;;  %894 = vst [vmem:[#allocation2 + $0x28] sm:$0xff] %v890_v42 }
 0x684   : > { %895 = vst [vmem:[#allocation2 + $0x30] sm:$0xff] %v891_v43  ;;  %896 = vst [vmem:[#allocation2 + $0x38] sm:$0xff] %v892_v44 }
 0x685 PF: > { %p2987_p10 = scmp.lt.s32.totalorder %s3455_s12, 2 }
 0x686   : > { %v912_v45 = vld [vmem:[#allocation5 + $0x10] sm:$0xff] (!%p2987_p10)  ;;  %v3479_v46 = vmov (!%p2987_p10), 0   ;;  %v909_v48 = vld [vmem:[%s3835_s23 + $0x10] sm:$0xff] (!%p2987_p10)  ;;  %v917_v50 = vld [vmem:[#allocation4 + $0x10] sm:$0xff] (!%p2987_p10)  ;;  %s2988_s14 = sshll.u32 (!%p2987_p10), %s3451_s11, 5 }
 0x687   : > { %900 = sbr.rel (%p2987_p10) target bundleno = 1824 (0x720), region = 96  ;;  %3237 = vset.pattern.permute.xlu0 (!%p2987_p10), %v3479_v46  ;;  %v913_v47 = vadd.f32 (!%p2987_p10), 1e-05, %v912_v45  ;;  %v910_v53 = vld [vmem:[%s3843_s8 + $0x10] sm:$0xff] (!%p2987_p10)  ;;  %s2885_s2 = scalar_lea.vmem (!%p2987_p10), [#allocation3], %s2988_s14 }
 0x688   : > { %v2989_v56 = vld [vmem:[%s2885_s2 + $0x40] sm:$0xff] (!%p2987_p10)  ;;  %v2990_v58 = vld [vmem:[%s2885_s2 + $0x48] sm:$0xff] (!%p2987_p10)  ;;  %v2991_v59 = vld [vmem:[%s2885_s2 + $0x50] sm:$0xff] (!%p2987_p10) }
 0x689   : > { %3238 = vrsqrt.f32 (!%p2987_p10), %v913_v47  ;;  %v2992_v60 = vld [vmem:[%s2885_s2 + $0x58] sm:$0xff] (!%p2987_p10) }
 0x693   : > { %v3239_v49 = vpop.eup %3238 }
 0x694   : > { %v915_v51 = vmul.f32 %v3239_v49, %v909_v48 }
 0x696   : > { %922 = vperm.xlu0 %3237, %v915_v51   ;;  %v918_v54 = vmul.f32 %v917_v50, %v915_v51 }
 0x698   : > { %v919_v55 = vsub.f32 %v910_v53, %v918_v54 }
 0x69a   : > { %931 = vperm.xlu0 %3237, %v919_v55  }
 0x715   : > { %v923_v57 = vpop.permute.xlu0 %922 }
 0x716   : > { %v925_v61 = vmul.f32 %v2989_v56, %v923_v57  ;;  %v926_v62 = vmul.f32 %v2990_v58, %v923_v57  ;;  %v927_v0 = vmul.f32 %v2991_v59, %v923_v57  ;;  %v928_v2 = vmul.f32 %v2992_v60, %v923_v57 }
 0x719   : > { %v932_v3 = vpop.permute.xlu0 %931 }
 0x71a   : > { %v934_v4 = vadd.f32 %v932_v3, %v925_v61  ;;  %v935_v5 = vadd.f32 %v932_v3, %v926_v62  ;;  %v936_v6 = vadd.f32 %v932_v3, %v927_v0  ;;  %v937_v7 = vadd.f32 %v932_v3, %v928_v2 }
 0x71c   : > { %v938_v8 = vmax.f32 %v934_v4, 0.0  ;;  %v939_v9 = vmax.f32 %v935_v5, 0.0  ;;  %v940_v10 = vmax.f32 %v936_v6, 0.0  ;;  %v941_v11 = vmax.f32 %v937_v7, 0.0 }
 0x71e   : > { %942 = vst [vmem:[#allocation2 + $0x40] sm:$0xff] %v938_v8  ;;  %943 = vst [vmem:[#allocation2 + $0x48] sm:$0xff] %v939_v9 }
 0x71f   : > { %944 = vst [vmem:[#allocation2 + $0x50] sm:$0xff] %v940_v10  ;;  %945 = vst [vmem:[#allocation2 + $0x58] sm:$0xff] %v941_v11 }
 0x720 PF: > { %p2993_p6 = scmp.lt.s32.totalorder %s3455_s12, 3 }
 0x721   : > { %v961_v12 = vld [vmem:[#allocation5 + $0x18] sm:$0xff] (!%p2993_p6)  ;;  %v3480_v13 = vmov (!%p2993_p6), 0   ;;  %v958_v15 = vld [vmem:[%s3835_s23 + $0x18] sm:$0xff] (!%p2993_p6)  ;;  %v966_v17 = vld [vmem:[#allocation4 + $0x18] sm:$0xff] (!%p2993_p6)  ;;  %s2994_s20 = sshll.u32 (!%p2993_p6), %s3451_s11, 5 }
 0x722   : > { %949 = sbr.rel (%p2993_p6) target bundleno = 1979 (0x7bb), region = 100  ;;  %3240 = vset.pattern.permute.xlu0 (!%p2993_p6), %v3480_v13  ;;  %v962_v14 = vadd.f32 (!%p2993_p6), 1e-05, %v961_v12  ;;  %v959_v19 = vld [vmem:[%s3843_s8 + $0x18] sm:$0xff] (!%p2993_p6)  ;;  %s2888_s16 = scalar_lea.vmem (!%p2993_p6), [#allocation3], %s2994_s20 }
 0x723   : > { %v2995_v22 = vld [vmem:[%s2888_s16 + $0x80] sm:$0xff] (!%p2993_p6)  ;;  %v2996_v24 = vld [vmem:[%s2888_s16 + $0x88] sm:$0xff] (!%p2993_p6)  ;;  %v2997_v25 = vld [vmem:[%s2888_s16 + $0x90] sm:$0xff] (!%p2993_p6) }
 0x724   : > { %3241 = vrsqrt.f32 (!%p2993_p6), %v962_v14  ;;  %v2998_v26 = vld [vmem:[%s2888_s16 + $0x98] sm:$0xff] (!%p2993_p6) }
 0x72e   : > { %v3242_v16 = vpop.eup %3241 }
 0x72f   : > { %v964_v18 = vmul.f32 %v3242_v16, %v958_v15 }
 0x731   : > { %971 = vperm.xlu0 %3240, %v964_v18   ;;  %v967_v20 = vmul.f32 %v966_v17, %v964_v18 }
 0x733   : > { %v968_v21 = vsub.f32 %v959_v19, %v967_v20 }
 0x735   : > { %980 = vperm.xlu0 %3240, %v968_v21  }
 0x7b0   : > { %v972_v23 = vpop.permute.xlu0 %971 }
 0x7b1   : > { %v974_v27 = vmul.f32 %v2995_v22, %v972_v23  ;;  %v975_v28 = vmul.f32 %v2996_v24, %v972_v23  ;;  %v976_v29 = vmul.f32 %v2997_v25, %v972_v23  ;;  %v977_v30 = vmul.f32 %v2998_v26, %v972_v23 }
 0x7b4   : > { %v981_v31 = vpop.permute.xlu0 %980 }
 0x7b5   : > { %v983_v32 = vadd.f32 %v981_v31, %v974_v27  ;;  %v984_v33 = vadd.f32 %v981_v31, %v975_v28  ;;  %v985_v34 = vadd.f32 %v981_v31, %v976_v29  ;;  %v986_v35 = vadd.f32 %v981_v31, %v977_v30 }
 0x7b7   : > { %v987_v36 = vmax.f32 %v983_v32, 0.0  ;;  %v988_v37 = vmax.f32 %v984_v33, 0.0  ;;  %v989_v38 = vmax.f32 %v985_v34, 0.0  ;;  %v990_v39 = vmax.f32 %v986_v35, 0.0 }
 0x7b9   : > { %991 = vst [vmem:[#allocation2 + $0x60] sm:$0xff] %v987_v36  ;;  %992 = vst [vmem:[#allocation2 + $0x68] sm:$0xff] %v988_v37 }
 0x7ba   : > { %993 = vst [vmem:[#allocation2 + $0x70] sm:$0xff] %v989_v38  ;;  %994 = vst [vmem:[#allocation2 + $0x78] sm:$0xff] %v990_v39 }
 0x7bb PF: > { %998 = sbr.rel (%p461_p4) target bundleno = 2133 (0x855), region = 104  ;;  %v1010_v40 = vld [vmem:[#allocation5 + $0x20] sm:$0xff] (!%p461_p4)  ;;  %v3481_v41 = vmov (!%p461_p4), 0   ;;  %v1007_v43 = vld [vmem:[%s3835_s23 + $0x20] sm:$0xff] (!%p461_p4)  ;;  %v1015_v45 = vld [vmem:[#allocation4 + $0x20] sm:$0xff] (!%p461_p4)  ;;  %s3000_s22 = sshll.u32 (!%p461_p4), %s3451_s11, 5 }
 0x7bc   : > { %3243 = vset.pattern.permute.xlu0 (!%p461_p4), %v3481_v41  ;;  %v1011_v42 = vadd.f32 (!%p461_p4), 1e-05, %v1010_v40  ;;  %v1008_v47 = vld [vmem:[%s3843_s8 + $0x20] sm:$0xff] (!%p461_p4)  ;;  %s2891_s0 = scalar_lea.vmem (!%p461_p4), [#allocation3], %s3000_s22 }
 0x7bd   : > { %v3001_v50 = vld [vmem:[%s2891_s0 + $0xc0] sm:$0xff] (!%p461_p4)  ;;  %v3002_v53 = vld [vmem:[%s2891_s0 + $0xc8] sm:$0xff] (!%p461_p4)  ;;  %v3003_v54 = vld [vmem:[%s2891_s0 + $0xd0] sm:$0xff] (!%p461_p4) }
 0x7be   : > { %3244 = vrsqrt.f32 (!%p461_p4), %v1011_v42  ;;  %v3004_v55 = vld [vmem:[%s2891_s0 + $0xd8] sm:$0xff] (!%p461_p4) }
 0x7c8   : > { %v3245_v44 = vpop.eup %3244 }
 0x7c9   : > { %v1013_v46 = vmul.f32 %v3245_v44, %v1007_v43 }
 0x7cb   : > { %1020 = vperm.xlu0 %3243, %v1013_v46   ;;  %v1016_v48 = vmul.f32 %v1015_v45, %v1013_v46 }
 0x7cd   : > { %v1017_v49 = vsub.f32 %v1008_v47, %v1016_v48 }
 0x7cf   : > { %1029 = vperm.xlu0 %3243, %v1017_v49  }
 0x84a   : > { %v1021_v51 = vpop.permute.xlu0 %1020 }
 0x84b   : > { %v1023_v56 = vmul.f32 %v3001_v50, %v1021_v51  ;;  %v1024_v57 = vmul.f32 %v3002_v53, %v1021_v51  ;;  %v1025_v58 = vmul.f32 %v3003_v54, %v1021_v51  ;;  %v1026_v59 = vmul.f32 %v3004_v55, %v1021_v51 }
 0x84e   : > { %v1030_v60 = vpop.permute.xlu0 %1029 }
 0x84f   : > { %v1032_v61 = vadd.f32 %v1030_v60, %v1023_v56  ;;  %v1033_v62 = vadd.f32 %v1030_v60, %v1024_v57  ;;  %v1034_v0 = vadd.f32 %v1030_v60, %v1025_v58  ;;  %v1035_v2 = vadd.f32 %v1030_v60, %v1026_v59 }
 0x851   : > { %v1036_v3 = vmax.f32 %v1032_v61, 0.0  ;;  %v1037_v4 = vmax.f32 %v1033_v62, 0.0  ;;  %v1038_v5 = vmax.f32 %v1034_v0, 0.0  ;;  %v1039_v6 = vmax.f32 %v1035_v2, 0.0 }
 0x853   : > { %1040 = vst [vmem:[#allocation2 + $0x80] sm:$0xff] %v1036_v3  ;;  %1041 = vst [vmem:[#allocation2 + $0x88] sm:$0xff] %v1037_v4 }
 0x854   : > { %1042 = vst [vmem:[#allocation2 + $0x90] sm:$0xff] %v1038_v5  ;;  %1043 = vst [vmem:[#allocation2 + $0x98] sm:$0xff] %v1039_v6 }
 0x855 PF: > { %v1072_v7 = vld [vmem:[#allocation2 + $0x8] sm:$0xff]  ;;  %v1074_v9 = vld [vmem:[#allocation2 + $0x18] sm:$0xff]  ;;  %3246 = vset.pattern.permute.xlu0 %v3476_v52  ;;  %v1071_v12 = vld [vmem:[#allocation2] sm:$0xff]  ;;  %v5222_v14 = vmov 0.0   ;;  %vm1091_vm5 = vcmask 326656   ;;  %s3483_s23 = smov 73  }
 0x856   : > { %v1076_v8 = vld [vmem:[#allocation2 + $0x28] sm:$0xff]  ;;  %v1078_v11 = vld [vmem:[#allocation2 + $0x38] sm:$0xff]  ;;  %v1075_v13 = vld [vmem:[#allocation2 + $0x20] sm:$0xff]  ;;  %1237 = vmatprep.mubr.f32.mxu0 %v5222_v14  ;;  %1464 = vmatprep.mubr.f32.mxu1 %v5222_v14  ;;  %s3484_s8 = smov 72   ;;  %s3486_s27 = smov 65  }
 0x857   : > { %v3070_v10 = vpack.c.bf16 %v1076_v8, %v1072_v7  ;;  %v3078_v15 = vpack.c.bf16 %v1078_v11, %v1074_v9  ;;  %v3072_v16 = vpack.c.bf16 %v1075_v13, %v1071_v12  ;;  %v1073_v17 = vld [vmem:[#allocation2 + $0x10] sm:$0xff]  ;;  %v1080_v19 = vld [vmem:[#allocation2 + $0x48] sm:$0xff]  ;;  %v1082_v22 = vld [vmem:[#allocation2 + $0x58] sm:$0xff]  ;;  %s3487_s21 = smov 64   ;;  %s3489_s3 = smov 57  }
 0x858   : > { %v1077_v18 = vld [vmem:[#allocation2 + $0x30] sm:$0xff]  ;;  %v1084_v21 = vld [vmem:[#allocation2 + $0x68] sm:$0xff]  ;;  %v1086_v23 = vld [vmem:[#allocation2 + $0x78] sm:$0xff]  ;;  %s3490_s25 = smov 56   ;;  %s3491_s30 = smov 55  }
 0x859   : > { %3071 = vmatprep.subr.bf16.mxu0 %v3070_v10  ;;  %v3080_v20 = vpack.c.bf16 %v1077_v18, %v1073_v17  ;;  %3079 = vmatprep.subr.bf16.mxu1 %v3078_v15  ;;  %v3074_v52 = vpack.c.bf16 %v1084_v21, %v1080_v19  ;;  %v3082_v24 = vpack.c.bf16 %v1086_v23, %v1082_v22  ;;  %v1079_v25 = vld [vmem:[#allocation2 + $0x40] sm:$0xff]  ;;  %v1081_v27 = vld [vmem:[#allocation2 + $0x50] sm:$0xff]  ;;  %v2753_v37 = vld [vmem:[%s3871_s17] sm:$0xff]  ;;  %s3488_s17 = smov 63   ;;  %s3492_s5 = smov 9  }
 0x85a   : > { %3073 = vmatpush1.bf16.msra.mxu0 %v3072_v16  ;;  %v1083_v26 = vld [vmem:[#allocation2 + $0x60] sm:$0xff]  ;;  %v1085_v29 = vld [vmem:[#allocation2 + $0x70] sm:$0xff]  ;;  %v1088_v31 = vld [vmem:[#allocation2 + $0x88] sm:$0xff]  ;;  %2756 = vperm.xlu0 %3246, %v2753_v37   ;;  %s3493_s1 = smov 8   ;;  %s3494_s4 = smov 7  }
 0x85b   : > { %3081 = vmatpush1.bf16.msra.mxu1 %v3080_v20  ;;  %v3076_v28 = vpack.c.bf16 %v1083_v26, %v1079_v25  ;;  %3075 = vmatprep.subr.bf16.mxu0 %v3074_v52  ;;  %v3084_v30 = vpack.c.bf16 %v1085_v29, %v1081_v27  ;;  %v1090_v32 = vld [vmem:[#allocation2 + $0x98] sm:$0xff]  ;;  %v1087_v33 = vld [vmem:[#allocation2 + $0x80] sm:$0xff]  ;;  %v1089_v34 = vld [vmem:[#allocation2 + $0x90] sm:$0xff]  ;;  %s3495_s7 = smov 1   ;;  %s3496_s14 = smov 127  }
 0x85c   : > { %3083 = vmatprep.subr.bf16.mxu1 %v3082_v24  ;;  %v1044_v35 = vld [vmem:[%s3850_s19] sm:$0xff]  ;;  %v1045_v36 = vld [vmem:[%s3850_s19 + $0x8] sm:$0xff]  ;;  %v1046_v38 = vld [vmem:[%s3850_s19 + $0x10] sm:$0xff]  ;;  %s5284_s16 = sld [smem:[#allocation48_spill]] }
 0x85d   : > { %v1047_v39 = vld [vmem:[%s3850_s19 + $0x18] sm:$0xff]  ;;  %v1048_v40 = vld [vmem:[%s3850_s19 + $0x20] sm:$0xff]  ;;  %v1049_v41 = vld [vmem:[%s3850_s19 + $0x28] sm:$0xff] }
 0x85e   : > { %3077 = vmatpush1.bf16.msra.mxu0 %v3076_v28  ;;  %v1050_v42 = vld [vmem:[%s3850_s19 + $0x30] sm:$0xff]  ;;  %v1051_v43 = vld [vmem:[%s3850_s19 + $0x38] sm:$0xff]  ;;  %v1052_v44 = vld [vmem:[%s3850_s19 + $0x40] sm:$0xff] }
 0x85f   : > { %3085 = vmatpush1.bf16.msra.mxu1 %v3084_v30  ;;  %1181 = vmatprep.subr.mxu0 %v1088_v31  ;;  %v1053_v45 = vld [vmem:[%s3850_s19 + $0x48] sm:$0xff]  ;;  %v1054_v46 = vld [vmem:[%s3850_s19 + $0x50] sm:$0xff]  ;;  %v1055_v47 = vld [vmem:[%s3850_s19 + $0x58] sm:$0xff] }
 0x860   : > { %1408 = vmatprep.subr.mxu1 %v1090_v32  ;;  %v1056_v48 = vld [vmem:[%s3850_s19 + $0x60] sm:$0xff]  ;;  %v1057_v49 = vld [vmem:[%s3850_s19 + $0x68] sm:$0xff]  ;;  %v1058_v50 = vld [vmem:[%s3850_s19 + $0x70] sm:$0xff] }
 0x861   : > { %v1059_v51 = vld [vmem:[%s3850_s19 + $0x78] sm:$0xff]  ;;  %v1060_v53 = vld [vmem:[%s3850_s19 + $0x80] sm:$0xff]  ;;  %v1061_v54 = vld [vmem:[%s3850_s19 + $0x88] sm:$0xff] }
 0x862   : > { %1182 = vmatpush1.msra.mxu0 %v1087_v33  ;;  %v1062_v55 = vld [vmem:[%s3850_s19 + $0x90] sm:$0xff]  ;;  %v1063_v56 = vld [vmem:[%s3850_s19 + $0x98] sm:$0xff]  ;;  %v1064_v57 = vld [vmem:[%s3850_s19 + $0xa0] sm:$0xff] }
 0x863   : > { %1409 = vmatpush1.msra.mxu1 %v1089_v34  ;;  %3005 = vmatmul.mubr.msk.f32.vlgmr.msra.gmra.mrb[0].mxu0 %vm1091_vm5, %v1044_v35  ;;  %v1065_v58 = vld [vmem:[%s3850_s19 + $0xa8] sm:$0xff]  ;;  %v1066_v59 = vld [vmem:[%s3850_s19 + $0xb0] sm:$0xff]  ;;  %v1067_v60 = vld [vmem:[%s3850_s19 + $0xb8] sm:$0xff] }
 0x864   : > { %3032 = vmatmul.mubr.msk.f32.vlgmr.msra.gmra.mrb[0].mxu1 %vm1091_vm5, %v1044_v35  ;;  %1243 = vmatprep.mubr.f32.mxu0 %v5222_v14  ;;  %v1068_v61 = vld [vmem:[%s3850_s19 + $0xc0] sm:$0xff]  ;;  %v1069_v62 = vld [vmem:[%s3850_s19 + $0xc8] sm:$0xff]  ;;  %v1070_v0 = vld [vmem:[%s3850_s19 + $0xd0] sm:$0xff]  ;;  %s3485_s19 = smov 71  }
 0x865   : > { %1470 = vmatprep.mubr.f32.mxu1 %v5222_v14 }
 0x867   : > { %3006 = vmatmul.mubr.msk.f32.gmra.mrb[2].mxu0 %vm1091_vm5, %v1045_v36 }
 0x868   : > { %3033 = vmatmul.mubr.msk.f32.gmra.mrb[2].mxu1 %vm1091_vm5, %v1045_v36  ;;  %1249 = vmatprep.mubr.f32.mxu0 %v5222_v14 }
 0x869   : > { %1476 = vmatprep.mubr.f32.mxu1 %v5222_v14 }
 0x86b   : > { %3007 = vmatmul.mubr.msk.f32.gmra.mrb[4].mxu0 %vm1091_vm5, %v1046_v38 }
 0x86c   : > { %3034 = vmatmul.mubr.msk.f32.gmra.mrb[4].mxu1 %vm1091_vm5, %v1046_v38  ;;  %1255 = vmatprep.mubr.f32.mxu0 %v5222_v14 }
 0x86d   : > { %1482 = vmatprep.mubr.f32.mxu1 %v5222_v14 }
 0x86f   : > { %3008 = vmatmul.mubr.msk.f32.gmra.mrb[6].mxu0 %vm1091_vm5, %v1047_v39 }
 0x870   : > { %3035 = vmatmul.mubr.msk.f32.gmra.mrb[6].mxu1 %vm1091_vm5, %v1047_v39  ;;  %1261 = vmatprep.mubr.f32.mxu0 %v5222_v14 }
 0x871   : > { %1488 = vmatprep.mubr.f32.mxu1 %v5222_v14 }
 0x873   : > { %3009 = vmatmul.mubr.msk.f32.gmra.mrb[8].mxu0 %vm1091_vm5, %v1048_v40 }
 0x874   : > { %3036 = vmatmul.mubr.msk.f32.gmra.mrb[8].mxu1 %vm1091_vm5, %v1048_v40  ;;  %1267 = vmatprep.mubr.f32.mxu0 %v5222_v14 }
 0x875   : > { %1494 = vmatprep.mubr.f32.mxu1 %v5222_v14 }
 0x877   : > { %3010 = vmatmul.mubr.msk.f32.gmra.mrb[10].mxu0 %vm1091_vm5, %v1049_v41 }
 0x878   : > { %3037 = vmatmul.mubr.msk.f32.gmra.mrb[10].mxu1 %vm1091_vm5, %v1049_v41  ;;  %1273 = vmatprep.mubr.f32.mxu0 %v5222_v14 }
 0x879   : > { %1500 = vmatprep.mubr.f32.mxu1 %v5222_v14 }
 0x87b   : > { %3011 = vmatmul.mubr.msk.f32.gmra.mrb[12].mxu0 %vm1091_vm5, %v1050_v42 }
 0x87c   : > { %3038 = vmatmul.mubr.msk.f32.gmra.mrb[12].mxu1 %vm1091_vm5, %v1050_v42  ;;  %1279 = vmatprep.mubr.f32.mxu0 %v5222_v14 }
 0x87d   : > { %1506 = vmatprep.mubr.f32.mxu1 %v5222_v14 }
 0x87f   : > { %3012 = vmatmul.mubr.msk.f32.gmra.mrb[14].mxu0 %vm1091_vm5, %v1051_v43 }
 0x880   : > { %3039 = vmatmul.mubr.msk.f32.gmra.mrb[14].mxu1 %vm1091_vm5, %v1051_v43  ;;  %1285 = vmatprep.mubr.f32.mxu0 %v5222_v14 }
 0x881   : > { %1512 = vmatprep.mubr.f32.mxu1 %v5222_v14 }
 0x883   : > { %3013 = vmatmul.mubr.msk.f32.gmra.mrb[16].mxu0 %vm1091_vm5, %v1052_v44 }
 0x884   : > { %3040 = vmatmul.mubr.msk.f32.gmra.mrb[16].mxu1 %vm1091_vm5, %v1052_v44  ;;  %1291 = vmatprep.mubr.f32.mxu0 %v5222_v14 }
 0x885   : > { %1518 = vmatprep.mubr.f32.mxu1 %v5222_v14 }
 0x887   : > { %3014 = vmatmul.mubr.msk.f32.gmra.mrb[18].mxu0 %vm1091_vm5, %v1053_v45 }
 0x888   : > { %3041 = vmatmul.mubr.msk.f32.gmra.mrb[18].mxu1 %vm1091_vm5, %v1053_v45  ;;  %1297 = vmatprep.mubr.f32.mxu0 %v5222_v14 }
 0x889   : > { %1524 = vmatprep.mubr.f32.mxu1 %v5222_v14 }
 0x88b   : > { %3015 = vmatmul.mubr.msk.f32.gmra.mrb[20].mxu0 %vm1091_vm5, %v1054_v46 }
 0x88c   : > { %3042 = vmatmul.mubr.msk.f32.gmra.mrb[20].mxu1 %vm1091_vm5, %v1054_v46  ;;  %1303 = vmatprep.mubr.f32.mxu0 %v5222_v14 }
 0x88d   : > { %1530 = vmatprep.mubr.f32.mxu1 %v5222_v14 }
 0x88f   : > { %3016 = vmatmul.mubr.msk.f32.gmra.mrb[22].mxu0 %vm1091_vm5, %v1055_v47 }
 0x890   : > { %3043 = vmatmul.mubr.msk.f32.gmra.mrb[22].mxu1 %vm1091_vm5, %v1055_v47  ;;  %1309 = vmatprep.mubr.f32.mxu0 %v5222_v14 }
 0x891   : > { %1536 = vmatprep.mubr.f32.mxu1 %v5222_v14 }
 0x893   : > { %3017 = vmatmul.mubr.msk.f32.gmra.mrb[24].mxu0 %vm1091_vm5, %v1056_v48 }
 0x894   : > { %1315 = vmatprep.mubr.f32.mxu0 %v5222_v14  ;;  %3044 = vmatmul.mubr.msk.f32.gmra.mrb[24].mxu1 %vm1091_vm5, %v1056_v48 }
 0x895   : > { %1542 = vmatprep.mubr.f32.mxu1 %v5222_v14 }
 0x897   : > { %3018 = vmatmul.mubr.msk.f32.gmra.mrb[26].mxu0 %vm1091_vm5, %v1057_v49 }
 0x898   : > { %1321 = vmatprep.mubr.f32.mxu0 %v5222_v14  ;;  %3045 = vmatmul.mubr.msk.f32.gmra.mrb[26].mxu1 %vm1091_vm5, %v1057_v49 }
 0x899   : > { %1548 = vmatprep.mubr.f32.mxu1 %v5222_v14 }
 0x89b   : > { %3019 = vmatmul.mubr.msk.f32.gmra.mrb[28].mxu0 %vm1091_vm5, %v1058_v50 }
 0x89c   : > { %3046 = vmatmul.mubr.msk.f32.gmra.mrb[28].mxu1 %vm1091_vm5, %v1058_v50  ;;  %1327 = vmatprep.mubr.f32.mxu0 %v5222_v14 }
 0x89d   : > { %1554 = vmatprep.mubr.f32.mxu1 %v5222_v14 }
 0x89f   : > { %3020 = vmatmul.mubr.msk.f32.gmra.mrb[30].mxu0 %vm1091_vm5, %v1059_v51 }
 0x8a0   : > { %3047 = vmatmul.mubr.msk.f32.gmra.mrb[30].mxu1 %vm1091_vm5, %v1059_v51  ;;  %1333 = vmatprep.mubr.f32.mxu0 %v5222_v14 }
 0x8a1   : > { %1560 = vmatprep.mubr.f32.mxu1 %v5222_v14 }
 0x8a3   : > { %3021 = vmatmul.mubr.msk.f32.gmra.mrb[32].mxu0 %vm1091_vm5, %v1060_v53 }
 0x8a4   : > { %3048 = vmatmul.mubr.msk.f32.gmra.mrb[32].mxu1 %vm1091_vm5, %v1060_v53  ;;  %1339 = vmatprep.mubr.f32.mxu0 %v5222_v14 }
 0x8a5   : > { %1566 = vmatprep.mubr.f32.mxu1 %v5222_v14 }
 0x8a7   : > { %3022 = vmatmul.mubr.msk.f32.gmra.mrb[34].mxu0 %vm1091_vm5, %v1061_v54 }
 0x8a8   : > { %3049 = vmatmul.mubr.msk.f32.gmra.mrb[34].mxu1 %vm1091_vm5, %v1061_v54  ;;  %1345 = vmatprep.mubr.f32.mxu0 %v5222_v14 }
 0x8a9   : > { %1572 = vmatprep.mubr.f32.mxu1 %v5222_v14 }
 0x8ab   : > { %3023 = vmatmul.mubr.msk.f32.gmra.mrb[36].mxu0 %vm1091_vm5, %v1062_v55 }
 0x8ac   : > { %3050 = vmatmul.mubr.msk.f32.gmra.mrb[36].mxu1 %vm1091_vm5, %v1062_v55  ;;  %1351 = vmatprep.mubr.f32.mxu0 %v5222_v14 }
 0x8ad   : > { %1578 = vmatprep.mubr.f32.mxu1 %v5222_v14 }
 0x8af   : > { %3024 = vmatmul.mubr.msk.f32.gmra.mrb[38].mxu0 %vm1091_vm5, %v1063_v56 }
 0x8b0   : > { %3051 = vmatmul.mubr.msk.f32.gmra.mrb[38].mxu1 %vm1091_vm5, %v1063_v56  ;;  %1357 = vmatprep.mubr.f32.mxu0 %v5222_v14 }
 0x8b1   : > { %1584 = vmatprep.mubr.f32.mxu1 %v5222_v14 }
 0x8b3   : > { %3025 = vmatmul.mubr.msk.f32.gmra.mrb[40].mxu0 %vm1091_vm5, %v1064_v57 }
 0x8b4   : > { %3052 = vmatmul.mubr.msk.f32.gmra.mrb[40].mxu1 %vm1091_vm5, %v1064_v57  ;;  %1363 = vmatprep.mubr.f32.mxu0 %v5222_v14 }
 0x8b5   : > { %1590 = vmatprep.mubr.f32.mxu1 %v5222_v14 }
 0x8b7   : > { %3026 = vmatmul.mubr.msk.f32.gmra.mrb[42].mxu0 %vm1091_vm5, %v1065_v58 }
 0x8b8   : > { %3053 = vmatmul.mubr.msk.f32.gmra.mrb[42].mxu1 %vm1091_vm5, %v1065_v58  ;;  %1369 = vmatprep.mubr.f32.mxu0 %v5222_v14 }
 0x8b9   : > { %1596 = vmatprep.mubr.f32.mxu1 %v5222_v14 }
 0x8bb   : > { %3027 = vmatmul.mubr.msk.f32.gmra.mrb[44].mxu0 %vm1091_vm5, %v1066_v59 }
 0x8bc   : > { %3054 = vmatmul.mubr.msk.f32.gmra.mrb[44].mxu1 %vm1091_vm5, %v1066_v59  ;;  %1375 = vmatprep.mubr.f32.mxu0 %v5222_v14 }
 0x8bd   : > { %1602 = vmatprep.mubr.f32.mxu1 %v5222_v14 }
 0x8bf   : > { %3028 = vmatmul.mubr.msk.f32.gmra.mrb[46].mxu0 %vm1091_vm5, %v1067_v60 }
 0x8c0   : > { %3055 = vmatmul.mubr.msk.f32.gmra.mrb[46].mxu1 %vm1091_vm5, %v1067_v60  ;;  %1381 = vmatprep.mubr.f32.mxu0 %v5222_v14 }
 0x8c1   : > { %1608 = vmatprep.mubr.f32.mxu1 %v5222_v14 }
 0x8c3   : > { %3029 = vmatmul.mubr.msk.f32.gmra.mrb[48].mxu0 %vm1091_vm5, %v1068_v61 }
 0x8c4   : > { %3056 = vmatmul.mubr.msk.f32.gmra.mrb[48].mxu1 %vm1091_vm5, %v1068_v61  ;;  %1387 = vmatprep.mubr.f32.mxu0 %v5222_v14 }
 0x8c5   : > { %1614 = vmatprep.mubr.f32.mxu1 %v5222_v14 }
 0x8c7   : > { %3030 = vmatmul.mubr.msk.f32.gmra.mrb[50].mxu0 %vm1091_vm5, %v1069_v62 }
 0x8c8   : > { %3057 = vmatmul.mubr.msk.f32.gmra.mrb[50].mxu1 %vm1091_vm5, %v1069_v62  ;;  %1393 = vmatprep.mubr.f32.mxu0 %v5222_v14 }
 0x8c9   : > { %1620 = vmatprep.mubr.f32.mxu1 %v5222_v14 }
 0x8cb   : > { %3031 = vmatmul.mubr.msk.f32.gmra.mrb[52].mxu0 %vm1091_vm5, %v1070_v0 }
 0x8cc   : > { %3058 = vmatmul.mubr.msk.f32.gmra.mrb[52].mxu1 %vm1091_vm5, %v1070_v0 }
 0x936   : > { %v1239_v2 = vpop.f32.mrb[0].mxu0 }
 0x937   : > { %v1466_v3 = vpop.f32.mrb[0].mxu1  ;;  %1644 = vrot.lane.b32.xlu0 %v1239_v2, %s3483_s23  ;;  %v1241_v4 = vpop.f32.mrb[1].mxu0 }
 0x938   : > { %1648 = vrot.lane.b32.xlu1 %v1466_v3, %s3483_s23  ;;  %v1468_v5 = vpop.f32.mrb[1].mxu1 }
 0x93a   : > { %v1245_v6 = vpop.f32.mrb[2].mxu0 }
 0x93b   : > { %1646 = vrot.lane.b32.xlu0 %v1241_v4, %s3483_s23  ;;  %v1247_v7 = vpop.f32.mrb[3].mxu0  ;;  %v1472_v8 = vpop.f32.mrb[2].mxu1 }
 0x93c   : > { %1650 = vrot.lane.b32.xlu1 %v1468_v5, %s3483_s23  ;;  %v1474_v9 = vpop.f32.mrb[3].mxu1 }
 0x93e   : > { %v1251_v10 = vpop.f32.mrb[4].mxu0 }
 0x93f   : > { %1690 = vrot.lane.b32.xlu0 %v1245_v6, %s3484_s8  ;;  %v1253_v11 = vpop.f32.mrb[5].mxu0  ;;  %v1478_v12 = vpop.f32.mrb[4].mxu1 }
 0x940   : > { %1692 = vrot.lane.b32.xlu1 %v1247_v7, %s3484_s8  ;;  %v1480_v13 = vpop.f32.mrb[5].mxu1 }
 0x942   : > { %v1257_v15 = vpop.f32.mrb[6].mxu0 }
 0x943   : > { %1694 = vrot.lane.b32.xlu0 %v1472_v8, %s3484_s8  ;;  %v1259_v16 = vpop.f32.mrb[7].mxu0  ;;  %v1484_v17 = vpop.f32.mrb[6].mxu1 }
 0x944   : > { %1696 = vrot.lane.b32.xlu1 %v1474_v9, %s3484_s8  ;;  %v1486_v18 = vpop.f32.mrb[7].mxu1 }
 0x946   : > { %v1263_v19 = vpop.f32.mrb[8].mxu0 }
 0x947   : > { %1732 = vrot.lane.b32.xlu0 %v1251_v10, %s3485_s19  ;;  %v1265_v20 = vpop.f32.mrb[9].mxu0  ;;  %v1490_v21 = vpop.f32.mrb[8].mxu1 }
 0x948   : > { %1734 = vrot.lane.b32.xlu1 %v1253_v11, %s3485_s19  ;;  %v1492_v22 = vpop.f32.mrb[9].mxu1 }
 0x94a   : > { %v1269_v23 = vpop.f32.mrb[10].mxu0 }
 0x94b   : > { %1736 = vrot.lane.b32.xlu0 %v1478_v12, %s3485_s19  ;;  %v1271_v52 = vpop.f32.mrb[11].mxu0  ;;  %v1496_v24 = vpop.f32.mrb[10].mxu1 }
 0x94c   : > { %1738 = vrot.lane.b32.xlu1 %v1480_v13, %s3485_s19  ;;  %v1498_v25 = vpop.f32.mrb[11].mxu1 }
 0x94e   : > { %v1275_v26 = vpop.f32.mrb[12].mxu0 }
 0x94f   : > { %1775 = vrot.lane.b32.xlu0 %v1257_v15, %s3486_s27  ;;  %v1277_v27 = vpop.f32.mrb[13].mxu0  ;;  %v1502_v28 = vpop.f32.mrb[12].mxu1 }
 0x950   : > { %1777 = vrot.lane.b32.xlu1 %v1259_v16, %s3486_s27  ;;  %v1504_v29 = vpop.f32.mrb[13].mxu1 }
 0x952   : > { %v1281_v30 = vpop.f32.mrb[14].mxu0 }
 0x953   : > { %1779 = vrot.lane.b32.xlu0 %v1484_v17, %s3486_s27  ;;  %v1283_v31 = vpop.f32.mrb[15].mxu0  ;;  %v1508_v32 = vpop.f32.mrb[14].mxu1 }
 0x954   : > { %1781 = vrot.lane.b32.xlu1 %v1486_v18, %s3486_s27  ;;  %v1510_v33 = vpop.f32.mrb[15].mxu1 }
 0x956   : > { %v1287_v34 = vpop.f32.mrb[16].mxu0 }
 0x957   : > { %1818 = vrot.lane.b32.xlu0 %v1263_v19, %s3487_s21  ;;  %v1289_v35 = vpop.f32.mrb[17].mxu0  ;;  %v1514_v36 = vpop.f32.mrb[16].mxu1 }
 0x958   : > { %1820 = vrot.lane.b32.xlu1 %v1265_v20, %s3487_s21  ;;  %v1516_v37 = vpop.f32.mrb[17].mxu1 }
 0x95a   : > { %v1293_v38 = vpop.f32.mrb[18].mxu0 }
 0x95b   : > { %1822 = vrot.lane.b32.xlu0 %v1490_v21, %s3487_s21  ;;  %v1295_v39 = vpop.f32.mrb[19].mxu0  ;;  %v1520_v40 = vpop.f32.mrb[18].mxu1 }
 0x95c   : > { %1824 = vrot.lane.b32.xlu1 %v1492_v22, %s3487_s21  ;;  %v4175_v41 = vpop.f32.mrb[19].mxu1 }
 0x95e   : > { %v4177_v42 = vpop.f32.mrb[20].mxu0 }
 0x95f   : > { %1860 = vrot.lane.b32.xlu0 %v1269_v23, %s3488_s17  ;;  %v4180_v43 = vpop.f32.mrb[21].mxu0  ;;  %v4182_v44 = vpop.f32.mrb[20].mxu1 }
 0x960   : > { %1862 = vrot.lane.b32.xlu1 %v1271_v52, %s3488_s17  ;;  %v4185_v45 = vpop.f32.mrb[21].mxu1 }
 0x962   : > { %v4187_v46 = vpop.f32.mrb[22].mxu0 }
 0x963   : > { %1864 = vrot.lane.b32.xlu0 %v1496_v24, %s3488_s17  ;;  %v4190_v47 = vpop.f32.mrb[23].mxu0  ;;  %v4192_v48 = vpop.f32.mrb[22].mxu1 }
 0x964   : > { %1866 = vrot.lane.b32.xlu1 %v1498_v25, %s3488_s17  ;;  %v4195_v49 = vpop.f32.mrb[23].mxu1 }
 0x966   : > { %v4197_v50 = vpop.f32.mrb[24].mxu0 }
 0x967   : > { %1903 = vrot.lane.b32.xlu0 %v1275_v26, %s3489_s3  ;;  %v4200_v51 = vpop.f32.mrb[25].mxu0  ;;  %v4202_v53 = vpop.f32.mrb[24].mxu1 }
 0x968   : > { %1905 = vrot.lane.b32.xlu1 %v1277_v27, %s3489_s3  ;;  %v4205_v54 = vpop.f32.mrb[25].mxu1 }
 0x96a   : > { %v4207_v55 = vpop.f32.mrb[26].mxu0 }
 0x96b   : > { %5263 = vst [vmem:[#allocation19_spill] sm:$0xff] %v4207_v55  ;;  %1907 = vrot.lane.b32.xlu0 %v1502_v28, %s3489_s3  ;;  %v4210_v56 = vpop.f32.mrb[27].mxu0  ;;  %v4212_v57 = vpop.f32.mrb[26].mxu1 }
 0x96c   : > { %5264 = vst [vmem:[#allocation20_spill] sm:$0xff] %v4210_v56  ;;  %5265 = vst [vmem:[#allocation21_spill] sm:$0xff] %v4212_v57  ;;  %1909 = vrot.lane.b32.xlu1 %v1504_v29, %s3489_s3  ;;  %v4215_v58 = vpop.f32.mrb[27].mxu1  ;;  %v4391_v57 = vsub.s32 3, %v3996_v1 }
 0x96d   : > { %5266 = vst [vmem:[#allocation22_spill] sm:$0xff] %v4215_v58 }
 0x96e   : > { %v4217_v59 = vpop.f32.mrb[28].mxu0 }
 0x96f   : > { %1947 = vrot.lane.b32.xlu0 %v1281_v30, %s3490_s25  ;;  %v4220_v60 = vpop.f32.mrb[29].mxu0  ;;  %v4222_v61 = vpop.f32.mrb[28].mxu1 }
 0x970   : > { %1949 = vrot.lane.b32.xlu1 %v1283_v31, %s3490_s25  ;;  %v4225_v62 = vpop.f32.mrb[29].mxu1 }
 0x972   : > { %v4227_v0 = vpop.f32.mrb[30].mxu0 }
 0x973   : > { %1951 = vrot.lane.b32.xlu0 %v1508_v32, %s3490_s25  ;;  %v4230_v2 = vpop.f32.mrb[31].mxu0  ;;  %v4232_v3 = vpop.f32.mrb[30].mxu1 }
 0x974   : > { %1953 = vrot.lane.b32.xlu1 %v1510_v33, %s3490_s25  ;;  %v4235_v4 = vpop.f32.mrb[31].mxu1 }
 0x976   : > { %v4237_v5 = vpop.f32.mrb[32].mxu0 }
 0x977   : > { %1989 = vrot.lane.b32.xlu0 %v1287_v34, %s3491_s30  ;;  %v4240_v6 = vpop.f32.mrb[33].mxu0  ;;  %v4242_v7 = vpop.f32.mrb[32].mxu1 }
 0x978   : > { %1991 = vrot.lane.b32.xlu1 %v1289_v35, %s3491_s30  ;;  %v4245_v8 = vpop.f32.mrb[33].mxu1 }
 0x97a   : > { %v4247_v9 = vpop.f32.mrb[34].mxu0 }
 0x97b   : > { %1993 = vrot.lane.b32.xlu0 %v1514_v36, %s3491_s30  ;;  %v4250_v10 = vpop.f32.mrb[35].mxu0  ;;  %v4252_v11 = vpop.f32.mrb[34].mxu1 }
 0x97c   : > { %1995 = vrot.lane.b32.xlu1 %v1516_v37, %s3491_s30  ;;  %v4255_v12 = vpop.f32.mrb[35].mxu1 }
 0x97e   : > { %v4257_v13 = vpop.f32.mrb[36].mxu0 }
 0x97f   : > { %2032 = vrot.lane.b32.xlu0 %v1293_v38, %s3492_s5  ;;  %v4259_v15 = vpop.f32.mrb[37].mxu0  ;;  %v4261_v16 = vpop.f32.mrb[36].mxu1 }
 0x980   : > { %2034 = vrot.lane.b32.xlu1 %v1295_v39, %s3492_s5  ;;  %v4263_v17 = vpop.f32.mrb[37].mxu1 }
 0x982   : > { %v4265_v18 = vpop.f32.mrb[38].mxu0 }
 0x983   : > { %2036 = vrot.lane.b32.xlu0 %v1520_v40, %s3492_s5  ;;  %v4267_v19 = vpop.f32.mrb[39].mxu0  ;;  %v4269_v20 = vpop.f32.mrb[38].mxu1 }
 0x984   : > { %2038 = vrot.lane.b32.xlu1 %v4175_v41, %s3492_s5  ;;  %v4272_v21 = vpop.f32.mrb[39].mxu1  ;;  %s3497_s5 = smov 121  }
 0x986   : > { %v4274_v22 = vpop.f32.mrb[40].mxu0 }
 0x987   : > { %2075 = vrot.lane.b32.xlu0 %v4177_v42, %s3493_s1  ;;  %v4277_v23 = vpop.f32.mrb[41].mxu0  ;;  %v4279_v52 = vpop.f32.mrb[40].mxu1 }
 0x988   : > { %2077 = vrot.lane.b32.xlu1 %v4180_v43, %s3493_s1  ;;  %v4282_v24 = vpop.f32.mrb[41].mxu1 }
 0x98a   : > { %v4284_v25 = vpop.f32.mrb[42].mxu0 }
 0x98b   : > { %2079 = vrot.lane.b32.xlu0 %v4182_v44, %s3493_s1  ;;  %v4287_v26 = vpop.f32.mrb[43].mxu0  ;;  %v4289_v27 = vpop.f32.mrb[42].mxu1 }
 0x98c   : > { %2081 = vrot.lane.b32.xlu1 %v4185_v45, %s3493_s1  ;;  %v4292_v28 = vpop.f32.mrb[43].mxu1 }
 0x98e   : > { %v4294_v29 = vpop.f32.mrb[44].mxu0 }
 0x98f   : > { %2117 = vrot.lane.b32.xlu0 %v4187_v46, %s3494_s4  ;;  %v4297_v30 = vpop.f32.mrb[45].mxu0  ;;  %v4299_v31 = vpop.f32.mrb[44].mxu1 }
 0x990   : > { %2119 = vrot.lane.b32.xlu1 %v4190_v47, %s3494_s4  ;;  %v4302_v32 = vpop.f32.mrb[45].mxu1 }
 0x992   : > { %v4304_v33 = vpop.f32.mrb[46].mxu0 }
 0x993   : > { %5267 = vst [vmem:[#allocation23_spill] sm:$0xff] %v4304_v33  ;;  %2121 = vrot.lane.b32.xlu0 %v4192_v48, %s3494_s4  ;;  %v4307_v34 = vpop.f32.mrb[47].mxu0  ;;  %v4309_v35 = vpop.f32.mrb[46].mxu1 }
 0x994   : > { %5268 = vst [vmem:[#allocation24_spill] sm:$0xff] %v4307_v34  ;;  %5269 = vst [vmem:[#allocation25_spill] sm:$0xff] %v4309_v35  ;;  %2123 = vrot.lane.b32.xlu1 %v4195_v49, %s3494_s4  ;;  %v4312_v36 = vpop.f32.mrb[47].mxu1  ;;  %v4345_v49 = vpop.permute.xlu0 %2756 }
 0x995   : > { %5270 = vst [vmem:[#allocation26_spill] sm:$0xff] %v4312_v36  ;;  %5283 = vst [vmem:[#allocation39_spill] sm:$0xff] %v4345_v49  ;;  %v5287_v49 = vlaneseq }
 0x996   : > { %v4314_v37 = vpop.f32.mrb[48].mxu0 }
 0x997   : > { %5271 = vst [vmem:[#allocation27_spill] sm:$0xff] %v4314_v37  ;;  %2160 = vrot.lane.b32.xlu0 %v4197_v50, %s3495_s7  ;;  %v4317_v38 = vpop.f32.mrb[49].mxu0  ;;  %v4319_v39 = vpop.f32.mrb[48].mxu1  ;;  %v4351_v50 = vld [vmem:[%s5284_s16] ss:$8 sm:$0xf] }
 0x998   : > { %5272 = vst [vmem:[#allocation28_spill] sm:$0xff] %v4317_v38  ;;  %5273 = vst [vmem:[#allocation29_spill] sm:$0xff] %v4319_v39  ;;  %2162 = vrot.lane.b32.xlu1 %v4200_v51, %s3495_s7  ;;  %v4322_v40 = vpop.f32.mrb[49].mxu1  ;;  %v4356_v51 = vld [vmem:[%s5284_s16 + $0x1] ss:$8 sm:$0xf] }
 0x999   : > { %5274 = vst [vmem:[#allocation30_spill] sm:$0xff] %v4322_v40  ;;  %5285 = vst [vmem:[#allocation40_spill] sm:$0xff] %v4351_v50  ;;  %vm1632_vm6 = vcmp.ge.f32.partialorder %v4351_v50, 1.0  ;;  %vm1634_vm7 = vcmp.ge.f32.partialorder %v4356_v51, 1.0  ;;  %v4380_v50 = vand.u32 127, %v5287_v49  ;;  %vm1640_vm15 = vcmp.le.f32.partialorder %v4356_v51, 6.0 }
 0x99a   : > { %v4324_v41 = vpop.f32.mrb[50].mxu0 }
 0x99b   : > { %5275 = vst [vmem:[#allocation31_spill] sm:$0xff] %v4324_v41  ;;  %2164 = vrot.lane.b32.xlu0 %v4202_v53, %s3495_s7  ;;  %v4327_v42 = vpop.f32.mrb[51].mxu0  ;;  %v4329_v43 = vpop.f32.mrb[50].mxu1  ;;  %v3060_v53 = vld [vmem:[%s5284_s16 + $0x2] ss:$8 sm:$0xf] }
 0x99c   : > { %5276 = vst [vmem:[#allocation32_spill] sm:$0xff] %v4327_v42  ;;  %5277 = vst [vmem:[#allocation33_spill] sm:$0xff] %v4329_v43  ;;  %2166 = vrot.lane.b32.xlu1 %v4205_v54, %s3495_s7  ;;  %v4332_v44 = vpop.f32.mrb[51].mxu1  ;;  %vm1636_vm8 = vcmp.ge.f32.partialorder %v3060_v53, 1.0  ;;  %vm1642_vm9 = vcmp.le.f32.partialorder %v3060_v53, 6.0  ;;  %s3498_s7 = smov 120  }
 0x99d   : > { %5278 = vst [vmem:[#allocation34_spill] sm:$0xff] %v4332_v44  ;;  %v4388_v55 = vsel %vm1642_vm9, 1.0, %v5222_v14  ;;  %v4394_v53 = vsub.s32 1, %v3996_v1  ;;  %vm1698_vm10 = vcmp.lt.s32.totalorder %v4380_v50, 72  ;;  %vm1654_vm11 = vcmp.lt.s32.totalorder %v4380_v50, 73 }
 0x99e   : > { %v4334_v45 = vpop.f32.mrb[52].mxu0  ;;  %vm1740_vm12 = vcmp.lt.s32.totalorder %v4380_v50, 71  ;;  %vm1783_vm13 = vcmp.lt.s32.totalorder %v4380_v50, 65  ;;  %vm1826_vm14 = vcmp.lt.s32.totalorder %v4380_v50, 64  ;;  %vm1868_vm0 = vcmp.lt.s32.totalorder %v4380_v50, 63 }
 0x99f   : > { %5279 = vst [vmem:[#allocation35_spill] sm:$0xff] %v4334_v45  ;;  %2206 = vrot.lane.b32.xlu0 %v4217_v59, %s3496_s14  ;;  %v4337_v46 = vpop.f32.mrb[53].mxu0  ;;  %v4339_v47 = vpop.f32.mrb[52].mxu1  ;;  %vm1911_vm1 = vcmp.lt.s32.totalorder %v4380_v50, 57  ;;  %vm1955_vm2 = vcmp.lt.s32.totalorder %v4380_v50, 56  ;;  %vm1997_vm3 = vcmp.lt.s32.totalorder %v4380_v50, 55 }
 0x9a0   : > { %5280 = vst [vmem:[#allocation36_spill] sm:$0xff] %v4337_v46  ;;  %5281 = vst [vmem:[#allocation37_spill] sm:$0xff] %v4339_v47  ;;  %2208 = vrot.lane.b32.xlu1 %v4220_v60, %s3496_s14  ;;  %v4342_v48 = vpop.f32.mrb[53].mxu1  ;;  %v4366_v60 = vsel %vm1632_vm6, 1.0, %v5222_v14  ;;  %vm2040_vm4 = vcmp.lt.s32.totalorder %v4380_v50, 9  ;;  %vm2083_vm5 = vcmp.lt.s32.totalorder %v4380_v50, 8 }
 0x9a1   : > { %5282 = vst [vmem:[#allocation38_spill] sm:$0xff] %v4342_v48  ;;  %v1873_v51 = vmul.f32 %v4388_v55, %v4366_v60  ;;  %vm2125_vm6 = vcmp.lt.s32.totalorder %v4380_v50, 7  ;;  %vm2256_vm9 = vcmp.lt.s32.totalorder %v4380_v50, 121 }
 0x9a3   : > { %2210 = vrot.lane.b32.xlu0 %v4222_v61, %s3496_s14  ;;  %v4369_v61 = vsel %vm1634_vm7, 1.0, %v5222_v14  ;;  %vm2168_vm7 = vcmp.lt.s32.totalorder %v4380_v50, 1 }
 0x9a4   : > { %2212 = vrot.lane.b32.xlu1 %v4225_v62, %s3496_s14  ;;  %5286 = vst [vmem:[#allocation41_spill] sm:$0xff] %v4369_v61  ;;  %v1659_v62 = vmul.f32 %v4369_v61, %v4366_v60  ;;  %s3499_s14 = smov 119  }
 0x9a6   : > { %v1711_v49 = vrot.slane %v1659_v62, %v4394_v53  ;;  %v1719_v42 = vrot.slane %v1659_v62, %v4391_v57 }
 0x9a7   : > { %2248 = vrot.lane.b32.xlu0 %v4227_v0, %s3497_s5 }
 0x9a8   : > { %2250 = vrot.lane.b32.xlu1 %v4230_v2, %s3497_s5  ;;  %v4376_v2 = vsel %vm1636_vm8, 1.0, %v5222_v14  ;;  %v1745_v14 = vmul.f32 %v1659_v62, %v4388_v55  ;;  %vm2214_vm8 = vcmp.lt.s32.totalorder %v4380_v50, 127 }
 0x9a9   : > { %v1645_v54 = vpop.permute.xlu0 %1644 }
 0x9aa   : > { %v1649_v59 = vpop.permute.xlu1 %1648  ;;  %v1762_v61 = vrot.slane %v1745_v14, %v4391_v57 }
 0x9ab   : > { %2252 = vrot.lane.b32.xlu0 %v4232_v3, %s3497_s5  ;;  %v1660_v3 = vmul.f32 %v1659_v62, %v4376_v2 }
 0x9ac   : > { %2254 = vrot.lane.b32.xlu1 %v4235_v4, %s3497_s5  ;;  %v4385_v4 = vsub.s32 0, %v3996_v1 }
 0x9ad   : > { %v1647_v0 = vpop.permute.xlu0 %1646  ;;  %v1677_v46 = vrot.slane %v1660_v3, %v4391_v57  ;;  %v1669_v45 = vrot.slane %v1660_v3, %v4394_v53 }
 0x9ae   : > { %v1651_v63 = vpop.permute.xlu1 %1650  ;;  %v1657_v44 = vsel %vm1654_vm11, %v1645_v54, %v1647_v0  ;;  %v1707_v43 = vrot.slane %v1659_v62, %v4385_v4 }
 0x9af   : > { %2291 = vrot.lane.b32.xlu0 %v4237_v5, %s3498_s7  ;;  %v4397_v5 = vsub.s32 2, %v3996_v1  ;;  %v1665_v1 = vrot.slane %v1660_v3, %v4385_v4 }
 0x9b0   : > { %2293 = vrot.lane.b32.xlu1 %v4240_v6, %s3498_s7 }
 0x9b1   : > { %v1691_v58 = vpop.permute.xlu0 %1690  ;;  %v1758_v37 = vrot.slane %v1745_v14, %v4397_v5 }
 0x9b2   : > { %v1693_v6 = vpop.permute.xlu1 %1692 }
 0x9b3   : > { %2295 = vrot.lane.b32.xlu0 %v4242_v7, %s3498_s7  ;;  %v1701_v56 = vsel %vm1698_vm10, %v1691_v58, %v1693_v6  ;;  %v1673_v7 = vrot.slane %v1660_v3, %v4397_v5  ;;  %v1754_v3 = vrot.slane %v1745_v14, %v4394_v53 }
 0x9b4   : > { %2297 = vrot.lane.b32.xlu1 %v4245_v8, %s3498_s7  ;;  %v1715_v8 = vrot.slane %v1659_v62, %v4397_v5  ;;  %v1725_v41 = vmul.f32 %v1711_v49, %v1701_v56  ;;  %v1788_v56 = vmul.f32 %v4376_v2, %v4366_v60  ;;  %v1750_v49 = vrot.slane %v1745_v14, %v4385_v4 }
 0x9b5   : > { %v1695_v48 = vpop.permute.xlu0 %1694 }
 0x9b6   : > { %v1697_v47 = vpop.permute.xlu1 %1696  ;;  %v1700_v40 = vsel %vm1698_vm10, %v1693_v6, %v1695_v48 }
 0x9b7   : > { %2333 = vrot.lane.b32.xlu0 %v4247_v9, %s3499_s14  ;;  %v1699_v39 = vsel %vm1698_vm10, %v1695_v48, %v1697_v47  ;;  %v1702_v38 = vsel %vm1698_vm10, %v1697_v47, %v1691_v58  ;;  %v1656_v9 = vsel %vm1654_vm11, %v1647_v0, %v1649_v59  ;;  %v1655_v48 = vsel %vm1654_vm11, %v1649_v59, %v1651_v63 }
 0x9b8   : > { %2335 = vrot.lane.b32.xlu1 %v4250_v10, %s3499_s14  ;;  %v1683_v10 = vmul.f32 %v1669_v45, %v1657_v44  ;;  %v1658_v58 = vsel %vm1654_vm11, %v1651_v63, %v1645_v54  ;;  %v1726_v47 = vmul.f32 %v1715_v8, %v1700_v40  ;;  %v1724_v0 = vmul.f32 %v1707_v43, %v1702_v38 }
 0x9b9   : > { %v1733_v62 = vpop.permute.xlu0 %1732  ;;  %v1727_v44 = vmul.f32 %v1719_v42, %v1699_v39  ;;  %v1684_v34 = vmul.f32 %v1673_v7, %v1656_v9  ;;  %v1797_v59 = vrot.slane %v1788_v56, %v4394_v53  ;;  %v1682_v33 = vmul.f32 %v1665_v1, %v1658_v58 }
 0x9ba   : > { %v1735_v6 = vpop.permute.xlu1 %1734  ;;  %v1729_v35 = vadd.f32 %v1725_v41, %v1683_v10  ;;  %v1685_v63 = vmul.f32 %v1677_v46, %v1655_v48 }
 0x9bb   : > { %v1743_v36 = vsel %vm1740_vm12, %v1733_v62, %v1735_v6  ;;  %2337 = vrot.lane.b32.xlu0 %v4252_v11, %s3499_s14  ;;  %v1730_v11 = vadd.f32 %v1726_v47, %v1684_v34  ;;  %v1728_v38 = vadd.f32 %v1724_v0, %v1682_v33 }
 0x9bc   : > { %v1768_v45 = vmul.f32 %v1754_v3, %v1743_v36  ;;  %2339 = vrot.lane.b32.xlu1 %v4255_v12, %s3499_s14  ;;  %v1731_v39 = vadd.f32 %v1727_v44, %v1685_v63  ;;  %v1847_v63 = vrot.slane %v4366_v60, %v4391_v57 }
 0x9bd   : > { %v1737_v14 = vpop.permute.xlu0 %1736 }
 0x9be   : > { %v1772_v40 = vadd.f32 %v1768_v45, %v1729_v35  ;;  %v1742_v54 = vsel %vm1740_vm12, %v1735_v6, %v1737_v14  ;;  %v1739_v8 = vpop.permute.xlu1 %1738 }
 0x9bf   : > { %v1769_v41 = vmul.f32 %v1758_v37, %v1742_v54  ;;  %v1741_v36 = vsel %vm1740_vm12, %v1737_v14, %v1739_v8  ;;  %v1744_v12 = vsel %vm1740_vm12, %v1739_v8, %v1733_v62  ;;  %2376 = vrot.lane.b32.xlu0 %v4257_v13, %s3483_s23  ;;  %v1801_v13 = vrot.slane %v1788_v56, %v4397_v5 }
 0x9c0   : > { %v1767_v42 = vmul.f32 %v1750_v49, %v1744_v12  ;;  %v1770_v43 = vmul.f32 %v1762_v61, %v1741_v36  ;;  %2378 = vrot.lane.b32.xlu1 %v4259_v15, %s3483_s23  ;;  %v1793_v61 = vrot.slane %v1788_v56, %v4385_v4  ;;  %v1805_v15 = vrot.slane %v1788_v56, %v4391_v57 }
 0x9c1   : > { %v1773_v35 = vadd.f32 %v1769_v41, %v1730_v11  ;;  %v1776_v46 = vpop.permute.xlu0 %1775  ;;  %v1839_v56 = vrot.slane %v4366_v60, %v4394_v53  ;;  %v5288_v54 = vmov 0.0  }
 0x9c2   : > { %v1771_v34 = vadd.f32 %v1767_v42, %v1728_v38  ;;  %v1774_v37 = vadd.f32 %v1770_v43, %v1731_v39  ;;  %v1778_v1 = vpop.permute.xlu1 %1777  ;;  %v4491_v8 = vsel %vm1640_vm15, 1.0, %v5288_v54  ;;  %v1882_v42 = vrot.slane %v1873_v51, %v4394_v53 }
 0x9c3   : > { %v1786_v7 = vsel %vm1783_vm13, %v1776_v46, %v1778_v1  ;;  %2380 = vrot.lane.b32.xlu0 %v4261_v16, %s3483_s23  ;;  %v4507_v43 = vmul.f32 %v4491_v8, %v4366_v60  ;;  %vm2299_vm15 = vcmp.lt.s32.totalorder %v4380_v50, 120 }
 0x9c4   : > { %v1811_v33 = vmul.f32 %v1797_v59, %v1786_v7  ;;  %2382 = vrot.lane.b32.xlu1 %v4263_v17, %s3483_s23  ;;  %v1835_v59 = vrot.slane %v4366_v60, %v4385_v4  ;;  %v1886_v7 = vrot.slane %v1873_v51, %v4397_v5  ;;  %s3061_s23 = sshll.u32 %s3455_s12, 1 }
 0x9c5   : > { %v1780_v3 = vpop.permute.xlu0 %1779  ;;  %s5129_s12 = sadd.s32 %s3451_s11, %s3061_s23 }
 0x9c6   : > { %v1815_v62 = vadd.f32 %v1811_v33, %v1772_v40  ;;  %v1785_v9 = vsel %vm1783_vm13, %v1778_v1, %v1780_v3  ;;  %v1782_v10 = vpop.permute.xlu1 %1781  ;;  %v1917_v33 = vmul.f32 %v4507_v43, %v4376_v2  ;;  %s3069_s11 = sshll.u32 %s5129_s12, 5 }
 0x9c7   : > { %v1812_v6 = vmul.f32 %v1801_v13, %v1785_v9  ;;  %v1784_v16 = vsel %vm1783_vm13, %v1780_v3, %v1782_v10  ;;  %v1787_v49 = vsel %vm1783_vm13, %v1782_v10, %v1776_v46  ;;  %2419 = vrot.lane.b32.xlu0 %v4265_v18, %s3484_s8  ;;  %v1890_v13 = vrot.slane %v1873_v51, %v4391_v57 }
 0x9c8   : > { %v1810_v17 = vmul.f32 %v1793_v61, %v1787_v49  ;;  %v1813_v48 = vmul.f32 %v1805_v15, %v1784_v16  ;;  %2421 = vrot.lane.b32.xlu1 %v4267_v19, %s3484_s8  ;;  %v1843_v19 = vrot.slane %v4366_v60, %v4397_v5  ;;  %v1878_v60 = vrot.slane %v1873_v51, %v4385_v4 }
 0x9c9   : > { %v1816_v58 = vadd.f32 %v1812_v6, %v1773_v35  ;;  %v1819_v47 = vpop.permute.xlu0 %1818  ;;  %v1926_v16 = vrot.slane %v1917_v33, %v4394_v53 }
 0x9ca   : > { %v1814_v0 = vadd.f32 %v1810_v17, %v1771_v34  ;;  %v1817_v44 = vadd.f32 %v1813_v48, %v1774_v37  ;;  %v1821_v45 = vpop.permute.xlu1 %1820 }
 0x9cb   : > { %v1829_v18 = vsel %vm1826_vm14, %v1819_v47, %v1821_v45  ;;  %2423 = vrot.lane.b32.xlu0 %v4269_v20, %s3484_s8 }
 0x9cc   : > { %v1853_v14 = vmul.f32 %v1839_v56, %v1829_v18  ;;  %2425 = vrot.lane.b32.xlu1 %v4272_v21, %s3484_s8  ;;  %s2767_s8 = scalar_lea.vmem [#allocation3], %s3069_s11 }
 0x9cd   : > { %v1823_v40 = vpop.permute.xlu0 %1822 }
 0x9ce   : > { %v1857_v20 = vadd.f32 %v1853_v14, %v1815_v62  ;;  %v1828_v11 = vsel %vm1826_vm14, %v1821_v45, %v1823_v40  ;;  %v1825_v41 = vpop.permute.xlu1 %1824 }
 0x9cf   : > { %v1854_v36 = vmul.f32 %v1843_v19, %v1828_v11  ;;  %v1827_v21 = vsel %vm1826_vm14, %v1823_v40, %v1825_v41  ;;  %v1830_v12 = vsel %vm1826_vm14, %v1825_v41, %v1819_v47  ;;  %2460 = vrot.lane.b32.xlu0 %v4274_v22, %s3485_s19  ;;  %v1968_v40 = vrot.slane %v4507_v43, %v4394_v53 }
 0x9d0   : > { %v1852_v38 = vmul.f32 %v1835_v59, %v1830_v12  ;;  %v1855_v39 = vmul.f32 %v1847_v63, %v1827_v21  ;;  %2462 = vrot.lane.b32.xlu1 %v4277_v23, %s3485_s19 }
 0x9d1   : > { %v1858_v35 = vadd.f32 %v1854_v36, %v1816_v58  ;;  %v1861_v46 = vpop.permute.xlu0 %1860 }
 0x9d2   : > { %v1856_v34 = vadd.f32 %v1852_v38, %v1814_v0  ;;  %v1859_v37 = vadd.f32 %v1855_v39, %v1817_v44  ;;  %v1863_v1 = vpop.permute.xlu1 %1862  ;;  %v1934_v44 = vrot.slane %v1917_v33, %v4391_v57  ;;  %v1964_v38 = vrot.slane %v4507_v43, %v4385_v4 }
 0x9d3   : > { %v1871_v22 = vsel %vm1868_vm0, %v1861_v46, %v1863_v1  ;;  %2464 = vrot.lane.b32.xlu0 %v4279_v52, %s3485_s19  ;;  %v1976_v39 = vrot.slane %v4507_v43, %v4391_v57 }
 0x9d4   : > { %v1896_v23 = vmul.f32 %v1882_v42, %v1871_v22  ;;  %2466 = vrot.lane.b32.xlu1 %v4282_v24, %s3485_s19  ;;  %v2002_v42 = vmul.f32 %v4507_v43, %v4388_v55  ;;  %v5289_v22 = vld [vmem:[#allocation23_spill] sm:$0xff] }
 0x9d5   : > { %v1865_v61 = vpop.permute.xlu0 %1864 }
 0x9d6   : > { %v1900_v15 = vadd.f32 %v1896_v23, %v1857_v20  ;;  %v1870_v3 = vsel %vm1868_vm0, %v1863_v1, %v1865_v61  ;;  %v1867_v62 = vpop.permute.xlu1 %1866 }
 0x9d7   : > { %v1897_v52 = vmul.f32 %v1886_v7, %v1870_v3  ;;  %v1869_v9 = vsel %vm1868_vm0, %v1865_v61, %v1867_v62  ;;  %v1872_v24 = vsel %vm1868_vm0, %v1867_v62, %v1861_v46  ;;  %2502 = vrot.lane.b32.xlu0 %v4284_v25, %s3486_s27  ;;  %v1930_v25 = vrot.slane %v1917_v33, %v4397_v5 }
 0x9d8   : > { %v1895_v10 = vmul.f32 %v1878_v60, %v1872_v24  ;;  %v1898_v6 = vmul.f32 %v1890_v13, %v1869_v9  ;;  %2504 = vrot.lane.b32.xlu1 %v4287_v26, %s3486_s27  ;;  %v1922_v26 = vrot.slane %v1917_v33, %v4385_v4  ;;  %v2011_v60 = vrot.slane %v2002_v42, %v4394_v53 }
 0x9d9   : > { %v1901_v49 = vadd.f32 %v1897_v52, %v1858_v35  ;;  %v1904_v17 = vpop.permute.xlu0 %1903  ;;  %v5291_v52 = vld [vmem:[#allocation25_spill] sm:$0xff]  ;;  %v2015_v9 = vrot.slane %v2002_v42, %v4397_v5 }
 0x9da   : > { %v1899_v48 = vadd.f32 %v1895_v10, %v1856_v34  ;;  %v1902_v56 = vadd.f32 %v1898_v6, %v1859_v37  ;;  %v1906_v58 = vpop.permute.xlu1 %1905  ;;  %v5292_v10 = vld [vmem:[#allocation26_spill] sm:$0xff]  ;;  %v2007_v6 = vrot.slane %v2002_v42, %v4385_v4 }
 0x9db   : > { %v1914_v47 = vsel %vm1911_vm1, %v1904_v17, %v1906_v58  ;;  %2506 = vrot.lane.b32.xlu0 %v4289_v27, %s3486_s27 }
 0x9dc   : > { %v1940_v0 = vmul.f32 %v1926_v16, %v1914_v47  ;;  %2508 = vrot.lane.b32.xlu1 %v4292_v28, %s3486_s27  ;;  %v2019_v16 = vrot.slane %v2002_v42, %v4391_v57 }
 0x9dd   : > { %v1908_v45 = vpop.permute.xlu0 %1907 }
 0x9de   : > { %v1944_v18 = vadd.f32 %v1940_v0, %v1900_v15  ;;  %v1913_v19 = vsel %vm1911_vm1, %v1906_v58, %v1908_v45  ;;  %v1910_v14 = vpop.permute.xlu1 %1909 }
 0x9df   : > { %v1941_v59 = vmul.f32 %v1930_v25, %v1913_v19  ;;  %v1912_v27 = vsel %vm1911_vm1, %v1908_v45, %v1910_v14  ;;  %v1915_v63 = vsel %vm1911_vm1, %v1910_v14, %v1904_v17  ;;  %2544 = vrot.lane.b32.xlu0 %v4294_v29, %s3487_s21  ;;  %v1972_v29 = vrot.slane %v4507_v43, %v4397_v5  ;;  %v5290_v43 = vld [vmem:[#allocation24_spill] sm:$0xff] }
 0x9e0   : > { %v1939_v28 = vmul.f32 %v1922_v26, %v1915_v63  ;;  %v1942_v51 = vmul.f32 %v1934_v44, %v1912_v27  ;;  %2546 = vrot.lane.b32.xlu1 %v4297_v30, %s3487_s21  ;;  %v5294_v44 = vld [vmem:[#allocation27_spill] sm:$0xff]  ;;  %v5295_v19 = vld [vmem:[#allocation28_spill] sm:$0xff] }
 0x9e1   : > { %v1945_v20 = vadd.f32 %v1941_v59, %v1901_v49  ;;  %v1948_v11 = vpop.permute.xlu0 %1947  ;;  %v5293_v49 = vld [vmem:[#allocation41_spill] sm:$0xff] }
 0x9e2   : > { %v1943_v41 = vadd.f32 %v1939_v28, %v1899_v48  ;;  %v1946_v36 = vadd.f32 %v1942_v51, %v1902_v56  ;;  %v1950_v21 = vpop.permute.xlu1 %1949  ;;  %v2045_v17 = vmul.f32 %v4376_v2, %v5293_v49 }
 0x9e3   : > { %v1958_v12 = vsel %vm1955_vm2, %v1948_v11, %v1950_v21  ;;  %2548 = vrot.lane.b32.xlu0 %v4299_v31, %s3487_s21 }
 0x9e4   : > { %v1982_v30 = vmul.f32 %v1968_v40, %v1958_v12  ;;  %2550 = vrot.lane.b32.xlu1 %v4302_v32, %s3487_s21  ;;  %v2054_v14 = vrot.slane %v2045_v17, %v4394_v53  ;;  %v2062_v12 = vrot.slane %v2045_v17, %v4391_v57 }
 0x9e5   : > { %v1952_v35 = vpop.permute.xlu0 %1951 }
 0x9e6   : > { %v1986_v46 = vadd.f32 %v1982_v30, %v1944_v18  ;;  %v1957_v31 = vsel %vm1955_vm2, %v1950_v21, %v1952_v35  ;;  %v1954_v34 = vpop.permute.xlu1 %1953  ;;  %v2050_v21 = vrot.slane %v2045_v17, %v4385_v4 }
 0x9e7   : > { %v1983_v37 = vmul.f32 %v1972_v29, %v1957_v31  ;;  %v1956_v1 = vsel %vm1955_vm2, %v1952_v35, %v1954_v34  ;;  %v1959_v32 = vsel %vm1955_vm2, %v1954_v34, %v1948_v11  ;;  %2585 = vrot.lane.b32.xlu0 %v5289_v22, %s3488_s17  ;;  %v2058_v11 = vrot.slane %v2045_v17, %v4397_v5  ;;  %v5298_v31 = vld [vmem:[#allocation31_spill] sm:$0xff] }
 0x9e8   : > { %v1981_v7 = vmul.f32 %v1964_v38, %v1959_v32  ;;  %v1984_v23 = vmul.f32 %v1976_v39, %v1956_v1  ;;  %2587 = vrot.lane.b32.xlu1 %v5290_v43, %s3488_s17  ;;  %v5299_v1 = vld [vmem:[#allocation32_spill] sm:$0xff]  ;;  %v2096_v32 = vrot.slane %v5293_v49, %v4394_v53 }
 0x9e9   : > { %v1987_v13 = vadd.f32 %v1983_v37, %v1945_v20  ;;  %v1990_v33 = vpop.permute.xlu0 %1989  ;;  %v5296_v20 = vld [vmem:[#allocation29_spill] sm:$0xff] }
 0x9ea   : > { %v1985_v61 = vadd.f32 %v1981_v7, %v1943_v41  ;;  %v1988_v15 = vadd.f32 %v1984_v23, %v1946_v36  ;;  %v1992_v3 = vpop.permute.xlu1 %1991  ;;  %v5297_v36 = vld [vmem:[#allocation30_spill] sm:$0xff] }
 0x9eb   : > { %v2000_v62 = vsel %vm1997_vm3, %v1990_v33, %v1992_v3  ;;  %2589 = vrot.lane.b32.xlu0 %v5291_v52, %s3488_s17  ;;  %v2104_v52 = vrot.slane %v5293_v49, %v4391_v57 }
 0x9ec   : > { %v2025_v24 = vmul.f32 %v2011_v60, %v2000_v62  ;;  %2591 = vrot.lane.b32.xlu1 %v5292_v10, %s3488_s17  ;;  %v2092_v62 = vrot.slane %v5293_v49, %v4385_v4 }
 0x9ed   : > { %v1994_v48 = vpop.permute.xlu0 %1993 }
 0x9ee   : > { %v2029_v56 = vadd.f32 %v2025_v24, %v1986_v46  ;;  %v1999_v58 = vsel %vm1997_vm3, %v1992_v3, %v1994_v48  ;;  %v1996_v47 = vpop.permute.xlu1 %1995  ;;  %v5301_v3 = vld [vmem:[#allocation34_spill] sm:$0xff] }
 0x9ef   : > { %v2026_v25 = vmul.f32 %v2015_v9, %v1999_v58  ;;  %v1998_v0 = vsel %vm1997_vm3, %v1994_v48, %v1996_v47  ;;  %v2001_v26 = vsel %vm1997_vm3, %v1996_v47, %v1990_v33  ;;  %2627 = vrot.lane.b32.xlu0 %v5294_v44, %s3489_s3  ;;  %v5300_v33 = vld [vmem:[#allocation33_spill] sm:$0xff]  ;;  %v2130_v9 = vmul.f32 %v4388_v55, %v5293_v49 }
 0x9f0   : > { %v2024_v45 = vmul.f32 %v2007_v6, %v2001_v26  ;;  %v2027_v18 = vmul.f32 %v2019_v16, %v1998_v0  ;;  %2629 = vrot.lane.b32.xlu1 %v5295_v19, %s3489_s3  ;;  %v5302_v58 = vld [vmem:[#allocation37_spill] sm:$0xff]  ;;  %v5303_v0 = vld [vmem:[#allocation35_spill] sm:$0xff] }
 0x9f1   : > { %v2030_v59 = vadd.f32 %v2026_v25, %v1987_v13  ;;  %v2033_v27 = vpop.permute.xlu0 %2032  ;;  %v2139_v26 = vrot.slane %v2130_v9, %v4394_v53 }
 0x9f2   : > { %v2028_v63 = vadd.f32 %v2024_v45, %v1985_v61  ;;  %v2031_v28 = vadd.f32 %v2027_v18, %v1988_v15  ;;  %v2035_v51 = vpop.permute.xlu1 %2034  ;;  %v2100_v61 = vrot.slane %v5293_v49, %v4397_v5 }
 0x9f3   : > { %v2043_v40 = vsel %vm2040_vm4, %v2033_v27, %v2035_v51  ;;  %2631 = vrot.lane.b32.xlu0 %v5296_v20, %s3489_s3 }
 0x9f4   : > { %v2068_v41 = vmul.f32 %v2054_v14, %v2043_v40  ;;  %2633 = vrot.lane.b32.xlu1 %v5297_v36, %s3489_s3  ;;  %v2147_v40 = vrot.slane %v2130_v9, %v4391_v57 }
 0x9f5   : > { %v2037_v29 = vpop.permute.xlu0 %2036 }
 0x9f6   : > { %v2072_v30 = vadd.f32 %v2068_v41, %v2029_v56  ;;  %v2042_v38 = vsel %vm2040_vm4, %v2035_v51, %v2037_v29  ;;  %v2039_v39 = vpop.permute.xlu1 %2038  ;;  %v2135_v51 = vrot.slane %v2130_v9, %v4385_v4 }
 0x9f7   : > { %v2069_v42 = vmul.f32 %v2058_v11, %v2042_v38  ;;  %v2041_v35 = vsel %vm2040_vm4, %v2037_v29, %v2039_v39  ;;  %v2044_v46 = vsel %vm2040_vm4, %v2039_v39, %v2033_v27  ;;  %2670 = vrot.lane.b32.xlu0 %v5298_v31, %s3490_s25  ;;  %v2143_v27 = vrot.slane %v2130_v9, %v4397_v5  ;;  %v5305_v39 = vld [vmem:[#allocation38_spill] sm:$0xff] }
 0x9f8   : > { %v2067_v34 = vmul.f32 %v2050_v21, %v2044_v46  ;;  %v2070_v37 = vmul.f32 %v2062_v12, %v2041_v35  ;;  %2672 = vrot.lane.b32.xlu1 %v5299_v1, %s3490_s25  ;;  %v2223_v9 = vrot.slane %v4388_v55, %v4385_v4 }
 0x9f9   : > { %v2073_v22 = vadd.f32 %v2069_v42, %v2030_v59  ;;  %v2076_v7 = vpop.permute.xlu0 %2075  ;;  %v2181_v42 = vrot.slane %v4376_v2, %v4394_v53 }
 0x9fa   : > { %v2071_v23 = vadd.f32 %v2067_v34, %v2028_v63  ;;  %v2074_v43 = vadd.f32 %v2070_v37, %v2031_v28  ;;  %v2078_v60 = vpop.permute.xlu1 %2077  ;;  %v5304_v28 = vld [vmem:[#allocation36_spill] sm:$0xff] }
 0x9fb   : > { %v2086_v13 = vsel %vm2083_vm5, %v2076_v7, %v2078_v60  ;;  %2674 = vrot.lane.b32.xlu0 %v5300_v33, %s3490_s25 }
 0x9fc   : > { %v2110_v15 = vmul.f32 %v2096_v32, %v2086_v13  ;;  %2676 = vrot.lane.b32.xlu1 %v5301_v3, %s3490_s25  ;;  %v2185_v32 = vrot.slane %v4376_v2, %v4397_v5 }
 0x9fd   : > { %v2080_v24 = vpop.permute.xlu0 %2079 }
 0x9fe   : > { %v2114_v10 = vadd.f32 %v2110_v15, %v2072_v30  ;;  %v2085_v6 = vsel %vm2083_vm5, %v2078_v60, %v2080_v24  ;;  %v2082_v16 = vpop.permute.xlu1 %2081 }
 0x9ff   : > { %v2111_v17 = vmul.f32 %v2100_v61, %v2085_v6  ;;  %v2084_v48 = vsel %vm2083_vm5, %v2080_v24, %v2082_v16  ;;  %v2087_v56 = vsel %vm2083_vm5, %v2082_v16, %v2076_v7  ;;  %2715 = vrot.lane.b32.xlu0 %v5302_v58, %s3491_s30  ;;  %v2177_v7 = vrot.slane %v4376_v2, %v4385_v4  ;;  %v5306_v24 = vld [vmem:[#allocation20_spill] sm:$0xff] }
 0xa00   : > { %v2109_v47 = vmul.f32 %v2092_v62, %v2087_v56  ;;  %v2112_v25 = vmul.f32 %v2104_v52, %v2084_v48  ;;  %2711 = vrot.lane.b32.xlu1 %v5303_v0, %s3491_s30  ;;  %v2227_v58 = vrot.slane %v4388_v55, %v4394_v53  ;;  %vm2341_vm5 = vcmp.lt.s32.totalorder %v4380_v50, 119 }
 0xa01   : > { %v2115_v44 = vadd.f32 %v2111_v17, %v2073_v22  ;;  %v2118_v45 = vpop.permute.xlu0 %2117 }
 0xa02   : > { %v2113_v18 = vadd.f32 %v2109_v47, %v2071_v23  ;;  %v2116_v19 = vadd.f32 %v2112_v25, %v2074_v43  ;;  %v2120_v14 = vpop.permute.xlu1 %2119  ;;  %v2189_v23 = vrot.slane %v4376_v2, %v4391_v57  ;;  %v5307_v25 = vld [vmem:[#allocation21_spill] sm:$0xff] }
 0xa03   : > { %v2128_v59 = vsel %vm2125_vm6, %v2118_v45, %v2120_v14 }
 0xa04   : > { %v2153_v63 = vmul.f32 %v2139_v26, %v2128_v59  ;;  %2713 = vrot.lane.b32.xlu1 %v5304_v28, %s3491_s30  ;;  %v2231_v26 = vrot.slane %v4388_v55, %v4397_v5 }
 0xa05   : > { %v2122_v20 = vpop.permute.xlu0 %2121 }
 0xa06   : > { %v2157_v11 = vadd.f32 %v2153_v63, %v2114_v10  ;;  %v2127_v41 = vsel %vm2125_vm6, %v2120_v14, %v2122_v20  ;;  %v2124_v36 = vpop.permute.xlu1 %2123  ;;  %v5309_v14 = vld [vmem:[#allocation22_spill] sm:$0xff] }
 0xa07   : > { %v2154_v21 = vmul.f32 %v2143_v27, %v2127_v41  ;;  %v2126_v12 = vsel %vm2125_vm6, %v2122_v20, %v2124_v36  ;;  %v2129_v29 = vsel %vm2125_vm6, %v2124_v36, %v2118_v45  ;;  %v5308_v45 = vld [vmem:[#allocation19_spill] sm:$0xff]  ;;  %v2261_v27 = vmul.f32 %v4491_v8, %v4376_v2 }
 0xa08   : > { %v2152_v30 = vmul.f32 %v2135_v51, %v2129_v29  ;;  %v2155_v38 = vmul.f32 %v2147_v40, %v2126_v12  ;;  %2717 = vrot.lane.b32.xlu1 %v5305_v39, %s3491_s30 }
 0xa09   : > { %v2158_v35 = vadd.f32 %v2154_v21, %v2115_v44  ;;  %v2161_v46 = vpop.permute.xlu0 %2160  ;;  %v2235_v44 = vrot.slane %v4388_v55, %v4391_v57  ;;  %v2266_v12 = vrot.slane %v2261_v27, %v4385_v4 }
 0xa0a   : > { %v2156_v31 = vadd.f32 %v2152_v30, %v2113_v18  ;;  %v2159_v34 = vadd.f32 %v2155_v38, %v2116_v19  ;;  %v2163_v37 = vpop.permute.xlu1 %2162 }
 0xa0b   : > { %v2171_v1 = vsel %vm2168_vm7, %v2161_v46, %v2163_v37 }
 0xa0c   : > { %v2195_v22 = vmul.f32 %v2181_v42, %v2171_v1 }
 0xa0d   : > { %v2165_v43 = vpop.permute.xlu0 %2164 }
 0xa0e   : > { %v2199_v60 = vadd.f32 %v2195_v22, %v2157_v11  ;;  %v2170_v13 = vsel %vm2168_vm7, %v2163_v37, %v2165_v43  ;;  %v2167_v33 = vpop.permute.xlu1 %2166  ;;  %v2278_v37 = vrot.slane %v2261_v27, %v4391_v57 }
 0xa0f   : > { %v2196_v61 = vmul.f32 %v2185_v32, %v2170_v13  ;;  %v2169_v15 = vsel %vm2168_vm7, %v2165_v43, %v2167_v33  ;;  %v2172_v3 = vsel %vm2168_vm7, %v2167_v33, %v2161_v46  ;;  %v2270_v46 = vrot.slane %v2261_v27, %v4394_v53 }
 0xa10   : > { %v2194_v62 = vmul.f32 %v2177_v7, %v2172_v3  ;;  %v2197_v52 = vmul.f32 %v2189_v23, %v2169_v15  ;;  %v2203_v10 = vadd.f32 %v2199_v60, %v5306_v24 }
 0xa11   : > { %v2200_v6 = vadd.f32 %v2196_v61, %v2158_v35  ;;  %v2207_v16 = vpop.permute.xlu0 %2206  ;;  %v2308_v61 = vrot.slane %v4491_v8, %v4385_v4 }
 0xa12   : > { %v2198_v17 = vadd.f32 %v2194_v62, %v2156_v31  ;;  %v2201_v48 = vadd.f32 %v2197_v52, %v2159_v34  ;;  %v2209_v56 = vpop.permute.xlu1 %2208  ;;  %v2274_v34 = vrot.slane %v2261_v27, %v4397_v5 }
 0xa13   : > { %v2217_v47 = vsel %vm2214_vm8, %v2207_v16, %v2209_v56  ;;  %v2204_v0 = vadd.f32 %v2200_v6, %v5307_v25 }
 0xa14   : > { %v2202_v18 = vadd.f32 %v2198_v17, %v5308_v45  ;;  %v2240_v19 = vmul.f32 %v2223_v9, %v2217_v47  ;;  %v2205_v59 = vadd.f32 %v2201_v48, %v5309_v14  ;;  %v2320_v17 = vrot.slane %v4491_v8, %v4391_v57 }
 0xa15   : > { %v2211_v63 = vpop.permute.xlu0 %2210 }
 0xa16   : > { %v2244_v28 = vadd.f32 %v2240_v19, %v2202_v18  ;;  %v2216_v51 = vsel %vm2214_vm8, %v2209_v56, %v2211_v63  ;;  %v2213_v40 = vpop.permute.xlu1 %2212 }
 0xa17   : > { %v2241_v20 = vmul.f32 %v2227_v58, %v2216_v51  ;;  %v2215_v11 = vsel %vm2214_vm8, %v2211_v63, %v2213_v40  ;;  %v2218_v41 = vsel %vm2214_vm8, %v2213_v40, %v2207_v16  ;;  %v2316_v16 = vrot.slane %v4491_v8, %v4397_v5 }
 0xa18   : > { %v2242_v36 = vmul.f32 %v2231_v26, %v2215_v11  ;;  %v2243_v21 = vmul.f32 %v2235_v44, %v2218_v41 }
 0xa19   : > { %v2245_v29 = vadd.f32 %v2241_v20, %v2203_v10  ;;  %v2249_v30 = vpop.permute.xlu0 %2248  ;;  %v2312_v10 = vrot.slane %v4491_v8, %v4394_v53 }
 0xa1a   : > { %v2246_v38 = vadd.f32 %v2242_v36, %v2204_v0  ;;  %v2247_v39 = vadd.f32 %v2243_v21, %v2205_v59  ;;  %v2251_v42 = vpop.permute.xlu1 %2250 }
 0xa1b   : > { %v2259_v35 = vsel %vm2256_vm9, %v2249_v30, %v2251_v42 }
 0xa1c   : > { %v2283_v31 = vmul.f32 %v2266_v12, %v2259_v35 }
 0xa1d   : > { %v2253_v1 = vpop.permute.xlu0 %2252 }
 0xa1e   : > { %v2287_v32 = vadd.f32 %v2283_v31, %v2244_v28  ;;  %v2258_v22 = vsel %vm2256_vm9, %v2251_v42, %v2253_v1  ;;  %v2255_v7 = vpop.permute.xlu1 %2254 }
 0xa1f   : > { %v2284_v23 = vmul.f32 %v2270_v46, %v2258_v22  ;;  %v2257_v43 = vsel %vm2256_vm9, %v2253_v1, %v2255_v7  ;;  %v2260_v60 = vsel %vm2256_vm9, %v2255_v7, %v2249_v30  ;;  %v4790_v1 = vmul.f32 %v4388_v55, %v4491_v8 }
 0xa20   : > { %v2285_v13 = vmul.f32 %v2274_v34, %v2257_v43  ;;  %v2286_v33 = vmul.f32 %v2278_v37, %v2260_v60 }
 0xa21   : > { %v2288_v15 = vadd.f32 %v2284_v23, %v2245_v29  ;;  %v2292_v3 = vpop.permute.xlu0 %2291  ;;  %v2355_v43 = vrot.slane %v4790_v1, %v4394_v53  ;;  %v2359_v60 = vrot.slane %v4790_v1, %v4397_v5 }
 0xa22   : > { %v2289_v62 = vadd.f32 %v2285_v13, %v2246_v38  ;;  %v2290_v52 = vadd.f32 %v2286_v33, %v2247_v39  ;;  %v2294_v9 = vpop.permute.xlu1 %2293  ;;  %v5310_v39 = vld [vmem:[#allocation40_spill] sm:$0xff] }
 0xa23   : > { %v2302_v24 = vsel %vm2299_vm15, %v2292_v3, %v2294_v9  ;;  %vm1638_vm4 = vcmp.le.f32.partialorder %v5310_v39, 6.0 }
 0xa24   : > { %v2325_v6 = vmul.f32 %v2308_v61, %v2302_v24  ;;  %v4776_v35 = vsel %vm1638_vm4, 1.0, %v5288_v54  ;;  %v2363_v61 = vrot.slane %v4790_v1, %v4391_v57 }
 0xa25   : > { %v2296_v48 = vpop.permute.xlu0 %2295  ;;  %v4784_v34 = vmul.f32 %v4776_v35, %v5293_v49  ;;  %v2351_v49 = vrot.slane %v4790_v1, %v4385_v4  ;;  %v4815_v13 = vmul.f32 %v4776_v35, %v4376_v2  ;;  %v4819_v33 = vmul.f32 %v4491_v8, %v4776_v35 }
 0xa26   : > { %v4730_v56 = vadd.f32 %v2325_v6, %v2287_v32  ;;  %v2301_v58 = vsel %vm2299_vm15, %v2294_v9, %v2296_v48  ;;  %v2298_v47 = vpop.permute.xlu1 %2297 }
 0xa27   : > { %v2326_v25 = vmul.f32 %v2312_v10, %v2301_v58  ;;  %v2300_v0 = vsel %vm2299_vm15, %v2296_v48, %v2298_v47  ;;  %v2303_v26 = vsel %vm2299_vm15, %v2298_v47, %v2292_v3  ;;  %v4796_v54 = vmul.f32 %v4784_v34, %v4376_v2 }
 0xa28   : > { %v2327_v44 = vmul.f32 %v2316_v16, %v2300_v0  ;;  %v2328_v45 = vmul.f32 %v2320_v17, %v2303_v26  ;;  %v4805_v7 = vmul.f32 %v4784_v34, %v4388_v55  ;;  %v2435_v9 = vrot.slane %v4784_v34, %v4385_v4 }
 0xa29   : > { %v4738_v18 = vadd.f32 %v2326_v25, %v2288_v15  ;;  %v4740_v19 = vpop.permute.xlu0 %2333  ;;  %v2394_v15 = vrot.slane %v4796_v54, %v4385_v4  ;;  %v2398_v3 = vrot.slane %v4796_v54, %v4394_v53  ;;  %v2439_v8 = vrot.slane %v4784_v34, %v4394_v53 }
 0xa2a   : > { %v4742_v14 = vadd.f32 %v2327_v44, %v2289_v62  ;;  %v4744_v59 = vadd.f32 %v2328_v45, %v2290_v52  ;;  %v2336_v27 = vpop.permute.xlu1 %2335  ;;  %v2402_v62 = vrot.slane %v4796_v54, %v4397_v5  ;;  %v2406_v52 = vrot.slane %v4796_v54, %v4391_v57 }
 0xa2b   : > { %v4839_v10 = vmul.f32 %v4388_v55, %v4776_v35  ;;  %v2443_v6 = vrot.slane %v4784_v34, %v4397_v5  ;;  %v2447_v16 = vrot.slane %v4784_v34, %v4391_v57  ;;  %v4859_v26 = vmul.f32 %v4819_v33, %v4376_v2 }
 0xa2c   : > { %v2344_v39 = vsel %vm2341_vm5, %v4740_v19, %v2336_v27  ;;  %v4911_v45 = vmul.f32 %v4819_v33, %v4388_v55 }
 0xa2d   : > { %v4746_v63 = vpop.permute.xlu0 %2337  ;;  %v2368_v47 = vmul.f32 %v2351_v49, %v2344_v39  ;;  %v2698_v39 = vrot.slane %v4819_v33, %v4391_v57 }
 0xa2e   : > { %v4748_v28 = vpop.permute.xlu1 %2339  ;;  %v2343_v1 = vsel %vm2341_vm5, %v2336_v27, %v4746_v63 }
 0xa2f   : > { %v2342_v0 = vsel %vm2341_vm5, %v4746_v63, %v4748_v28  ;;  %v2345_v2 = vsel %vm2341_vm5, %v4748_v28, %v4740_v19  ;;  %v2369_v48 = vmul.f32 %v2355_v43, %v2343_v1 }
 0xa30   : > { %v2370_v1 = vmul.f32 %v2359_v60, %v2342_v0  ;;  %v2371_v44 = vmul.f32 %v2363_v61, %v2345_v2  ;;  %v2372_v61 = vadd.f32 %v2368_v47, %v4730_v56 }
 0xa31   : > { %v4750_v51 = vpop.permute.xlu0 %2376 }
 0xa32   : > { %v4752_v40 = vpop.permute.xlu1 %2378 }
 0xa33   : > { %v2386_v27 = vsel %vm1654_vm11, %v4750_v51, %v4752_v40 }
 0xa34   : > { %v2411_v17 = vmul.f32 %v2394_v15, %v2386_v27 }
 0xa35   : > { %v4754_v20 = vpop.permute.xlu0 %2380 }
 0xa36   : > { %v4756_v11 = vpop.permute.xlu1 %2382  ;;  %v2385_v63 = vsel %vm1654_vm11, %v4752_v40, %v4754_v20 }
 0xa37   : > { %v2384_v40 = vsel %vm1654_vm11, %v4754_v20, %v4756_v11  ;;  %v2387_v55 = vsel %vm1654_vm11, %v4756_v11, %v4750_v51  ;;  %v2412_v49 = vmul.f32 %v2398_v3, %v2385_v63  ;;  %v2373_v20 = vadd.f32 %v2369_v48, %v4738_v18 }
 0xa38   : > { %v2728_v51 = vrot.slane %v4911_v45, %v4385_v4  ;;  %v2732_v11 = vrot.slane %v4911_v45, %v4394_v53  ;;  %v2413_v15 = vmul.f32 %v2402_v62, %v2384_v40  ;;  %v2414_v3 = vmul.f32 %v2406_v52, %v2387_v55 }
 0xa39   : > { %v4758_v41 = vpop.permute.xlu0 %2419  ;;  %v2415_v48 = vadd.f32 %v2411_v17, %v2372_v61  ;;  %v5315_v61 = vrot.slane %v4815_v13, %v4385_v4 }
 0xa3a   : > { %v4760_v36 = vpop.permute.xlu1 %2421 }
 0xa3b   : > { %v2429_v43 = vsel %vm1698_vm10, %v4758_v41, %v4760_v36 }
 0xa3d   : > { %v4762_v21 = vpop.permute.xlu0 %2423 }
 0xa3e   : > { %v4764_v12 = vpop.permute.xlu1 %2425  ;;  %v2428_v60 = vsel %vm1698_vm10, %v4760_v36, %v4762_v21  ;;  %v2452_v36 = vmul.f32 %v2435_v9, %v2429_v43  ;;  %v2416_v9 = vadd.f32 %v2412_v49, %v2373_v20  ;;  %v5313_v49 = vrot.slane %v4805_v7, %v4397_v5 }
 0xa3f   : > { %v2427_v2 = vsel %vm1698_vm10, %v4762_v21, %v4764_v12  ;;  %v2430_v56 = vsel %vm1698_vm10, %v4764_v12, %v4758_v41  ;;  %v2453_v62 = vmul.f32 %v2439_v8, %v2428_v60  ;;  %v2374_v41 = vadd.f32 %v2370_v1, %v4742_v14 }
 0xa40   : > { %v2375_v12 = vadd.f32 %v2371_v44, %v4744_v59  ;;  %v2454_v8 = vmul.f32 %v2443_v6, %v2427_v2  ;;  %v2455_v47 = vmul.f32 %v2447_v16, %v2430_v56  ;;  %v5312_v6 = vrot.slane %v4805_v7, %v4394_v53 }
 0xa41   : > { %v4766_v29 = vpop.permute.xlu0 %2460  ;;  %v2456_v63 = vadd.f32 %v2452_v36, %v2415_v48  ;;  %v2457_v55 = vadd.f32 %v2453_v62, %v2416_v9  ;;  %v5314_v1 = vrot.slane %v4805_v7, %v4391_v57  ;;  %v5319_v9 = vrot.slane %v4776_v35, %v4385_v4 }
 0xa42   : > { %v4768_v30 = vpop.permute.xlu1 %2462  ;;  %v2418_v44 = vadd.f32 %v2414_v3, %v2375_v12 }
 0xa43   : > { %v2470_v52 = vsel %vm1740_vm12, %v4766_v29, %v4768_v30 }
 0xa45   : > { %v4770_v38 = vpop.permute.xlu0 %2464 }
 0xa46   : > { %v4773_v42 = vpop.permute.xlu1 %2466  ;;  %v2469_v21 = vsel %vm1740_vm12, %v4768_v30, %v4770_v38  ;;  %v5311_v30 = vrot.slane %v4805_v7, %v4385_v4 }
 0xa47   : > { %v2468_v27 = vsel %vm1740_vm12, %v4770_v38, %v4773_v42  ;;  %v2471_v14 = vsel %vm1740_vm12, %v4773_v42, %v4766_v29  ;;  %v2495_v34 = vmul.f32 %v5312_v6, %v2469_v21  ;;  %v2417_v42 = vadd.f32 %v2413_v15, %v2374_v41 }
 0xa48   : > { %v2494_v17 = vmul.f32 %v5311_v30, %v2470_v52  ;;  %v2496_v43 = vmul.f32 %v5313_v49, %v2468_v27  ;;  %v2497_v40 = vmul.f32 %v5314_v1, %v2471_v14  ;;  %v5316_v15 = vrot.slane %v4815_v13, %v4394_v53 }
 0xa49   : > { %v4778_v46 = vpop.permute.xlu0 %2502  ;;  %v2499_v36 = vadd.f32 %v2495_v34, %v2457_v55  ;;  %v5317_v52 = vrot.slane %v4815_v13, %v4397_v5  ;;  %v5318_v41 = vrot.slane %v4815_v13, %v4391_v57  ;;  %v5322_v34 = vrot.slane %v4776_v35, %v4391_v57 }
 0xa4a   : > { %v4780_v31 = vpop.permute.xlu1 %2504  ;;  %v2498_v56 = vadd.f32 %v2494_v17, %v2456_v63  ;;  %v5321_v17 = vrot.slane %v4776_v35, %v4397_v5  ;;  %v5323_v63 = vrot.slane %v4839_v10, %v4385_v4 }
 0xa4b   : > { %v2512_v16 = vsel %vm1783_vm13, %v4778_v46, %v4780_v31 }
 0xa4c   : > { %v2536_v20 = vmul.f32 %v5315_v61, %v2512_v16  ;;  %v5326_v61 = vrot.slane %v4839_v10, %v4391_v57 }
 0xa4d   : > { %v4786_v37 = vpop.permute.xlu0 %2506 }
 0xa4e   : > { %v4792_v32 = vpop.permute.xlu1 %2508  ;;  %v2511_v38 = vsel %vm1783_vm13, %v4780_v31, %v4786_v37 }
 0xa4f   : > { %v2510_v60 = vsel %vm1783_vm13, %v4786_v37, %v4792_v32  ;;  %v2513_v31 = vsel %vm1783_vm13, %v4792_v32, %v4778_v46  ;;  %v2537_v3 = vmul.f32 %v5316_v15, %v2511_v38  ;;  %v2458_v46 = vadd.f32 %v2454_v8, %v2417_v42 }
 0xa50   : > { %v2459_v32 = vadd.f32 %v2455_v47, %v2418_v44  ;;  %v2538_v21 = vmul.f32 %v5317_v52, %v2510_v60  ;;  %v2539_v12 = vmul.f32 %v5318_v41, %v2513_v31  ;;  %v5320_v47 = vrot.slane %v4776_v35, %v4394_v53 }
 0xa51   : > { %v4798_v22 = vpop.permute.xlu0 %2544  ;;  %v2500_v14 = vadd.f32 %v2496_v43, %v2458_v46  ;;  %v2541_v30 = vadd.f32 %v2537_v3, %v2499_v36  ;;  %v5324_v35 = vrot.slane %v4839_v10, %v4394_v53  ;;  %v5325_v60 = vrot.slane %v4839_v10, %v4397_v5 }
 0xa52   : > { %v4807_v23 = vpop.permute.xlu1 %2546  ;;  %v5329_v41 = vrot.slane %v4819_v33, %v4385_v4 }
 0xa53   : > { %v2554_v7 = vsel %vm1826_vm14, %v4798_v22, %v4807_v23  ;;  %v2542_v1 = vadd.f32 %v2538_v21, %v2500_v14 }
 0xa54   : > { %v2577_v8 = vmul.f32 %v5319_v9, %v2554_v7  ;;  %v5331_v9 = vrot.slane %v4859_v26, %v4397_v5 }
 0xa55   : > { %v4835_v24 = vpop.permute.xlu0 %2548 }
 0xa56   : > { %v4849_v58 = vpop.permute.xlu1 %2550  ;;  %v2553_v37 = vsel %vm1826_vm14, %v4807_v23, %v4835_v24 }
 0xa57   : > { %v2552_v48 = vsel %vm1826_vm14, %v4835_v24, %v4849_v58  ;;  %v2555_v23 = vsel %vm1826_vm14, %v4849_v58, %v4798_v22  ;;  %v2578_v27 = vmul.f32 %v5320_v47, %v2553_v37  ;;  %v2501_v22 = vadd.f32 %v2497_v40, %v2459_v32 }
 0xa58   : > { %v2540_v58 = vadd.f32 %v2536_v20, %v2498_v56  ;;  %v2579_v6 = vmul.f32 %v5321_v17, %v2552_v48  ;;  %v2580_v16 = vmul.f32 %v5322_v34, %v2555_v23  ;;  %v5328_v37 = vrot.slane %v4859_v26, %v4394_v53  ;;  %v2776_v34 = vld [vmem:[%s3852_s24] sm:$0xff] }
 0xa59   : > { %v4875_v25 = vpop.permute.xlu0 %2585  ;;  %v2582_v40 = vadd.f32 %v2578_v27, %v2541_v30  ;;  %v5330_v48 = vrot.slane %v4819_v33, %v4394_v53  ;;  %v5332_v47 = vrot.slane %v4859_v26, %v4391_v57  ;;  %v5333_v17 = vrot.slane %v4819_v33, %v4397_v5  ;;  %v2777_v53 = vld [vmem:[%s3852_s24 + $0x8] sm:$0xff] }
 0xa5a   : > { %v4885_v54 = vpop.permute.xlu1 %2587  ;;  %v2583_v36 = vadd.f32 %v2579_v6, %v2542_v1 }
 0xa5b   : > { %v2595_v13 = vsel %vm1868_vm0, %v4875_v25, %v4885_v54 }
 0xa5c   : > { %v2619_v55 = vmul.f32 %v5323_v63, %v2595_v13  ;;  %v2736_v13 = vrot.slane %v4911_v45, %v4397_v5 }
 0xa5d   : > { %v4921_v19 = vpop.permute.xlu0 %2589 }
 0xa5e   : > { %v4923_v28 = vpop.permute.xlu1 %2591  ;;  %v2594_v24 = vsel %vm1868_vm0, %v4885_v54, %v4921_v19 }
 0xa5f   : > { %v2593_v38 = vsel %vm1868_vm0, %v4921_v19, %v4923_v28  ;;  %v2596_v54 = vsel %vm1868_vm0, %v4923_v28, %v4875_v25  ;;  %v2620_v49 = vmul.f32 %v5324_v35, %v2594_v24  ;;  %v2543_v25 = vadd.f32 %v2539_v12, %v2501_v22 }
 0xa60   : > { %v2581_v28 = vadd.f32 %v2577_v8, %v2540_v58  ;;  %v2621_v31 = vmul.f32 %v5325_v60, %v2593_v38  ;;  %v2622_v20 = vmul.f32 %v5326_v61, %v2596_v54  ;;  %v2740_v24 = vrot.slane %v4911_v45, %v4391_v57 }
 0xa61   : > { %v4951_v0 = vpop.permute.xlu0 %2627  ;;  %v2624_v21 = vadd.f32 %v2620_v49, %v2582_v40  ;;  %v2781_v61 = vcombine.high %v2777_v53, %v2777_v53 }
 0xa62   : > { %v2630_v18 = vpop.permute.xlu1 %2629  ;;  %v2623_v52 = vadd.f32 %v2619_v55, %v2581_v28  ;;  %v2625_v14 = vadd.f32 %v2621_v31, %v2583_v36 }
 0xa63   : > { %v2637_v19 = vsel %vm1911_vm1, %v4951_v0, %v2630_v18 }
 0xa65   : > { %v2632_v59 = vpop.permute.xlu0 %2631 }
 0xa66   : > { %v2634_v29 = vpop.permute.xlu1 %2633  ;;  %v2636_v43 = vsel %vm1911_vm1, %v2630_v18, %v2632_v59  ;;  %v5327_v18 = vrot.slane %v4859_v26, %v4385_v4  ;;  %v5334_v4 = vld [vmem:[#allocation39_spill] sm:$0xff] }
 0xa67   : > { %v2663_v46 = vmul.f32 %v5328_v37, %v2636_v43  ;;  %v2635_v32 = vsel %vm1911_vm1, %v2632_v59, %v2634_v29  ;;  %v2638_v10 = vsel %vm1911_vm1, %v2634_v29, %v4951_v0 }
 0xa68   : > { %v2662_v7 = vmul.f32 %v5327_v18, %v2637_v19  ;;  %v2664_v8 = vmul.f32 %v5331_v9, %v2635_v32  ;;  %v2665_v27 = vmul.f32 %v5332_v47, %v2638_v10 }
 0xa69   : > { %v2671_v2 = vpop.permute.xlu0 %2670  ;;  %v2667_v58 = vadd.f32 %v2663_v46, %v2624_v21 }
 0xa6a   : > { %v2673_v62 = vpop.permute.xlu1 %2672  ;;  %v2666_v22 = vadd.f32 %v2662_v7, %v2623_v52  ;;  %v2668_v33 = vadd.f32 %v2664_v8, %v2625_v14 }
 0xa6b   : > { %v2680_v15 = vsel %vm1955_vm2, %v2671_v2, %v2673_v62 }
 0xa6c   : > { %v2703_v12 = vmul.f32 %v5329_v41, %v2680_v15 }
 0xa6d   : > { %v2675_v42 = vpop.permute.xlu0 %2674 }
 0xa6e   : > { %v2677_v44 = vpop.permute.xlu1 %2676  ;;  %v2679_v3 = vsel %vm1955_vm2, %v2673_v62, %v2675_v42  ;;  %v2584_v62 = vadd.f32 %v2580_v16, %v2543_v25  ;;  %v2707_v54 = vadd.f32 %v2703_v12, %v2666_v22 }
 0xa6f   : > { %v2704_v23 = vmul.f32 %v5330_v48, %v2679_v3  ;;  %v2678_v59 = vsel %vm1955_vm2, %v2675_v42, %v2677_v44  ;;  %v2681_v0 = vsel %vm1955_vm2, %v2677_v44, %v2671_v2  ;;  %v2780_v44 = vcombine.high %v2776_v34, %v2776_v34 }
 0xa70   : > { %v2626_v2 = vadd.f32 %v2622_v20, %v2584_v62  ;;  %v2705_v6 = vmul.f32 %v5333_v17, %v2678_v59  ;;  %v2706_v26 = vmul.f32 %v2698_v39, %v2681_v0 }
 0xa71   : > { %v2716_v29 = vpop.permute.xlu0 %2715  ;;  %v2708_v42 = vadd.f32 %v2704_v23, %v2667_v58 }
 0xa72   : > { %v2712_v56 = vpop.permute.xlu1 %2711  ;;  %v2669_v39 = vadd.f32 %v2665_v27, %v2626_v2  ;;  %v2709_v49 = vadd.f32 %v2705_v6, %v2668_v33 }
 0xa74   : > { %v2710_v19 = vadd.f32 %v2706_v26, %v2669_v39 }
 0xa76   : > { %v2714_v30 = vpop.permute.xlu1 %2713 }
 0xa77   : > { %v2720_v16 = vsel %vm1997_vm3, %v2714_v30, %v2716_v29  ;;  %v2721_v38 = vsel %vm1997_vm3, %v2712_v56, %v2714_v30 }
 0xa78   : > { %v2745_v5 = vmul.f32 %v2728_v51, %v2721_v38  ;;  %v2746_v57 = vmul.f32 %v2732_v11, %v2720_v16 }
 0xa7a   : > { %v2749_v63 = vadd.f32 %v2745_v5, %v2707_v54  ;;  %v2750_v55 = vadd.f32 %v2746_v57, %v2708_v42  ;;  %v2718_v35 = vpop.permute.xlu1 %2717 }
 0xa7b   : > { %v2719_v43 = vsel %vm1997_vm3, %v2716_v29, %v2718_v35  ;;  %v2722_v1 = vsel %vm1997_vm3, %v2718_v35, %v2712_v56 }
 0xa7c   : > { %v2759_v51 = vadd.f32 %v5334_v4, %v2749_v63  ;;  %v2760_v25 = vadd.f32 %v5334_v4, %v2750_v55  ;;  %v2747_v45 = vmul.f32 %v2736_v13, %v2719_v43  ;;  %v2748_v11 = vmul.f32 %v2740_v24, %v2722_v1 }
 0xa7e   : > { %2768 = vst [vmem:[%s2767_s8] sm:$0xff] %v2759_v51  ;;  %2769 = vst [vmem:[%s2767_s8 + $0x8] sm:$0xff] %v2760_v25  ;;  %v2772_v28 = vmul.f32 0.2, %v2759_v51  ;;  %v2773_v40 = vmul.f32 0.2, %v2760_v25  ;;  %v2751_v60 = vadd.f32 %v2747_v45, %v2709_v49  ;;  %v2752_v31 = vadd.f32 %v2748_v11, %v2710_v19 }
 0xa80   : > { %v2784_v20 = vadd.f32 %v2776_v34, %v2772_v28  ;;  %v2785_v50 = vadd.f32 %v2780_v44, %v2773_v40  ;;  %v2761_v15 = vadd.f32 %v5334_v4, %v2751_v60  ;;  %v2762_v3 = vadd.f32 %v5334_v4, %v2752_v31 }
 0xa82   : > { %v2792_v18 = vcombine.low %v2784_v20, %v2785_v50  ;;  %2770 = vst [vmem:[%s2767_s8 + $0x10] sm:$0xff] %v2761_v15  ;;  %2771 = vst [vmem:[%s2767_s8 + $0x18] sm:$0xff] %v2762_v3  ;;  %v2774_v7 = vmul.f32 0.2, %v2761_v15  ;;  %v2775_v37 = vmul.f32 0.2, %v2762_v3 }
 0xa84   : > { %2796 = vst [vmem:[%s3876_s18] sm:$0xff] %v2792_v18  ;;  %v2786_v46 = vadd.f32 %v2777_v53, %v2774_v7  ;;  %v2787_v32 = vadd.f32 %v2781_v61, %v2775_v37 }
 0xa86   : > { %v2793_v10 = vcombine.low %v2786_v46, %v2787_v32 }
 0xa88   : > { %2797 = vst [vmem:[%s3876_s18 + $0x8] sm:$0xff] %v2793_v10 }
 0xa89 PF: > { %s27_s15 = sadd.s32 1, %s3467_s15   ;;  %s5335_s12 = sld [smem:[#allocation16_spill]] }
 0xa8a   : > { %p24_p4 = scmp.ge.s32.totalorder %s27_s15, 12   ;;  %s5336_s24 = sld [smem:[#allocation17_spill]] }
 0xa8b   : > { %s5337_s14 = sld [smem:[#allocation18_spill]]  ;;  %s5338_s27 = smov %s3431_s28 }
 0xa8c   : > { %s5339_s28 = smov %s3435_s29  ;;  %s5340_s29 = smov %s3775_s6 }
 0xa8d   : > { %s5341_s30 = smov %s3443_s9  ;;  %s5342_s9 = smov %s3447_s10 }
 0xa8e   : > { %s5343_s10 = smov %s3792_s26  ;;  %s5344_s11 = smov %s3459_s13 }
 0xa8f   :  { %26 = sbr.rel (!%p24_p4) target bundleno = 21 (0x15), region = 198 }
 0xa90   : > { %s5345_s13 = smov %s5336_s24 }
 0xa96   :  { %2819 = vsyncpa [#allocation7], 1 }
 0xa97   :  { %2821 = vsyncpa [#allocation7 + $0x1], 1 }
 0xa98   :  { %2822 = vsyncpa [#allocation9], 1 }
 0xa99   :  { %2824 = vsyncpa [#allocation9 + $0x1], 1 }
 0xa9a   :  { %2825 = vsyncpa [#allocation12], 1 }
 0xa9b   :  { %2827 = vsyncpa [#allocation12 + $0x1], 1 }

// kernel: rrdb.4
= control target key start
LH: loop header
LB: loop body
LE: loop exit
PB: predicated region body
PF: predicated region fallthrough
CT: control target
= control target key end

     0   :  { %s3162_s27 = smov 0   ;;  %s3164_s28 = smov 0   ;;  %s4539_s0 = inlined_call_operand.vmem [shape: f32[8,1], index: 0, kind: input, shape index: {}]   ;;  %s4540_s1 = inlined_call_operand.vmem [shape: f32[8,1], index: 1, kind: input, shape index: {}]   ;;  %s4541_s2 = inlined_call_operand.vmem [shape: f32[5,40,1], index: 2, kind: input, shape index: {}]   ;;  %s4542_s3 = inlined_call_operand.vmem [shape: f32[5,40,1], index: 3, kind: input, shape index: {}]   ;;  %s4543_s4 = inlined_call_operand.vmem [shape: f32[5,216,40], index: 4, kind: input, shape index: {}]   ;;  %s4544_s5 = inlined_call_operand.vmem [shape: f32[5,8,1], index: 5, kind: input, shape index: {}]   ;;  %s4545_s6 = inlined_call_operand.vmem [shape: f32[8,512], index: 6, kind: input, shape index: {}]   ;;  %s4546_s7 = inlined_call_operand.vmem [shape: f32[2,4,512], index: 7, kind: input, shape index: {}]   ;;  %s4547_s8 = inlined_call_operand.vmem [shape: f32[2,4,512], index: 8, kind: output, shape index: {}]  }
   0x1   :  { %s3166_s29 = smov 0   ;;  %s3168_s30 = smov 0  }
   0x2   :  { %s3170_s9 = smov 0  }
   0x3 LB: > { %4556 = sst [smem:[#allocation6_spill]] %s3086_s30  ;;  %s27_s10 = sadd.s32 1, %s3082_s29  ;;  %s3090_s9 = sphi %s3170_s9, %s18_s9   ;;  %s3086_s30 = sphi %s3168_s30, %s4632_s30   ;;  %s3082_s29 = sphi %s3166_s29, %s4634_s29   ;;  %s3078_s28 = sphi %s3164_s28, %s4630_s28   ;;  %s3074_s27 = sphi %s3162_s27, %s4633_s27  }
   0x4   : > { %s30_s11 = sadd.s32 1, %s3086_s30  ;;  %p28_p0 = scmp.ge.s32.totalorder %s27_s10, 2 }
   0x5   : > { %p2856_p1 = scmp.ge.s32.totalorder %s3090_s9, 1  ;;  %p313_p2 = scmp.lt.s32.totalorder %s3090_s9, 11 }
   0x6   : > { %s4636_s10 = smov (%p28_p0, %s27_s10), 0  ;;  %s4638_s11 = smov (!%p28_p0, %s30_s11), %s3086_s30 }
   0x7   : > { %4557 = sst [smem:[#allocation7_spill]] %s4636_s10  ;;  %p314_p3 = pnand %p2856_p1, %p313_p2 }
   0x8   : > { %p32_p4 = scmp.ge.s32.totalorder %s4638_s11, 5 }
   0x9   : > { %317 = sbr.rel (%p314_p3) target bundleno = 2538 (0x9ea), region = 52 }
   0xa   : > { %s4640_s11 = smov (%p32_p4, %s4638_s11), 0 }
   0xb   : > { %4558 = sst [smem:[#allocation8_spill]] %s4640_s11 }
  0x10   : > { %p366_p5 = scmp.lt.s32.totalorder %s3078_s28, 4  ;;  %p385_p6 = scmp.lt.s32.totalorder %s3074_s27, 1 }
  0x11   : > { %p395_p7 = scmp.eq.s32.totalorder %s3078_s28, 0  ;;  %p396_p8 = scmp.eq.s32.totalorder %s3074_s27, 0 }
  0x12   : > { %s367_s12 = scalar_select %p366_p5, %s3078_s28, 4 }
  0x13   : > { %s386_s13 = scalar_select %p385_p6, %s3074_s27, 1 }
  0x14   : > { %s2967_s14 = smul.u32 40, %s367_s12  ;;  %s2860_s15 = sshll.u32 %s367_s12, 3 }
  0x15   : > { %s2968_s16 = smul.u32 216, %s367_s12  ;;  %s3207_s19 = scalar_lea.vmem %s4544_s5, %s2860_s15 }
  0x16   : > { %s3212_s22 = scalar_lea.vmem %s4541_s2, %s2967_s14  ;;  %s3217_s25 = scalar_lea.vmem %s4542_s3, %s2967_s14 }
  0x17   : > { %s3222_s10 = scalar_lea.vmem %s4543_s4, %s2968_s16  ;;  %s2947_s12 = sshll.u32 %s386_s13, 4 }
  0x18   : > { %s3227_s15 = scalar_lea.vmem %s4546_s7, %s2947_s12  ;;  %s3232_s21 = scalar_lea.vmem %s4547_s8, %s2947_s12 }
  0x19   : > { %p397_p9 = pnand %p396_p8, %p395_p7 }
  0x1a   : > { %vm461_vm0 = vcmask (!%p397_p9), 7168   ;;  %v3241_v0 = vld [vmem:[%s4539_s0] sm:$0xff] (!%p397_p9)  ;;  %v3092_v2 = vmov (!%p397_p9), 0.0  }
  0x1b   : > { %400 = sbr.rel (%p397_p9) target bundleno = 63 (0x3f), region = 56  ;;  %v3246_v1 = vld [vmem:[%s4540_s1] sm:$0xff] (!%p397_p9)  ;;  %462 = vst.msk [vmem:[#allocation4] sm:$0xff] (!%p397_p9), %vm461_vm0, %v3092_v2  ;;  %401 = vst [vmem:[#allocation2] sm:$0xff] (!%p397_p9), %v3092_v2 }
  0x1c   : > { %402 = vst [vmem:[#allocation2 + $0x8] sm:$0xff] (!%p397_p9), %v3092_v2  ;;  %403 = vst [vmem:[#allocation2 + $0x10] sm:$0xff] (!%p397_p9), %v3092_v2 }
  0x1d   : > { %404 = vst [vmem:[#allocation2 + $0x18] sm:$0xff] (!%p397_p9), %v3092_v2  ;;  %405 = vst [vmem:[#allocation2 + $0x20] sm:$0xff] (!%p397_p9), %v3092_v2 }
  0x1e   : > { %406 = vst [vmem:[#allocation2 + $0x28] sm:$0xff] (!%p397_p9), %v3092_v2  ;;  %407 = vst [vmem:[#allocation2 + $0x30] sm:$0xff] (!%p397_p9), %v3092_v2 }
  0x1f   : > { %408 = vst [vmem:[#allocation2 + $0x38] sm:$0xff] (!%p397_p9), %v3092_v2  ;;  %409 = vst [vmem:[#allocation2 + $0x40] sm:$0xff] (!%p397_p9), %v3092_v2 }
  0x20   : > { %410 = vst [vmem:[#allocation2 + $0x48] sm:$0xff] (!%p397_p9), %v3092_v2  ;;  %411 = vst [vmem:[#allocation2 + $0x50] sm:$0xff] (!%p397_p9), %v3092_v2 }
  0x21   : > { %412 = vst [vmem:[#allocation2 + $0x58] sm:$0xff] (!%p397_p9), %v3092_v2  ;;  %413 = vst [vmem:[#allocation2 + $0x60] sm:$0xff] (!%p397_p9), %v3092_v2 }
  0x22   : > { %414 = vst [vmem:[#allocation2 + $0x68] sm:$0xff] %v3092_v2  ;;  %415 = vst [vmem:[#allocation2 + $0x70] sm:$0xff] %v3092_v2 }
  0x23   : > { %416 = vst [vmem:[#allocation2 + $0x78] sm:$0xff] %v3092_v2  ;;  %417 = vst [vmem:[#allocation2 + $0x80] sm:$0xff] %v3092_v2 }
  0x24   : > { %418 = vst [vmem:[#allocation2 + $0x88] sm:$0xff] %v3092_v2  ;;  %419 = vst [vmem:[#allocation2 + $0x90] sm:$0xff] %v3092_v2 }
  0x25   : > { %420 = vst [vmem:[#allocation2 + $0x98] sm:$0xff] %v3092_v2  ;;  %421 = vst [vmem:[#allocation3] sm:$0xff] %v3092_v2 }
  0x26   : > { %422 = vst [vmem:[#allocation3 + $0x8] sm:$0xff] %v3092_v2  ;;  %423 = vst [vmem:[#allocation3 + $0x10] sm:$0xff] %v3092_v2 }
  0x27   : > { %424 = vst [vmem:[#allocation3 + $0x18] sm:$0xff] %v3092_v2  ;;  %425 = vst [vmem:[#allocation3 + $0x20] sm:$0xff] %v3092_v2 }
  0x28   : > { %426 = vst [vmem:[#allocation3 + $0x28] sm:$0xff] %v3092_v2  ;;  %427 = vst [vmem:[#allocation3 + $0x30] sm:$0xff] %v3092_v2 }
  0x29   : > { %428 = vst [vmem:[#allocation3 + $0x38] sm:$0xff] %v3092_v2  ;;  %429 = vst [vmem:[#allocation3 + $0x40] sm:$0xff] %v3092_v2 }
  0x2a   : > { %430 = vst [vmem:[#allocation3 + $0x48] sm:$0xff] %v3092_v2  ;;  %431 = vst [vmem:[#allocation3 + $0x50] sm:$0xff] %v3092_v2 }
  0x2b   : > { %432 = vst [vmem:[#allocation3 + $0x58] sm:$0xff] %v3092_v2  ;;  %433 = vst [vmem:[#allocation3 + $0x60] sm:$0xff] %v3092_v2 }
  0x2c   : > { %434 = vst [vmem:[#allocation3 + $0x68] sm:$0xff] %v3092_v2  ;;  %435 = vst [vmem:[#allocation3 + $0x70] sm:$0xff] %v3092_v2 }
  0x2d   : > { %436 = vst [vmem:[#allocation3 + $0x78] sm:$0xff] %v3092_v2  ;;  %437 = vst [vmem:[#allocation3 + $0x80] sm:$0xff] %v3092_v2 }
  0x2e   : > { %438 = vst [vmem:[#allocation3 + $0x88] sm:$0xff] %v3092_v2  ;;  %439 = vst [vmem:[#allocation3 + $0x90] sm:$0xff] %v3092_v2 }
  0x2f   : > { %440 = vst [vmem:[#allocation3 + $0x98] sm:$0xff] %v3092_v2  ;;  %441 = vst [vmem:[#allocation3 + $0xa0] sm:$0xff] %v3092_v2 }
  0x30   : > { %442 = vst [vmem:[#allocation3 + $0xa8] sm:$0xff] %v3092_v2  ;;  %443 = vst [vmem:[#allocation3 + $0xb0] sm:$0xff] %v3092_v2 }
  0x31   : > { %444 = vst [vmem:[#allocation3 + $0xb8] sm:$0xff] %v3092_v2  ;;  %445 = vst [vmem:[#allocation3 + $0xc0] sm:$0xff] %v3092_v2 }
  0x32   : > { %446 = vst [vmem:[#allocation3 + $0xc8] sm:$0xff] %v3092_v2  ;;  %447 = vst [vmem:[#allocation3 + $0xd0] sm:$0xff] %v3092_v2 }
  0x33   : > { %448 = vst [vmem:[#allocation3 + $0xd8] sm:$0xff] %v3092_v2  ;;  %449 = vst [vmem:[#allocation3 + $0xe0] sm:$0xff] %v3092_v2 }
  0x34   : > { %450 = vst [vmem:[#allocation3 + $0xe8] sm:$0xff] %v3092_v2  ;;  %451 = vst [vmem:[#allocation3 + $0xf0] sm:$0xff] %v3092_v2 }
  0x35   : > { %452 = vst [vmem:[#allocation3 + $0xf8] sm:$0xff] %v3092_v2  ;;  %453 = vst [vmem:[#allocation3 + $0x100] sm:$0xff] %v3092_v2 }
  0x36   : > { %454 = vst [vmem:[#allocation3 + $0x108] sm:$0xff] %v3092_v2  ;;  %455 = vst [vmem:[#allocation3 + $0x110] sm:$0xff] %v3092_v2 }
  0x37   : > { %456 = vst [vmem:[#allocation3 + $0x118] sm:$0xff] %v3092_v2  ;;  %457 = vst [vmem:[#allocation3 + $0x120] sm:$0xff] %v3092_v2 }
  0x38   : > { %458 = vst [vmem:[#allocation3 + $0x128] sm:$0xff] %v3092_v2  ;;  %459 = vst [vmem:[#allocation3 + $0x130] sm:$0xff] %v3092_v2 }
  0x39   : > { %460 = vst [vmem:[#allocation3 + $0x138] sm:$0xff] %v3092_v2  ;;  %463 = vst.msk [vmem:[#allocation4 + $0x8] sm:$0xff] %vm461_vm0, %v3092_v2 }
  0x3a   : > { %464 = vst.msk [vmem:[#allocation4 + $0x10] sm:$0xff] %vm461_vm0, %v3092_v2  ;;  %465 = vst.msk [vmem:[#allocation4 + $0x18] sm:$0xff] %vm461_vm0, %v3092_v2 }
  0x3b   : > { %466 = vst.msk [vmem:[#allocation4 + $0x20] sm:$0xff] %vm461_vm0, %v3092_v2  ;;  %467 = vst.msk [vmem:[#allocation5] sm:$0xff] %vm461_vm0, %v3092_v2 }
  0x3c   : > { %468 = vst.msk [vmem:[#allocation5 + $0x8] sm:$0xff] %vm461_vm0, %v3092_v2  ;;  %469 = vst.msk [vmem:[#allocation5 + $0x10] sm:$0xff] %vm461_vm0, %v3092_v2 }
  0x3d   : > { %470 = vst.msk [vmem:[#allocation5 + $0x18] sm:$0xff] %vm461_vm0, %v3092_v2  ;;  %471 = vst.msk [vmem:[#allocation5 + $0x20] sm:$0xff] %vm461_vm0, %v3092_v2 }
  0x3e   : > { %473 = vst.msk [vmem:[#allocation4] sm:$0xff] %vm461_vm0, %v3241_v0  ;;  %475 = vst.msk [vmem:[#allocation5] sm:$0xff] %vm461_vm0, %v3246_v1 }
  0x3f PF: > { %p476_p10 = scmp.eq.s32.totalorder %s3078_s28, 1 }
  0x41   : > { %p477_p11 = pnand %p476_p10, %p396_p8 }
  0x42   : > { %v481_v3 = vld [vmem:[#allocation3] sm:$0xff] (!%p477_p11)  ;;  %v482_v4 = vld [vmem:[#allocation3 + $0x8] sm:$0xff] (!%p477_p11)  ;;  %v483_v5 = vld [vmem:[#allocation3 + $0x10] sm:$0xff] (!%p477_p11)  ;;  %vm532_vm1 = vcmask (!%p477_p11), 7168  }
  0x43   : > { %480 = sbr.rel (%p477_p11) target bundleno = 384 (0x180), region = 60  ;;  %v485_v6 = vadd.f32 (!%p477_p11), %v482_v4, %v481_v3  ;;  %v492_v7 = vld [vmem:[#allocation3 + $0x20] sm:$0xff] (!%p477_p11)  ;;  %v493_v8 = vld [vmem:[#allocation3 + $0x28] sm:$0xff] (!%p477_p11)  ;;  %v484_v9 = vld [vmem:[#allocation3 + $0x18] sm:$0xff] (!%p477_p11) }
  0x44   : > { %v494_v10 = vld [vmem:[#allocation3 + $0x30] sm:$0xff] (!%p477_p11)  ;;  %v496_v11 = vadd.f32 (!%p477_p11), %v493_v8, %v492_v7  ;;  %v495_v13 = vld [vmem:[#allocation3 + $0x38] sm:$0xff] (!%p477_p11) }
  0x45   : > { %v486_v12 = vadd.f32 (!%p477_p11), %v485_v6, %v483_v5 }
  0x46   : > { %v497_v14 = vadd.f32 (!%p477_p11), %v496_v11, %v494_v10 }
  0x47   : > { %v487_v15 = vadd.f32 (!%p477_p11), %v486_v12, %v484_v9 }
  0x48   : > { %v498_v16 = vadd.f32 (!%p477_p11), %v497_v14, %v495_v13 }
  0x49   : > { %488 = vadd.xlane.f32.xlu0 (!%p477_p11), %v487_v15 }
  0x4d   : > { %499 = vadd.xlane.f32.xlu0 %v498_v16 }
  0xd6   : > { %v489_v17 = vpop.xlane.xlu0 %488 }
  0xda   : > { %v500_v18 = vpop.xlane.xlu0 %499 }
  0xdb   : > { %v501_v19 = vadd.f32 %v500_v18, %v489_v17 }
  0xdd   : > { %v502_v20 = vmul.f32 0.0009765625, %v501_v19 }
  0xdf   : > { %v503_v21 = vsub.f32 %v481_v3, %v502_v20  ;;  %v504_v22 = vsub.f32 %v482_v4, %v502_v20  ;;  %v505_v23 = vsub.f32 %v483_v5, %v502_v20  ;;  %533 = vst.msk [vmem:[#allocation4 + $0x8] sm:$0xff] %vm532_vm1, %v502_v20  ;;  %v517_v24 = vsub.f32 %v492_v7, %v502_v20 }
  0xe0   : > { %v518_v25 = vsub.f32 %v493_v8, %v502_v20  ;;  %v506_v26 = vsub.f32 %v484_v9, %v502_v20  ;;  %v519_v29 = vsub.f32 %v494_v10, %v502_v20  ;;  %v520_v37 = vsub.f32 %v495_v13, %v502_v20 }
  0xe1   : > { %v507_v27 = vmul.f32 %v503_v21, %v503_v21  ;;  %v508_v28 = vmul.f32 %v504_v22, %v504_v22  ;;  %v521_v30 = vmul.f32 %v517_v24, %v517_v24  ;;  %v509_v32 = vmul.f32 %v505_v23, %v505_v23 }
  0xe2   : > { %v522_v31 = vmul.f32 %v518_v25, %v518_v25  ;;  %v510_v35 = vmul.f32 %v506_v26, %v506_v26  ;;  %v523_v38 = vmul.f32 %v519_v29, %v519_v29  ;;  %v524_v41 = vmul.f32 %v520_v37, %v520_v37 }
  0xe3   : > { %v511_v33 = vadd.f32 %v508_v28, %v507_v27 }
  0xe4   : > { %v525_v34 = vadd.f32 %v522_v31, %v521_v30 }
  0xe5   : > { %v512_v36 = vadd.f32 %v511_v33, %v509_v32 }
  0xe6   : > { %v526_v40 = vadd.f32 %v525_v34, %v523_v38 }
  0xe7   : > { %v513_v39 = vadd.f32 %v512_v36, %v510_v35 }
  0xe8   : > { %v527_v42 = vadd.f32 %v526_v40, %v524_v41 }
  0xe9   : > { %514 = vadd.xlane.f32.xlu1 %v513_v39 }
  0xed   : > { %528 = vadd.xlane.f32.xlu1 %v527_v42 }
 0x176   : > { %v515_v43 = vpop.xlane.xlu1 %514 }
 0x17a   : > { %v529_v44 = vpop.xlane.xlu1 %528 }
 0x17b   : > { %v530_v45 = vadd.f32 %v529_v44, %v515_v43 }
 0x17d   : > { %v534_v46 = vmul.f32 0.0009765625, %v530_v45 }
 0x17f   : > { %536 = vst.msk [vmem:[#allocation5 + $0x8] sm:$0xff] %vm532_vm1, %v534_v46 }
 0x180 PF: > { %p537_p12 = scmp.eq.s32.totalorder %s3078_s28, 2 }
 0x182   : > { %p538_p13 = pnand %p537_p12, %p396_p8 }
 0x183   : > { %v543_v47 = vld [vmem:[#allocation3 + $0x40] sm:$0xff] (!%p538_p13)  ;;  %v544_v48 = vld [vmem:[#allocation3 + $0x48] sm:$0xff] (!%p538_p13)  ;;  %v545_v49 = vld [vmem:[#allocation3 + $0x50] sm:$0xff] (!%p538_p13)  ;;  %vm594_vm2 = vcmask (!%p538_p13), 7168  }
 0x184   : > { %541 = sbr.rel (%p538_p13) target bundleno = 705 (0x2c1), region = 64  ;;  %v547_v50 = vadd.f32 (!%p538_p13), %v544_v48, %v543_v47  ;;  %v554_v51 = vld [vmem:[#allocation3 + $0x60] sm:$0xff] (!%p538_p13)  ;;  %v555_v52 = vld [vmem:[#allocation3 + $0x68] sm:$0xff] (!%p538_p13)  ;;  %v546_v53 = vld [vmem:[#allocation3 + $0x58] sm:$0xff] (!%p538_p13) }
 0x185   : > { %v556_v54 = vld [vmem:[#allocation3 + $0x70] sm:$0xff] (!%p538_p13)  ;;  %v558_v55 = vadd.f32 (!%p538_p13), %v555_v52, %v554_v51  ;;  %v557_v57 = vld [vmem:[#allocation3 + $0x78] sm:$0xff] (!%p538_p13) }
 0x186   : > { %v548_v56 = vadd.f32 (!%p538_p13), %v547_v50, %v545_v49 }
 0x187   : > { %v559_v58 = vadd.f32 (!%p538_p13), %v558_v55, %v556_v54 }
 0x188   : > { %v549_v59 = vadd.f32 (!%p538_p13), %v548_v56, %v546_v53 }
 0x189   : > { %v560_v60 = vadd.f32 (!%p538_p13), %v559_v58, %v557_v57 }
 0x18a   : > { %550 = vadd.xlane.f32.xlu0 (!%p538_p13), %v549_v59 }
 0x18e   : > { %561 = vadd.xlane.f32.xlu0 %v560_v60 }
 0x217   : > { %v551_v61 = vpop.xlane.xlu0 %550 }
 0x21b   : > { %v562_v62 = vpop.xlane.xlu0 %561 }
 0x21c   : > { %v563_v63 = vadd.f32 %v562_v62, %v551_v61 }
 0x21e   : > { %v564_v0 = vmul.f32 0.0009765625, %v563_v63 }
 0x220   : > { %v565_v1 = vsub.f32 %v543_v47, %v564_v0  ;;  %v566_v2 = vsub.f32 %v544_v48, %v564_v0  ;;  %v567_v3 = vsub.f32 %v545_v49, %v564_v0  ;;  %595 = vst.msk [vmem:[#allocation4 + $0x10] sm:$0xff] %vm594_vm2, %v564_v0  ;;  %v579_v4 = vsub.f32 %v554_v51, %v564_v0 }
 0x221   : > { %v580_v5 = vsub.f32 %v555_v52, %v564_v0  ;;  %v568_v6 = vsub.f32 %v546_v53, %v564_v0  ;;  %v581_v9 = vsub.f32 %v556_v54, %v564_v0  ;;  %v582_v17 = vsub.f32 %v557_v57, %v564_v0 }
 0x222   : > { %v569_v7 = vmul.f32 %v565_v1, %v565_v1  ;;  %v570_v8 = vmul.f32 %v566_v2, %v566_v2  ;;  %v583_v10 = vmul.f32 %v579_v4, %v579_v4  ;;  %v571_v12 = vmul.f32 %v567_v3, %v567_v3 }
 0x223   : > { %v584_v11 = vmul.f32 %v580_v5, %v580_v5  ;;  %v572_v15 = vmul.f32 %v568_v6, %v568_v6  ;;  %v585_v18 = vmul.f32 %v581_v9, %v581_v9  ;;  %v586_v21 = vmul.f32 %v582_v17, %v582_v17 }
 0x224   : > { %v573_v13 = vadd.f32 %v570_v8, %v569_v7 }
 0x225   : > { %v587_v14 = vadd.f32 %v584_v11, %v583_v10 }
 0x226   : > { %v574_v16 = vadd.f32 %v573_v13, %v571_v12 }
 0x227   : > { %v588_v20 = vadd.f32 %v587_v14, %v585_v18 }
 0x228   : > { %v575_v19 = vadd.f32 %v574_v16, %v572_v15 }
 0x229   : > { %v589_v22 = vadd.f32 %v588_v20, %v586_v21 }
 0x22a   : > { %576 = vadd.xlane.f32.xlu1 %v575_v19 }
 0x22e   : > { %590 = vadd.xlane.f32.xlu1 %v589_v22 }
 0x2b7   : > { %v577_v23 = vpop.xlane.xlu1 %576 }
 0x2bb   : > { %v591_v24 = vpop.xlane.xlu1 %590 }
 0x2bc   : > { %v592_v25 = vadd.f32 %v591_v24, %v577_v23 }
 0x2be   : > { %v596_v26 = vmul.f32 0.0009765625, %v592_v25 }
 0x2c0   : > { %598 = vst.msk [vmem:[#allocation5 + $0x10] sm:$0xff] %vm594_vm2, %v596_v26 }
 0x2c1 PF: > { %p599_p0 = scmp.eq.s32.totalorder %s3078_s28, 3 }
 0x2c3   : > { %p600_p1 = pnand %p599_p0, %p396_p8 }
 0x2c4   : > { %v605_v27 = vld [vmem:[#allocation3 + $0x80] sm:$0xff] (!%p600_p1)  ;;  %v606_v28 = vld [vmem:[#allocation3 + $0x88] sm:$0xff] (!%p600_p1)  ;;  %v607_v29 = vld [vmem:[#allocation3 + $0x90] sm:$0xff] (!%p600_p1)  ;;  %vm656_vm3 = vcmask (!%p600_p1), 7168  }
 0x2c5   : > { %603 = sbr.rel (%p600_p1) target bundleno = 1026 (0x402), region = 68  ;;  %v609_v30 = vadd.f32 (!%p600_p1), %v606_v28, %v605_v27  ;;  %v616_v31 = vld [vmem:[#allocation3 + $0xa0] sm:$0xff] (!%p600_p1)  ;;  %v617_v32 = vld [vmem:[#allocation3 + $0xa8] sm:$0xff] (!%p600_p1)  ;;  %v608_v33 = vld [vmem:[#allocation3 + $0x98] sm:$0xff] (!%p600_p1) }
 0x2c6   : > { %v618_v34 = vld [vmem:[#allocation3 + $0xb0] sm:$0xff] (!%p600_p1)  ;;  %v620_v35 = vadd.f32 (!%p600_p1), %v617_v32, %v616_v31  ;;  %v619_v37 = vld [vmem:[#allocation3 + $0xb8] sm:$0xff] (!%p600_p1) }
 0x2c7   : > { %v610_v36 = vadd.f32 (!%p600_p1), %v609_v30, %v607_v29 }
 0x2c8   : > { %v621_v38 = vadd.f32 (!%p600_p1), %v620_v35, %v618_v34 }
 0x2c9   : > { %v611_v39 = vadd.f32 (!%p600_p1), %v610_v36, %v608_v33 }
 0x2ca   : > { %v622_v40 = vadd.f32 (!%p600_p1), %v621_v38, %v619_v37 }
 0x2cb   : > { %612 = vadd.xlane.f32.xlu0 (!%p600_p1), %v611_v39 }
 0x2cf   : > { %623 = vadd.xlane.f32.xlu0 %v622_v40 }
 0x358   : > { %v613_v41 = vpop.xlane.xlu0 %612 }
 0x35c   : > { %v624_v42 = vpop.xlane.xlu0 %623 }
 0x35d   : > { %v625_v43 = vadd.f32 %v624_v42, %v613_v41 }
 0x35f   : > { %v626_v44 = vmul.f32 0.0009765625, %v625_v43 }
 0x361   : > { %v627_v45 = vsub.f32 %v605_v27, %v626_v44  ;;  %v628_v46 = vsub.f32 %v606_v28, %v626_v44  ;;  %v629_v47 = vsub.f32 %v607_v29, %v626_v44  ;;  %657 = vst.msk [vmem:[#allocation4 + $0x18] sm:$0xff] %vm656_vm3, %v626_v44  ;;  %v641_v48 = vsub.f32 %v616_v31, %v626_v44 }
 0x362   : > { %v642_v49 = vsub.f32 %v617_v32, %v626_v44  ;;  %v630_v50 = vsub.f32 %v608_v33, %v626_v44  ;;  %v643_v53 = vsub.f32 %v618_v34, %v626_v44  ;;  %v644_v61 = vsub.f32 %v619_v37, %v626_v44 }
 0x363   : > { %v631_v51 = vmul.f32 %v627_v45, %v627_v45  ;;  %v632_v52 = vmul.f32 %v628_v46, %v628_v46  ;;  %v645_v54 = vmul.f32 %v641_v48, %v641_v48  ;;  %v633_v56 = vmul.f32 %v629_v47, %v629_v47 }
 0x364   : > { %v646_v55 = vmul.f32 %v642_v49, %v642_v49  ;;  %v634_v59 = vmul.f32 %v630_v50, %v630_v50  ;;  %v647_v62 = vmul.f32 %v643_v53, %v643_v53  ;;  %v648_v1 = vmul.f32 %v644_v61, %v644_v61 }
 0x365   : > { %v635_v57 = vadd.f32 %v632_v52, %v631_v51 }
 0x366   : > { %v649_v58 = vadd.f32 %v646_v55, %v645_v54 }
 0x367   : > { %v636_v60 = vadd.f32 %v635_v57, %v633_v56 }
 0x368   : > { %v650_v0 = vadd.f32 %v649_v58, %v647_v62 }
 0x369   : > { %v637_v63 = vadd.f32 %v636_v60, %v634_v59 }
 0x36a   : > { %v651_v2 = vadd.f32 %v650_v0, %v648_v1 }
 0x36b   : > { %638 = vadd.xlane.f32.xlu1 %v637_v63 }
 0x36f   : > { %652 = vadd.xlane.f32.xlu1 %v651_v2 }
 0x3f8   : > { %v639_v3 = vpop.xlane.xlu1 %638 }
 0x3fc   : > { %v653_v4 = vpop.xlane.xlu1 %652 }
 0x3fd   : > { %v654_v5 = vadd.f32 %v653_v4, %v639_v3 }
 0x3ff   : > { %v658_v6 = vmul.f32 0.0009765625, %v654_v5 }
 0x401   : > { %660 = vst.msk [vmem:[#allocation5 + $0x18] sm:$0xff] %vm656_vm3, %v658_v6 }
 0x402 PF: > { %p661_p2 = scmp.eq.s32.totalorder %s3078_s28, 4 }
 0x404   : > { %p662_p3 = pnand %p661_p2, %p396_p8 }
 0x405   : > { %v667_v7 = vld [vmem:[#allocation3 + $0xc0] sm:$0xff] (!%p662_p3)  ;;  %v668_v8 = vld [vmem:[#allocation3 + $0xc8] sm:$0xff] (!%p662_p3)  ;;  %v669_v9 = vld [vmem:[#allocation3 + $0xd0] sm:$0xff] (!%p662_p3)  ;;  %vm718_vm4 = vcmask (!%p662_p3), 7168  }
 0x406   : > { %665 = sbr.rel (%p662_p3) target bundleno = 1347 (0x543), region = 72  ;;  %v671_v10 = vadd.f32 (!%p662_p3), %v668_v8, %v667_v7  ;;  %v678_v11 = vld [vmem:[#allocation3 + $0xe0] sm:$0xff] (!%p662_p3)  ;;  %v679_v12 = vld [vmem:[#allocation3 + $0xe8] sm:$0xff] (!%p662_p3)  ;;  %v670_v13 = vld [vmem:[#allocation3 + $0xd8] sm:$0xff] (!%p662_p3) }
 0x407   : > { %v680_v14 = vld [vmem:[#allocation3 + $0xf0] sm:$0xff] (!%p662_p3)  ;;  %v682_v15 = vadd.f32 (!%p662_p3), %v679_v12, %v678_v11  ;;  %v681_v17 = vld [vmem:[#allocation3 + $0xf8] sm:$0xff] (!%p662_p3) }
 0x408   : > { %v672_v16 = vadd.f32 (!%p662_p3), %v671_v10, %v669_v9 }
 0x409   : > { %v683_v18 = vadd.f32 (!%p662_p3), %v682_v15, %v680_v14 }
 0x40a   : > { %v673_v19 = vadd.f32 (!%p662_p3), %v672_v16, %v670_v13 }
 0x40b   : > { %v684_v20 = vadd.f32 (!%p662_p3), %v683_v18, %v681_v17 }
 0x40c   : > { %674 = vadd.xlane.f32.xlu0 (!%p662_p3), %v673_v19 }
 0x410   : > { %685 = vadd.xlane.f32.xlu0 %v684_v20 }
 0x499   : > { %v675_v21 = vpop.xlane.xlu0 %674 }
 0x49d   : > { %v686_v22 = vpop.xlane.xlu0 %685 }
 0x49e   : > { %v687_v23 = vadd.f32 %v686_v22, %v675_v21 }
 0x4a0   : > { %v688_v24 = vmul.f32 0.0009765625, %v687_v23 }
 0x4a2   : > { %v689_v25 = vsub.f32 %v667_v7, %v688_v24  ;;  %v690_v26 = vsub.f32 %v668_v8, %v688_v24  ;;  %v691_v27 = vsub.f32 %v669_v9, %v688_v24  ;;  %719 = vst.msk [vmem:[#allocation4 + $0x20] sm:$0xff] %vm718_vm4, %v688_v24  ;;  %v703_v28 = vsub.f32 %v678_v11, %v688_v24 }
 0x4a3   : > { %v704_v29 = vsub.f32 %v679_v12, %v688_v24  ;;  %v692_v30 = vsub.f32 %v670_v13, %v688_v24  ;;  %v705_v33 = vsub.f32 %v680_v14, %v688_v24  ;;  %v706_v41 = vsub.f32 %v681_v17, %v688_v24 }
 0x4a4   : > { %v693_v31 = vmul.f32 %v689_v25, %v689_v25  ;;  %v694_v32 = vmul.f32 %v690_v26, %v690_v26  ;;  %v707_v34 = vmul.f32 %v703_v28, %v703_v28  ;;  %v695_v36 = vmul.f32 %v691_v27, %v691_v27 }
 0x4a5   : > { %v708_v35 = vmul.f32 %v704_v29, %v704_v29  ;;  %v696_v39 = vmul.f32 %v692_v30, %v692_v30  ;;  %v709_v42 = vmul.f32 %v705_v33, %v705_v33  ;;  %v710_v45 = vmul.f32 %v706_v41, %v706_v41 }
 0x4a6   : > { %v697_v37 = vadd.f32 %v694_v32, %v693_v31 }
 0x4a7   : > { %v711_v38 = vadd.f32 %v708_v35, %v707_v34 }
 0x4a8   : > { %v698_v40 = vadd.f32 %v697_v37, %v695_v36 }
 0x4a9   : > { %v712_v44 = vadd.f32 %v711_v38, %v709_v42 }
 0x4aa   : > { %v699_v43 = vadd.f32 %v698_v40, %v696_v39 }
 0x4ab   : > { %v713_v46 = vadd.f32 %v712_v44, %v710_v45 }
 0x4ac   : > { %700 = vadd.xlane.f32.xlu1 %v699_v43 }
 0x4b0   : > { %714 = vadd.xlane.f32.xlu1 %v713_v46 }
 0x539   : > { %v701_v47 = vpop.xlane.xlu1 %700 }
 0x53d   : > { %v715_v48 = vpop.xlane.xlu1 %714 }
 0x53e   : > { %v716_v49 = vadd.f32 %v715_v48, %v701_v47 }
 0x540   : > { %v720_v50 = vmul.f32 0.0009765625, %v716_v49 }
 0x542   : > { %722 = vst.msk [vmem:[#allocation5 + $0x20] sm:$0xff] %vm718_vm4, %v720_v50 }
 0x543 PF: > { %v724_v51 = vld [vmem:[#allocation5] sm:$0xff]  ;;  %v3093_v52 = vmov 0   ;;  %v729_v56 = vld [vmem:[#allocation4] sm:$0xff]  ;;  %v3094_v61 = vmov 839922192   ;;  %v4549_v63 = vlaneseq  ;;  %v733_v6 = vld [vmem:[%s3227_s15 + $0x8] sm:$0xff] }
 0x544   : > { %3034 = vset.pattern.permute.xlu0 %v3093_v52  ;;  %v725_v53 = vadd.f32 1e-05, %v724_v51  ;;  %v723_v54 = vld [vmem:[%s3212_s22] sm:$0xff]  ;;  %v739_v62 = vunpack.c.l.s4 %v3094_v61  ;;  %p2865_p4 = scmp.lt.s32.totalorder %s3078_s28, 1 }
 0x545   : > { %v728_v58 = vld [vmem:[%s3217_s25] sm:$0xff]  ;;  %v3356_v1 = vshrl.u32 %v4549_v63, 7  ;;  %v788_v17 = vld [vmem:[#allocation5 + $0x8] sm:$0xff] (!%p2865_p4)  ;;  %v3095_v18 = vmov (!%p2865_p4), 0   ;;  %s2949_s30 = sshll.u32 (!%p2865_p4), %s3074_s27, 5 }
 0x546   : > { %3035 = vrsqrt.f32 %v725_v53  ;;  %v740_v0 = vunpack.c.0.s8 %v739_v62  ;;  %v732_v5 = vld [vmem:[%s3227_s15] sm:$0xff]  ;;  %v789_v19 = vadd.f32 (!%p2865_p4), 1e-05, %v788_v17  ;;  %v785_v20 = vld [vmem:[%s3212_s22 + $0x8] sm:$0xff] (!%p2865_p4)  ;;  %s780_s23 = scalar_lea.vmem (!%p2865_p4), [#allocation3], %s2949_s30 }
 0x547   : > { %v793_v22 = vld [vmem:[#allocation4 + $0x8] sm:$0xff] (!%p2865_p4)  ;;  %v786_v24 = vld [vmem:[%s3217_s25 + $0x8] sm:$0xff] (!%p2865_p4)  ;;  %v783_v30 = vld [vmem:[%s780_s23 + $0x10] sm:$0xff] (!%p2865_p4) }
 0x548   : > { %v743_v2 = vsub.s32 %v740_v0, %v3356_v1  ;;  %3038 = vrsqrt.f32 (!%p2865_p4), %v789_v19  ;;  %v781_v27 = vld [vmem:[%s780_s23] sm:$0xff] (!%p2865_p4)  ;;  %v782_v29 = vld [vmem:[%s780_s23 + $0x8] sm:$0xff] (!%p2865_p4)  ;;  %v784_v31 = vld [vmem:[%s780_s23 + $0x18] sm:$0xff] (!%p2865_p4) }
 0x550   : > { %v3036_v55 = vpop.eup %3035 }
 0x551   : > { %v727_v57 = vmul.f32 %v3036_v55, %v723_v54 }
 0x552   : > { %v3039_v21 = vpop.eup (!%p2865_p4), %3038 }
 0x553   : > { %736 = vperm.xlu0 %3034, %v727_v57   ;;  %v730_v59 = vmul.f32 %v729_v56, %v727_v57  ;;  %v791_v23 = vmul.f32 (!%p2865_p4), %v3039_v21, %v785_v20 }
 0x555   : > { %v731_v60 = vsub.f32 %v728_v58, %v730_v59  ;;  %v794_v25 = vmul.f32 (!%p2865_p4), %v793_v22, %v791_v23 }
 0x557   : > { %750 = vperm.xlu0 %3034, %v731_v60   ;;  %v795_v26 = vsub.f32 (!%p2865_p4), %v786_v24, %v794_v25 }
 0x55b   : > { %3037 = vset.pattern.permute.xlu0 (!%p2865_p4), %v3095_v18 }
 0x55c   : > { %798 = vperm.xlu0 (!%p2865_p4), %3037, %v791_v23  }
 0x560   : > { %807 = vperm.xlu0 (!%p2865_p4), %3037, %v795_v26  }
 0x5d2   : > { %v737_v3 = vpop.permute.xlu0 %736 }
 0x5d3   : > { %v744_v4 = vrot.slane %v737_v3, %v743_v2 }
 0x5d5   : > { %v746_v8 = vmul.f32 %v744_v4, %v732_v5  ;;  %v747_v9 = vmul.f32 %v744_v4, %v733_v6 }
 0x5d6   : > { %v751_v7 = vpop.permute.xlu0 %750 }
 0x5d7   : > { %v758_v10 = vrot.slane %v751_v7, %v743_v2 }
 0x5d9   : > { %v760_v11 = vadd.f32 %v758_v10, %v746_v8  ;;  %v761_v12 = vadd.f32 %v758_v10, %v747_v9  ;;  %777 = sbr.rel (%p2865_p4) target bundleno = 1510 (0x5e6), region = 76 }
 0x5db   : > { %v762_v13 = vmax.f32 %v760_v11, 0.0  ;;  %v763_v14 = vmax.f32 %v761_v12, 0.0  ;;  %v799_v28 = vpop.permute.xlu0 (!%p2865_p4), %798 }
 0x5dc   : > { %v801_v32 = vmul.f32 (!%p2865_p4), %v799_v28, %v781_v27  ;;  %v802_v33 = vmul.f32 (!%p2865_p4), %v799_v28, %v782_v29  ;;  %v803_v34 = vmul.f32 (!%p2865_p4), %v799_v28, %v783_v30  ;;  %v804_v35 = vmul.f32 (!%p2865_p4), %v799_v28, %v784_v31 }
 0x5dd   : > { %v766_v15 = vcombine.high %v762_v13, %v762_v13  ;;  %v767_v16 = vcombine.high %v763_v14, %v763_v14  ;;  %770 = vst [vmem:[#allocation2] sm:$0xf] %v762_v13  ;;  %772 = vst [vmem:[#allocation2 + $0x10] sm:$0xf] %v763_v14 }
 0x5df   : > { %771 = vst [vmem:[#allocation2 + $0x8] sm:$0xf] %v766_v15  ;;  %773 = vst [vmem:[#allocation2 + $0x18] sm:$0xf] %v767_v16  ;;  %v808_v36 = vpop.permute.xlu0 (!%p2865_p4), %807 }
 0x5e0   : > { %v810_v37 = vadd.f32 %v808_v36, %v801_v32  ;;  %v811_v38 = vadd.f32 %v808_v36, %v802_v33  ;;  %v812_v39 = vadd.f32 %v808_v36, %v803_v34  ;;  %v813_v40 = vadd.f32 %v808_v36, %v804_v35 }
 0x5e2   : > { %v814_v41 = vmax.f32 %v810_v37, 0.0  ;;  %v815_v42 = vmax.f32 %v811_v38, 0.0  ;;  %v816_v43 = vmax.f32 %v812_v39, 0.0  ;;  %v817_v44 = vmax.f32 %v813_v40, 0.0 }
 0x5e4   : > { %818 = vst [vmem:[#allocation2 + $0x20] sm:$0xff] %v814_v41  ;;  %819 = vst [vmem:[#allocation2 + $0x28] sm:$0xff] %v815_v42 }
 0x5e5   : > { %820 = vst [vmem:[#allocation2 + $0x30] sm:$0xff] %v816_v43  ;;  %821 = vst [vmem:[#allocation2 + $0x38] sm:$0xff] %v817_v44 }
 0x5e6 PF: > { %p2868_p6 = scmp.lt.s32.totalorder %s3078_s28, 2 }
 0x5e7   : > { %v837_v45 = vld [vmem:[#allocation5 + $0x10] sm:$0xff] (!%p2868_p6)  ;;  %v3096_v46 = vmov (!%p2868_p6), 0   ;;  %v842_v50 = vld [vmem:[#allocation4 + $0x10] sm:$0xff] (!%p2868_p6)  ;;  %s2869_s24 = sshll.u32 (!%p2868_p6), %s3074_s27, 5 }
 0x5e8   : > { %825 = sbr.rel (%p2868_p6) target bundleno = 1665 (0x681), region = 80  ;;  %3040 = vset.pattern.permute.xlu0 (!%p2868_p6), %v3096_v46  ;;  %v838_v47 = vadd.f32 (!%p2868_p6), 1e-05, %v837_v45  ;;  %v834_v48 = vld [vmem:[%s3212_s22 + $0x10] sm:$0xff] (!%p2868_p6)  ;;  %s2781_s26 = scalar_lea.vmem (!%p2868_p6), [#allocation3], %s2869_s24 }
 0x5e9   : > { %v835_v53 = vld [vmem:[%s3217_s25 + $0x10] sm:$0xff] (!%p2868_p6)  ;;  %v2870_v56 = vld [vmem:[%s2781_s26 + $0x40] sm:$0xff] (!%p2868_p6)  ;;  %v2871_v58 = vld [vmem:[%s2781_s26 + $0x48] sm:$0xff] (!%p2868_p6) }
 0x5ea   : > { %3041 = vrsqrt.f32 (!%p2868_p6), %v838_v47  ;;  %v2872_v59 = vld [vmem:[%s2781_s26 + $0x50] sm:$0xff] (!%p2868_p6)  ;;  %v2873_v60 = vld [vmem:[%s2781_s26 + $0x58] sm:$0xff] (!%p2868_p6) }
 0x5f4   : > { %v3042_v49 = vpop.eup %3041 }
 0x5f5   : > { %v840_v51 = vmul.f32 %v3042_v49, %v834_v48 }
 0x5f7   : > { %847 = vperm.xlu0 %3040, %v840_v51   ;;  %v843_v54 = vmul.f32 %v842_v50, %v840_v51 }
 0x5f9   : > { %v844_v55 = vsub.f32 %v835_v53, %v843_v54 }
 0x5fb   : > { %856 = vperm.xlu0 %3040, %v844_v55  }
 0x676   : > { %v848_v57 = vpop.permute.xlu0 %847 }
 0x677   : > { %v850_v61 = vmul.f32 %v2870_v56, %v848_v57  ;;  %v851_v62 = vmul.f32 %v2871_v58, %v848_v57  ;;  %v852_v0 = vmul.f32 %v2872_v59, %v848_v57  ;;  %v853_v2 = vmul.f32 %v2873_v60, %v848_v57 }
 0x67a   : > { %v857_v3 = vpop.permute.xlu0 %856 }
 0x67b   : > { %v859_v4 = vadd.f32 %v857_v3, %v850_v61  ;;  %v860_v5 = vadd.f32 %v857_v3, %v851_v62  ;;  %v861_v6 = vadd.f32 %v857_v3, %v852_v0  ;;  %v862_v7 = vadd.f32 %v857_v3, %v853_v2 }
 0x67d   : > { %v863_v8 = vmax.f32 %v859_v4, 0.0  ;;  %v864_v9 = vmax.f32 %v860_v5, 0.0  ;;  %v865_v10 = vmax.f32 %v861_v6, 0.0  ;;  %v866_v11 = vmax.f32 %v862_v7, 0.0 }
 0x67f   : > { %867 = vst [vmem:[#allocation2 + $0x40] sm:$0xff] %v863_v8  ;;  %868 = vst [vmem:[#allocation2 + $0x48] sm:$0xff] %v864_v9 }
 0x680   : > { %869 = vst [vmem:[#allocation2 + $0x50] sm:$0xff] %v865_v10  ;;  %870 = vst [vmem:[#allocation2 + $0x58] sm:$0xff] %v866_v11 }
 0x681 PF: > { %p2874_p7 = scmp.lt.s32.totalorder %s3078_s28, 3 }
 0x682   : > { %v886_v12 = vld [vmem:[#allocation5 + $0x18] sm:$0xff] (!%p2874_p7)  ;;  %v3097_v13 = vmov (!%p2874_p7), 0   ;;  %v891_v17 = vld [vmem:[#allocation4 + $0x18] sm:$0xff] (!%p2874_p7)  ;;  %s2875_s12 = sshll.u32 (!%p2874_p7), %s3074_s27, 5 }
 0x683   : > { %874 = sbr.rel (%p2874_p7) target bundleno = 1820 (0x71c), region = 84  ;;  %3043 = vset.pattern.permute.xlu0 (!%p2874_p7), %v3097_v13  ;;  %v887_v14 = vadd.f32 (!%p2874_p7), 1e-05, %v886_v12  ;;  %v883_v15 = vld [vmem:[%s3212_s22 + $0x18] sm:$0xff] (!%p2874_p7)  ;;  %s2784_s17 = scalar_lea.vmem (!%p2874_p7), [#allocation3], %s2875_s12 }
 0x684   : > { %v884_v19 = vld [vmem:[%s3217_s25 + $0x18] sm:$0xff] (!%p2874_p7)  ;;  %v2876_v22 = vld [vmem:[%s2784_s17 + $0x80] sm:$0xff] (!%p2874_p7)  ;;  %v2877_v24 = vld [vmem:[%s2784_s17 + $0x88] sm:$0xff] (!%p2874_p7) }
 0x685   : > { %3044 = vrsqrt.f32 (!%p2874_p7), %v887_v14  ;;  %v2878_v25 = vld [vmem:[%s2784_s17 + $0x90] sm:$0xff] (!%p2874_p7)  ;;  %v2879_v26 = vld [vmem:[%s2784_s17 + $0x98] sm:$0xff] (!%p2874_p7) }
 0x68f   : > { %v3045_v16 = vpop.eup %3044 }
 0x690   : > { %v889_v18 = vmul.f32 %v3045_v16, %v883_v15 }
 0x692   : > { %896 = vperm.xlu0 %3043, %v889_v18   ;;  %v892_v20 = vmul.f32 %v891_v17, %v889_v18 }
 0x694   : > { %v893_v21 = vsub.f32 %v884_v19, %v892_v20 }
 0x696   : > { %905 = vperm.xlu0 %3043, %v893_v21  }
 0x711   : > { %v897_v23 = vpop.permute.xlu0 %896 }
 0x712   : > { %v899_v27 = vmul.f32 %v2876_v22, %v897_v23  ;;  %v900_v28 = vmul.f32 %v2877_v24, %v897_v23  ;;  %v901_v29 = vmul.f32 %v2878_v25, %v897_v23  ;;  %v902_v30 = vmul.f32 %v2879_v26, %v897_v23 }
 0x715   : > { %v906_v31 = vpop.permute.xlu0 %905 }
 0x716   : > { %v908_v32 = vadd.f32 %v906_v31, %v899_v27  ;;  %v909_v33 = vadd.f32 %v906_v31, %v900_v28  ;;  %v910_v34 = vadd.f32 %v906_v31, %v901_v29  ;;  %v911_v35 = vadd.f32 %v906_v31, %v902_v30 }
 0x718   : > { %v912_v36 = vmax.f32 %v908_v32, 0.0  ;;  %v913_v37 = vmax.f32 %v909_v33, 0.0  ;;  %v914_v38 = vmax.f32 %v910_v34, 0.0  ;;  %v915_v39 = vmax.f32 %v911_v35, 0.0 }
 0x71a   : > { %916 = vst [vmem:[#allocation2 + $0x60] sm:$0xff] %v912_v36  ;;  %917 = vst [vmem:[#allocation2 + $0x68] sm:$0xff] %v913_v37 }
 0x71b   : > { %918 = vst [vmem:[#allocation2 + $0x70] sm:$0xff] %v914_v38  ;;  %919 = vst [vmem:[#allocation2 + $0x78] sm:$0xff] %v915_v39 }
 0x71c PF: > { %923 = sbr.rel (%p366_p5) target bundleno = 1974 (0x7b6), region = 88  ;;  %v935_v40 = vld [vmem:[#allocation5 + $0x20] sm:$0xff] (!%p366_p5)  ;;  %v3098_v41 = vmov (!%p366_p5), 0   ;;  %v940_v45 = vld [vmem:[#allocation4 + $0x20] sm:$0xff] (!%p366_p5)  ;;  %s2881_s18 = sshll.u32 (!%p366_p5), %s3074_s27, 5 }
 0x71d   : > { %3046 = vset.pattern.permute.xlu0 (!%p366_p5), %v3098_v41  ;;  %v936_v42 = vadd.f32 (!%p366_p5), 1e-05, %v935_v40  ;;  %v932_v43 = vld [vmem:[%s3212_s22 + $0x20] sm:$0xff] (!%p366_p5)  ;;  %s2787_s20 = scalar_lea.vmem (!%p366_p5), [#allocation3], %s2881_s18 }
 0x71e   : > { %v933_v47 = vld [vmem:[%s3217_s25 + $0x20] sm:$0xff] (!%p366_p5)  ;;  %v2883_v53 = vld [vmem:[%s2787_s20 + $0xc8] sm:$0xff] (!%p366_p5)  ;;  %v2884_v54 = vld [vmem:[%s2787_s20 + $0xd0] sm:$0xff] (!%p366_p5) }
 0x71f   : > { %3047 = vrsqrt.f32 (!%p366_p5), %v936_v42  ;;  %v2882_v50 = vld [vmem:[%s2787_s20 + $0xc0] sm:$0xff] (!%p366_p5)  ;;  %v2885_v55 = vld [vmem:[%s2787_s20 + $0xd8] sm:$0xff] (!%p366_p5) }
 0x729   : > { %v3048_v44 = vpop.eup %3047 }
 0x72a   : > { %v938_v46 = vmul.f32 %v3048_v44, %v932_v43 }
 0x72c   : > { %945 = vperm.xlu0 %3046, %v938_v46   ;;  %v941_v48 = vmul.f32 %v940_v45, %v938_v46 }
 0x72e   : > { %v942_v49 = vsub.f32 %v933_v47, %v941_v48 }
 0x730   : > { %954 = vperm.xlu0 %3046, %v942_v49  }
 0x7ab   : > { %v946_v51 = vpop.permute.xlu0 %945 }
 0x7ac   : > { %v948_v56 = vmul.f32 %v2882_v50, %v946_v51  ;;  %v949_v57 = vmul.f32 %v2883_v53, %v946_v51  ;;  %v950_v58 = vmul.f32 %v2884_v54, %v946_v51  ;;  %v951_v59 = vmul.f32 %v2885_v55, %v946_v51 }
 0x7af   : > { %v955_v60 = vpop.permute.xlu0 %954 }
 0x7b0   : > { %v957_v61 = vadd.f32 %v955_v60, %v948_v56  ;;  %v958_v62 = vadd.f32 %v955_v60, %v949_v57  ;;  %v959_v0 = vadd.f32 %v955_v60, %v950_v58  ;;  %v960_v2 = vadd.f32 %v955_v60, %v951_v59 }
 0x7b2   : > { %v961_v3 = vmax.f32 %v957_v61, 0.0  ;;  %v962_v4 = vmax.f32 %v958_v62, 0.0  ;;  %v963_v5 = vmax.f32 %v959_v0, 0.0  ;;  %v964_v6 = vmax.f32 %v960_v2, 0.0 }
 0x7b4   : > { %965 = vst [vmem:[#allocation2 + $0x80] sm:$0xff] %v961_v3  ;;  %966 = vst [vmem:[#allocation2 + $0x88] sm:$0xff] %v962_v4 }
 0x7b5   : > { %967 = vst [vmem:[#allocation2 + $0x90] sm:$0xff] %v963_v5  ;;  %968 = vst [vmem:[#allocation2 + $0x98] sm:$0xff] %v964_v6 }
 0x7b6 PF: > { %v997_v7 = vld [vmem:[#allocation2 + $0x8] sm:$0xff]  ;;  %v999_v9 = vld [vmem:[#allocation2 + $0x18] sm:$0xff]  ;;  %3049 = vset.pattern.permute.xlu0 %v3093_v52  ;;  %v996_v12 = vld [vmem:[#allocation2] sm:$0xff]  ;;  %v4552_v14 = vmov 0.0   ;;  %vm1016_vm5 = vcmask 326656   ;;  %s3102_s22 = smov 71  }
 0x7b7   : > { %v1001_v8 = vld [vmem:[#allocation2 + $0x28] sm:$0xff]  ;;  %v1003_v11 = vld [vmem:[#allocation2 + $0x38] sm:$0xff]  ;;  %v1000_v13 = vld [vmem:[#allocation2 + $0x20] sm:$0xff]  ;;  %1162 = vmatprep.mubr.f32.mxu0 %v4552_v14  ;;  %1389 = vmatprep.mubr.f32.mxu1 %v4552_v14  ;;  %s3103_s25 = smov 65   ;;  %s3104_s14 = smov 64  }
 0x7b8   : > { %v2951_v10 = vpack.c.bf16 %v1001_v8, %v997_v7  ;;  %v2959_v15 = vpack.c.bf16 %v1003_v11, %v999_v9  ;;  %v2953_v16 = vpack.c.bf16 %v1000_v13, %v996_v12  ;;  %v998_v17 = vld [vmem:[#allocation2 + $0x10] sm:$0xff]  ;;  %v1005_v19 = vld [vmem:[#allocation2 + $0x48] sm:$0xff]  ;;  %v1007_v22 = vld [vmem:[#allocation2 + $0x58] sm:$0xff]  ;;  %s3105_s11 = smov 63   ;;  %s3106_s13 = smov 57  }
 0x7b9   : > { %v1002_v18 = vld [vmem:[#allocation2 + $0x30] sm:$0xff]  ;;  %v1009_v21 = vld [vmem:[#allocation2 + $0x68] sm:$0xff]  ;;  %v1011_v23 = vld [vmem:[#allocation2 + $0x78] sm:$0xff]  ;;  %s3107_s16 = smov 56   ;;  %s3108_s30 = smov 55  }
 0x7ba   : > { %2952 = vmatprep.subr.bf16.mxu0 %v2951_v10  ;;  %v2961_v20 = vpack.c.bf16 %v1002_v18, %v998_v17  ;;  %2960 = vmatprep.subr.bf16.mxu1 %v2959_v15  ;;  %v2955_v52 = vpack.c.bf16 %v1009_v21, %v1005_v19  ;;  %v2963_v24 = vpack.c.bf16 %v1011_v23, %v1007_v22  ;;  %v1004_v25 = vld [vmem:[#allocation2 + $0x40] sm:$0xff]  ;;  %v1006_v27 = vld [vmem:[#allocation2 + $0x50] sm:$0xff]  ;;  %v969_v35 = vld [vmem:[%s3222_s10] sm:$0xff]  ;;  %s3109_s23 = smov 9   ;;  %s3110_s24 = smov 8  }
 0x7bb   : > { %2954 = vmatpush1.bf16.msra.mxu0 %v2953_v16  ;;  %v1008_v26 = vld [vmem:[#allocation2 + $0x60] sm:$0xff]  ;;  %v1010_v29 = vld [vmem:[#allocation2 + $0x70] sm:$0xff]  ;;  %v1013_v31 = vld [vmem:[#allocation2 + $0x88] sm:$0xff]  ;;  %s3111_s26 = smov 7   ;;  %s3112_s12 = smov 1  }
 0x7bc   : > { %2962 = vmatpush1.bf16.msra.mxu1 %v2961_v20  ;;  %v2957_v28 = vpack.c.bf16 %v1008_v26, %v1004_v25  ;;  %2956 = vmatprep.subr.bf16.mxu0 %v2955_v52  ;;  %v2965_v30 = vpack.c.bf16 %v1010_v29, %v1006_v27  ;;  %v1015_v32 = vld [vmem:[#allocation2 + $0x98] sm:$0xff]  ;;  %v1012_v33 = vld [vmem:[#allocation2 + $0x80] sm:$0xff]  ;;  %v1014_v34 = vld [vmem:[#allocation2 + $0x90] sm:$0xff]  ;;  %s3113_s17 = smov 127   ;;  %s3115_s18 = smov 120  }
 0x7bd   : > { %2964 = vmatprep.subr.bf16.mxu1 %v2963_v24  ;;  %v970_v36 = vld [vmem:[%s3222_s10 + $0x8] sm:$0xff]  ;;  %v2678_v37 = vld [vmem:[%s3207_s19] sm:$0xff]  ;;  %v971_v38 = vld [vmem:[%s3222_s10 + $0x10] sm:$0xff]  ;;  %s3100_s19 = smov 73   ;;  %s3116_s20 = smov 119  }
 0x7be   : > { %2681 = vperm.xlu0 %3049, %v2678_v37   ;;  %v972_v39 = vld [vmem:[%s3222_s10 + $0x18] sm:$0xff]  ;;  %v973_v40 = vld [vmem:[%s3222_s10 + $0x20] sm:$0xff]  ;;  %v974_v41 = vld [vmem:[%s3222_s10 + $0x28] sm:$0xff] }
 0x7bf   : > { %2958 = vmatpush1.bf16.msra.mxu0 %v2957_v28  ;;  %v975_v42 = vld [vmem:[%s3222_s10 + $0x30] sm:$0xff]  ;;  %v976_v43 = vld [vmem:[%s3222_s10 + $0x38] sm:$0xff]  ;;  %v977_v44 = vld [vmem:[%s3222_s10 + $0x40] sm:$0xff] }
 0x7c0   : > { %2966 = vmatpush1.bf16.msra.mxu1 %v2965_v30  ;;  %1106 = vmatprep.subr.mxu0 %v1013_v31  ;;  %v978_v45 = vld [vmem:[%s3222_s10 + $0x48] sm:$0xff]  ;;  %v979_v46 = vld [vmem:[%s3222_s10 + $0x50] sm:$0xff]  ;;  %v980_v47 = vld [vmem:[%s3222_s10 + $0x58] sm:$0xff] }
 0x7c1   : > { %1333 = vmatprep.subr.mxu1 %v1015_v32  ;;  %v981_v48 = vld [vmem:[%s3222_s10 + $0x60] sm:$0xff]  ;;  %v982_v49 = vld [vmem:[%s3222_s10 + $0x68] sm:$0xff]  ;;  %v983_v50 = vld [vmem:[%s3222_s10 + $0x70] sm:$0xff] }
 0x7c2   : > { %v984_v51 = vld [vmem:[%s3222_s10 + $0x78] sm:$0xff]  ;;  %v985_v53 = vld [vmem:[%s3222_s10 + $0x80] sm:$0xff]  ;;  %v986_v54 = vld [vmem:[%s3222_s10 + $0x88] sm:$0xff] }
 0x7c3   : > { %1107 = vmatpush1.msra.mxu0 %v1012_v33  ;;  %v987_v55 = vld [vmem:[%s3222_s10 + $0x90] sm:$0xff]  ;;  %v988_v56 = vld [vmem:[%s3222_s10 + $0x98] sm:$0xff]  ;;  %v989_v57 = vld [vmem:[%s3222_s10 + $0xa0] sm:$0xff] }
 0x7c4   : > { %1334 = vmatpush1.msra.mxu1 %v1014_v34  ;;  %2886 = vmatmul.mubr.msk.f32.vlgmr.msra.gmra.mrb[0].mxu0 %vm1016_vm5, %v969_v35  ;;  %v990_v58 = vld [vmem:[%s3222_s10 + $0xa8] sm:$0xff]  ;;  %v991_v59 = vld [vmem:[%s3222_s10 + $0xb0] sm:$0xff]  ;;  %v992_v60 = vld [vmem:[%s3222_s10 + $0xb8] sm:$0xff] }
 0x7c5   : > { %2913 = vmatmul.mubr.msk.f32.vlgmr.msra.gmra.mrb[0].mxu1 %vm1016_vm5, %v969_v35  ;;  %1168 = vmatprep.mubr.f32.mxu0 %v4552_v14  ;;  %v993_v61 = vld [vmem:[%s3222_s10 + $0xc0] sm:$0xff]  ;;  %v994_v62 = vld [vmem:[%s3222_s10 + $0xc8] sm:$0xff]  ;;  %v995_v0 = vld [vmem:[%s3222_s10 + $0xd0] sm:$0xff]  ;;  %s3101_s10 = smov 72  }
 0x7c6   : > { %1395 = vmatprep.mubr.f32.mxu1 %v4552_v14 }
 0x7c8   : > { %2887 = vmatmul.mubr.msk.f32.gmra.mrb[2].mxu0 %vm1016_vm5, %v970_v36 }
 0x7c9   : > { %2914 = vmatmul.mubr.msk.f32.gmra.mrb[2].mxu1 %vm1016_vm5, %v970_v36  ;;  %1174 = vmatprep.mubr.f32.mxu0 %v4552_v14 }
 0x7ca   : > { %1401 = vmatprep.mubr.f32.mxu1 %v4552_v14 }
 0x7cc   : > { %2888 = vmatmul.mubr.msk.f32.gmra.mrb[4].mxu0 %vm1016_vm5, %v971_v38 }
 0x7cd   : > { %2915 = vmatmul.mubr.msk.f32.gmra.mrb[4].mxu1 %vm1016_vm5, %v971_v38  ;;  %1180 = vmatprep.mubr.f32.mxu0 %v4552_v14 }
 0x7ce   : > { %1407 = vmatprep.mubr.f32.mxu1 %v4552_v14 }
 0x7d0   : > { %2889 = vmatmul.mubr.msk.f32.gmra.mrb[6].mxu0 %vm1016_vm5, %v972_v39 }
 0x7d1   : > { %2916 = vmatmul.mubr.msk.f32.gmra.mrb[6].mxu1 %vm1016_vm5, %v972_v39  ;;  %1186 = vmatprep.mubr.f32.mxu0 %v4552_v14 }
 0x7d2   : > { %1413 = vmatprep.mubr.f32.mxu1 %v4552_v14 }
 0x7d4   : > { %2890 = vmatmul.mubr.msk.f32.gmra.mrb[8].mxu0 %vm1016_vm5, %v973_v40 }
 0x7d5   : > { %2917 = vmatmul.mubr.msk.f32.gmra.mrb[8].mxu1 %vm1016_vm5, %v973_v40  ;;  %1192 = vmatprep.mubr.f32.mxu0 %v4552_v14 }
 0x7d6   : > { %1419 = vmatprep.mubr.f32.mxu1 %v4552_v14 }
 0x7d8   : > { %2891 = vmatmul.mubr.msk.f32.gmra.mrb[10].mxu0 %vm1016_vm5, %v974_v41 }
 0x7d9   : > { %2918 = vmatmul.mubr.msk.f32.gmra.mrb[10].mxu1 %vm1016_vm5, %v974_v41  ;;  %1198 = vmatprep.mubr.f32.mxu0 %v4552_v14 }
 0x7da   : > { %1425 = vmatprep.mubr.f32.mxu1 %v4552_v14 }
 0x7dc   : > { %2892 = vmatmul.mubr.msk.f32.gmra.mrb[12].mxu0 %vm1016_vm5, %v975_v42 }
 0x7dd   : > { %2919 = vmatmul.mubr.msk.f32.gmra.mrb[12].mxu1 %vm1016_vm5, %v975_v42  ;;  %1204 = vmatprep.mubr.f32.mxu0 %v4552_v14 }
 0x7de   : > { %1431 = vmatprep.mubr.f32.mxu1 %v4552_v14 }
 0x7e0   : > { %2893 = vmatmul.mubr.msk.f32.gmra.mrb[14].mxu0 %vm1016_vm5, %v976_v43 }
 0x7e1   : > { %2920 = vmatmul.mubr.msk.f32.gmra.mrb[14].mxu1 %vm1016_vm5, %v976_v43  ;;  %1210 = vmatprep.mubr.f32.mxu0 %v4552_v14 }
 0x7e2   : > { %1437 = vmatprep.mubr.f32.mxu1 %v4552_v14 }
 0x7e4   : > { %2894 = vmatmul.mubr.msk.f32.gmra.mrb[16].mxu0 %vm1016_vm5, %v977_v44 }
 0x7e5   : > { %2921 = vmatmul.mubr.msk.f32.gmra.mrb[16].mxu1 %vm1016_vm5, %v977_v44  ;;  %1216 = vmatprep.mubr.f32.mxu0 %v4552_v14 }
 0x7e6   : > { %1443 = vmatprep.mubr.f32.mxu1 %v4552_v14 }
 0x7e8   : > { %2895 = vmatmul.mubr.msk.f32.gmra.mrb[18].mxu0 %vm1016_vm5, %v978_v45 }
 0x7e9   : > { %2922 = vmatmul.mubr.msk.f32.gmra.mrb[18].mxu1 %vm1016_vm5, %v978_v45  ;;  %1222 = vmatprep.mubr.f32.mxu0 %v4552_v14 }
 0x7ea   : > { %1449 = vmatprep.mubr.f32.mxu1 %v4552_v14 }
 0x7ec   : > { %2896 = vmatmul.mubr.msk.f32.gmra.mrb[20].mxu0 %vm1016_vm5, %v979_v46 }
 0x7ed   : > { %2923 = vmatmul.mubr.msk.f32.gmra.mrb[20].mxu1 %vm1016_vm5, %v979_v46  ;;  %1228 = vmatprep.mubr.f32.mxu0 %v4552_v14 }
 0x7ee   : > { %1455 = vmatprep.mubr.f32.mxu1 %v4552_v14 }
 0x7f0   : > { %2897 = vmatmul.mubr.msk.f32.gmra.mrb[22].mxu0 %vm1016_vm5, %v980_v47 }
 0x7f1   : > { %2924 = vmatmul.mubr.msk.f32.gmra.mrb[22].mxu1 %vm1016_vm5, %v980_v47  ;;  %1234 = vmatprep.mubr.f32.mxu0 %v4552_v14 }
 0x7f2   : > { %1461 = vmatprep.mubr.f32.mxu1 %v4552_v14 }
 0x7f4   : > { %2898 = vmatmul.mubr.msk.f32.gmra.mrb[24].mxu0 %vm1016_vm5, %v981_v48 }
 0x7f5   : > { %1240 = vmatprep.mubr.f32.mxu0 %v4552_v14  ;;  %2925 = vmatmul.mubr.msk.f32.gmra.mrb[24].mxu1 %vm1016_vm5, %v981_v48 }
 0x7f6   : > { %1467 = vmatprep.mubr.f32.mxu1 %v4552_v14 }
 0x7f8   : > { %2899 = vmatmul.mubr.msk.f32.gmra.mrb[26].mxu0 %vm1016_vm5, %v982_v49 }
 0x7f9   : > { %1246 = vmatprep.mubr.f32.mxu0 %v4552_v14  ;;  %2926 = vmatmul.mubr.msk.f32.gmra.mrb[26].mxu1 %vm1016_vm5, %v982_v49 }
 0x7fa   : > { %1473 = vmatprep.mubr.f32.mxu1 %v4552_v14 }
 0x7fc   : > { %2900 = vmatmul.mubr.msk.f32.gmra.mrb[28].mxu0 %vm1016_vm5, %v983_v50 }
 0x7fd   : > { %2927 = vmatmul.mubr.msk.f32.gmra.mrb[28].mxu1 %vm1016_vm5, %v983_v50  ;;  %1252 = vmatprep.mubr.f32.mxu0 %v4552_v14 }
 0x7fe   : > { %1479 = vmatprep.mubr.f32.mxu1 %v4552_v14 }
 0x800   : > { %2901 = vmatmul.mubr.msk.f32.gmra.mrb[30].mxu0 %vm1016_vm5, %v984_v51 }
 0x801   : > { %2928 = vmatmul.mubr.msk.f32.gmra.mrb[30].mxu1 %vm1016_vm5, %v984_v51  ;;  %1258 = vmatprep.mubr.f32.mxu0 %v4552_v14 }
 0x802   : > { %1485 = vmatprep.mubr.f32.mxu1 %v4552_v14 }
 0x804   : > { %2902 = vmatmul.mubr.msk.f32.gmra.mrb[32].mxu0 %vm1016_vm5, %v985_v53 }
 0x805   : > { %2929 = vmatmul.mubr.msk.f32.gmra.mrb[32].mxu1 %vm1016_vm5, %v985_v53  ;;  %1264 = vmatprep.mubr.f32.mxu0 %v4552_v14 }
 0x806   : > { %1491 = vmatprep.mubr.f32.mxu1 %v4552_v14 }
 0x808   : > { %2903 = vmatmul.mubr.msk.f32.gmra.mrb[34].mxu0 %vm1016_vm5, %v986_v54 }
 0x809   : > { %2930 = vmatmul.mubr.msk.f32.gmra.mrb[34].mxu1 %vm1016_vm5, %v986_v54  ;;  %1270 = vmatprep.mubr.f32.mxu0 %v4552_v14 }
 0x80a   : > { %1497 = vmatprep.mubr.f32.mxu1 %v4552_v14 }
 0x80c   : > { %2904 = vmatmul.mubr.msk.f32.gmra.mrb[36].mxu0 %vm1016_vm5, %v987_v55 }
 0x80d   : > { %2931 = vmatmul.mubr.msk.f32.gmra.mrb[36].mxu1 %vm1016_vm5, %v987_v55  ;;  %1276 = vmatprep.mubr.f32.mxu0 %v4552_v14 }
 0x80e   : > { %1503 = vmatprep.mubr.f32.mxu1 %v4552_v14 }
 0x810   : > { %2905 = vmatmul.mubr.msk.f32.gmra.mrb[38].mxu0 %vm1016_vm5, %v988_v56 }
 0x811   : > { %2932 = vmatmul.mubr.msk.f32.gmra.mrb[38].mxu1 %vm1016_vm5, %v988_v56  ;;  %1282 = vmatprep.mubr.f32.mxu0 %v4552_v14 }
 0x812   : > { %1509 = vmatprep.mubr.f32.mxu1 %v4552_v14 }
 0x814   : > { %2906 = vmatmul.mubr.msk.f32.gmra.mrb[40].mxu0 %vm1016_vm5, %v989_v57 }
 0x815   : > { %2933 = vmatmul.mubr.msk.f32.gmra.mrb[40].mxu1 %vm1016_vm5, %v989_v57  ;;  %1288 = vmatprep.mubr.f32.mxu0 %v4552_v14 }
 0x816   : > { %1515 = vmatprep.mubr.f32.mxu1 %v4552_v14 }
 0x818   : > { %2907 = vmatmul.mubr.msk.f32.gmra.mrb[42].mxu0 %vm1016_vm5, %v990_v58 }
 0x819   : > { %2934 = vmatmul.mubr.msk.f32.gmra.mrb[42].mxu1 %vm1016_vm5, %v990_v58  ;;  %1294 = vmatprep.mubr.f32.mxu0 %v4552_v14 }
 0x81a   : > { %1521 = vmatprep.mubr.f32.mxu1 %v4552_v14 }
 0x81c   : > { %2908 = vmatmul.mubr.msk.f32.gmra.mrb[44].mxu0 %vm1016_vm5, %v991_v59 }
 0x81d   : > { %2935 = vmatmul.mubr.msk.f32.gmra.mrb[44].mxu1 %vm1016_vm5, %v991_v59  ;;  %1300 = vmatprep.mubr.f32.mxu0 %v4552_v14 }
 0x81e   : > { %1527 = vmatprep.mubr.f32.mxu1 %v4552_v14 }
 0x820   : > { %2909 = vmatmul.mubr.msk.f32.gmra.mrb[46].mxu0 %vm1016_vm5, %v992_v60 }
 0x821   : > { %2936 = vmatmul.mubr.msk.f32.gmra.mrb[46].mxu1 %vm1016_vm5, %v992_v60  ;;  %1306 = vmatprep.mubr.f32.mxu0 %v4552_v14 }
 0x822   : > { %1533 = vmatprep.mubr.f32.mxu1 %v4552_v14 }
 0x824   : > { %2910 = vmatmul.mubr.msk.f32.gmra.mrb[48].mxu0 %vm1016_vm5, %v993_v61 }
 0x825   : > { %2937 = vmatmul.mubr.msk.f32.gmra.mrb[48].mxu1 %vm1016_vm5, %v993_v61  ;;  %1312 = vmatprep.mubr.f32.mxu0 %v4552_v14 }
 0x826   : > { %1539 = vmatprep.mubr.f32.mxu1 %v4552_v14 }
 0x828   : > { %2911 = vmatmul.mubr.msk.f32.gmra.mrb[50].mxu0 %vm1016_vm5, %v994_v62 }
 0x829   : > { %2938 = vmatmul.mubr.msk.f32.gmra.mrb[50].mxu1 %vm1016_vm5, %v994_v62  ;;  %1318 = vmatprep.mubr.f32.mxu0 %v4552_v14 }
 0x82a   : > { %1545 = vmatprep.mubr.f32.mxu1 %v4552_v14 }
 0x82c   : > { %2912 = vmatmul.mubr.msk.f32.gmra.mrb[52].mxu0 %vm1016_vm5, %v995_v0 }
 0x82d   : > { %2939 = vmatmul.mubr.msk.f32.gmra.mrb[52].mxu1 %vm1016_vm5, %v995_v0 }
 0x897   : > { %v1164_v2 = vpop.f32.mrb[0].mxu0 }
 0x898   : > { %v1391_v3 = vpop.f32.mrb[0].mxu1  ;;  %1569 = vrot.lane.b32.xlu0 %v1164_v2, %s3100_s19  ;;  %v1166_v4 = vpop.f32.mrb[1].mxu0 }
 0x899   : > { %1573 = vrot.lane.b32.xlu1 %v1391_v3, %s3100_s19  ;;  %v1393_v5 = vpop.f32.mrb[1].mxu1 }
 0x89b   : > { %v1170_v6 = vpop.f32.mrb[2].mxu0 }
 0x89c   : > { %1571 = vrot.lane.b32.xlu0 %v1166_v4, %s3100_s19  ;;  %v1172_v7 = vpop.f32.mrb[3].mxu0  ;;  %v1397_v8 = vpop.f32.mrb[2].mxu1 }
 0x89d   : > { %1575 = vrot.lane.b32.xlu1 %v1393_v5, %s3100_s19  ;;  %v1399_v9 = vpop.f32.mrb[3].mxu1 }
 0x89f   : > { %v1176_v10 = vpop.f32.mrb[4].mxu0 }
 0x8a0   : > { %1615 = vrot.lane.b32.xlu0 %v1170_v6, %s3101_s10  ;;  %v1178_v11 = vpop.f32.mrb[5].mxu0  ;;  %v1403_v12 = vpop.f32.mrb[4].mxu1 }
 0x8a1   : > { %1617 = vrot.lane.b32.xlu1 %v1172_v7, %s3101_s10  ;;  %v1405_v13 = vpop.f32.mrb[5].mxu1 }
 0x8a3   : > { %v1182_v15 = vpop.f32.mrb[6].mxu0 }
 0x8a4   : > { %1619 = vrot.lane.b32.xlu0 %v1397_v8, %s3101_s10  ;;  %v1184_v16 = vpop.f32.mrb[7].mxu0  ;;  %v1409_v17 = vpop.f32.mrb[6].mxu1 }
 0x8a5   : > { %1621 = vrot.lane.b32.xlu1 %v1399_v9, %s3101_s10  ;;  %v1411_v18 = vpop.f32.mrb[7].mxu1 }
 0x8a7   : > { %v1188_v19 = vpop.f32.mrb[8].mxu0 }
 0x8a8   : > { %1657 = vrot.lane.b32.xlu0 %v1176_v10, %s3102_s22  ;;  %v1190_v20 = vpop.f32.mrb[9].mxu0  ;;  %v1415_v21 = vpop.f32.mrb[8].mxu1 }
 0x8a9   : > { %1659 = vrot.lane.b32.xlu1 %v1178_v11, %s3102_s22  ;;  %v1417_v22 = vpop.f32.mrb[9].mxu1 }
 0x8ab   : > { %v1194_v23 = vpop.f32.mrb[10].mxu0 }
 0x8ac   : > { %1661 = vrot.lane.b32.xlu0 %v1403_v12, %s3102_s22  ;;  %v1196_v52 = vpop.f32.mrb[11].mxu0  ;;  %v1421_v24 = vpop.f32.mrb[10].mxu1 }
 0x8ad   : > { %1663 = vrot.lane.b32.xlu1 %v1405_v13, %s3102_s22  ;;  %v1423_v25 = vpop.f32.mrb[11].mxu1 }
 0x8af   : > { %v1200_v26 = vpop.f32.mrb[12].mxu0 }
 0x8b0   : > { %1700 = vrot.lane.b32.xlu0 %v1182_v15, %s3103_s25  ;;  %v1202_v27 = vpop.f32.mrb[13].mxu0  ;;  %v1427_v28 = vpop.f32.mrb[12].mxu1 }
 0x8b1   : > { %1702 = vrot.lane.b32.xlu1 %v1184_v16, %s3103_s25  ;;  %v1429_v29 = vpop.f32.mrb[13].mxu1 }
 0x8b3   : > { %v1206_v30 = vpop.f32.mrb[14].mxu0 }
 0x8b4   : > { %1704 = vrot.lane.b32.xlu0 %v1409_v17, %s3103_s25  ;;  %v1208_v31 = vpop.f32.mrb[15].mxu0  ;;  %v1433_v32 = vpop.f32.mrb[14].mxu1 }
 0x8b5   : > { %1706 = vrot.lane.b32.xlu1 %v1411_v18, %s3103_s25  ;;  %v1435_v33 = vpop.f32.mrb[15].mxu1 }
 0x8b7   : > { %v1212_v34 = vpop.f32.mrb[16].mxu0 }
 0x8b8   : > { %1743 = vrot.lane.b32.xlu0 %v1188_v19, %s3104_s14  ;;  %v1214_v35 = vpop.f32.mrb[17].mxu0  ;;  %v1439_v36 = vpop.f32.mrb[16].mxu1 }
 0x8b9   : > { %1745 = vrot.lane.b32.xlu1 %v1190_v20, %s3104_s14  ;;  %v1441_v37 = vpop.f32.mrb[17].mxu1 }
 0x8bb   : > { %v1218_v38 = vpop.f32.mrb[18].mxu0 }
 0x8bc   : > { %1747 = vrot.lane.b32.xlu0 %v1415_v21, %s3104_s14  ;;  %v1220_v39 = vpop.f32.mrb[19].mxu0  ;;  %v1445_v40 = vpop.f32.mrb[18].mxu1 }
 0x8bd   : > { %1749 = vrot.lane.b32.xlu1 %v1417_v22, %s3104_s14  ;;  %v3535_v41 = vpop.f32.mrb[19].mxu1 }
 0x8bf   : > { %v3537_v42 = vpop.f32.mrb[20].mxu0 }
 0x8c0   : > { %1785 = vrot.lane.b32.xlu0 %v1194_v23, %s3105_s11  ;;  %v3540_v43 = vpop.f32.mrb[21].mxu0  ;;  %v3542_v44 = vpop.f32.mrb[20].mxu1 }
 0x8c1   : > { %1787 = vrot.lane.b32.xlu1 %v1196_v52, %s3105_s11  ;;  %v3545_v45 = vpop.f32.mrb[21].mxu1 }
 0x8c3   : > { %v3547_v46 = vpop.f32.mrb[22].mxu0 }
 0x8c4   : > { %1789 = vrot.lane.b32.xlu0 %v1421_v24, %s3105_s11  ;;  %v3550_v47 = vpop.f32.mrb[23].mxu0  ;;  %v3552_v48 = vpop.f32.mrb[22].mxu1 }
 0x8c5   : > { %1791 = vrot.lane.b32.xlu1 %v1423_v25, %s3105_s11  ;;  %v3555_v49 = vpop.f32.mrb[23].mxu1 }
 0x8c7   : > { %v3557_v50 = vpop.f32.mrb[24].mxu0 }
 0x8c8   : > { %1828 = vrot.lane.b32.xlu0 %v1200_v26, %s3106_s13  ;;  %v3560_v51 = vpop.f32.mrb[25].mxu0  ;;  %v3562_v53 = vpop.f32.mrb[24].mxu1 }
 0x8c9   : > { %1830 = vrot.lane.b32.xlu1 %v1202_v27, %s3106_s13  ;;  %v3565_v54 = vpop.f32.mrb[25].mxu1 }
 0x8cb   : > { %v3567_v55 = vpop.f32.mrb[26].mxu0 }
 0x8cc   : > { %4559 = vst [vmem:[#allocation9_spill] sm:$0xff] %v3567_v55  ;;  %1832 = vrot.lane.b32.xlu0 %v1427_v28, %s3106_s13  ;;  %v3570_v56 = vpop.f32.mrb[27].mxu0  ;;  %v3572_v57 = vpop.f32.mrb[26].mxu1 }
 0x8cd   : > { %4560 = vst [vmem:[#allocation10_spill] sm:$0xff] %v3570_v56  ;;  %4561 = vst [vmem:[#allocation11_spill] sm:$0xff] %v3572_v57  ;;  %1834 = vrot.lane.b32.xlu1 %v1429_v29, %s3106_s13  ;;  %v3575_v58 = vpop.f32.mrb[27].mxu1  ;;  %v3751_v57 = vsub.s32 3, %v3356_v1 }
 0x8ce   : > { %4562 = vst [vmem:[#allocation12_spill] sm:$0xff] %v3575_v58 }
 0x8cf   : > { %v3577_v59 = vpop.f32.mrb[28].mxu0 }
 0x8d0   : > { %1872 = vrot.lane.b32.xlu0 %v1206_v30, %s3107_s16  ;;  %v3580_v60 = vpop.f32.mrb[29].mxu0  ;;  %v3582_v61 = vpop.f32.mrb[28].mxu1 }
 0x8d1   : > { %1874 = vrot.lane.b32.xlu1 %v1208_v31, %s3107_s16  ;;  %v3585_v62 = vpop.f32.mrb[29].mxu1 }
 0x8d3   : > { %v3587_v0 = vpop.f32.mrb[30].mxu0 }
 0x8d4   : > { %1876 = vrot.lane.b32.xlu0 %v1433_v32, %s3107_s16  ;;  %v3590_v2 = vpop.f32.mrb[31].mxu0  ;;  %v3592_v3 = vpop.f32.mrb[30].mxu1 }
 0x8d5   : > { %1878 = vrot.lane.b32.xlu1 %v1435_v33, %s3107_s16  ;;  %v3595_v4 = vpop.f32.mrb[31].mxu1 }
 0x8d7   : > { %v3597_v5 = vpop.f32.mrb[32].mxu0 }
 0x8d8   : > { %1914 = vrot.lane.b32.xlu0 %v1212_v34, %s3108_s30  ;;  %v3600_v6 = vpop.f32.mrb[33].mxu0  ;;  %v3602_v7 = vpop.f32.mrb[32].mxu1 }
 0x8d9   : > { %1916 = vrot.lane.b32.xlu1 %v1214_v35, %s3108_s30  ;;  %v3605_v8 = vpop.f32.mrb[33].mxu1 }
 0x8db   : > { %v3607_v9 = vpop.f32.mrb[34].mxu0 }
 0x8dc   : > { %1918 = vrot.lane.b32.xlu0 %v1439_v36, %s3108_s30  ;;  %v3610_v10 = vpop.f32.mrb[35].mxu0  ;;  %v3612_v11 = vpop.f32.mrb[34].mxu1 }
 0x8dd   : > { %1920 = vrot.lane.b32.xlu1 %v1441_v37, %s3108_s30  ;;  %v3615_v12 = vpop.f32.mrb[35].mxu1 }
 0x8df   : > { %v3617_v13 = vpop.f32.mrb[36].mxu0 }
 0x8e0   : > { %1957 = vrot.lane.b32.xlu0 %v1218_v38, %s3109_s23  ;;  %v3619_v15 = vpop.f32.mrb[37].mxu0  ;;  %v3621_v16 = vpop.f32.mrb[36].mxu1 }
 0x8e1   : > { %1959 = vrot.lane.b32.xlu1 %v1220_v39, %s3109_s23  ;;  %v3623_v17 = vpop.f32.mrb[37].mxu1 }
 0x8e3   : > { %v3625_v18 = vpop.f32.mrb[38].mxu0 }
 0x8e4   : > { %1961 = vrot.lane.b32.xlu0 %v1445_v40, %s3109_s23  ;;  %v3627_v19 = vpop.f32.mrb[39].mxu0  ;;  %v3629_v20 = vpop.f32.mrb[38].mxu1 }
 0x8e5   : > { %1963 = vrot.lane.b32.xlu1 %v3535_v41, %s3109_s23  ;;  %v3632_v21 = vpop.f32.mrb[39].mxu1 }
 0x8e7   : > { %v3634_v22 = vpop.f32.mrb[40].mxu0 }
 0x8e8   : > { %2000 = vrot.lane.b32.xlu0 %v3537_v42, %s3110_s24  ;;  %v3637_v23 = vpop.f32.mrb[41].mxu0  ;;  %v3639_v52 = vpop.f32.mrb[40].mxu1 }
 0x8e9   : > { %2002 = vrot.lane.b32.xlu1 %v3540_v43, %s3110_s24  ;;  %v3642_v24 = vpop.f32.mrb[41].mxu1 }
 0x8eb   : > { %v3644_v25 = vpop.f32.mrb[42].mxu0 }
 0x8ec   : > { %2004 = vrot.lane.b32.xlu0 %v3542_v44, %s3110_s24  ;;  %v3647_v26 = vpop.f32.mrb[43].mxu0  ;;  %v3649_v27 = vpop.f32.mrb[42].mxu1 }
 0x8ed   : > { %2006 = vrot.lane.b32.xlu1 %v3545_v45, %s3110_s24  ;;  %v3652_v28 = vpop.f32.mrb[43].mxu1 }
 0x8ef   : > { %v3654_v29 = vpop.f32.mrb[44].mxu0 }
 0x8f0   : > { %2042 = vrot.lane.b32.xlu0 %v3547_v46, %s3111_s26  ;;  %v3657_v30 = vpop.f32.mrb[45].mxu0  ;;  %v3659_v31 = vpop.f32.mrb[44].mxu1 }
 0x8f1   : > { %2044 = vrot.lane.b32.xlu1 %v3550_v47, %s3111_s26  ;;  %v3662_v32 = vpop.f32.mrb[45].mxu1 }
 0x8f3   : > { %v3664_v33 = vpop.f32.mrb[46].mxu0 }
 0x8f4   : > { %4563 = vst [vmem:[#allocation13_spill] sm:$0xff] %v3664_v33  ;;  %2046 = vrot.lane.b32.xlu0 %v3552_v48, %s3111_s26  ;;  %v3667_v34 = vpop.f32.mrb[47].mxu0  ;;  %v3669_v35 = vpop.f32.mrb[46].mxu1 }
 0x8f5   : > { %4564 = vst [vmem:[#allocation14_spill] sm:$0xff] %v3667_v34  ;;  %4565 = vst [vmem:[#allocation15_spill] sm:$0xff] %v3669_v35  ;;  %2048 = vrot.lane.b32.xlu1 %v3555_v49, %s3111_s26  ;;  %v3672_v36 = vpop.f32.mrb[47].mxu1  ;;  %v3705_v49 = vpop.permute.xlu0 %2681  ;;  %s3114_s26 = smov 121  }
 0x8f6   : > { %4566 = vst [vmem:[#allocation16_spill] sm:$0xff] %v3672_v36  ;;  %4579 = vst [vmem:[#allocation29_spill] sm:$0xff] %v3705_v49  ;;  %v4582_v49 = vlaneseq }
 0x8f7   : > { %v3674_v37 = vpop.f32.mrb[48].mxu0 }
 0x8f8   : > { %4567 = vst [vmem:[#allocation17_spill] sm:$0xff] %v3674_v37  ;;  %2085 = vrot.lane.b32.xlu0 %v3557_v50, %s3112_s12  ;;  %v3677_v38 = vpop.f32.mrb[49].mxu0  ;;  %v3679_v39 = vpop.f32.mrb[48].mxu1  ;;  %v3711_v50 = vld [vmem:[%s4545_s6] ss:$8 sm:$0xf] }
 0x8f9   : > { %4568 = vst [vmem:[#allocation18_spill] sm:$0xff] %v3677_v38  ;;  %4569 = vst [vmem:[#allocation19_spill] sm:$0xff] %v3679_v39  ;;  %2087 = vrot.lane.b32.xlu1 %v3560_v51, %s3112_s12  ;;  %v3682_v40 = vpop.f32.mrb[49].mxu1  ;;  %v3716_v51 = vld [vmem:[%s4545_s6 + $0x1] ss:$8 sm:$0xf] }
 0x8fa   : > { %4570 = vst [vmem:[#allocation20_spill] sm:$0xff] %v3682_v40  ;;  %4580 = vst [vmem:[#allocation30_spill] sm:$0xff] %v3711_v50  ;;  %vm1557_vm6 = vcmp.ge.f32.partialorder %v3711_v50, 1.0  ;;  %vm1559_vm7 = vcmp.ge.f32.partialorder %v3716_v51, 1.0  ;;  %v3740_v50 = vand.u32 127, %v4582_v49  ;;  %vm1565_vm15 = vcmp.le.f32.partialorder %v3716_v51, 6.0 }
 0x8fb   : > { %v3684_v41 = vpop.f32.mrb[50].mxu0 }
 0x8fc   : > { %4571 = vst [vmem:[#allocation21_spill] sm:$0xff] %v3684_v41  ;;  %2089 = vrot.lane.b32.xlu0 %v3562_v53, %s3112_s12  ;;  %v3687_v42 = vpop.f32.mrb[51].mxu0  ;;  %v3689_v43 = vpop.f32.mrb[50].mxu1  ;;  %v2941_v53 = vld [vmem:[%s4545_s6 + $0x2] ss:$8 sm:$0xf] }
 0x8fd   : > { %4572 = vst [vmem:[#allocation22_spill] sm:$0xff] %v3687_v42  ;;  %4573 = vst [vmem:[#allocation23_spill] sm:$0xff] %v3689_v43  ;;  %2091 = vrot.lane.b32.xlu1 %v3565_v54, %s3112_s12  ;;  %v3692_v44 = vpop.f32.mrb[51].mxu1  ;;  %vm1561_vm8 = vcmp.ge.f32.partialorder %v2941_v53, 1.0  ;;  %vm1567_vm9 = vcmp.le.f32.partialorder %v2941_v53, 6.0  ;;  %v3754_v53 = vsub.s32 1, %v3356_v1 }
 0x8fe   : > { %4574 = vst [vmem:[#allocation24_spill] sm:$0xff] %v3692_v44  ;;  %v3748_v55 = vsel %vm1567_vm9, 1.0, %v4552_v14  ;;  %vm1623_vm10 = vcmp.lt.s32.totalorder %v3740_v50, 72  ;;  %vm1579_vm11 = vcmp.lt.s32.totalorder %v3740_v50, 73  ;;  %vm1665_vm12 = vcmp.lt.s32.totalorder %v3740_v50, 71 }
 0x8ff   : > { %v3694_v45 = vpop.f32.mrb[52].mxu0  ;;  %vm1708_vm13 = vcmp.lt.s32.totalorder %v3740_v50, 65  ;;  %vm1751_vm14 = vcmp.lt.s32.totalorder %v3740_v50, 64  ;;  %vm1793_vm0 = vcmp.lt.s32.totalorder %v3740_v50, 63  ;;  %vm1836_vm1 = vcmp.lt.s32.totalorder %v3740_v50, 57 }
 0x900   : > { %4575 = vst [vmem:[#allocation25_spill] sm:$0xff] %v3694_v45  ;;  %2131 = vrot.lane.b32.xlu0 %v3577_v59, %s3113_s17  ;;  %v3697_v46 = vpop.f32.mrb[53].mxu0  ;;  %v3699_v47 = vpop.f32.mrb[52].mxu1  ;;  %vm1880_vm2 = vcmp.lt.s32.totalorder %v3740_v50, 56  ;;  %vm1922_vm3 = vcmp.lt.s32.totalorder %v3740_v50, 55  ;;  %vm1965_vm4 = vcmp.lt.s32.totalorder %v3740_v50, 9 }
 0x901   : > { %4576 = vst [vmem:[#allocation26_spill] sm:$0xff] %v3697_v46  ;;  %4577 = vst [vmem:[#allocation27_spill] sm:$0xff] %v3699_v47  ;;  %2133 = vrot.lane.b32.xlu1 %v3580_v60, %s3113_s17  ;;  %v3702_v48 = vpop.f32.mrb[53].mxu1  ;;  %v3726_v60 = vsel %vm1557_vm6, 1.0, %v4552_v14  ;;  %vm2008_vm5 = vcmp.lt.s32.totalorder %v3740_v50, 8  ;;  %vm2050_vm6 = vcmp.lt.s32.totalorder %v3740_v50, 7 }
 0x902   : > { %4578 = vst [vmem:[#allocation28_spill] sm:$0xff] %v3702_v48  ;;  %v1798_v51 = vmul.f32 %v3748_v55, %v3726_v60  ;;  %vm2181_vm9 = vcmp.lt.s32.totalorder %v3740_v50, 121 }
 0x904   : > { %2135 = vrot.lane.b32.xlu0 %v3582_v61, %s3113_s17  ;;  %v3729_v61 = vsel %vm1559_vm7, 1.0, %v4552_v14  ;;  %vm2093_vm7 = vcmp.lt.s32.totalorder %v3740_v50, 1 }
 0x905   : > { %2137 = vrot.lane.b32.xlu1 %v3585_v62, %s3113_s17  ;;  %4581 = vst [vmem:[#allocation31_spill] sm:$0xff] %v3729_v61  ;;  %v1584_v62 = vmul.f32 %v3729_v61, %v3726_v60 }
 0x907   : > { %v1636_v49 = vrot.slane %v1584_v62, %v3754_v53  ;;  %v1644_v42 = vrot.slane %v1584_v62, %v3751_v57 }
 0x908   : > { %2173 = vrot.lane.b32.xlu0 %v3587_v0, %s3114_s26 }
 0x909   : > { %2175 = vrot.lane.b32.xlu1 %v3590_v2, %s3114_s26  ;;  %v3736_v2 = vsel %vm1561_vm8, 1.0, %v4552_v14  ;;  %v1670_v14 = vmul.f32 %v1584_v62, %v3748_v55  ;;  %vm2139_vm8 = vcmp.lt.s32.totalorder %v3740_v50, 127 }
 0x90a   : > { %v1570_v54 = vpop.permute.xlu0 %1569 }
 0x90b   : > { %v1574_v59 = vpop.permute.xlu1 %1573  ;;  %v1687_v61 = vrot.slane %v1670_v14, %v3751_v57 }
 0x90c   : > { %2177 = vrot.lane.b32.xlu0 %v3592_v3, %s3114_s26  ;;  %v1585_v3 = vmul.f32 %v1584_v62, %v3736_v2 }
 0x90d   : > { %2179 = vrot.lane.b32.xlu1 %v3595_v4, %s3114_s26  ;;  %v3745_v4 = vsub.s32 0, %v3356_v1 }
 0x90e   : > { %v1572_v0 = vpop.permute.xlu0 %1571  ;;  %v1602_v46 = vrot.slane %v1585_v3, %v3751_v57  ;;  %v1594_v45 = vrot.slane %v1585_v3, %v3754_v53 }
 0x90f   : > { %v1576_v63 = vpop.permute.xlu1 %1575  ;;  %v1582_v44 = vsel %vm1579_vm11, %v1570_v54, %v1572_v0  ;;  %v1632_v43 = vrot.slane %v1584_v62, %v3745_v4 }
 0x910   : > { %2216 = vrot.lane.b32.xlu0 %v3597_v5, %s3115_s18  ;;  %v3757_v5 = vsub.s32 2, %v3356_v1  ;;  %v1590_v1 = vrot.slane %v1585_v3, %v3745_v4 }
 0x911   : > { %2218 = vrot.lane.b32.xlu1 %v3600_v6, %s3115_s18 }
 0x912   : > { %v1616_v58 = vpop.permute.xlu0 %1615  ;;  %v1683_v37 = vrot.slane %v1670_v14, %v3757_v5 }
 0x913   : > { %v1618_v6 = vpop.permute.xlu1 %1617 }
 0x914   : > { %2220 = vrot.lane.b32.xlu0 %v3602_v7, %s3115_s18  ;;  %v1626_v56 = vsel %vm1623_vm10, %v1616_v58, %v1618_v6  ;;  %v1598_v7 = vrot.slane %v1585_v3, %v3757_v5  ;;  %v1679_v3 = vrot.slane %v1670_v14, %v3754_v53 }
 0x915   : > { %2222 = vrot.lane.b32.xlu1 %v3605_v8, %s3115_s18  ;;  %v1640_v8 = vrot.slane %v1584_v62, %v3757_v5  ;;  %v1650_v41 = vmul.f32 %v1636_v49, %v1626_v56  ;;  %v1713_v56 = vmul.f32 %v3736_v2, %v3726_v60  ;;  %v1675_v49 = vrot.slane %v1670_v14, %v3745_v4 }
 0x916   : > { %v1620_v48 = vpop.permute.xlu0 %1619 }
 0x917   : > { %v1622_v47 = vpop.permute.xlu1 %1621  ;;  %v1625_v40 = vsel %vm1623_vm10, %v1618_v6, %v1620_v48 }
 0x918   : > { %2258 = vrot.lane.b32.xlu0 %v3607_v9, %s3116_s20  ;;  %v1624_v39 = vsel %vm1623_vm10, %v1620_v48, %v1622_v47  ;;  %v1627_v38 = vsel %vm1623_vm10, %v1622_v47, %v1616_v58  ;;  %v1581_v9 = vsel %vm1579_vm11, %v1572_v0, %v1574_v59  ;;  %v1580_v48 = vsel %vm1579_vm11, %v1574_v59, %v1576_v63 }
 0x919   : > { %2260 = vrot.lane.b32.xlu1 %v3610_v10, %s3116_s20  ;;  %v1608_v10 = vmul.f32 %v1594_v45, %v1582_v44  ;;  %v1583_v58 = vsel %vm1579_vm11, %v1576_v63, %v1570_v54  ;;  %v1651_v47 = vmul.f32 %v1640_v8, %v1625_v40  ;;  %v1649_v0 = vmul.f32 %v1632_v43, %v1627_v38 }
 0x91a   : > { %v1658_v62 = vpop.permute.xlu0 %1657  ;;  %v1652_v44 = vmul.f32 %v1644_v42, %v1624_v39  ;;  %v1609_v34 = vmul.f32 %v1598_v7, %v1581_v9  ;;  %v1722_v59 = vrot.slane %v1713_v56, %v3754_v53  ;;  %v1607_v33 = vmul.f32 %v1590_v1, %v1583_v58 }
 0x91b   : > { %v1660_v6 = vpop.permute.xlu1 %1659  ;;  %v1654_v35 = vadd.f32 %v1650_v41, %v1608_v10  ;;  %v1610_v63 = vmul.f32 %v1602_v46, %v1580_v48 }
 0x91c   : > { %v1668_v36 = vsel %vm1665_vm12, %v1658_v62, %v1660_v6  ;;  %2262 = vrot.lane.b32.xlu0 %v3612_v11, %s3116_s20  ;;  %v1655_v11 = vadd.f32 %v1651_v47, %v1609_v34  ;;  %v1653_v38 = vadd.f32 %v1649_v0, %v1607_v33 }
 0x91d   : > { %v1693_v45 = vmul.f32 %v1679_v3, %v1668_v36  ;;  %2264 = vrot.lane.b32.xlu1 %v3615_v12, %s3116_s20  ;;  %v1656_v39 = vadd.f32 %v1652_v44, %v1610_v63  ;;  %v1772_v63 = vrot.slane %v3726_v60, %v3751_v57 }
 0x91e   : > { %v1662_v14 = vpop.permute.xlu0 %1661 }
 0x91f   : > { %v1697_v40 = vadd.f32 %v1693_v45, %v1654_v35  ;;  %v1667_v54 = vsel %vm1665_vm12, %v1660_v6, %v1662_v14  ;;  %v1664_v8 = vpop.permute.xlu1 %1663 }
 0x920   : > { %v1694_v41 = vmul.f32 %v1683_v37, %v1667_v54  ;;  %v1666_v36 = vsel %vm1665_vm12, %v1662_v14, %v1664_v8  ;;  %v1669_v12 = vsel %vm1665_vm12, %v1664_v8, %v1658_v62  ;;  %2301 = vrot.lane.b32.xlu0 %v3617_v13, %s3100_s19  ;;  %v1726_v13 = vrot.slane %v1713_v56, %v3757_v5 }
 0x921   : > { %v1692_v42 = vmul.f32 %v1675_v49, %v1669_v12  ;;  %v1695_v43 = vmul.f32 %v1687_v61, %v1666_v36  ;;  %2303 = vrot.lane.b32.xlu1 %v3619_v15, %s3100_s19  ;;  %v1718_v61 = vrot.slane %v1713_v56, %v3745_v4  ;;  %v1730_v15 = vrot.slane %v1713_v56, %v3751_v57 }
 0x922   : > { %v1698_v35 = vadd.f32 %v1694_v41, %v1655_v11  ;;  %v1701_v46 = vpop.permute.xlu0 %1700  ;;  %v1764_v56 = vrot.slane %v3726_v60, %v3754_v53  ;;  %v4583_v54 = vmov 0.0  }
 0x923   : > { %v1696_v34 = vadd.f32 %v1692_v42, %v1653_v38  ;;  %v1699_v37 = vadd.f32 %v1695_v43, %v1656_v39  ;;  %v1703_v1 = vpop.permute.xlu1 %1702  ;;  %v3851_v8 = vsel %vm1565_vm15, 1.0, %v4583_v54  ;;  %v1807_v42 = vrot.slane %v1798_v51, %v3754_v53 }
 0x924   : > { %v1711_v7 = vsel %vm1708_vm13, %v1701_v46, %v1703_v1  ;;  %2305 = vrot.lane.b32.xlu0 %v3621_v16, %s3100_s19  ;;  %v3867_v43 = vmul.f32 %v3851_v8, %v3726_v60  ;;  %vm2224_vm15 = vcmp.lt.s32.totalorder %v3740_v50, 120 }
 0x925   : > { %v1736_v33 = vmul.f32 %v1722_v59, %v1711_v7  ;;  %2307 = vrot.lane.b32.xlu1 %v3623_v17, %s3100_s19  ;;  %v1760_v59 = vrot.slane %v3726_v60, %v3745_v4  ;;  %v1811_v7 = vrot.slane %v1798_v51, %v3757_v5  ;;  %s2942_s19 = sshll.u32 %s3078_s28, 1 }
 0x926   : > { %v1705_v3 = vpop.permute.xlu0 %1704  ;;  %s4489_s28 = sadd.s32 %s3074_s27, %s2942_s19 }
 0x927   : > { %v1740_v62 = vadd.f32 %v1736_v33, %v1697_v40  ;;  %v1710_v9 = vsel %vm1708_vm13, %v1703_v1, %v1705_v3  ;;  %v1707_v10 = vpop.permute.xlu1 %1706  ;;  %v1842_v33 = vmul.f32 %v3867_v43, %v3736_v2  ;;  %s2950_s27 = sshll.u32 %s4489_s28, 5 }
 0x928   : > { %v1737_v6 = vmul.f32 %v1726_v13, %v1710_v9  ;;  %v1709_v16 = vsel %vm1708_vm13, %v1705_v3, %v1707_v10  ;;  %v1712_v49 = vsel %vm1708_vm13, %v1707_v10, %v1701_v46  ;;  %2344 = vrot.lane.b32.xlu0 %v3625_v18, %s3101_s10  ;;  %v1815_v13 = vrot.slane %v1798_v51, %v3751_v57 }
 0x929   : > { %v1735_v17 = vmul.f32 %v1718_v61, %v1712_v49  ;;  %v1738_v48 = vmul.f32 %v1730_v15, %v1709_v16  ;;  %2346 = vrot.lane.b32.xlu1 %v3627_v19, %s3101_s10  ;;  %v1768_v19 = vrot.slane %v3726_v60, %v3757_v5  ;;  %v1803_v60 = vrot.slane %v1798_v51, %v3745_v4 }
 0x92a   : > { %v1741_v58 = vadd.f32 %v1737_v6, %v1698_v35  ;;  %v1744_v47 = vpop.permute.xlu0 %1743  ;;  %v1851_v16 = vrot.slane %v1842_v33, %v3754_v53 }
 0x92b   : > { %v1739_v0 = vadd.f32 %v1735_v17, %v1696_v34  ;;  %v1742_v44 = vadd.f32 %v1738_v48, %v1699_v37  ;;  %v1746_v45 = vpop.permute.xlu1 %1745 }
 0x92c   : > { %v1754_v18 = vsel %vm1751_vm14, %v1744_v47, %v1746_v45  ;;  %2348 = vrot.lane.b32.xlu0 %v3629_v20, %s3101_s10 }
 0x92d   : > { %v1778_v14 = vmul.f32 %v1764_v56, %v1754_v18  ;;  %2350 = vrot.lane.b32.xlu1 %v3632_v21, %s3101_s10  ;;  %s2692_s10 = scalar_lea.vmem [#allocation3], %s2950_s27 }
 0x92e   : > { %v1748_v40 = vpop.permute.xlu0 %1747 }
 0x92f   : > { %v1782_v20 = vadd.f32 %v1778_v14, %v1740_v62  ;;  %v1753_v11 = vsel %vm1751_vm14, %v1746_v45, %v1748_v40  ;;  %v1750_v41 = vpop.permute.xlu1 %1749 }
 0x930   : > { %v1779_v36 = vmul.f32 %v1768_v19, %v1753_v11  ;;  %v1752_v21 = vsel %vm1751_vm14, %v1748_v40, %v1750_v41  ;;  %v1755_v12 = vsel %vm1751_vm14, %v1750_v41, %v1744_v47  ;;  %2385 = vrot.lane.b32.xlu0 %v3634_v22, %s3102_s22  ;;  %v1893_v40 = vrot.slane %v3867_v43, %v3754_v53 }
 0x931   : > { %v1777_v38 = vmul.f32 %v1760_v59, %v1755_v12  ;;  %v1780_v39 = vmul.f32 %v1772_v63, %v1752_v21  ;;  %2387 = vrot.lane.b32.xlu1 %v3637_v23, %s3102_s22 }
 0x932   : > { %v1783_v35 = vadd.f32 %v1779_v36, %v1741_v58  ;;  %v1786_v46 = vpop.permute.xlu0 %1785 }
 0x933   : > { %v1781_v34 = vadd.f32 %v1777_v38, %v1739_v0  ;;  %v1784_v37 = vadd.f32 %v1780_v39, %v1742_v44  ;;  %v1788_v1 = vpop.permute.xlu1 %1787  ;;  %v1859_v44 = vrot.slane %v1842_v33, %v3751_v57  ;;  %v1889_v38 = vrot.slane %v3867_v43, %v3745_v4 }
 0x934   : > { %v1796_v22 = vsel %vm1793_vm0, %v1786_v46, %v1788_v1  ;;  %2389 = vrot.lane.b32.xlu0 %v3639_v52, %s3102_s22  ;;  %v1901_v39 = vrot.slane %v3867_v43, %v3751_v57 }
 0x935   : > { %v1821_v23 = vmul.f32 %v1807_v42, %v1796_v22  ;;  %2391 = vrot.lane.b32.xlu1 %v3642_v24, %s3102_s22  ;;  %v1927_v42 = vmul.f32 %v3867_v43, %v3748_v55  ;;  %v4584_v22 = vld [vmem:[#allocation13_spill] sm:$0xff] }
 0x936   : > { %v1790_v61 = vpop.permute.xlu0 %1789 }
 0x937   : > { %v1825_v15 = vadd.f32 %v1821_v23, %v1782_v20  ;;  %v1795_v3 = vsel %vm1793_vm0, %v1788_v1, %v1790_v61  ;;  %v1792_v62 = vpop.permute.xlu1 %1791 }
 0x938   : > { %v1822_v52 = vmul.f32 %v1811_v7, %v1795_v3  ;;  %v1794_v9 = vsel %vm1793_vm0, %v1790_v61, %v1792_v62  ;;  %v1797_v24 = vsel %vm1793_vm0, %v1792_v62, %v1786_v46  ;;  %2427 = vrot.lane.b32.xlu0 %v3644_v25, %s3103_s25  ;;  %v1855_v25 = vrot.slane %v1842_v33, %v3757_v5 }
 0x939   : > { %v1820_v10 = vmul.f32 %v1803_v60, %v1797_v24  ;;  %v1823_v6 = vmul.f32 %v1815_v13, %v1794_v9  ;;  %2429 = vrot.lane.b32.xlu1 %v3647_v26, %s3103_s25  ;;  %v1847_v26 = vrot.slane %v1842_v33, %v3745_v4  ;;  %v1936_v60 = vrot.slane %v1927_v42, %v3754_v53 }
 0x93a   : > { %v1826_v49 = vadd.f32 %v1822_v52, %v1783_v35  ;;  %v1829_v17 = vpop.permute.xlu0 %1828  ;;  %v4586_v52 = vld [vmem:[#allocation15_spill] sm:$0xff]  ;;  %v1940_v9 = vrot.slane %v1927_v42, %v3757_v5 }
 0x93b   : > { %v1824_v48 = vadd.f32 %v1820_v10, %v1781_v34  ;;  %v1827_v56 = vadd.f32 %v1823_v6, %v1784_v37  ;;  %v1831_v58 = vpop.permute.xlu1 %1830  ;;  %v4587_v10 = vld [vmem:[#allocation16_spill] sm:$0xff]  ;;  %v1932_v6 = vrot.slane %v1927_v42, %v3745_v4 }
 0x93c   : > { %v1839_v47 = vsel %vm1836_vm1, %v1829_v17, %v1831_v58  ;;  %2431 = vrot.lane.b32.xlu0 %v3649_v27, %s3103_s25 }
 0x93d   : > { %v1865_v0 = vmul.f32 %v1851_v16, %v1839_v47  ;;  %2433 = vrot.lane.b32.xlu1 %v3652_v28, %s3103_s25  ;;  %v1944_v16 = vrot.slane %v1927_v42, %v3751_v57 }
 0x93e   : > { %v1833_v45 = vpop.permute.xlu0 %1832 }
 0x93f   : > { %v1869_v18 = vadd.f32 %v1865_v0, %v1825_v15  ;;  %v1838_v19 = vsel %vm1836_vm1, %v1831_v58, %v1833_v45  ;;  %v1835_v14 = vpop.permute.xlu1 %1834 }
 0x940   : > { %v1866_v59 = vmul.f32 %v1855_v25, %v1838_v19  ;;  %v1837_v27 = vsel %vm1836_vm1, %v1833_v45, %v1835_v14  ;;  %v1840_v63 = vsel %vm1836_vm1, %v1835_v14, %v1829_v17  ;;  %2469 = vrot.lane.b32.xlu0 %v3654_v29, %s3104_s14  ;;  %v1897_v29 = vrot.slane %v3867_v43, %v3757_v5  ;;  %v4585_v43 = vld [vmem:[#allocation14_spill] sm:$0xff] }
 0x941   : > { %v1864_v28 = vmul.f32 %v1847_v26, %v1840_v63  ;;  %v1867_v51 = vmul.f32 %v1859_v44, %v1837_v27  ;;  %2471 = vrot.lane.b32.xlu1 %v3657_v30, %s3104_s14  ;;  %v4589_v44 = vld [vmem:[#allocation17_spill] sm:$0xff]  ;;  %v4590_v19 = vld [vmem:[#allocation18_spill] sm:$0xff] }
 0x942   : > { %v1870_v20 = vadd.f32 %v1866_v59, %v1826_v49  ;;  %v1873_v11 = vpop.permute.xlu0 %1872  ;;  %v4588_v49 = vld [vmem:[#allocation31_spill] sm:$0xff] }
 0x943   : > { %v1868_v41 = vadd.f32 %v1864_v28, %v1824_v48  ;;  %v1871_v36 = vadd.f32 %v1867_v51, %v1827_v56  ;;  %v1875_v21 = vpop.permute.xlu1 %1874  ;;  %v1970_v17 = vmul.f32 %v3736_v2, %v4588_v49 }
 0x944   : > { %v1883_v12 = vsel %vm1880_vm2, %v1873_v11, %v1875_v21  ;;  %2473 = vrot.lane.b32.xlu0 %v3659_v31, %s3104_s14 }
 0x945   : > { %v1907_v30 = vmul.f32 %v1893_v40, %v1883_v12  ;;  %2475 = vrot.lane.b32.xlu1 %v3662_v32, %s3104_s14  ;;  %v1979_v14 = vrot.slane %v1970_v17, %v3754_v53  ;;  %v1987_v12 = vrot.slane %v1970_v17, %v3751_v57 }
 0x946   : > { %v1877_v35 = vpop.permute.xlu0 %1876 }
 0x947   : > { %v1911_v46 = vadd.f32 %v1907_v30, %v1869_v18  ;;  %v1882_v31 = vsel %vm1880_vm2, %v1875_v21, %v1877_v35  ;;  %v1879_v34 = vpop.permute.xlu1 %1878  ;;  %v1975_v21 = vrot.slane %v1970_v17, %v3745_v4 }
 0x948   : > { %v1908_v37 = vmul.f32 %v1897_v29, %v1882_v31  ;;  %v1881_v1 = vsel %vm1880_vm2, %v1877_v35, %v1879_v34  ;;  %v1884_v32 = vsel %vm1880_vm2, %v1879_v34, %v1873_v11  ;;  %2510 = vrot.lane.b32.xlu0 %v4584_v22, %s3105_s11  ;;  %v1983_v11 = vrot.slane %v1970_v17, %v3757_v5  ;;  %v4593_v31 = vld [vmem:[#allocation21_spill] sm:$0xff] }
 0x949   : > { %v1906_v7 = vmul.f32 %v1889_v38, %v1884_v32  ;;  %v1909_v23 = vmul.f32 %v1901_v39, %v1881_v1  ;;  %2512 = vrot.lane.b32.xlu1 %v4585_v43, %s3105_s11  ;;  %v4594_v1 = vld [vmem:[#allocation22_spill] sm:$0xff]  ;;  %v2021_v32 = vrot.slane %v4588_v49, %v3754_v53 }
 0x94a   : > { %v1912_v13 = vadd.f32 %v1908_v37, %v1870_v20  ;;  %v1915_v33 = vpop.permute.xlu0 %1914  ;;  %v4591_v20 = vld [vmem:[#allocation19_spill] sm:$0xff] }
 0x94b   : > { %v1910_v61 = vadd.f32 %v1906_v7, %v1868_v41  ;;  %v1913_v15 = vadd.f32 %v1909_v23, %v1871_v36  ;;  %v1917_v3 = vpop.permute.xlu1 %1916  ;;  %v4592_v36 = vld [vmem:[#allocation20_spill] sm:$0xff] }
 0x94c   : > { %v1925_v62 = vsel %vm1922_vm3, %v1915_v33, %v1917_v3  ;;  %2514 = vrot.lane.b32.xlu0 %v4586_v52, %s3105_s11  ;;  %v2029_v52 = vrot.slane %v4588_v49, %v3751_v57 }
 0x94d   : > { %v1950_v24 = vmul.f32 %v1936_v60, %v1925_v62  ;;  %2516 = vrot.lane.b32.xlu1 %v4587_v10, %s3105_s11  ;;  %v2017_v62 = vrot.slane %v4588_v49, %v3745_v4 }
 0x94e   : > { %v1919_v48 = vpop.permute.xlu0 %1918 }
 0x94f   : > { %v1954_v56 = vadd.f32 %v1950_v24, %v1911_v46  ;;  %v1924_v58 = vsel %vm1922_vm3, %v1917_v3, %v1919_v48  ;;  %v1921_v47 = vpop.permute.xlu1 %1920  ;;  %v4596_v3 = vld [vmem:[#allocation24_spill] sm:$0xff] }
 0x950   : > { %v1951_v25 = vmul.f32 %v1940_v9, %v1924_v58  ;;  %v1923_v0 = vsel %vm1922_vm3, %v1919_v48, %v1921_v47  ;;  %v1926_v26 = vsel %vm1922_vm3, %v1921_v47, %v1915_v33  ;;  %2552 = vrot.lane.b32.xlu0 %v4589_v44, %s3106_s13  ;;  %v4595_v33 = vld [vmem:[#allocation23_spill] sm:$0xff]  ;;  %v2055_v9 = vmul.f32 %v3748_v55, %v4588_v49 }
 0x951   : > { %v1949_v45 = vmul.f32 %v1932_v6, %v1926_v26  ;;  %v1952_v18 = vmul.f32 %v1944_v16, %v1923_v0  ;;  %2554 = vrot.lane.b32.xlu1 %v4590_v19, %s3106_s13  ;;  %v4597_v58 = vld [vmem:[#allocation27_spill] sm:$0xff]  ;;  %v4598_v0 = vld [vmem:[#allocation25_spill] sm:$0xff] }
 0x952   : > { %v1955_v59 = vadd.f32 %v1951_v25, %v1912_v13  ;;  %v1958_v27 = vpop.permute.xlu0 %1957  ;;  %v2064_v26 = vrot.slane %v2055_v9, %v3754_v53 }
 0x953   : > { %v1953_v63 = vadd.f32 %v1949_v45, %v1910_v61  ;;  %v1956_v28 = vadd.f32 %v1952_v18, %v1913_v15  ;;  %v1960_v51 = vpop.permute.xlu1 %1959  ;;  %v2025_v61 = vrot.slane %v4588_v49, %v3757_v5 }
 0x954   : > { %v1968_v40 = vsel %vm1965_vm4, %v1958_v27, %v1960_v51  ;;  %2556 = vrot.lane.b32.xlu0 %v4591_v20, %s3106_s13 }
 0x955   : > { %v1993_v41 = vmul.f32 %v1979_v14, %v1968_v40  ;;  %2558 = vrot.lane.b32.xlu1 %v4592_v36, %s3106_s13  ;;  %v2072_v40 = vrot.slane %v2055_v9, %v3751_v57 }
 0x956   : > { %v1962_v29 = vpop.permute.xlu0 %1961 }
 0x957   : > { %v1997_v30 = vadd.f32 %v1993_v41, %v1954_v56  ;;  %v1967_v38 = vsel %vm1965_vm4, %v1960_v51, %v1962_v29  ;;  %v1964_v39 = vpop.permute.xlu1 %1963  ;;  %v2060_v51 = vrot.slane %v2055_v9, %v3745_v4 }
 0x958   : > { %v1994_v42 = vmul.f32 %v1983_v11, %v1967_v38  ;;  %v1966_v35 = vsel %vm1965_vm4, %v1962_v29, %v1964_v39  ;;  %v1969_v46 = vsel %vm1965_vm4, %v1964_v39, %v1958_v27  ;;  %2595 = vrot.lane.b32.xlu0 %v4593_v31, %s3107_s16  ;;  %v2068_v27 = vrot.slane %v2055_v9, %v3757_v5  ;;  %v4600_v39 = vld [vmem:[#allocation28_spill] sm:$0xff] }
 0x959   : > { %v1992_v34 = vmul.f32 %v1975_v21, %v1969_v46  ;;  %v1995_v37 = vmul.f32 %v1987_v12, %v1966_v35  ;;  %2597 = vrot.lane.b32.xlu1 %v4594_v1, %s3107_s16  ;;  %v2148_v9 = vrot.slane %v3748_v55, %v3745_v4 }
 0x95a   : > { %v1998_v22 = vadd.f32 %v1994_v42, %v1955_v59  ;;  %v2001_v7 = vpop.permute.xlu0 %2000  ;;  %v2106_v42 = vrot.slane %v3736_v2, %v3754_v53 }
 0x95b   : > { %v1996_v23 = vadd.f32 %v1992_v34, %v1953_v63  ;;  %v1999_v43 = vadd.f32 %v1995_v37, %v1956_v28  ;;  %v2003_v60 = vpop.permute.xlu1 %2002  ;;  %v4599_v28 = vld [vmem:[#allocation26_spill] sm:$0xff] }
 0x95c   : > { %v2011_v13 = vsel %vm2008_vm5, %v2001_v7, %v2003_v60  ;;  %2599 = vrot.lane.b32.xlu0 %v4595_v33, %s3107_s16 }
 0x95d   : > { %v2035_v15 = vmul.f32 %v2021_v32, %v2011_v13  ;;  %2601 = vrot.lane.b32.xlu1 %v4596_v3, %s3107_s16  ;;  %v2110_v32 = vrot.slane %v3736_v2, %v3757_v5 }
 0x95e   : > { %v2005_v24 = vpop.permute.xlu0 %2004 }
 0x95f   : > { %v2039_v10 = vadd.f32 %v2035_v15, %v1997_v30  ;;  %v2010_v6 = vsel %vm2008_vm5, %v2003_v60, %v2005_v24  ;;  %v2007_v16 = vpop.permute.xlu1 %2006 }
 0x960   : > { %v2036_v17 = vmul.f32 %v2025_v61, %v2010_v6  ;;  %v2009_v48 = vsel %vm2008_vm5, %v2005_v24, %v2007_v16  ;;  %v2012_v56 = vsel %vm2008_vm5, %v2007_v16, %v2001_v7  ;;  %2640 = vrot.lane.b32.xlu0 %v4597_v58, %s3108_s30  ;;  %v2102_v7 = vrot.slane %v3736_v2, %v3745_v4  ;;  %v4601_v24 = vld [vmem:[#allocation10_spill] sm:$0xff] }
 0x961   : > { %v2034_v47 = vmul.f32 %v2017_v62, %v2012_v56  ;;  %v2037_v25 = vmul.f32 %v2029_v52, %v2009_v48  ;;  %2636 = vrot.lane.b32.xlu1 %v4598_v0, %s3108_s30  ;;  %v2152_v58 = vrot.slane %v3748_v55, %v3754_v53  ;;  %vm2266_vm5 = vcmp.lt.s32.totalorder %v3740_v50, 119 }
 0x962   : > { %v2040_v44 = vadd.f32 %v2036_v17, %v1998_v22  ;;  %v2043_v45 = vpop.permute.xlu0 %2042 }
 0x963   : > { %v2038_v18 = vadd.f32 %v2034_v47, %v1996_v23  ;;  %v2041_v19 = vadd.f32 %v2037_v25, %v1999_v43  ;;  %v2045_v14 = vpop.permute.xlu1 %2044  ;;  %v2114_v23 = vrot.slane %v3736_v2, %v3751_v57  ;;  %v4602_v25 = vld [vmem:[#allocation11_spill] sm:$0xff] }
 0x964   : > { %v2053_v59 = vsel %vm2050_vm6, %v2043_v45, %v2045_v14 }
 0x965   : > { %v2078_v63 = vmul.f32 %v2064_v26, %v2053_v59  ;;  %2638 = vrot.lane.b32.xlu1 %v4599_v28, %s3108_s30  ;;  %v2156_v26 = vrot.slane %v3748_v55, %v3757_v5 }
 0x966   : > { %v2047_v20 = vpop.permute.xlu0 %2046 }
 0x967   : > { %v2082_v11 = vadd.f32 %v2078_v63, %v2039_v10  ;;  %v2052_v41 = vsel %vm2050_vm6, %v2045_v14, %v2047_v20  ;;  %v2049_v36 = vpop.permute.xlu1 %2048  ;;  %v4604_v14 = vld [vmem:[#allocation12_spill] sm:$0xff] }
 0x968   : > { %v2079_v21 = vmul.f32 %v2068_v27, %v2052_v41  ;;  %v2051_v12 = vsel %vm2050_vm6, %v2047_v20, %v2049_v36  ;;  %v2054_v29 = vsel %vm2050_vm6, %v2049_v36, %v2043_v45  ;;  %v4603_v45 = vld [vmem:[#allocation9_spill] sm:$0xff]  ;;  %v2186_v27 = vmul.f32 %v3851_v8, %v3736_v2 }
 0x969   : > { %v2077_v30 = vmul.f32 %v2060_v51, %v2054_v29  ;;  %v2080_v38 = vmul.f32 %v2072_v40, %v2051_v12  ;;  %2642 = vrot.lane.b32.xlu1 %v4600_v39, %s3108_s30 }
 0x96a   : > { %v2083_v35 = vadd.f32 %v2079_v21, %v2040_v44  ;;  %v2086_v46 = vpop.permute.xlu0 %2085  ;;  %v2160_v44 = vrot.slane %v3748_v55, %v3751_v57  ;;  %v2191_v12 = vrot.slane %v2186_v27, %v3745_v4 }
 0x96b   : > { %v2081_v31 = vadd.f32 %v2077_v30, %v2038_v18  ;;  %v2084_v34 = vadd.f32 %v2080_v38, %v2041_v19  ;;  %v2088_v37 = vpop.permute.xlu1 %2087 }
 0x96c   : > { %v2096_v1 = vsel %vm2093_vm7, %v2086_v46, %v2088_v37 }
 0x96d   : > { %v2120_v22 = vmul.f32 %v2106_v42, %v2096_v1 }
 0x96e   : > { %v2090_v43 = vpop.permute.xlu0 %2089 }
 0x96f   : > { %v2124_v60 = vadd.f32 %v2120_v22, %v2082_v11  ;;  %v2095_v13 = vsel %vm2093_vm7, %v2088_v37, %v2090_v43  ;;  %v2092_v33 = vpop.permute.xlu1 %2091  ;;  %v2203_v37 = vrot.slane %v2186_v27, %v3751_v57 }
 0x970   : > { %v2121_v61 = vmul.f32 %v2110_v32, %v2095_v13  ;;  %v2094_v15 = vsel %vm2093_vm7, %v2090_v43, %v2092_v33  ;;  %v2097_v3 = vsel %vm2093_vm7, %v2092_v33, %v2086_v46  ;;  %v2195_v46 = vrot.slane %v2186_v27, %v3754_v53 }
 0x971   : > { %v2119_v62 = vmul.f32 %v2102_v7, %v2097_v3  ;;  %v2122_v52 = vmul.f32 %v2114_v23, %v2094_v15  ;;  %v2128_v10 = vadd.f32 %v2124_v60, %v4601_v24 }
 0x972   : > { %v2125_v6 = vadd.f32 %v2121_v61, %v2083_v35  ;;  %v2132_v16 = vpop.permute.xlu0 %2131  ;;  %v2233_v61 = vrot.slane %v3851_v8, %v3745_v4 }
 0x973   : > { %v2123_v17 = vadd.f32 %v2119_v62, %v2081_v31  ;;  %v2126_v48 = vadd.f32 %v2122_v52, %v2084_v34  ;;  %v2134_v56 = vpop.permute.xlu1 %2133  ;;  %v2199_v34 = vrot.slane %v2186_v27, %v3757_v5 }
 0x974   : > { %v2142_v47 = vsel %vm2139_vm8, %v2132_v16, %v2134_v56  ;;  %v2129_v0 = vadd.f32 %v2125_v6, %v4602_v25 }
 0x975   : > { %v2127_v18 = vadd.f32 %v2123_v17, %v4603_v45  ;;  %v2165_v19 = vmul.f32 %v2148_v9, %v2142_v47  ;;  %v2130_v59 = vadd.f32 %v2126_v48, %v4604_v14  ;;  %v2245_v17 = vrot.slane %v3851_v8, %v3751_v57 }
 0x976   : > { %v2136_v63 = vpop.permute.xlu0 %2135 }
 0x977   : > { %v2169_v28 = vadd.f32 %v2165_v19, %v2127_v18  ;;  %v2141_v51 = vsel %vm2139_vm8, %v2134_v56, %v2136_v63  ;;  %v2138_v40 = vpop.permute.xlu1 %2137 }
 0x978   : > { %v2166_v20 = vmul.f32 %v2152_v58, %v2141_v51  ;;  %v2140_v11 = vsel %vm2139_vm8, %v2136_v63, %v2138_v40  ;;  %v2143_v41 = vsel %vm2139_vm8, %v2138_v40, %v2132_v16  ;;  %v2241_v16 = vrot.slane %v3851_v8, %v3757_v5 }
 0x979   : > { %v2167_v36 = vmul.f32 %v2156_v26, %v2140_v11  ;;  %v2168_v21 = vmul.f32 %v2160_v44, %v2143_v41 }
 0x97a   : > { %v2170_v29 = vadd.f32 %v2166_v20, %v2128_v10  ;;  %v2174_v30 = vpop.permute.xlu0 %2173  ;;  %v2237_v10 = vrot.slane %v3851_v8, %v3754_v53 }
 0x97b   : > { %v2171_v38 = vadd.f32 %v2167_v36, %v2129_v0  ;;  %v2172_v39 = vadd.f32 %v2168_v21, %v2130_v59  ;;  %v2176_v42 = vpop.permute.xlu1 %2175 }
 0x97c   : > { %v2184_v35 = vsel %vm2181_vm9, %v2174_v30, %v2176_v42 }
 0x97d   : > { %v2208_v31 = vmul.f32 %v2191_v12, %v2184_v35 }
 0x97e   : > { %v2178_v1 = vpop.permute.xlu0 %2177 }
 0x97f   : > { %v2212_v32 = vadd.f32 %v2208_v31, %v2169_v28  ;;  %v2183_v22 = vsel %vm2181_vm9, %v2176_v42, %v2178_v1  ;;  %v2180_v7 = vpop.permute.xlu1 %2179 }
 0x980   : > { %v2209_v23 = vmul.f32 %v2195_v46, %v2183_v22  ;;  %v2182_v43 = vsel %vm2181_vm9, %v2178_v1, %v2180_v7  ;;  %v2185_v60 = vsel %vm2181_vm9, %v2180_v7, %v2174_v30  ;;  %v4150_v1 = vmul.f32 %v3748_v55, %v3851_v8 }
 0x981   : > { %v2210_v13 = vmul.f32 %v2199_v34, %v2182_v43  ;;  %v2211_v33 = vmul.f32 %v2203_v37, %v2185_v60 }
 0x982   : > { %v2213_v15 = vadd.f32 %v2209_v23, %v2170_v29  ;;  %v2217_v3 = vpop.permute.xlu0 %2216  ;;  %v2280_v43 = vrot.slane %v4150_v1, %v3754_v53  ;;  %v2284_v60 = vrot.slane %v4150_v1, %v3757_v5 }
 0x983   : > { %v2214_v62 = vadd.f32 %v2210_v13, %v2171_v38  ;;  %v2215_v52 = vadd.f32 %v2211_v33, %v2172_v39  ;;  %v2219_v9 = vpop.permute.xlu1 %2218  ;;  %v4605_v39 = vld [vmem:[#allocation30_spill] sm:$0xff] }
 0x984   : > { %v2227_v24 = vsel %vm2224_vm15, %v2217_v3, %v2219_v9  ;;  %vm1563_vm4 = vcmp.le.f32.partialorder %v4605_v39, 6.0 }
 0x985   : > { %v2250_v6 = vmul.f32 %v2233_v61, %v2227_v24  ;;  %v4136_v35 = vsel %vm1563_vm4, 1.0, %v4583_v54  ;;  %v2288_v61 = vrot.slane %v4150_v1, %v3751_v57 }
 0x986   : > { %v2221_v48 = vpop.permute.xlu0 %2220  ;;  %v4144_v34 = vmul.f32 %v4136_v35, %v4588_v49  ;;  %v2276_v49 = vrot.slane %v4150_v1, %v3745_v4  ;;  %v4175_v13 = vmul.f32 %v4136_v35, %v3736_v2  ;;  %v4179_v33 = vmul.f32 %v3851_v8, %v4136_v35 }
 0x987   : > { %v4090_v56 = vadd.f32 %v2250_v6, %v2212_v32  ;;  %v2226_v58 = vsel %vm2224_vm15, %v2219_v9, %v2221_v48  ;;  %v2223_v47 = vpop.permute.xlu1 %2222 }
 0x988   : > { %v2251_v25 = vmul.f32 %v2237_v10, %v2226_v58  ;;  %v2225_v0 = vsel %vm2224_vm15, %v2221_v48, %v2223_v47  ;;  %v2228_v26 = vsel %vm2224_vm15, %v2223_v47, %v2217_v3  ;;  %v4156_v54 = vmul.f32 %v4144_v34, %v3736_v2 }
 0x989   : > { %v2252_v44 = vmul.f32 %v2241_v16, %v2225_v0  ;;  %v2253_v45 = vmul.f32 %v2245_v17, %v2228_v26  ;;  %v4165_v7 = vmul.f32 %v4144_v34, %v3748_v55  ;;  %v2360_v9 = vrot.slane %v4144_v34, %v3745_v4 }
 0x98a   : > { %v4098_v18 = vadd.f32 %v2251_v25, %v2213_v15  ;;  %v4100_v19 = vpop.permute.xlu0 %2258  ;;  %v2319_v15 = vrot.slane %v4156_v54, %v3745_v4  ;;  %v2323_v3 = vrot.slane %v4156_v54, %v3754_v53  ;;  %v2364_v8 = vrot.slane %v4144_v34, %v3754_v53 }
 0x98b   : > { %v4102_v14 = vadd.f32 %v2252_v44, %v2214_v62  ;;  %v4104_v59 = vadd.f32 %v2253_v45, %v2215_v52  ;;  %v2261_v27 = vpop.permute.xlu1 %2260  ;;  %v2327_v62 = vrot.slane %v4156_v54, %v3757_v5  ;;  %v2331_v52 = vrot.slane %v4156_v54, %v3751_v57 }
 0x98c   : > { %v4199_v10 = vmul.f32 %v3748_v55, %v4136_v35  ;;  %v2368_v6 = vrot.slane %v4144_v34, %v3757_v5  ;;  %v2372_v16 = vrot.slane %v4144_v34, %v3751_v57  ;;  %v4219_v26 = vmul.f32 %v4179_v33, %v3736_v2 }
 0x98d   : > { %v2269_v39 = vsel %vm2266_vm5, %v4100_v19, %v2261_v27  ;;  %v4271_v45 = vmul.f32 %v4179_v33, %v3748_v55 }
 0x98e   : > { %v4106_v63 = vpop.permute.xlu0 %2262  ;;  %v2293_v47 = vmul.f32 %v2276_v49, %v2269_v39  ;;  %v2623_v39 = vrot.slane %v4179_v33, %v3751_v57 }
 0x98f   : > { %v4108_v28 = vpop.permute.xlu1 %2264  ;;  %v2268_v1 = vsel %vm2266_vm5, %v2261_v27, %v4106_v63 }
 0x990   : > { %v2267_v0 = vsel %vm2266_vm5, %v4106_v63, %v4108_v28  ;;  %v2270_v2 = vsel %vm2266_vm5, %v4108_v28, %v4100_v19  ;;  %v2294_v48 = vmul.f32 %v2280_v43, %v2268_v1 }
 0x991   : > { %v2295_v1 = vmul.f32 %v2284_v60, %v2267_v0  ;;  %v2296_v44 = vmul.f32 %v2288_v61, %v2270_v2  ;;  %v2297_v61 = vadd.f32 %v2293_v47, %v4090_v56 }
 0x992   : > { %v4110_v51 = vpop.permute.xlu0 %2301 }
 0x993   : > { %v4112_v40 = vpop.permute.xlu1 %2303 }
 0x994   : > { %v2311_v27 = vsel %vm1579_vm11, %v4110_v51, %v4112_v40 }
 0x995   : > { %v2336_v17 = vmul.f32 %v2319_v15, %v2311_v27 }
 0x996   : > { %v4114_v20 = vpop.permute.xlu0 %2305 }
 0x997   : > { %v4116_v11 = vpop.permute.xlu1 %2307  ;;  %v2310_v63 = vsel %vm1579_vm11, %v4112_v40, %v4114_v20 }
 0x998   : > { %v2309_v40 = vsel %vm1579_vm11, %v4114_v20, %v4116_v11  ;;  %v2312_v55 = vsel %vm1579_vm11, %v4116_v11, %v4110_v51  ;;  %v2337_v49 = vmul.f32 %v2323_v3, %v2310_v63  ;;  %v2298_v20 = vadd.f32 %v2294_v48, %v4098_v18 }
 0x999   : > { %v2653_v51 = vrot.slane %v4271_v45, %v3745_v4  ;;  %v2657_v11 = vrot.slane %v4271_v45, %v3754_v53  ;;  %v2338_v15 = vmul.f32 %v2327_v62, %v2309_v40  ;;  %v2339_v3 = vmul.f32 %v2331_v52, %v2312_v55 }
 0x99a   : > { %v4118_v41 = vpop.permute.xlu0 %2344  ;;  %v2340_v48 = vadd.f32 %v2336_v17, %v2297_v61  ;;  %v4610_v61 = vrot.slane %v4175_v13, %v3745_v4 }
 0x99b   : > { %v4120_v36 = vpop.permute.xlu1 %2346 }
 0x99c   : > { %v2354_v43 = vsel %vm1623_vm10, %v4118_v41, %v4120_v36 }
 0x99e   : > { %v4122_v21 = vpop.permute.xlu0 %2348 }
 0x99f   : > { %v4124_v12 = vpop.permute.xlu1 %2350  ;;  %v2353_v60 = vsel %vm1623_vm10, %v4120_v36, %v4122_v21  ;;  %v2377_v36 = vmul.f32 %v2360_v9, %v2354_v43  ;;  %v2341_v9 = vadd.f32 %v2337_v49, %v2298_v20  ;;  %v4608_v49 = vrot.slane %v4165_v7, %v3757_v5 }
 0x9a0   : > { %v2352_v2 = vsel %vm1623_vm10, %v4122_v21, %v4124_v12  ;;  %v2355_v56 = vsel %vm1623_vm10, %v4124_v12, %v4118_v41  ;;  %v2378_v62 = vmul.f32 %v2364_v8, %v2353_v60  ;;  %v2299_v41 = vadd.f32 %v2295_v1, %v4102_v14 }
 0x9a1   : > { %v2300_v12 = vadd.f32 %v2296_v44, %v4104_v59  ;;  %v2379_v8 = vmul.f32 %v2368_v6, %v2352_v2  ;;  %v2380_v47 = vmul.f32 %v2372_v16, %v2355_v56  ;;  %v4607_v6 = vrot.slane %v4165_v7, %v3754_v53 }
 0x9a2   : > { %v4126_v29 = vpop.permute.xlu0 %2385  ;;  %v2381_v63 = vadd.f32 %v2377_v36, %v2340_v48  ;;  %v2382_v55 = vadd.f32 %v2378_v62, %v2341_v9  ;;  %v4609_v1 = vrot.slane %v4165_v7, %v3751_v57  ;;  %v4614_v9 = vrot.slane %v4136_v35, %v3745_v4 }
 0x9a3   : > { %v4128_v30 = vpop.permute.xlu1 %2387  ;;  %v2343_v44 = vadd.f32 %v2339_v3, %v2300_v12 }
 0x9a4   : > { %v2395_v52 = vsel %vm1665_vm12, %v4126_v29, %v4128_v30 }
 0x9a6   : > { %v4130_v38 = vpop.permute.xlu0 %2389 }
 0x9a7   : > { %v4133_v42 = vpop.permute.xlu1 %2391  ;;  %v2394_v21 = vsel %vm1665_vm12, %v4128_v30, %v4130_v38  ;;  %v4606_v30 = vrot.slane %v4165_v7, %v3745_v4 }
 0x9a8   : > { %v2393_v27 = vsel %vm1665_vm12, %v4130_v38, %v4133_v42  ;;  %v2396_v14 = vsel %vm1665_vm12, %v4133_v42, %v4126_v29  ;;  %v2420_v34 = vmul.f32 %v4607_v6, %v2394_v21  ;;  %v2342_v42 = vadd.f32 %v2338_v15, %v2299_v41 }
 0x9a9   : > { %v2419_v17 = vmul.f32 %v4606_v30, %v2395_v52  ;;  %v2421_v43 = vmul.f32 %v4608_v49, %v2393_v27  ;;  %v2422_v40 = vmul.f32 %v4609_v1, %v2396_v14  ;;  %v4611_v15 = vrot.slane %v4175_v13, %v3754_v53 }
 0x9aa   : > { %v4138_v46 = vpop.permute.xlu0 %2427  ;;  %v2424_v36 = vadd.f32 %v2420_v34, %v2382_v55  ;;  %v4612_v52 = vrot.slane %v4175_v13, %v3757_v5  ;;  %v4613_v41 = vrot.slane %v4175_v13, %v3751_v57  ;;  %v4617_v34 = vrot.slane %v4136_v35, %v3751_v57 }
 0x9ab   : > { %v4140_v31 = vpop.permute.xlu1 %2429  ;;  %v2423_v56 = vadd.f32 %v2419_v17, %v2381_v63  ;;  %v4616_v17 = vrot.slane %v4136_v35, %v3757_v5  ;;  %v4618_v63 = vrot.slane %v4199_v10, %v3745_v4 }
 0x9ac   : > { %v2437_v16 = vsel %vm1708_vm13, %v4138_v46, %v4140_v31 }
 0x9ad   : > { %v2461_v20 = vmul.f32 %v4610_v61, %v2437_v16  ;;  %v4621_v61 = vrot.slane %v4199_v10, %v3751_v57 }
 0x9ae   : > { %v4146_v37 = vpop.permute.xlu0 %2431 }
 0x9af   : > { %v4152_v32 = vpop.permute.xlu1 %2433  ;;  %v2436_v38 = vsel %vm1708_vm13, %v4140_v31, %v4146_v37 }
 0x9b0   : > { %v2435_v60 = vsel %vm1708_vm13, %v4146_v37, %v4152_v32  ;;  %v2438_v31 = vsel %vm1708_vm13, %v4152_v32, %v4138_v46  ;;  %v2462_v3 = vmul.f32 %v4611_v15, %v2436_v38  ;;  %v2383_v46 = vadd.f32 %v2379_v8, %v2342_v42 }
 0x9b1   : > { %v2384_v32 = vadd.f32 %v2380_v47, %v2343_v44  ;;  %v2463_v21 = vmul.f32 %v4612_v52, %v2435_v60  ;;  %v2464_v12 = vmul.f32 %v4613_v41, %v2438_v31  ;;  %v4615_v47 = vrot.slane %v4136_v35, %v3754_v53 }
 0x9b2   : > { %v4158_v22 = vpop.permute.xlu0 %2469  ;;  %v2425_v14 = vadd.f32 %v2421_v43, %v2383_v46  ;;  %v2466_v30 = vadd.f32 %v2462_v3, %v2424_v36  ;;  %v4619_v35 = vrot.slane %v4199_v10, %v3754_v53  ;;  %v4620_v60 = vrot.slane %v4199_v10, %v3757_v5 }
 0x9b3   : > { %v4167_v23 = vpop.permute.xlu1 %2471  ;;  %v4624_v41 = vrot.slane %v4179_v33, %v3745_v4 }
 0x9b4   : > { %v2479_v7 = vsel %vm1751_vm14, %v4158_v22, %v4167_v23  ;;  %v2467_v1 = vadd.f32 %v2463_v21, %v2425_v14 }
 0x9b5   : > { %v2502_v8 = vmul.f32 %v4614_v9, %v2479_v7  ;;  %v4626_v9 = vrot.slane %v4219_v26, %v3757_v5 }
 0x9b6   : > { %v4195_v24 = vpop.permute.xlu0 %2473 }
 0x9b7   : > { %v4209_v58 = vpop.permute.xlu1 %2475  ;;  %v2478_v37 = vsel %vm1751_vm14, %v4167_v23, %v4195_v24 }
 0x9b8   : > { %v2477_v48 = vsel %vm1751_vm14, %v4195_v24, %v4209_v58  ;;  %v2480_v23 = vsel %vm1751_vm14, %v4209_v58, %v4158_v22  ;;  %v2503_v27 = vmul.f32 %v4615_v47, %v2478_v37  ;;  %v2426_v22 = vadd.f32 %v2422_v40, %v2384_v32 }
 0x9b9   : > { %v2465_v58 = vadd.f32 %v2461_v20, %v2423_v56  ;;  %v2504_v6 = vmul.f32 %v4616_v17, %v2477_v48  ;;  %v2505_v16 = vmul.f32 %v4617_v34, %v2480_v23  ;;  %v4623_v37 = vrot.slane %v4219_v26, %v3754_v53  ;;  %v2701_v34 = vld [vmem:[%s3227_s15] sm:$0xff] }
 0x9ba   : > { %v4235_v25 = vpop.permute.xlu0 %2510  ;;  %v2507_v40 = vadd.f32 %v2503_v27, %v2466_v30  ;;  %v4625_v48 = vrot.slane %v4179_v33, %v3754_v53  ;;  %v4627_v47 = vrot.slane %v4219_v26, %v3751_v57  ;;  %v4628_v17 = vrot.slane %v4179_v33, %v3757_v5  ;;  %v2702_v53 = vld [vmem:[%s3227_s15 + $0x8] sm:$0xff] }
 0x9bb   : > { %v4245_v54 = vpop.permute.xlu1 %2512  ;;  %v2508_v36 = vadd.f32 %v2504_v6, %v2467_v1 }
 0x9bc   : > { %v2520_v13 = vsel %vm1793_vm0, %v4235_v25, %v4245_v54 }
 0x9bd   : > { %v2544_v55 = vmul.f32 %v4618_v63, %v2520_v13  ;;  %v2661_v13 = vrot.slane %v4271_v45, %v3757_v5 }
 0x9be   : > { %v4281_v19 = vpop.permute.xlu0 %2514 }
 0x9bf   : > { %v4283_v28 = vpop.permute.xlu1 %2516  ;;  %v2519_v24 = vsel %vm1793_vm0, %v4245_v54, %v4281_v19 }
 0x9c0   : > { %v2518_v38 = vsel %vm1793_vm0, %v4281_v19, %v4283_v28  ;;  %v2521_v54 = vsel %vm1793_vm0, %v4283_v28, %v4235_v25  ;;  %v2545_v49 = vmul.f32 %v4619_v35, %v2519_v24  ;;  %v2468_v25 = vadd.f32 %v2464_v12, %v2426_v22 }
 0x9c1   : > { %v2506_v28 = vadd.f32 %v2502_v8, %v2465_v58  ;;  %v2546_v31 = vmul.f32 %v4620_v60, %v2518_v38  ;;  %v2547_v20 = vmul.f32 %v4621_v61, %v2521_v54  ;;  %v2665_v24 = vrot.slane %v4271_v45, %v3751_v57 }
 0x9c2   : > { %v4311_v0 = vpop.permute.xlu0 %2552  ;;  %v2549_v21 = vadd.f32 %v2545_v49, %v2507_v40  ;;  %v2706_v61 = vcombine.high %v2702_v53, %v2702_v53 }
 0x9c3   : > { %v2555_v18 = vpop.permute.xlu1 %2554  ;;  %v2548_v52 = vadd.f32 %v2544_v55, %v2506_v28  ;;  %v2550_v14 = vadd.f32 %v2546_v31, %v2508_v36 }
 0x9c4   : > { %v2562_v19 = vsel %vm1836_vm1, %v4311_v0, %v2555_v18 }
 0x9c6   : > { %v2557_v59 = vpop.permute.xlu0 %2556 }
 0x9c7   : > { %v2559_v29 = vpop.permute.xlu1 %2558  ;;  %v2561_v43 = vsel %vm1836_vm1, %v2555_v18, %v2557_v59  ;;  %v4622_v18 = vrot.slane %v4219_v26, %v3745_v4  ;;  %v4629_v4 = vld [vmem:[#allocation29_spill] sm:$0xff] }
 0x9c8   : > { %v2588_v46 = vmul.f32 %v4623_v37, %v2561_v43  ;;  %v2560_v32 = vsel %vm1836_vm1, %v2557_v59, %v2559_v29  ;;  %v2563_v10 = vsel %vm1836_vm1, %v2559_v29, %v4311_v0 }
 0x9c9   : > { %v2587_v7 = vmul.f32 %v4622_v18, %v2562_v19  ;;  %v2589_v8 = vmul.f32 %v4626_v9, %v2560_v32  ;;  %v2590_v27 = vmul.f32 %v4627_v47, %v2563_v10 }
 0x9ca   : > { %v2596_v2 = vpop.permute.xlu0 %2595  ;;  %v2592_v58 = vadd.f32 %v2588_v46, %v2549_v21 }
 0x9cb   : > { %v2598_v62 = vpop.permute.xlu1 %2597  ;;  %v2591_v22 = vadd.f32 %v2587_v7, %v2548_v52  ;;  %v2593_v33 = vadd.f32 %v2589_v8, %v2550_v14 }
 0x9cc   : > { %v2605_v15 = vsel %vm1880_vm2, %v2596_v2, %v2598_v62 }
 0x9cd   : > { %v2628_v12 = vmul.f32 %v4624_v41, %v2605_v15 }
 0x9ce   : > { %v2600_v42 = vpop.permute.xlu0 %2599 }
 0x9cf   : > { %v2602_v44 = vpop.permute.xlu1 %2601  ;;  %v2604_v3 = vsel %vm1880_vm2, %v2598_v62, %v2600_v42  ;;  %v2509_v62 = vadd.f32 %v2505_v16, %v2468_v25  ;;  %v2632_v54 = vadd.f32 %v2628_v12, %v2591_v22 }
 0x9d0   : > { %v2629_v23 = vmul.f32 %v4625_v48, %v2604_v3  ;;  %v2603_v59 = vsel %vm1880_vm2, %v2600_v42, %v2602_v44  ;;  %v2606_v0 = vsel %vm1880_vm2, %v2602_v44, %v2596_v2  ;;  %v2705_v44 = vcombine.high %v2701_v34, %v2701_v34 }
 0x9d1   : > { %v2551_v2 = vadd.f32 %v2547_v20, %v2509_v62  ;;  %v2630_v6 = vmul.f32 %v4628_v17, %v2603_v59  ;;  %v2631_v26 = vmul.f32 %v2623_v39, %v2606_v0 }
 0x9d2   : > { %v2641_v29 = vpop.permute.xlu0 %2640  ;;  %v2633_v42 = vadd.f32 %v2629_v23, %v2592_v58 }
 0x9d3   : > { %v2637_v56 = vpop.permute.xlu1 %2636  ;;  %v2594_v39 = vadd.f32 %v2590_v27, %v2551_v2  ;;  %v2634_v49 = vadd.f32 %v2630_v6, %v2593_v33 }
 0x9d5   : > { %v2635_v19 = vadd.f32 %v2631_v26, %v2594_v39 }
 0x9d7   : > { %v2639_v30 = vpop.permute.xlu1 %2638 }
 0x9d8   : > { %v2645_v16 = vsel %vm1922_vm3, %v2639_v30, %v2641_v29  ;;  %v2646_v38 = vsel %vm1922_vm3, %v2637_v56, %v2639_v30 }
 0x9d9   : > { %v2670_v5 = vmul.f32 %v2653_v51, %v2646_v38  ;;  %v2671_v57 = vmul.f32 %v2657_v11, %v2645_v16 }
 0x9db   : > { %v2674_v63 = vadd.f32 %v2670_v5, %v2632_v54  ;;  %v2675_v55 = vadd.f32 %v2671_v57, %v2633_v42  ;;  %v2643_v35 = vpop.permute.xlu1 %2642 }
 0x9dc   : > { %v2644_v43 = vsel %vm1922_vm3, %v2641_v29, %v2643_v35  ;;  %v2647_v1 = vsel %vm1922_vm3, %v2643_v35, %v2637_v56 }
 0x9dd   : > { %v2684_v51 = vadd.f32 %v4629_v4, %v2674_v63  ;;  %v2685_v25 = vadd.f32 %v4629_v4, %v2675_v55  ;;  %v2672_v45 = vmul.f32 %v2661_v13, %v2644_v43  ;;  %v2673_v11 = vmul.f32 %v2665_v24, %v2647_v1 }
 0x9df   : > { %2693 = vst [vmem:[%s2692_s10] sm:$0xff] %v2684_v51  ;;  %2694 = vst [vmem:[%s2692_s10 + $0x8] sm:$0xff] %v2685_v25  ;;  %v2697_v28 = vmul.f32 0.2, %v2684_v51  ;;  %v2698_v40 = vmul.f32 0.2, %v2685_v25  ;;  %v2676_v60 = vadd.f32 %v2672_v45, %v2634_v49  ;;  %v2677_v31 = vadd.f32 %v2673_v11, %v2635_v19 }
 0x9e1   : > { %v2709_v20 = vadd.f32 %v2701_v34, %v2697_v28  ;;  %v2710_v50 = vadd.f32 %v2705_v44, %v2698_v40  ;;  %v2686_v15 = vadd.f32 %v4629_v4, %v2676_v60  ;;  %v2687_v3 = vadd.f32 %v4629_v4, %v2677_v31 }
 0x9e3   : > { %v2717_v18 = vcombine.low %v2709_v20, %v2710_v50  ;;  %2695 = vst [vmem:[%s2692_s10 + $0x10] sm:$0xff] %v2686_v15  ;;  %2696 = vst [vmem:[%s2692_s10 + $0x18] sm:$0xff] %v2687_v3  ;;  %v2699_v7 = vmul.f32 0.2, %v2686_v15  ;;  %v2700_v37 = vmul.f32 0.2, %v2687_v3 }
 0x9e5   : > { %2721 = vst [vmem:[%s3232_s21] sm:$0xff] %v2717_v18  ;;  %v2711_v46 = vadd.f32 %v2702_v53, %v2699_v7  ;;  %v2712_v32 = vadd.f32 %v2706_v61, %v2700_v37 }
 0x9e7   : > { %v2718_v10 = vcombine.low %v2711_v46, %v2712_v32 }
 0x9e9   : > { %2722 = vst [vmem:[%s3232_s21 + $0x8] sm:$0xff] %v2718_v10 }
 0x9ea PF: > { %s18_s9 = sadd.s32 1, %s3090_s9   ;;  %s4630_s28 = sld [smem:[#allocation6_spill]] }
 0x9eb   : > { %p15_p5 = scmp.ge.s32.totalorder %s18_s9, 12   ;;  %s4631_s15 = sld [smem:[#allocation7_spill]] }
 0x9ec   : > { %s4632_s30 = sld [smem:[#allocation8_spill]]  ;;  %s4633_s27 = smov %s3082_s29 }
 0x9ed   :  { %17 = sbr.rel (!%p15_p5) target bundleno = 3 (0x3), region = 160 }
 0x9f1   : > { %s4634_s29 = smov %s4631_s15 }

</bundles_post_ra>
